<compile_context>
chip_gen: v7x
topology: tpu7x:2x2x1
jax: 0.10.0
libtpu: 0.0.40
codegen_flags: <defaults>
</compile_context>

<pallas_src>
import functools

import jax
import jax.numpy as jnp
from jax.experimental import pallas as pl
from jax.experimental.pallas import tpu as pltpu


def _round_up(x, m):
    return (x + m - 1) // m * m


def _vmem_budget(block_bytes):
    """Scoped-VMEM request derived from the real per-step working set.

    Generous floor (16 MiB) so the compiler has headroom, ceiling 32 MiB so
    v7x's 64 MiB physical VMEM keeps room for double-buffered inputs."""
    return int(min(max(4 * block_bytes + (2 << 20), 16 << 20), 32 << 20))


# ----------------------------- Pallas kernel --------------------------------

def _fused_layer_kernel(x_ref, w_ref, b_ref, *rest, bn, has_res, act, eps):
    """One M-tile of a whole conv layer.

    acc = X @ W + b          (bf16 MXU inputs, f32 accumulation, stays in VMEM)
    if bn:      acc = (acc - mean) * rsqrt(var + eps) * gamma + beta
                (biased training-mode batch stats over the resident M rows)
    if has_res: acc += residual
    acc = act(acc); single store, cast to the output dtype only at the store
    (f32 epilogue math everywhere -- v5e has no bf16 VALUs).
    """
    o_ref = rest[-1]
    i = 0
    if bn:
        g_ref, beta_ref = rest[0], rest[1]
        i = 2
    if has_res:
        r_ref = rest[i]

    acc = jnp.dot(x_ref[...], w_ref[...], preferred_element_type=jnp.float32)
    acc = acc + b_ref[...]
    if bn:
        mean = jnp.mean(acc, axis=0, keepdims=True)
        ex2 = jnp.mean(acc * acc, axis=0, keepdims=True)
        var = jnp.maximum(ex2 - mean * mean, 0.0)       # biased batch variance
        scale = jax.lax.rsqrt(var + eps) * g_ref[...]
        acc = (acc - mean) * scale + beta_ref[...]
    if has_res:
        acc = acc + r_ref[...].astype(jnp.float32)
    if act == "relu":
        acc = jnp.maximum(acc, 0.0)
    elif act == "sigmoid":
        acc = jax.nn.sigmoid(acc)
    o_ref[...] = acc.astype(o_ref.dtype)


# ----------------------------- wrappers --------------------------------------

def _im2col(x, kh, kw, stride, padding):
    """x: [N,H,W,C] -> ([N*Ho*Wo, kh*kw*C], (N,Ho,Wo)); K order = (kh, kw, cin).

    TODO(synk): replace the materialized im2col with in-kernel tap accumulation
    (shifted pl.ds reads over a K-tap grid axis) -- only matters at >=112x112.
    """
    N, H, W, C = x.shape
    xp = jnp.pad(x, ((0, 0), (padding, padding), (padding, padding), (0, 0)))
    Ho = (H + 2 * padding - kh) // stride + 1
    Wo = (W + 2 * padding - kw) // stride + 1
    cols = []
    for i in range(kh):
        for j in range(kw):
            cols.append(jax.lax.slice(
                xp, (0, i, j, 0),
                (N, i + (Ho - 1) * stride + 1, j + (Wo - 1) * stride + 1, C),
                (1, stride, stride, 1)))
    cols = jnp.concatenate(cols, axis=-1)
    return cols.reshape(N * Ho * Wo, kh * kw * C), (N, Ho, Wo)


def conv_bn_act(x, w, b=None, *, stride=1, padding=1, bn=None, residual=None,
                act="none", out_dtype=jnp.bfloat16):
    """Fused conv (+bias) (+training-mode BN) (+residual add) (+activation).

    x: [N,H,W,Cin] (bf16), w: [KH,KW,Cin,Cout] f32.  One pallas_call per layer;
    the f32 GEMM accumulator never touches HBM.
    """
    kh, kw, cin, cout = w.shape
    if x.dtype != jnp.bfloat16:
        x = x.astype(jnp.bfloat16)
    N = x.shape[0]
    if kh == 1 and kw == 1 and padding == 0:
        sl = x[:, ::stride, ::stride, :]
        Ho, Wo = sl.shape[1], sl.shape[2]
        cols = sl.reshape(N * Ho * Wo, cin)
    else:
        cols, (N, Ho, Wo) = _im2col(x, kh, kw, stride, padding)
    M, K = cols.shape
    wb = w.reshape(K, cout).astype(jnp.bfloat16)
    if b is None:
        b = jnp.zeros((cout,), jnp.float32)
    b2 = b.astype(jnp.float32).reshape(1, cout)

    has_bn = bn is not None
    has_res = residual is not None

    if has_bn:
        # Batch statistics need every row resident -> single sequential step.
        # (All BN layers in this net have M in {32, 128, 512}; never padded,
        #  so padded rows cannot bias the statistics.)
        TM = Mp = M
    else:
        TM = 256 if M >= 512 else M     # >=2 parallel tiles on the big layers
        Mp = _round_up(M, TM)
        if Mp != M:
            cols = jnp.pad(cols, ((0, Mp - M), (0, 0)))
    n_tiles = Mp // TM

    in_specs = [pl.BlockSpec((TM, K), lambda i: (i, 0)),
                pl.BlockSpec((K, cout), lambda i: (0, 0)),   # weights resident
                pl.BlockSpec((1, cout), lambda i: (0, 0))]
    args = [cols, wb, b2]
    if has_bn:
        gamma, beta = bn
        in_specs += [pl.BlockSpec((1, cout), lambda i: (0, 0)),
                     pl.BlockSpec((1, cout), lambda i: (0, 0))]
        args += [gamma.astype(jnp.float32).reshape(1, cout),
                 beta.astype(jnp.float32).reshape(1, cout)]
    if has_res:
        r2 = residual.astype(jnp.bfloat16).reshape(M, cout)
        if Mp != M:
            r2 = jnp.pad(r2, ((0, Mp - M), (0, 0)))
        in_specs.append(pl.BlockSpec((TM, cout), lambda i: (i, 0)))
        args.append(r2)

    out_isz = jnp.dtype(out_dtype).itemsize
    block_bytes = (TM * K * 2 + K * cout * 2 + cout * 4
                   + (2 * cout * 4 if has_bn else 0)
                   + (TM * cout * 2 if has_res else 0)
                   + TM * cout * out_isz)
    flops = 2 * Mp * K * cout
    trans = Mp * cout if act == "sigmoid" else (cout if has_bn else 0)
    bytes_acc = (Mp * K + K * cout) * 2 + Mp * cout * out_isz

    y = pl.pallas_call(
        functools.partial(_fused_layer_kernel, bn=has_bn, has_res=has_res,
                          act=act, eps=1e-5),
        out_shape=jax.ShapeDtypeStruct((Mp, cout), out_dtype),
        grid=(n_tiles,),
        in_specs=in_specs,
        out_specs=pl.BlockSpec((TM, cout), lambda i: (i, 0)),
        compiler_params=pltpu.CompilerParams(
            # BN stats need the whole M in one step -> keep it "arbitrary"
            # (do NOT parallelize that axis); independent non-BN tiles are
            # "parallel" for v7x megacore.
            dimension_semantics=("arbitrary",) if has_bn else ("parallel",),
            vmem_limit_bytes=_vmem_budget(block_bytes)),
        cost_estimate=pl.CostEstimate(flops=flops, transcendentals=trans,
                                      bytes_accessed=bytes_acc),
    )(*args)
    if Mp != M:
        y = y[:M]
    return y.reshape(N, Ho, Wo, cout)


def maxpool_3x3_s2_p1(x):
    """3x3 / stride-2 / pad-1 max pool as a fused jnp.maximum chain (mem-bound)."""
    N, H, W, C = x.shape
    xp = jnp.pad(x, ((0, 0), (1, 1), (1, 1), (0, 0)), constant_values=-jnp.inf)
    Ho = (H + 2 - 3) // 2 + 1
    Wo = (W + 2 - 3) // 2 + 1
    out = None
    for i in range(3):
        for j in range(3):
            tap = jax.lax.slice(
                xp, (0, i, j, 0),
                (N, i + (Ho - 1) * 2 + 1, j + (Wo - 1) * 2 + 1, C),
                (1, 2, 2, 1))
            out = tap if out is None else jnp.maximum(out, tap)
    return out


def upsample2x(x):
    # nn.Upsample(scale_factor=2), default mode='nearest'.
    # TODO(synk): fuse the nearest-neighbor read into the consumer conv's
    # im2col / index_map instead of materializing the 4x-larger activation.
    return jnp.repeat(jnp.repeat(x, 2, axis=1), 2, axis=2)


# ----------------------------- parameters ------------------------------------

def _conv_w(key, kh, kw, cin, cout):
    fan_in = kh * kw * cin
    return jax.random.normal(key, (kh, kw, cin, cout), jnp.float32) / jnp.sqrt(
        jnp.float32(fan_in))


def init_params(key):
    keys = iter(jax.random.split(key, 64))
    p = {}
    # ResNet-18 gray stem (conv1 weight is 1-input-channel, bias-free).
    p["conv1_w"] = _conv_w(next(keys), 7, 7, 1, 64)
    p["bn1_g"] = jnp.ones((64,), jnp.float32)
    p["bn1_b"] = jnp.zeros((64,), jnp.float32)

    def block(cin, cout, downsample):
        d = {
            "conv1_w": _conv_w(next(keys), 3, 3, cin, cout),
            "bn1_g": jnp.ones((cout,), jnp.float32),
            "bn1_b": jnp.zeros((cout,), jnp.float32),
            "conv2_w": _conv_w(next(keys), 3, 3, cout, cout),
            "bn2_g": jnp.ones((cout,), jnp.float32),
            "bn2_b": jnp.zeros((cout,), jnp.float32),
        }
        if downsample:
            d["ds_w"] = _conv_w(next(keys), 1, 1, cin, cout)
            d["ds_g"] = jnp.ones((cout,), jnp.float32)
            d["ds_b"] = jnp.zeros((cout,), jnp.float32)
        return d

    p["layer1"] = [block(64, 64, False), block(64, 64, False)]
    p["layer2"] = [block(64, 128, True), block(128, 128, False)]

    # ColorizationNet (only the layers its forward() actually uses).
    def convb(kh, kw, cin, cout):
        return (_conv_w(next(keys), kh, kw, cin, cout),
                0.01 * jax.random.normal(next(keys), (cout,), jnp.float32))

    p["c_conv1"] = convb(3, 3, 128, 128)
    p["c_bn2_g"] = jnp.ones((128,), jnp.float32)
    p["c_bn2_b"] = jnp.zeros((128,), jnp.float32)
    p["c_conv2"] = convb(3, 3, 128, 64)
    p["c_bn3_g"] = jnp.ones((64,), jnp.float32)
    p["c_bn3_b"] = jnp.zeros((64,), jnp.float32)
    p["c_conv3"] = convb(3, 3, 64, 64)
    p["c_conv4"] = convb(3, 3, 64, 32)
    p["c_conv5"] = convb(3, 3, 32, 2)
    return p


# ----------------------------- forward pass ----------------------------------

def _basic_block(x, blk, stride):
    out = conv_bn_act(x, blk["conv1_w"], stride=stride, padding=1,
                      bn=(blk["bn1_g"], blk["bn1_b"]), act="relu")
    if "ds_w" in blk:
        identity = conv_bn_act(x, blk["ds_w"], stride=stride, padding=0,
                               bn=(blk["ds_g"], blk["ds_b"]), act="none")
    else:
        identity = x
    # conv2 + BN + residual add + ReLU fused into a single kernel.
    return conv_bn_act(out, blk["conv2_w"], stride=1, padding=1,
                       bn=(blk["bn2_g"], blk["bn2_b"]), residual=identity,
                       act="relu")


def colornet_forward(params, input_image_nchw):
    # NCHW f32 -> NHWC bf16 once (activations stay bf16; kernel math is f32).
    x = jnp.transpose(input_image_nchw, (0, 2, 3, 1)).astype(jnp.bfloat16)

    # ---- midlevel_resnet = resnet18 children[0:6] ----
    x = conv_bn_act(x, params["conv1_w"], stride=2, padding=3,
                    bn=(params["bn1_g"], params["bn1_b"]), act="relu")
    x = maxpool_3x3_s2_p1(x)
    for blk in params["layer1"]:
        x = _basic_block(x, blk, stride=1)
    for i, blk in enumerate(params["layer2"]):
        x = _basic_block(x, blk, stride=2 if i == 0 else 1)

    # ---- ColorizationNet.forward ----
    w, b = params["c_conv1"]
    x = conv_bn_act(x, w, b, bn=(params["c_bn2_g"], params["c_bn2_b"]),
                    act="relu")
    x = upsample2x(x)
    w, b = params["c_conv2"]
    x = conv_bn_act(x, w, b, bn=(params["c_bn3_g"], params["c_bn3_b"]),
                    act="relu")
    w, b = params["c_conv3"]
    x = conv_bn_act(x, w, b, act="relu")
    x = upsample2x(x)
    w, b = params["c_conv4"]
    x = conv_bn_act(x, w, b, act="sigmoid")
    # conv5 (Cout=2): zero-pad output channels to 128 so the kernel store is
    # lane-dense; padded channels (zero weights/bias) are sliced off after.
    w5, b5 = params["c_conv5"]
    w5p = jnp.pad(w5, ((0, 0), (0, 0), (0, 0), (0, 128 - w5.shape[-1])))
    b5p = jnp.pad(b5, (0, 128 - b5.shape[0]))
    x = conv_bn_act(x, w5p, b5p, act="none", out_dtype=jnp.float32)[..., :2]
    x = upsample2x(x)

    return jnp.transpose(x, (0, 3, 1, 2))  # NHWC -> NCHW


# ----------------------------- driver -----------------------------------------

if __name__ == "__main__":
    key = jax.random.PRNGKey(0)
    pkey, xkey = jax.random.split(key)
    params = init_params(pkey)
    # Grayscale NCHW input (ResNet-gray stem has 1 input channel).
    x = jax.random.normal(xkey, (2, 1, 32, 32), jnp.float32)
    out = jax.jit(colornet_forward)(params, x)
    out = jax.block_until_ready(out)
    assert out.shape == (2, 2, 32, 32), out.shape
    assert jnp.all(jnp.isfinite(out))
    print("KERNEL_OK")
</pallas_src>

<mosaic_0001>
module attributes {stable_mosaic.version = 11 : i64} {
  func.func @_fused_layer_kernel(%arg0: i32, %arg1: memref<512x49xbf16, #tpu.memory_space<vmem>>, %arg2: memref<49x64xbf16, #tpu.memory_space<vmem>>, %arg3: memref<1x64xf32, #tpu.memory_space<vmem>>, %arg4: memref<1x64xf32, #tpu.memory_space<vmem>>, %arg5: memref<1x64xf32, #tpu.memory_space<vmem>>, %arg6: memref<512x64xbf16, #tpu.memory_space<vmem>>) attributes {dimension_semantics = [#tpu.dimension_semantics<arbitrary>], iteration_bounds = array<i64: 1>, scalar_prefetch = 0 : i64, scratch_operands = 0 : i64, tpu.core_type = #tpu.core_type<tc>, window_params = [{transform_indices = @transform_0, window_bounds = array<i64: 512, 49>}, {pipeline_mode = #tpu.pipeline_mode<synchronous>, transform_indices = @transform_1, window_bounds = array<i64: 49, 64>}, {pipeline_mode = #tpu.pipeline_mode<synchronous>, transform_indices = @transform_2, window_bounds = array<i64: 1, 64>}, {pipeline_mode = #tpu.pipeline_mode<synchronous>, transform_indices = @transform_3, window_bounds = array<i64: 1, 64>}, {pipeline_mode = #tpu.pipeline_mode<synchronous>, transform_indices = @transform_4, window_bounds = array<i64: 1, 64>}, {transform_indices = @transform_5, window_bounds = array<i64: 512, 64>}]} {
    %c0 = arith.constant 0 : index
    %c0_0 = arith.constant 0 : index
    %0 = vector.load %arg1[%c0, %c0_0] : memref<512x49xbf16, #tpu.memory_space<vmem>>, vector<512x49xbf16>
    %c0_1 = arith.constant 0 : index
    %c0_2 = arith.constant 0 : index
    %1 = vector.load %arg2[%c0_1, %c0_2] : memref<49x64xbf16, #tpu.memory_space<vmem>>, vector<49x64xbf16>
    %cst = arith.constant dense<0.000000e+00> : vector<512x64xf32>
    %2 = tpu.matmul %0, %1, %cst {dimension_numbers = #tpu.dot_dimension_numbers<[1], [0], [0], [1], [0, 0, 1, 1], [], []>} : vector<512x49xbf16>, vector<49x64xbf16>, vector<512x64xf32> -> vector<512x64xf32>
    %c0_3 = arith.constant 0 : index
    %c0_4 = arith.constant 0 : index
    %3 = vector.load %arg3[%c0_3, %c0_4] : memref<1x64xf32, #tpu.memory_space<vmem>>, vector<1x64xf32>
    %4 = vector.broadcast %3 : vector<1x64xf32> to vector<512x64xf32>
    %5 = arith.addf %2, %4 : vector<512x64xf32>
    %cst_5 = arith.constant dense<0.000000e+00> : vector<64xf32>
    %6 = vector.multi_reduction <add>, %5, %cst_5 [0] : vector<512x64xf32> to vector<64xf32>
    %7 = vector.shape_cast %6 : vector<64xf32> to vector<1x64xf32>
    %cst_6 = arith.constant 5.120000e+02 : f32
    %8 = vector.broadcast %cst_6 : f32 to vector<1x64xf32>
    %9 = arith.divf %7, %8 : vector<1x64xf32>
    %10 = arith.mulf %5, %5 : vector<512x64xf32>
    %cst_7 = arith.constant dense<0.000000e+00> : vector<64xf32>
    %11 = vector.multi_reduction <add>, %10, %cst_7 [0] : vector<512x64xf32> to vector<64xf32>
    %12 = vector.shape_cast %11 : vector<64xf32> to vector<1x64xf32>
    %cst_8 = arith.constant 5.120000e+02 : f32
    %13 = vector.broadcast %cst_8 : f32 to vector<1x64xf32>
    %14 = arith.divf %12, %13 : vector<1x64xf32>
    %15 = arith.mulf %9, %9 : vector<1x64xf32>
    %16 = arith.subf %14, %15 : vector<1x64xf32>
    %cst_9 = arith.constant 0.000000e+00 : f32
    %17 = vector.broadcast %cst_9 : f32 to vector<1x64xf32>
    %18 = arith.maximumf %16, %17 : vector<1x64xf32>
    %cst_10 = arith.constant 9.99999974E-6 : f32
    %19 = vector.broadcast %cst_10 : f32 to vector<1x64xf32>
    %20 = arith.addf %18, %19 : vector<1x64xf32>
    %21 = math.rsqrt %20 : vector<1x64xf32>
    %c0_11 = arith.constant 0 : index
    %c0_12 = arith.constant 0 : index
    %22 = vector.load %arg4[%c0_11, %c0_12] : memref<1x64xf32, #tpu.memory_space<vmem>>, vector<1x64xf32>
    %23 = arith.mulf %21, %22 : vector<1x64xf32>
    %24 = vector.broadcast %9 : vector<1x64xf32> to vector<512x64xf32>
    %25 = arith.subf %5, %24 : vector<512x64xf32>
    %26 = vector.broadcast %23 : vector<1x64xf32> to vector<512x64xf32>
    %27 = arith.mulf %25, %26 : vector<512x64xf32>
    %c0_13 = arith.constant 0 : index
    %c0_14 = arith.constant 0 : index
    %28 = vector.load %arg5[%c0_13, %c0_14] : memref<1x64xf32, #tpu.memory_space<vmem>>, vector<1x64xf32>
    %29 = vector.broadcast %28 : vector<1x64xf32> to vector<512x64xf32>
    %30 = arith.addf %27, %29 : vector<512x64xf32>
    %cst_15 = arith.constant 0.000000e+00 : f32
    %31 = vector.broadcast %cst_15 : f32 to vector<512x64xf32>
    %32 = arith.maximumf %30, %31 : vector<512x64xf32>
    %33 = arith.truncf %32 : vector<512x64xf32> to vector<512x64xbf16>
    %c0_16 = arith.constant 0 : index
    %c0_17 = arith.constant 0 : index
    %34 = vector.load %arg6[%c0_16, %c0_17] : memref<512x64xbf16, #tpu.memory_space<vmem>>, vector<512x64xbf16>
    tpu.vector_store %arg6[%c0_16, %c0_17], %33 {strides = array<i32>} : memref<512x64xbf16, #tpu.memory_space<vmem>>, vector<512x64xbf16>,
    return
  }
  func.func @transform_0(%arg0: i32) -> (i32, i32) {
    %c0_i32 = arith.constant 0 : i32
    %c0_i32_0 = arith.constant 0 : i32
    return %arg0, %c0_i32 : i32, i32
  }
  func.func @transform_1(%arg0: i32) -> (i32, i32) {
    %c0_i32 = arith.constant 0 : i32
    %c0_i32_0 = arith.constant 0 : i32
    %c0_i32_1 = arith.constant 0 : i32
    return %c0_i32, %c0_i32_0 : i32, i32
  }
  func.func @transform_2(%arg0: i32) -> (i32, i32) {
    %c0_i32 = arith.constant 0 : i32
    %c0_i32_0 = arith.constant 0 : i32
    %c0_i32_1 = arith.constant 0 : i32
    return %c0_i32, %c0_i32_0 : i32, i32
  }
  func.func @transform_3(%arg0: i32) -> (i32, i32) {
    %c0_i32 = arith.constant 0 : i32
    %c0_i32_0 = arith.constant 0 : i32
    %c0_i32_1 = arith.constant 0 : i32
    return %c0_i32, %c0_i32_0 : i32, i32
  }
  func.func @transform_4(%arg0: i32) -> (i32, i32) {
    %c0_i32 = arith.constant 0 : i32
    %c0_i32_0 = arith.constant 0 : i32
    %c0_i32_1 = arith.constant 0 : i32
    return %c0_i32, %c0_i32_0 : i32, i32
  }
  func.func @transform_5(%arg0: i32) -> (i32, i32) {
    %c0_i32 = arith.constant 0 : i32
    %c0_i32_0 = arith.constant 0 : i32
    return %arg0, %c0_i32 : i32, i32
  }
}

module attributes {stable_mosaic.version = 11 : i64} {
  func.func @_fused_layer_kernel(%arg0: i32, %arg1: memref<128x576xbf16, #tpu.memory_space<vmem>>, %arg2: memref<576x64xbf16, #tpu.memory_space<vmem>>, %arg3: memref<1x64xf32, #tpu.memory_space<vmem>>, %arg4: memref<1x64xf32, #tpu.memory_space<vmem>>, %arg5: memref<1x64xf32, #tpu.memory_space<vmem>>, %arg6: memref<128x64xbf16, #tpu.memory_space<vmem>>) attributes {dimension_semantics = [#tpu.dimension_semantics<arbitrary>], iteration_bounds = array<i64: 1>, scalar_prefetch = 0 : i64, scratch_operands = 0 : i64, tpu.core_type = #tpu.core_type<tc>, window_params = [{transform_indices = @transform_0, window_bounds = array<i64: 128, 576>}, {pipeline_mode = #tpu.pipeline_mode<synchronous>, transform_indices = @transform_1, window_bounds = array<i64: 576, 64>}, {pipeline_mode = #tpu.pipeline_mode<synchronous>, transform_indices = @transform_2, window_bounds = array<i64: 1, 64>}, {pipeline_mode = #tpu.pipeline_mode<synchronous>, transform_indices = @transform_3, window_bounds = array<i64: 1, 64>}, {pipeline_mode = #tpu.pipeline_mode<synchronous>, transform_indices = @transform_4, window_bounds = array<i64: 1, 64>}, {transform_indices = @transform_5, window_bounds = array<i64: 128, 64>}]} {
    %c0 = arith.constant 0 : index
    %c0_0 = arith.constant 0 : index
    %0 = vector.load %arg1[%c0, %c0_0] : memref<128x576xbf16, #tpu.memory_space<vmem>>, vector<128x576xbf16>
    %c0_1 = arith.constant 0 : index
    %c0_2 = arith.constant 0 : index
    %1 = vector.load %arg2[%c0_1, %c0_2] : memref<576x64xbf16, #tpu.memory_space<vmem>>, vector<576x64xbf16>
    %cst = arith.constant dense<0.000000e+00> : vector<128x64xf32>
    %2 = tpu.matmul %0, %1, %cst {dimension_numbers = #tpu.dot_dimension_numbers<[1], [0], [0], [1], [0, 0, 1, 1], [], []>} : vector<128x576xbf16>, vector<576x64xbf16>, vector<128x64xf32> -> vector<128x64xf32>
    %c0_3 = arith.constant 0 : index
    %c0_4 = arith.constant 0 : index
    %3 = vector.load %arg3[%c0_3, %c0_4] : memref<1x64xf32, #tpu.memory_space<vmem>>, vector<1x64xf32>
    %4 = vector.broadcast %3 : vector<1x64xf32> to vector<128x64xf32>
    %5 = arith.addf %2, %4 : vector<128x64xf32>
    %cst_5 = arith.constant dense<0.000000e+00> : vector<64xf32>
    %6 = vector.multi_reduction <add>, %5, %cst_5 [0] : vector<128x64xf32> to vector<64xf32>
    %7 = vector.shape_cast %6 : vector<64xf32> to vector<1x64xf32>
    %cst_6 = arith.constant 1.280000e+02 : f32
    %8 = vector.broadcast %cst_6 : f32 to vector<1x64xf32>
    %9 = arith.divf %7, %8 : vector<1x64xf32>
    %10 = arith.mulf %5, %5 : vector<128x64xf32>
    %cst_7 = arith.constant dense<0.000000e+00> : vector<64xf32>
    %11 = vector.multi_reduction <add>, %10, %cst_7 [0] : vector<128x64xf32> to vector<64xf32>
    %12 = vector.shape_cast %11 : vector<64xf32> to vector<1x64xf32>
    %cst_8 = arith.constant 1.280000e+02 : f32
    %13 = vector.broadcast %cst_8 : f32 to vector<1x64xf32>
    %14 = arith.divf %12, %13 : vector<1x64xf32>
    %15 = arith.mulf %9, %9 : vector<1x64xf32>
    %16 = arith.subf %14, %15 : vector<1x64xf32>
    %cst_9 = arith.constant 0.000000e+00 : f32
    %17 = vector.broadcast %cst_9 : f32 to vector<1x64xf32>
    %18 = arith.maximumf %16, %17 : vector<1x64xf32>
    %cst_10 = arith.constant 9.99999974E-6 : f32
    %19 = vector.broadcast %cst_10 : f32 to vector<1x64xf32>
    %20 = arith.addf %18, %19 : vector<1x64xf32>
    %21 = math.rsqrt %20 : vector<1x64xf32>
    %c0_11 = arith.constant 0 : index
    %c0_12 = arith.constant 0 : index
    %22 = vector.load %arg4[%c0_11, %c0_12] : memref<1x64xf32, #tpu.memory_space<vmem>>, vector<1x64xf32>
    %23 = arith.mulf %21, %22 : vector<1x64xf32>
    %24 = vector.broadcast %9 : vector<1x64xf32> to vector<128x64xf32>
    %25 = arith.subf %5, %24 : vector<128x64xf32>
    %26 = vector.broadcast %23 : vector<1x64xf32> to vector<128x64xf32>
    %27 = arith.mulf %25, %26 : vector<128x64xf32>
    %c0_13 = arith.constant 0 : index
    %c0_14 = arith.constant 0 : index
    %28 = vector.load %arg5[%c0_13, %c0_14] : memref<1x64xf32, #tpu.memory_space<vmem>>, vector<1x64xf32>
    %29 = vector.broadcast %28 : vector<1x64xf32> to vector<128x64xf32>
    %30 = arith.addf %27, %29 : vector<128x64xf32>
    %cst_15 = arith.constant 0.000000e+00 : f32
    %31 = vector.broadcast %cst_15 : f32 to vector<128x64xf32>
    %32 = arith.maximumf %30, %31 : vector<128x64xf32>
    %33 = arith.truncf %32 : vector<128x64xf32> to vector<128x64xbf16>
    %c0_16 = arith.constant 0 : index
    %c0_17 = arith.constant 0 : index
    %34 = vector.load %arg6[%c0_16, %c0_17] : memref<128x64xbf16, #tpu.memory_space<vmem>>, vector<128x64xbf16>
    tpu.vector_store %arg6[%c0_16, %c0_17], %33 {strides = array<i32>} : memref<128x64xbf16, #tpu.memory_space<vmem>>, vector<128x64xbf16>,
    return
  }
  func.func @transform_0(%arg0: i32) -> (i32, i32) {
    %c0_i32 = arith.constant 0 : i32
    %c0_i32_0 = arith.constant 0 : i32
    return %arg0, %c0_i32 : i32, i32
  }
  func.func @transform_1(%arg0: i32) -> (i32, i32) {
    %c0_i32 = arith.constant 0 : i32
    %c0_i32_0 = arith.constant 0 : i32
    %c0_i32_1 = arith.constant 0 : i32
    return %c0_i32, %c0_i32_0 : i32, i32
  }
  func.func @transform_2(%arg0: i32) -> (i32, i32) {
    %c0_i32 = arith.constant 0 : i32
    %c0_i32_0 = arith.constant 0 : i32
    %c0_i32_1 = arith.constant 0 : i32
    return %c0_i32, %c0_i32_0 : i32, i32
  }
  func.func @transform_3(%arg0: i32) -> (i32, i32) {
    %c0_i32 = arith.constant 0 : i32
    %c0_i32_0 = arith.constant 0 : i32
    %c0_i32_1 = arith.constant 0 : i32
    return %c0_i32, %c0_i32_0 : i32, i32
  }
  func.func @transform_4(%arg0: i32) -> (i32, i32) {
    %c0_i32 = arith.constant 0 : i32
    %c0_i32_0 = arith.constant 0 : i32
    %c0_i32_1 = arith.constant 0 : i32
    return %c0_i32, %c0_i32_0 : i32, i32
  }
  func.func @transform_5(%arg0: i32) -> (i32, i32) {
    %c0_i32 = arith.constant 0 : i32
    %c0_i32_0 = arith.constant 0 : i32
    return %arg0, %c0_i32 : i32, i32
  }
}

module attributes {stable_mosaic.version = 11 : i64} {
  func.func @_fused_layer_kernel(%arg0: i32, %arg1: memref<128x576xbf16, #tpu.memory_space<vmem>>, %arg2: memref<576x64xbf16, #tpu.memory_space<vmem>>, %arg3: memref<1x64xf32, #tpu.memory_space<vmem>>, %arg4: memref<1x64xf32, #tpu.memory_space<vmem>>, %arg5: memref<1x64xf32, #tpu.memory_space<vmem>>, %arg6: memref<128x64xbf16, #tpu.memory_space<vmem>>, %arg7: memref<128x64xbf16, #tpu.memory_space<vmem>>) attributes {dimension_semantics = [#tpu.dimension_semantics<arbitrary>], iteration_bounds = array<i64: 1>, scalar_prefetch = 0 : i64, scratch_operands = 0 : i64, tpu.core_type = #tpu.core_type<tc>, window_params = [{transform_indices = @transform_0, window_bounds = array<i64: 128, 576>}, {pipeline_mode = #tpu.pipeline_mode<synchronous>, transform_indices = @transform_1, window_bounds = array<i64: 576, 64>}, {pipeline_mode = #tpu.pipeline_mode<synchronous>, transform_indices = @transform_2, window_bounds = array<i64: 1, 64>}, {pipeline_mode = #tpu.pipeline_mode<synchronous>, transform_indices = @transform_3, window_bounds = array<i64: 1, 64>}, {pipeline_mode = #tpu.pipeline_mode<synchronous>, transform_indices = @transform_4, window_bounds = array<i64: 1, 64>}, {transform_indices = @transform_5, window_bounds = array<i64: 128, 64>}, {transform_indices = @transform_6, window_bounds = array<i64: 128, 64>}]} {
    %c0 = arith.constant 0 : index
    %c0_0 = arith.constant 0 : index
    %0 = vector.load %arg1[%c0, %c0_0] : memref<128x576xbf16, #tpu.memory_space<vmem>>, vector<128x576xbf16>
    %c0_1 = arith.constant 0 : index
    %c0_2 = arith.constant 0 : index
    %1 = vector.load %arg2[%c0_1, %c0_2] : memref<576x64xbf16, #tpu.memory_space<vmem>>, vector<576x64xbf16>
    %cst = arith.constant dense<0.000000e+00> : vector<128x64xf32>
    %2 = tpu.matmul %0, %1, %cst {dimension_numbers = #tpu.dot_dimension_numbers<[1], [0], [0], [1], [0, 0, 1, 1], [], []>} : vector<128x576xbf16>, vector<576x64xbf16>, vector<128x64xf32> -> vector<128x64xf32>
    %c0_3 = arith.constant 0 : index
    %c0_4 = arith.constant 0 : index
    %3 = vector.load %arg3[%c0_3, %c0_4] : memref<1x64xf32, #tpu.memory_space<vmem>>, vector<1x64xf32>
    %4 = vector.broadcast %3 : vector<1x64xf32> to vector<128x64xf32>
    %5 = arith.addf %2, %4 : vector<128x64xf32>
    %cst_5 = arith.constant dense<0.000000e+00> : vector<64xf32>
    %6 = vector.multi_reduction <add>, %5, %cst_5 [0] : vector<128x64xf32> to vector<64xf32>
    %7 = vector.shape_cast %6 : vector<64xf32> to vector<1x64xf32>
    %cst_6 = arith.constant 1.280000e+02 : f32
    %8 = vector.broadcast %cst_6 : f32 to vector<1x64xf32>
    %9 = arith.divf %7, %8 : vector<1x64xf32>
    %10 = arith.mulf %5, %5 : vector<128x64xf32>
    %cst_7 = arith.constant dense<0.000000e+00> : vector<64xf32>
    %11 = vector.multi_reduction <add>, %10, %cst_7 [0] : vector<128x64xf32> to vector<64xf32>
    %12 = vector.shape_cast %11 : vector<64xf32> to vector<1x64xf32>
    %cst_8 = arith.constant 1.280000e+02 : f32
    %13 = vector.broadcast %cst_8 : f32 to vector<1x64xf32>
    %14 = arith.divf %12, %13 : vector<1x64xf32>
    %15 = arith.mulf %9, %9 : vector<1x64xf32>
    %16 = arith.subf %14, %15 : vector<1x64xf32>
    %cst_9 = arith.constant 0.000000e+00 : f32
    %17 = vector.broadcast %cst_9 : f32 to vector<1x64xf32>
    %18 = arith.maximumf %16, %17 : vector<1x64xf32>
    %cst_10 = arith.constant 9.99999974E-6 : f32
    %19 = vector.broadcast %cst_10 : f32 to vector<1x64xf32>
    %20 = arith.addf %18, %19 : vector<1x64xf32>
    %21 = math.rsqrt %20 : vector<1x64xf32>
    %c0_11 = arith.constant 0 : index
    %c0_12 = arith.constant 0 : index
    %22 = vector.load %arg4[%c0_11, %c0_12] : memref<1x64xf32, #tpu.memory_space<vmem>>, vector<1x64xf32>
    %23 = arith.mulf %21, %22 : vector<1x64xf32>
    %24 = vector.broadcast %9 : vector<1x64xf32> to vector<128x64xf32>
    %25 = arith.subf %5, %24 : vector<128x64xf32>
    %26 = vector.broadcast %23 : vector<1x64xf32> to vector<128x64xf32>
    %27 = arith.mulf %25, %26 : vector<128x64xf32>
    %c0_13 = arith.constant 0 : index
    %c0_14 = arith.constant 0 : index
    %28 = vector.load %arg5[%c0_13, %c0_14] : memref<1x64xf32, #tpu.memory_space<vmem>>, vector<1x64xf32>
    %29 = vector.broadcast %28 : vector<1x64xf32> to vector<128x64xf32>
    %30 = arith.addf %27, %29 : vector<128x64xf32>
    %c0_15 = arith.constant 0 : index
    %c0_16 = arith.constant 0 : index
    %31 = vector.load %arg6[%c0_15, %c0_16] : memref<128x64xbf16, #tpu.memory_space<vmem>>, vector<128x64xbf16>
    %32 = arith.extf %31 : vector<128x64xbf16> to vector<128x64xf32>
    %33 = arith.addf %30, %32 : vector<128x64xf32>
    %cst_17 = arith.constant 0.000000e+00 : f32
    %34 = vector.broadcast %cst_17 : f32 to vector<128x64xf32>
    %35 = arith.maximumf %33, %34 : vector<128x64xf32>
    %36 = arith.truncf %35 : vector<128x64xf32> to vector<128x64xbf16>
    %c0_18 = arith.constant 0 : index
    %c0_19 = arith.constant 0 : index
    %37 = vector.load %arg7[%c0_18, %c0_19] : memref<128x64xbf16, #tpu.memory_space<vmem>>, vector<128x64xbf16>
    tpu.vector_store %arg7[%c0_18, %c0_19], %36 {strides = array<i32>} : memref<128x64xbf16, #tpu.memory_space<vmem>>, vector<128x64xbf16>,
    return
  }
  func.func @transform_0(%arg0: i32) -> (i32, i32) {
    %c0_i32 = arith.constant 0 : i32
    %c0_i32_0 = arith.constant 0 : i32
    return %arg0, %c0_i32 : i32, i32
  }
  func.func @transform_1(%arg0: i32) -> (i32, i32) {
    %c0_i32 = arith.constant 0 : i32
    %c0_i32_0 = arith.constant 0 : i32
    %c0_i32_1 = arith.constant 0 : i32
    return %c0_i32, %c0_i32_0 : i32, i32
  }
  func.func @transform_2(%arg0: i32) -> (i32, i32) {
    %c0_i32 = arith.constant 0 : i32
    %c0_i32_0 = arith.constant 0 : i32
    %c0_i32_1 = arith.constant 0 : i32
    return %c0_i32, %c0_i32_0 : i32, i32
  }
  func.func @transform_3(%arg0: i32) -> (i32, i32) {
    %c0_i32 = arith.constant 0 : i32
    %c0_i32_0 = arith.constant 0 : i32
    %c0_i32_1 = arith.constant 0 : i32
    return %c0_i32, %c0_i32_0 : i32, i32
  }
  func.func @transform_4(%arg0: i32) -> (i32, i32) {
    %c0_i32 = arith.constant 0 : i32
    %c0_i32_0 = arith.constant 0 : i32
    %c0_i32_1 = arith.constant 0 : i32
    return %c0_i32, %c0_i32_0 : i32, i32
  }
  func.func @transform_5(%arg0: i32) -> (i32, i32) {
    %c0_i32 = arith.constant 0 : i32
    %c0_i32_0 = arith.constant 0 : i32
    return %arg0, %c0_i32 : i32, i32
  }
  func.func @transform_6(%arg0: i32) -> (i32, i32) {
    %c0_i32 = arith.constant 0 : i32
    %c0_i32_0 = arith.constant 0 : i32
    return %arg0, %c0_i32 : i32, i32
  }
}

module attributes {stable_mosaic.version = 11 : i64} {
  func.func @_fused_layer_kernel(%arg0: i32, %arg1: memref<32x576xbf16, #tpu.memory_space<vmem>>, %arg2: memref<576x128xbf16, #tpu.memory_space<vmem>>, %arg3: memref<1x128xf32, #tpu.memory_space<vmem>>, %arg4: memref<1x128xf32, #tpu.memory_space<vmem>>, %arg5: memref<1x128xf32, #tpu.memory_space<vmem>>, %arg6: memref<32x128xbf16, #tpu.memory_space<vmem>>) attributes {dimension_semantics = [#tpu.dimension_semantics<arbitrary>], iteration_bounds = array<i64: 1>, scalar_prefetch = 0 : i64, scratch_operands = 0 : i64, tpu.core_type = #tpu.core_type<tc>, window_params = [{transform_indices = @transform_0, window_bounds = array<i64: 32, 576>}, {pipeline_mode = #tpu.pipeline_mode<synchronous>, transform_indices = @transform_1, window_bounds = array<i64: 576, 128>}, {pipeline_mode = #tpu.pipeline_mode<synchronous>, transform_indices = @transform_2, window_bounds = array<i64: 1, 128>}, {pipeline_mode = #tpu.pipeline_mode<synchronous>, transform_indices = @transform_3, window_bounds = array<i64: 1, 128>}, {pipeline_mode = #tpu.pipeline_mode<synchronous>, transform_indices = @transform_4, window_bounds = array<i64: 1, 128>}, {transform_indices = @transform_5, window_bounds = array<i64: 32, 128>}]} {
    %c0 = arith.constant 0 : index
    %c0_0 = arith.constant 0 : index
    %0 = vector.load %arg1[%c0, %c0_0] : memref<32x576xbf16, #tpu.memory_space<vmem>>, vector<32x576xbf16>
    %c0_1 = arith.constant 0 : index
    %c0_2 = arith.constant 0 : index
    %1 = vector.load %arg2[%c0_1, %c0_2] : memref<576x128xbf16, #tpu.memory_space<vmem>>, vector<576x128xbf16>
    %cst = arith.constant dense<0.000000e+00> : vector<32x128xf32>
    %2 = tpu.matmul %0, %1, %cst {dimension_numbers = #tpu.dot_dimension_numbers<[1], [0], [0], [1], [0, 0, 1, 1], [], []>} : vector<32x576xbf16>, vector<576x128xbf16>, vector<32x128xf32> -> vector<32x128xf32>
    %c0_3 = arith.constant 0 : index
    %c0_4 = arith.constant 0 : index
    %3 = vector.load %arg3[%c0_3, %c0_4] : memref<1x128xf32, #tpu.memory_space<vmem>>, vector<1x128xf32>
    %4 = vector.broadcast %3 : vector<1x128xf32> to vector<32x128xf32>
    %5 = arith.addf %2, %4 : vector<32x128xf32>
    %cst_5 = arith.constant dense<0.000000e+00> : vector<128xf32>
    %6 = vector.multi_reduction <add>, %5, %cst_5 [0] : vector<32x128xf32> to vector<128xf32>
    %7 = vector.shape_cast %6 : vector<128xf32> to vector<1x128xf32>
    %cst_6 = arith.constant 3.200000e+01 : f32
    %8 = vector.broadcast %cst_6 : f32 to vector<1x128xf32>
    %9 = arith.divf %7, %8 : vector<1x128xf32>
    %10 = arith.mulf %5, %5 : vector<32x128xf32>
    %cst_7 = arith.constant dense<0.000000e+00> : vector<128xf32>
    %11 = vector.multi_reduction <add>, %10, %cst_7 [0] : vector<32x128xf32> to vector<128xf32>
    %12 = vector.shape_cast %11 : vector<128xf32> to vector<1x128xf32>
    %cst_8 = arith.constant 3.200000e+01 : f32
    %13 = vector.broadcast %cst_8 : f32 to vector<1x128xf32>
    %14 = arith.divf %12, %13 : vector<1x128xf32>
    %15 = arith.mulf %9, %9 : vector<1x128xf32>
    %16 = arith.subf %14, %15 : vector<1x128xf32>
    %cst_9 = arith.constant 0.000000e+00 : f32
    %17 = vector.broadcast %cst_9 : f32 to vector<1x128xf32>
    %18 = arith.maximumf %16, %17 : vector<1x128xf32>
    %cst_10 = arith.constant 9.99999974E-6 : f32
    %19 = vector.broadcast %cst_10 : f32 to vector<1x128xf32>
    %20 = arith.addf %18, %19 : vector<1x128xf32>
    %21 = math.rsqrt %20 : vector<1x128xf32>
    %c0_11 = arith.constant 0 : index
    %c0_12 = arith.constant 0 : index
    %22 = vector.load %arg4[%c0_11, %c0_12] : memref<1x128xf32, #tpu.memory_space<vmem>>, vector<1x128xf32>
    %23 = arith.mulf %21, %22 : vector<1x128xf32>
    %24 = vector.broadcast %9 : vector<1x128xf32> to vector<32x128xf32>
    %25 = arith.subf %5, %24 : vector<32x128xf32>
    %26 = vector.broadcast %23 : vector<1x128xf32> to vector<32x128xf32>
    %27 = arith.mulf %25, %26 : vector<32x128xf32>
    %c0_13 = arith.constant 0 : index
    %c0_14 = arith.constant 0 : index
    %28 = vector.load %arg5[%c0_13, %c0_14] : memref<1x128xf32, #tpu.memory_space<vmem>>, vector<1x128xf32>
    %29 = vector.broadcast %28 : vector<1x128xf32> to vector<32x128xf32>
    %30 = arith.addf %27, %29 : vector<32x128xf32>
    %cst_15 = arith.constant 0.000000e+00 : f32
    %31 = vector.broadcast %cst_15 : f32 to vector<32x128xf32>
    %32 = arith.maximumf %30, %31 : vector<32x128xf32>
    %33 = arith.truncf %32 : vector<32x128xf32> to vector<32x128xbf16>
    %c0_16 = arith.constant 0 : index
    %c0_17 = arith.constant 0 : index
    %34 = vector.load %arg6[%c0_16, %c0_17] : memref<32x128xbf16, #tpu.memory_space<vmem>>, vector<32x128xbf16>
    tpu.vector_store %arg6[%c0_16, %c0_17], %33 {strides = array<i32>} : memref<32x128xbf16, #tpu.memory_space<vmem>>, vector<32x128xbf16>,
    return
  }
  func.func @transform_0(%arg0: i32) -> (i32, i32) {
    %c0_i32 = arith.constant 0 : i32
    %c0_i32_0 = arith.constant 0 : i32
    return %arg0, %c0_i32 : i32, i32
  }
  func.func @transform_1(%arg0: i32) -> (i32, i32) {
    %c0_i32 = arith.constant 0 : i32
    %c0_i32_0 = arith.constant 0 : i32
    %c0_i32_1 = arith.constant 0 : i32
    return %c0_i32, %c0_i32_0 : i32, i32
  }
  func.func @transform_2(%arg0: i32) -> (i32, i32) {
    %c0_i32 = arith.constant 0 : i32
    %c0_i32_0 = arith.constant 0 : i32
    %c0_i32_1 = arith.constant 0 : i32
    return %c0_i32, %c0_i32_0 : i32, i32
  }
  func.func @transform_3(%arg0: i32) -> (i32, i32) {
    %c0_i32 = arith.constant 0 : i32
    %c0_i32_0 = arith.constant 0 : i32
    %c0_i32_1 = arith.constant 0 : i32
    return %c0_i32, %c0_i32_0 : i32, i32
  }
  func.func @transform_4(%arg0: i32) -> (i32, i32) {
    %c0_i32 = arith.constant 0 : i32
    %c0_i32_0 = arith.constant 0 : i32
    %c0_i32_1 = arith.constant 0 : i32
    return %c0_i32, %c0_i32_0 : i32, i32
  }
  func.func @transform_5(%arg0: i32) -> (i32, i32) {
    %c0_i32 = arith.constant 0 : i32
    %c0_i32_0 = arith.constant 0 : i32
    return %arg0, %c0_i32 : i32, i32
  }
}

module attributes {stable_mosaic.version = 11 : i64} {
  func.func @_fused_layer_kernel(%arg0: i32, %arg1: memref<32x64xbf16, #tpu.memory_space<vmem>>, %arg2: memref<64x128xbf16, #tpu.memory_space<vmem>>, %arg3: memref<1x128xf32, #tpu.memory_space<vmem>>, %arg4: memref<1x128xf32, #tpu.memory_space<vmem>>, %arg5: memref<1x128xf32, #tpu.memory_space<vmem>>, %arg6: memref<32x128xbf16, #tpu.memory_space<vmem>>) attributes {dimension_semantics = [#tpu.dimension_semantics<arbitrary>], iteration_bounds = array<i64: 1>, scalar_prefetch = 0 : i64, scratch_operands = 0 : i64, tpu.core_type = #tpu.core_type<tc>, window_params = [{transform_indices = @transform_0, window_bounds = array<i64: 32, 64>}, {pipeline_mode = #tpu.pipeline_mode<synchronous>, transform_indices = @transform_1, window_bounds = array<i64: 64, 128>}, {pipeline_mode = #tpu.pipeline_mode<synchronous>, transform_indices = @transform_2, window_bounds = array<i64: 1, 128>}, {pipeline_mode = #tpu.pipeline_mode<synchronous>, transform_indices = @transform_3, window_bounds = array<i64: 1, 128>}, {pipeline_mode = #tpu.pipeline_mode<synchronous>, transform_indices = @transform_4, window_bounds = array<i64: 1, 128>}, {transform_indices = @transform_5, window_bounds = array<i64: 32, 128>}]} {
    %c0 = arith.constant 0 : index
    %c0_0 = arith.constant 0 : index
    %0 = vector.load %arg1[%c0, %c0_0] : memref<32x64xbf16, #tpu.memory_space<vmem>>, vector<32x64xbf16>
    %c0_1 = arith.constant 0 : index
    %c0_2 = arith.constant 0 : index
    %1 = vector.load %arg2[%c0_1, %c0_2] : memref<64x128xbf16, #tpu.memory_space<vmem>>, vector<64x128xbf16>
    %cst = arith.constant dense<0.000000e+00> : vector<32x128xf32>
    %2 = tpu.matmul %0, %1, %cst {dimension_numbers = #tpu.dot_dimension_numbers<[1], [0], [0], [1], [0, 0, 1, 1], [], []>} : vector<32x64xbf16>, vector<64x128xbf16>, vector<32x128xf32> -> vector<32x128xf32>
    %c0_3 = arith.constant 0 : index
    %c0_4 = arith.constant 0 : index
    %3 = vector.load %arg3[%c0_3, %c0_4] : memref<1x128xf32, #tpu.memory_space<vmem>>, vector<1x128xf32>
    %4 = vector.broadcast %3 : vector<1x128xf32> to vector<32x128xf32>
    %5 = arith.addf %2, %4 : vector<32x128xf32>
    %cst_5 = arith.constant dense<0.000000e+00> : vector<128xf32>
    %6 = vector.multi_reduction <add>, %5, %cst_5 [0] : vector<32x128xf32> to vector<128xf32>
    %7 = vector.shape_cast %6 : vector<128xf32> to vector<1x128xf32>
    %cst_6 = arith.constant 3.200000e+01 : f32
    %8 = vector.broadcast %cst_6 : f32 to vector<1x128xf32>
    %9 = arith.divf %7, %8 : vector<1x128xf32>
    %10 = arith.mulf %5, %5 : vector<32x128xf32>
    %cst_7 = arith.constant dense<0.000000e+00> : vector<128xf32>
    %11 = vector.multi_reduction <add>, %10, %cst_7 [0] : vector<32x128xf32> to vector<128xf32>
    %12 = vector.shape_cast %11 : vector<128xf32> to vector<1x128xf32>
    %cst_8 = arith.constant 3.200000e+01 : f32
    %13 = vector.broadcast %cst_8 : f32 to vector<1x128xf32>
    %14 = arith.divf %12, %13 : vector<1x128xf32>
    %15 = arith.mulf %9, %9 : vector<1x128xf32>
    %16 = arith.subf %14, %15 : vector<1x128xf32>
    %cst_9 = arith.constant 0.000000e+00 : f32
    %17 = vector.broadcast %cst_9 : f32 to vector<1x128xf32>
    %18 = arith.maximumf %16, %17 : vector<1x128xf32>
    %cst_10 = arith.constant 9.99999974E-6 : f32
    %19 = vector.broadcast %cst_10 : f32 to vector<1x128xf32>
    %20 = arith.addf %18, %19 : vector<1x128xf32>
    %21 = math.rsqrt %20 : vector<1x128xf32>
    %c0_11 = arith.constant 0 : index
    %c0_12 = arith.constant 0 : index
    %22 = vector.load %arg4[%c0_11, %c0_12] : memref<1x128xf32, #tpu.memory_space<vmem>>, vector<1x128xf32>
    %23 = arith.mulf %21, %22 : vector<1x128xf32>
    %24 = vector.broadcast %9 : vector<1x128xf32> to vector<32x128xf32>
    %25 = arith.subf %5, %24 : vector<32x128xf32>
    %26 = vector.broadcast %23 : vector<1x128xf32> to vector<32x128xf32>
    %27 = arith.mulf %25, %26 : vector<32x128xf32>
    %c0_13 = arith.constant 0 : index
    %c0_14 = arith.constant 0 : index
    %28 = vector.load %arg5[%c0_13, %c0_14] : memref<1x128xf32, #tpu.memory_space<vmem>>, vector<1x128xf32>
    %29 = vector.broadcast %28 : vector<1x128xf32> to vector<32x128xf32>
    %30 = arith.addf %27, %29 : vector<32x128xf32>
    %31 = arith.truncf %30 : vector<32x128xf32> to vector<32x128xbf16>
    %c0_15 = arith.constant 0 : index
    %c0_16 = arith.constant 0 : index
    %32 = vector.load %arg6[%c0_15, %c0_16] : memref<32x128xbf16, #tpu.memory_space<vmem>>, vector<32x128xbf16>
    tpu.vector_store %arg6[%c0_15, %c0_16], %31 {strides = array<i32>} : memref<32x128xbf16, #tpu.memory_space<vmem>>, vector<32x128xbf16>,
    return
  }
  func.func @transform_0(%arg0: i32) -> (i32, i32) {
    %c0_i32 = arith.constant 0 : i32
    %c0_i32_0 = arith.constant 0 : i32
    return %arg0, %c0_i32 : i32, i32
  }
  func.func @transform_1(%arg0: i32) -> (i32, i32) {
    %c0_i32 = arith.constant 0 : i32
    %c0_i32_0 = arith.constant 0 : i32
    %c0_i32_1 = arith.constant 0 : i32
    return %c0_i32, %c0_i32_0 : i32, i32
  }
  func.func @transform_2(%arg0: i32) -> (i32, i32) {
    %c0_i32 = arith.constant 0 : i32
    %c0_i32_0 = arith.constant 0 : i32
    %c0_i32_1 = arith.constant 0 : i32
    return %c0_i32, %c0_i32_0 : i32, i32
  }
  func.func @transform_3(%arg0: i32) -> (i32, i32) {
    %c0_i32 = arith.constant 0 : i32
    %c0_i32_0 = arith.constant 0 : i32
    %c0_i32_1 = arith.constant 0 : i32
    return %c0_i32, %c0_i32_0 : i32, i32
  }
  func.func @transform_4(%arg0: i32) -> (i32, i32) {
    %c0_i32 = arith.constant 0 : i32
    %c0_i32_0 = arith.constant 0 : i32
    %c0_i32_1 = arith.constant 0 : i32
    return %c0_i32, %c0_i32_0 : i32, i32
  }
  func.func @transform_5(%arg0: i32) -> (i32, i32) {
    %c0_i32 = arith.constant 0 : i32
    %c0_i32_0 = arith.constant 0 : i32
    return %arg0, %c0_i32 : i32, i32
  }
}

module attributes {stable_mosaic.version = 11 : i64} {
  func.func @_fused_layer_kernel(%arg0: i32, %arg1: memref<32x1152xbf16, #tpu.memory_space<vmem>>, %arg2: memref<1152x128xbf16, #tpu.memory_space<vmem>>, %arg3: memref<1x128xf32, #tpu.memory_space<vmem>>, %arg4: memref<1x128xf32, #tpu.memory_space<vmem>>, %arg5: memref<1x128xf32, #tpu.memory_space<vmem>>, %arg6: memref<32x128xbf16, #tpu.memory_space<vmem>>, %arg7: memref<32x128xbf16, #tpu.memory_space<vmem>>) attributes {dimension_semantics = [#tpu.dimension_semantics<arbitrary>], iteration_bounds = array<i64: 1>, scalar_prefetch = 0 : i64, scratch_operands = 0 : i64, tpu.core_type = #tpu.core_type<tc>, window_params = [{transform_indices = @transform_0, window_bounds = array<i64: 32, 1152>}, {pipeline_mode = #tpu.pipeline_mode<synchronous>, transform_indices = @transform_1, window_bounds = array<i64: 1152, 128>}, {pipeline_mode = #tpu.pipeline_mode<synchronous>, transform_indices = @transform_2, window_bounds = array<i64: 1, 128>}, {pipeline_mode = #tpu.pipeline_mode<synchronous>, transform_indices = @transform_3, window_bounds = array<i64: 1, 128>}, {pipeline_mode = #tpu.pipeline_mode<synchronous>, transform_indices = @transform_4, window_bounds = array<i64: 1, 128>}, {transform_indices = @transform_5, window_bounds = array<i64: 32, 128>}, {transform_indices = @transform_6, window_bounds = array<i64: 32, 128>}]} {
    %c0 = arith.constant 0 : index
    %c0_0 = arith.constant 0 : index
    %0 = vector.load %arg1[%c0, %c0_0] : memref<32x1152xbf16, #tpu.memory_space<vmem>>, vector<32x1152xbf16>
    %c0_1 = arith.constant 0 : index
    %c0_2 = arith.constant 0 : index
    %1 = vector.load %arg2[%c0_1, %c0_2] : memref<1152x128xbf16, #tpu.memory_space<vmem>>, vector<1152x128xbf16>
    %cst = arith.constant dense<0.000000e+00> : vector<32x128xf32>
    %2 = tpu.matmul %0, %1, %cst {dimension_numbers = #tpu.dot_dimension_numbers<[1], [0], [0], [1], [0, 0, 1, 1], [], []>} : vector<32x1152xbf16>, vector<1152x128xbf16>, vector<32x128xf32> -> vector<32x128xf32>
    %c0_3 = arith.constant 0 : index
    %c0_4 = arith.constant 0 : index
    %3 = vector.load %arg3[%c0_3, %c0_4] : memref<1x128xf32, #tpu.memory_space<vmem>>, vector<1x128xf32>
    %4 = vector.broadcast %3 : vector<1x128xf32> to vector<32x128xf32>
    %5 = arith.addf %2, %4 : vector<32x128xf32>
    %cst_5 = arith.constant dense<0.000000e+00> : vector<128xf32>
    %6 = vector.multi_reduction <add>, %5, %cst_5 [0] : vector<32x128xf32> to vector<128xf32>
    %7 = vector.shape_cast %6 : vector<128xf32> to vector<1x128xf32>
    %cst_6 = arith.constant 3.200000e+01 : f32
    %8 = vector.broadcast %cst_6 : f32 to vector<1x128xf32>
    %9 = arith.divf %7, %8 : vector<1x128xf32>
    %10 = arith.mulf %5, %5 : vector<32x128xf32>
    %cst_7 = arith.constant dense<0.000000e+00> : vector<128xf32>
    %11 = vector.multi_reduction <add>, %10, %cst_7 [0] : vector<32x128xf32> to vector<128xf32>
    %12 = vector.shape_cast %11 : vector<128xf32> to vector<1x128xf32>
    %cst_8 = arith.constant 3.200000e+01 : f32
    %13 = vector.broadcast %cst_8 : f32 to vector<1x128xf32>
    %14 = arith.divf %12, %13 : vector<1x128xf32>
    %15 = arith.mulf %9, %9 : vector<1x128xf32>
    %16 = arith.subf %14, %15 : vector<1x128xf32>
    %cst_9 = arith.constant 0.000000e+00 : f32
    %17 = vector.broadcast %cst_9 : f32 to vector<1x128xf32>
    %18 = arith.maximumf %16, %17 : vector<1x128xf32>
    %cst_10 = arith.constant 9.99999974E-6 : f32
    %19 = vector.broadcast %cst_10 : f32 to vector<1x128xf32>
    %20 = arith.addf %18, %19 : vector<1x128xf32>
    %21 = math.rsqrt %20 : vector<1x128xf32>
    %c0_11 = arith.constant 0 : index
    %c0_12 = arith.constant 0 : index
    %22 = vector.load %arg4[%c0_11, %c0_12] : memref<1x128xf32, #tpu.memory_space<vmem>>, vector<1x128xf32>
    %23 = arith.mulf %21, %22 : vector<1x128xf32>
    %24 = vector.broadcast %9 : vector<1x128xf32> to vector<32x128xf32>
    %25 = arith.subf %5, %24 : vector<32x128xf32>
    %26 = vector.broadcast %23 : vector<1x128xf32> to vector<32x128xf32>
    %27 = arith.mulf %25, %26 : vector<32x128xf32>
    %c0_13 = arith.constant 0 : index
    %c0_14 = arith.constant 0 : index
    %28 = vector.load %arg5[%c0_13, %c0_14] : memref<1x128xf32, #tpu.memory_space<vmem>>, vector<1x128xf32>
    %29 = vector.broadcast %28 : vector<1x128xf32> to vector<32x128xf32>
    %30 = arith.addf %27, %29 : vector<32x128xf32>
    %c0_15 = arith.constant 0 : index
    %c0_16 = arith.constant 0 : index
    %31 = vector.load %arg6[%c0_15, %c0_16] : memref<32x128xbf16, #tpu.memory_space<vmem>>, vector<32x128xbf16>
    %32 = arith.extf %31 : vector<32x128xbf16> to vector<32x128xf32>
    %33 = arith.addf %30, %32 : vector<32x128xf32>
    %cst_17 = arith.constant 0.000000e+00 : f32
    %34 = vector.broadcast %cst_17 : f32 to vector<32x128xf32>
    %35 = arith.maximumf %33, %34 : vector<32x128xf32>
    %36 = arith.truncf %35 : vector<32x128xf32> to vector<32x128xbf16>
    %c0_18 = arith.constant 0 : index
    %c0_19 = arith.constant 0 : index
    %37 = vector.load %arg7[%c0_18, %c0_19] : memref<32x128xbf16, #tpu.memory_space<vmem>>, vector<32x128xbf16>
    tpu.vector_store %arg7[%c0_18, %c0_19], %36 {strides = array<i32>} : memref<32x128xbf16, #tpu.memory_space<vmem>>, vector<32x128xbf16>,
    return
  }
  func.func @transform_0(%arg0: i32) -> (i32, i32) {
    %c0_i32 = arith.constant 0 : i32
    %c0_i32_0 = arith.constant 0 : i32
    return %arg0, %c0_i32 : i32, i32
  }
  func.func @transform_1(%arg0: i32) -> (i32, i32) {
    %c0_i32 = arith.constant 0 : i32
    %c0_i32_0 = arith.constant 0 : i32
    %c0_i32_1 = arith.constant 0 : i32
    return %c0_i32, %c0_i32_0 : i32, i32
  }
  func.func @transform_2(%arg0: i32) -> (i32, i32) {
    %c0_i32 = arith.constant 0 : i32
    %c0_i32_0 = arith.constant 0 : i32
    %c0_i32_1 = arith.constant 0 : i32
    return %c0_i32, %c0_i32_0 : i32, i32
  }
  func.func @transform_3(%arg0: i32) -> (i32, i32) {
    %c0_i32 = arith.constant 0 : i32
    %c0_i32_0 = arith.constant 0 : i32
    %c0_i32_1 = arith.constant 0 : i32
    return %c0_i32, %c0_i32_0 : i32, i32
  }
  func.func @transform_4(%arg0: i32) -> (i32, i32) {
    %c0_i32 = arith.constant 0 : i32
    %c0_i32_0 = arith.constant 0 : i32
    %c0_i32_1 = arith.constant 0 : i32
    return %c0_i32, %c0_i32_0 : i32, i32
  }
  func.func @transform_5(%arg0: i32) -> (i32, i32) {
    %c0_i32 = arith.constant 0 : i32
    %c0_i32_0 = arith.constant 0 : i32
    return %arg0, %c0_i32 : i32, i32
  }
  func.func @transform_6(%arg0: i32) -> (i32, i32) {
    %c0_i32 = arith.constant 0 : i32
    %c0_i32_0 = arith.constant 0 : i32
    return %arg0, %c0_i32 : i32, i32
  }
}

module attributes {stable_mosaic.version = 11 : i64} {
  func.func @_fused_layer_kernel(%arg0: i32, %arg1: memref<32x1152xbf16, #tpu.memory_space<vmem>>, %arg2: memref<1152x128xbf16, #tpu.memory_space<vmem>>, %arg3: memref<1x128xf32, #tpu.memory_space<vmem>>, %arg4: memref<1x128xf32, #tpu.memory_space<vmem>>, %arg5: memref<1x128xf32, #tpu.memory_space<vmem>>, %arg6: memref<32x128xbf16, #tpu.memory_space<vmem>>) attributes {dimension_semantics = [#tpu.dimension_semantics<arbitrary>], iteration_bounds = array<i64: 1>, scalar_prefetch = 0 : i64, scratch_operands = 0 : i64, tpu.core_type = #tpu.core_type<tc>, window_params = [{transform_indices = @transform_0, window_bounds = array<i64: 32, 1152>}, {pipeline_mode = #tpu.pipeline_mode<synchronous>, transform_indices = @transform_1, window_bounds = array<i64: 1152, 128>}, {pipeline_mode = #tpu.pipeline_mode<synchronous>, transform_indices = @transform_2, window_bounds = array<i64: 1, 128>}, {pipeline_mode = #tpu.pipeline_mode<synchronous>, transform_indices = @transform_3, window_bounds = array<i64: 1, 128>}, {pipeline_mode = #tpu.pipeline_mode<synchronous>, transform_indices = @transform_4, window_bounds = array<i64: 1, 128>}, {transform_indices = @transform_5, window_bounds = array<i64: 32, 128>}]} {
    %c0 = arith.constant 0 : index
    %c0_0 = arith.constant 0 : index
    %0 = vector.load %arg1[%c0, %c0_0] : memref<32x1152xbf16, #tpu.memory_space<vmem>>, vector<32x1152xbf16>
    %c0_1 = arith.constant 0 : index
    %c0_2 = arith.constant 0 : index
    %1 = vector.load %arg2[%c0_1, %c0_2] : memref<1152x128xbf16, #tpu.memory_space<vmem>>, vector<1152x128xbf16>
    %cst = arith.constant dense<0.000000e+00> : vector<32x128xf32>
    %2 = tpu.matmul %0, %1, %cst {dimension_numbers = #tpu.dot_dimension_numbers<[1], [0], [0], [1], [0, 0, 1, 1], [], []>} : vector<32x1152xbf16>, vector<1152x128xbf16>, vector<32x128xf32> -> vector<32x128xf32>
    %c0_3 = arith.constant 0 : index
    %c0_4 = arith.constant 0 : index
    %3 = vector.load %arg3[%c0_3, %c0_4] : memref<1x128xf32, #tpu.memory_space<vmem>>, vector<1x128xf32>
    %4 = vector.broadcast %3 : vector<1x128xf32> to vector<32x128xf32>
    %5 = arith.addf %2, %4 : vector<32x128xf32>
    %cst_5 = arith.constant dense<0.000000e+00> : vector<128xf32>
    %6 = vector.multi_reduction <add>, %5, %cst_5 [0] : vector<32x128xf32> to vector<128xf32>
    %7 = vector.shape_cast %6 : vector<128xf32> to vector<1x128xf32>
    %cst_6 = arith.constant 3.200000e+01 : f32
    %8 = vector.broadcast %cst_6 : f32 to vector<1x128xf32>
    %9 = arith.divf %7, %8 : vector<1x128xf32>
    %10 = arith.mulf %5, %5 : vector<32x128xf32>
    %cst_7 = arith.constant dense<0.000000e+00> : vector<128xf32>
    %11 = vector.multi_reduction <add>, %10, %cst_7 [0] : vector<32x128xf32> to vector<128xf32>
    %12 = vector.shape_cast %11 : vector<128xf32> to vector<1x128xf32>
    %cst_8 = arith.constant 3.200000e+01 : f32
    %13 = vector.broadcast %cst_8 : f32 to vector<1x128xf32>
    %14 = arith.divf %12, %13 : vector<1x128xf32>
    %15 = arith.mulf %9, %9 : vector<1x128xf32>
    %16 = arith.subf %14, %15 : vector<1x128xf32>
    %cst_9 = arith.constant 0.000000e+00 : f32
    %17 = vector.broadcast %cst_9 : f32 to vector<1x128xf32>
    %18 = arith.maximumf %16, %17 : vector<1x128xf32>
    %cst_10 = arith.constant 9.99999974E-6 : f32
    %19 = vector.broadcast %cst_10 : f32 to vector<1x128xf32>
    %20 = arith.addf %18, %19 : vector<1x128xf32>
    %21 = math.rsqrt %20 : vector<1x128xf32>
    %c0_11 = arith.constant 0 : index
    %c0_12 = arith.constant 0 : index
    %22 = vector.load %arg4[%c0_11, %c0_12] : memref<1x128xf32, #tpu.memory_space<vmem>>, vector<1x128xf32>
    %23 = arith.mulf %21, %22 : vector<1x128xf32>
    %24 = vector.broadcast %9 : vector<1x128xf32> to vector<32x128xf32>
    %25 = arith.subf %5, %24 : vector<32x128xf32>
    %26 = vector.broadcast %23 : vector<1x128xf32> to vector<32x128xf32>
    %27 = arith.mulf %25, %26 : vector<32x128xf32>
    %c0_13 = arith.constant 0 : index
    %c0_14 = arith.constant 0 : index
    %28 = vector.load %arg5[%c0_13, %c0_14] : memref<1x128xf32, #tpu.memory_space<vmem>>, vector<1x128xf32>
    %29 = vector.broadcast %28 : vector<1x128xf32> to vector<32x128xf32>
    %30 = arith.addf %27, %29 : vector<32x128xf32>
    %cst_15 = arith.constant 0.000000e+00 : f32
    %31 = vector.broadcast %cst_15 : f32 to vector<32x128xf32>
    %32 = arith.maximumf %30, %31 : vector<32x128xf32>
    %33 = arith.truncf %32 : vector<32x128xf32> to vector<32x128xbf16>
    %c0_16 = arith.constant 0 : index
    %c0_17 = arith.constant 0 : index
    %34 = vector.load %arg6[%c0_16, %c0_17] : memref<32x128xbf16, #tpu.memory_space<vmem>>, vector<32x128xbf16>
    tpu.vector_store %arg6[%c0_16, %c0_17], %33 {strides = array<i32>} : memref<32x128xbf16, #tpu.memory_space<vmem>>, vector<32x128xbf16>,
    return
  }
  func.func @transform_0(%arg0: i32) -> (i32, i32) {
    %c0_i32 = arith.constant 0 : i32
    %c0_i32_0 = arith.constant 0 : i32
    return %arg0, %c0_i32 : i32, i32
  }
  func.func @transform_1(%arg0: i32) -> (i32, i32) {
    %c0_i32 = arith.constant 0 : i32
    %c0_i32_0 = arith.constant 0 : i32
    %c0_i32_1 = arith.constant 0 : i32
    return %c0_i32, %c0_i32_0 : i32, i32
  }
  func.func @transform_2(%arg0: i32) -> (i32, i32) {
    %c0_i32 = arith.constant 0 : i32
    %c0_i32_0 = arith.constant 0 : i32
    %c0_i32_1 = arith.constant 0 : i32
    return %c0_i32, %c0_i32_0 : i32, i32
  }
  func.func @transform_3(%arg0: i32) -> (i32, i32) {
    %c0_i32 = arith.constant 0 : i32
    %c0_i32_0 = arith.constant 0 : i32
    %c0_i32_1 = arith.constant 0 : i32
    return %c0_i32, %c0_i32_0 : i32, i32
  }
  func.func @transform_4(%arg0: i32) -> (i32, i32) {
    %c0_i32 = arith.constant 0 : i32
    %c0_i32_0 = arith.constant 0 : i32
    %c0_i32_1 = arith.constant 0 : i32
    return %c0_i32, %c0_i32_0 : i32, i32
  }
  func.func @transform_5(%arg0: i32) -> (i32, i32) {
    %c0_i32 = arith.constant 0 : i32
    %c0_i32_0 = arith.constant 0 : i32
    return %arg0, %c0_i32 : i32, i32
  }
}

module attributes {stable_mosaic.version = 11 : i64} {
  func.func @_fused_layer_kernel(%arg0: i32, %arg1: memref<128x576xbf16, #tpu.memory_space<vmem>>, %arg2: memref<576x64xbf16, #tpu.memory_space<vmem>>, %arg3: memref<1x64xf32, #tpu.memory_space<vmem>>, %arg4: memref<128x64xbf16, #tpu.memory_space<vmem>>) attributes {dimension_semantics = [#tpu.dimension_semantics<parallel>], iteration_bounds = array<i64: 1>, scalar_prefetch = 0 : i64, scratch_operands = 0 : i64, tpu.core_type = #tpu.core_type<tc>, window_params = [{transform_indices = @transform_0, window_bounds = array<i64: 128, 576>}, {pipeline_mode = #tpu.pipeline_mode<synchronous>, transform_indices = @transform_1, window_bounds = array<i64: 576, 64>}, {pipeline_mode = #tpu.pipeline_mode<synchronous>, transform_indices = @transform_2, window_bounds = array<i64: 1, 64>}, {transform_indices = @transform_3, window_bounds = array<i64: 128, 64>}]} {
    %c0 = arith.constant 0 : index
    %c0_0 = arith.constant 0 : index
    %0 = vector.load %arg1[%c0, %c0_0] : memref<128x576xbf16, #tpu.memory_space<vmem>>, vector<128x576xbf16>
    %c0_1 = arith.constant 0 : index
    %c0_2 = arith.constant 0 : index
    %1 = vector.load %arg2[%c0_1, %c0_2] : memref<576x64xbf16, #tpu.memory_space<vmem>>, vector<576x64xbf16>
    %cst = arith.constant dense<0.000000e+00> : vector<128x64xf32>
    %2 = tpu.matmul %0, %1, %cst {dimension_numbers = #tpu.dot_dimension_numbers<[1], [0], [0], [1], [0, 0, 1, 1], [], []>} : vector<128x576xbf16>, vector<576x64xbf16>, vector<128x64xf32> -> vector<128x64xf32>
    %c0_3 = arith.constant 0 : index
    %c0_4 = arith.constant 0 : index
    %3 = vector.load %arg3[%c0_3, %c0_4] : memref<1x64xf32, #tpu.memory_space<vmem>>, vector<1x64xf32>
    %4 = vector.broadcast %3 : vector<1x64xf32> to vector<128x64xf32>
    %5 = arith.addf %2, %4 : vector<128x64xf32>
    %cst_5 = arith.constant 0.000000e+00 : f32
    %6 = vector.broadcast %cst_5 : f32 to vector<128x64xf32>
    %7 = arith.maximumf %5, %6 : vector<128x64xf32>
    %8 = arith.truncf %7 : vector<128x64xf32> to vector<128x64xbf16>
    %c0_6 = arith.constant 0 : index
    %c0_7 = arith.constant 0 : index
    %9 = vector.load %arg4[%c0_6, %c0_7] : memref<128x64xbf16, #tpu.memory_space<vmem>>, vector<128x64xbf16>
    tpu.vector_store %arg4[%c0_6, %c0_7], %8 {strides = array<i32>} : memref<128x64xbf16, #tpu.memory_space<vmem>>, vector<128x64xbf16>,
    return
  }
  func.func @transform_0(%arg0: i32) -> (i32, i32) {
    %c0_i32 = arith.constant 0 : i32
    %c0_i32_0 = arith.constant 0 : i32
    return %arg0, %c0_i32 : i32, i32
  }
  func.func @transform_1(%arg0: i32) -> (i32, i32) {
    %c0_i32 = arith.constant 0 : i32
    %c0_i32_0 = arith.constant 0 : i32
    %c0_i32_1 = arith.constant 0 : i32
    return %c0_i32, %c0_i32_0 : i32, i32
  }
  func.func @transform_2(%arg0: i32) -> (i32, i32) {
    %c0_i32 = arith.constant 0 : i32
    %c0_i32_0 = arith.constant 0 : i32
    %c0_i32_1 = arith.constant 0 : i32
    return %c0_i32, %c0_i32_0 : i32, i32
  }
  func.func @transform_3(%arg0: i32) -> (i32, i32) {
    %c0_i32 = arith.constant 0 : i32
    %c0_i32_0 = arith.constant 0 : i32
    return %arg0, %c0_i32 : i32, i32
  }
}

module attributes {stable_mosaic.version = 11 : i64} {
  func.func @_fused_layer_kernel(%arg0: i32, %arg1: memref<128x1152xbf16, #tpu.memory_space<vmem>>, %arg2: memref<1152x64xbf16, #tpu.memory_space<vmem>>, %arg3: memref<1x64xf32, #tpu.memory_space<vmem>>, %arg4: memref<1x64xf32, #tpu.memory_space<vmem>>, %arg5: memref<1x64xf32, #tpu.memory_space<vmem>>, %arg6: memref<128x64xbf16, #tpu.memory_space<vmem>>) attributes {dimension_semantics = [#tpu.dimension_semantics<arbitrary>], iteration_bounds = array<i64: 1>, scalar_prefetch = 0 : i64, scratch_operands = 0 : i64, tpu.core_type = #tpu.core_type<tc>, window_params = [{transform_indices = @transform_0, window_bounds = array<i64: 128, 1152>}, {pipeline_mode = #tpu.pipeline_mode<synchronous>, transform_indices = @transform_1, window_bounds = array<i64: 1152, 64>}, {pipeline_mode = #tpu.pipeline_mode<synchronous>, transform_indices = @transform_2, window_bounds = array<i64: 1, 64>}, {pipeline_mode = #tpu.pipeline_mode<synchronous>, transform_indices = @transform_3, window_bounds = array<i64: 1, 64>}, {pipeline_mode = #tpu.pipeline_mode<synchronous>, transform_indices = @transform_4, window_bounds = array<i64: 1, 64>}, {transform_indices = @transform_5, window_bounds = array<i64: 128, 64>}]} {
    %c0 = arith.constant 0 : index
    %c0_0 = arith.constant 0 : index
    %0 = vector.load %arg1[%c0, %c0_0] : memref<128x1152xbf16, #tpu.memory_space<vmem>>, vector<128x1152xbf16>
    %c0_1 = arith.constant 0 : index
    %c0_2 = arith.constant 0 : index
    %1 = vector.load %arg2[%c0_1, %c0_2] : memref<1152x64xbf16, #tpu.memory_space<vmem>>, vector<1152x64xbf16>
    %cst = arith.constant dense<0.000000e+00> : vector<128x64xf32>
    %2 = tpu.matmul %0, %1, %cst {dimension_numbers = #tpu.dot_dimension_numbers<[1], [0], [0], [1], [0, 0, 1, 1], [], []>} : vector<128x1152xbf16>, vector<1152x64xbf16>, vector<128x64xf32> -> vector<128x64xf32>
    %c0_3 = arith.constant 0 : index
    %c0_4 = arith.constant 0 : index
    %3 = vector.load %arg3[%c0_3, %c0_4] : memref<1x64xf32, #tpu.memory_space<vmem>>, vector<1x64xf32>
    %4 = vector.broadcast %3 : vector<1x64xf32> to vector<128x64xf32>
    %5 = arith.addf %2, %4 : vector<128x64xf32>
    %cst_5 = arith.constant dense<0.000000e+00> : vector<64xf32>
    %6 = vector.multi_reduction <add>, %5, %cst_5 [0] : vector<128x64xf32> to vector<64xf32>
    %7 = vector.shape_cast %6 : vector<64xf32> to vector<1x64xf32>
    %cst_6 = arith.constant 1.280000e+02 : f32
    %8 = vector.broadcast %cst_6 : f32 to vector<1x64xf32>
    %9 = arith.divf %7, %8 : vector<1x64xf32>
    %10 = arith.mulf %5, %5 : vector<128x64xf32>
    %cst_7 = arith.constant dense<0.000000e+00> : vector<64xf32>
    %11 = vector.multi_reduction <add>, %10, %cst_7 [0] : vector<128x64xf32> to vector<64xf32>
    %12 = vector.shape_cast %11 : vector<64xf32> to vector<1x64xf32>
    %cst_8 = arith.constant 1.280000e+02 : f32
    %13 = vector.broadcast %cst_8 : f32 to vector<1x64xf32>
    %14 = arith.divf %12, %13 : vector<1x64xf32>
    %15 = arith.mulf %9, %9 : vector<1x64xf32>
    %16 = arith.subf %14, %15 : vector<1x64xf32>
    %cst_9 = arith.constant 0.000000e+00 : f32
    %17 = vector.broadcast %cst_9 : f32 to vector<1x64xf32>
    %18 = arith.maximumf %16, %17 : vector<1x64xf32>
    %cst_10 = arith.constant 9.99999974E-6 : f32
    %19 = vector.broadcast %cst_10 : f32 to vector<1x64xf32>
    %20 = arith.addf %18, %19 : vector<1x64xf32>
    %21 = math.rsqrt %20 : vector<1x64xf32>
    %c0_11 = arith.constant 0 : index
    %c0_12 = arith.constant 0 : index
    %22 = vector.load %arg4[%c0_11, %c0_12] : memref<1x64xf32, #tpu.memory_space<vmem>>, vector<1x64xf32>
    %23 = arith.mulf %21, %22 : vector<1x64xf32>
    %24 = vector.broadcast %9 : vector<1x64xf32> to vector<128x64xf32>
    %25 = arith.subf %5, %24 : vector<128x64xf32>
    %26 = vector.broadcast %23 : vector<1x64xf32> to vector<128x64xf32>
    %27 = arith.mulf %25, %26 : vector<128x64xf32>
    %c0_13 = arith.constant 0 : index
    %c0_14 = arith.constant 0 : index
    %28 = vector.load %arg5[%c0_13, %c0_14] : memref<1x64xf32, #tpu.memory_space<vmem>>, vector<1x64xf32>
    %29 = vector.broadcast %28 : vector<1x64xf32> to vector<128x64xf32>
    %30 = arith.addf %27, %29 : vector<128x64xf32>
    %cst_15 = arith.constant 0.000000e+00 : f32
    %31 = vector.broadcast %cst_15 : f32 to vector<128x64xf32>
    %32 = arith.maximumf %30, %31 : vector<128x64xf32>
    %33 = arith.truncf %32 : vector<128x64xf32> to vector<128x64xbf16>
    %c0_16 = arith.constant 0 : index
    %c0_17 = arith.constant 0 : index
    %34 = vector.load %arg6[%c0_16, %c0_17] : memref<128x64xbf16, #tpu.memory_space<vmem>>, vector<128x64xbf16>
    tpu.vector_store %arg6[%c0_16, %c0_17], %33 {strides = array<i32>} : memref<128x64xbf16, #tpu.memory_space<vmem>>, vector<128x64xbf16>,
    return
  }
  func.func @transform_0(%arg0: i32) -> (i32, i32) {
    %c0_i32 = arith.constant 0 : i32
    %c0_i32_0 = arith.constant 0 : i32
    return %arg0, %c0_i32 : i32, i32
  }
  func.func @transform_1(%arg0: i32) -> (i32, i32) {
    %c0_i32 = arith.constant 0 : i32
    %c0_i32_0 = arith.constant 0 : i32
    %c0_i32_1 = arith.constant 0 : i32
    return %c0_i32, %c0_i32_0 : i32, i32
  }
  func.func @transform_2(%arg0: i32) -> (i32, i32) {
    %c0_i32 = arith.constant 0 : i32
    %c0_i32_0 = arith.constant 0 : i32
    %c0_i32_1 = arith.constant 0 : i32
    return %c0_i32, %c0_i32_0 : i32, i32
  }
  func.func @transform_3(%arg0: i32) -> (i32, i32) {
    %c0_i32 = arith.constant 0 : i32
    %c0_i32_0 = arith.constant 0 : i32
    %c0_i32_1 = arith.constant 0 : i32
    return %c0_i32, %c0_i32_0 : i32, i32
  }
  func.func @transform_4(%arg0: i32) -> (i32, i32) {
    %c0_i32 = arith.constant 0 : i32
    %c0_i32_0 = arith.constant 0 : i32
    %c0_i32_1 = arith.constant 0 : i32
    return %c0_i32, %c0_i32_0 : i32, i32
  }
  func.func @transform_5(%arg0: i32) -> (i32, i32) {
    %c0_i32 = arith.constant 0 : i32
    %c0_i32_0 = arith.constant 0 : i32
    return %arg0, %c0_i32 : i32, i32
  }
}

module attributes {stable_mosaic.version = 11 : i64} {
  func.func @_fused_layer_kernel(%arg0: i32, %arg1: memref<256x576xbf16, #tpu.memory_space<vmem>>, %arg2: memref<576x32xbf16, #tpu.memory_space<vmem>>, %arg3: memref<1x32xf32, #tpu.memory_space<vmem>>, %arg4: memref<256x32xbf16, #tpu.memory_space<vmem>>) attributes {dimension_semantics = [#tpu.dimension_semantics<parallel>], iteration_bounds = array<i64: 2>, scalar_prefetch = 0 : i64, scratch_operands = 0 : i64, tpu.core_type = #tpu.core_type<tc>, window_params = [{transform_indices = @transform_0, window_bounds = array<i64: 256, 576>}, {pipeline_mode = #tpu.pipeline_mode<synchronous>, transform_indices = @transform_1, window_bounds = array<i64: 576, 32>}, {pipeline_mode = #tpu.pipeline_mode<synchronous>, transform_indices = @transform_2, window_bounds = array<i64: 1, 32>}, {transform_indices = @transform_3, window_bounds = array<i64: 256, 32>}]} {
    %c0 = arith.constant 0 : index
    %c0_0 = arith.constant 0 : index
    %0 = vector.load %arg1[%c0, %c0_0] : memref<256x576xbf16, #tpu.memory_space<vmem>>, vector<256x576xbf16>
    %c0_1 = arith.constant 0 : index
    %c0_2 = arith.constant 0 : index
    %1 = vector.load %arg2[%c0_1, %c0_2] : memref<576x32xbf16, #tpu.memory_space<vmem>>, vector<576x32xbf16>
    %cst = arith.constant dense<0.000000e+00> : vector<256x32xf32>
    %2 = tpu.matmul %0, %1, %cst {dimension_numbers = #tpu.dot_dimension_numbers<[1], [0], [0], [1], [0, 0, 1, 1], [], []>} : vector<256x576xbf16>, vector<576x32xbf16>, vector<256x32xf32> -> vector<256x32xf32>
    %c0_3 = arith.constant 0 : index
    %c0_4 = arith.constant 0 : index
    %3 = vector.load %arg3[%c0_3, %c0_4] : memref<1x32xf32, #tpu.memory_space<vmem>>, vector<1x32xf32>
    %4 = vector.broadcast %3 : vector<1x32xf32> to vector<256x32xf32>
    %5 = arith.addf %2, %4 : vector<256x32xf32>
    %6 = arith.negf %5 : vector<256x32xf32>
    %7 = math.exp %6 : vector<256x32xf32>
    %cst_5 = arith.constant 1.000000e+00 : f32
    %8 = vector.broadcast %cst_5 : f32 to vector<256x32xf32>
    %9 = arith.addf %8, %7 : vector<256x32xf32>
    %10 = arith.divf %8, %9 : vector<256x32xf32>
    %11 = arith.truncf %10 : vector<256x32xf32> to vector<256x32xbf16>
    %c0_6 = arith.constant 0 : index
    %c0_7 = arith.constant 0 : index
    %12 = vector.load %arg4[%c0_6, %c0_7] : memref<256x32xbf16, #tpu.memory_space<vmem>>, vector<256x32xbf16>
    tpu.vector_store %arg4[%c0_6, %c0_7], %11 {strides = array<i32>} : memref<256x32xbf16, #tpu.memory_space<vmem>>, vector<256x32xbf16>,
    return
  }
  func.func @transform_0(%arg0: i32) -> (i32, i32) {
    %c0_i32 = arith.constant 0 : i32
    %c0_i32_0 = arith.constant 0 : i32
    return %arg0, %c0_i32 : i32, i32
  }
  func.func @transform_1(%arg0: i32) -> (i32, i32) {
    %c0_i32 = arith.constant 0 : i32
    %c0_i32_0 = arith.constant 0 : i32
    %c0_i32_1 = arith.constant 0 : i32
    return %c0_i32, %c0_i32_0 : i32, i32
  }
  func.func @transform_2(%arg0: i32) -> (i32, i32) {
    %c0_i32 = arith.constant 0 : i32
    %c0_i32_0 = arith.constant 0 : i32
    %c0_i32_1 = arith.constant 0 : i32
    return %c0_i32, %c0_i32_0 : i32, i32
  }
  func.func @transform_3(%arg0: i32) -> (i32, i32) {
    %c0_i32 = arith.constant 0 : i32
    %c0_i32_0 = arith.constant 0 : i32
    return %arg0, %c0_i32 : i32, i32
  }
}

module attributes {stable_mosaic.version = 11 : i64} {
  func.func @_fused_layer_kernel(%arg0: i32, %arg1: memref<256x288xbf16, #tpu.memory_space<vmem>>, %arg2: memref<288x128xbf16, #tpu.memory_space<vmem>>, %arg3: memref<1x128xf32, #tpu.memory_space<vmem>>, %arg4: memref<256x128xf32, #tpu.memory_space<vmem>>) attributes {dimension_semantics = [#tpu.dimension_semantics<parallel>], iteration_bounds = array<i64: 2>, scalar_prefetch = 0 : i64, scratch_operands = 0 : i64, tpu.core_type = #tpu.core_type<tc>, window_params = [{transform_indices = @transform_0, window_bounds = array<i64: 256, 288>}, {pipeline_mode = #tpu.pipeline_mode<synchronous>, transform_indices = @transform_1, window_bounds = array<i64: 288, 128>}, {pipeline_mode = #tpu.pipeline_mode<synchronous>, transform_indices = @transform_2, window_bounds = array<i64: 1, 128>}, {transform_indices = @transform_3, window_bounds = array<i64: 256, 128>}]} {
    %c0 = arith.constant 0 : index
    %c0_0 = arith.constant 0 : index
    %0 = vector.load %arg1[%c0, %c0_0] : memref<256x288xbf16, #tpu.memory_space<vmem>>, vector<256x288xbf16>
    %c0_1 = arith.constant 0 : index
    %c0_2 = arith.constant 0 : index
    %1 = vector.load %arg2[%c0_1, %c0_2] : memref<288x128xbf16, #tpu.memory_space<vmem>>, vector<288x128xbf16>
    %cst = arith.constant dense<0.000000e+00> : vector<256x128xf32>
    %2 = tpu.matmul %0, %1, %cst {dimension_numbers = #tpu.dot_dimension_numbers<[1], [0], [0], [1], [0, 0, 1, 1], [], []>} : vector<256x288xbf16>, vector<288x128xbf16>, vector<256x128xf32> -> vector<256x128xf32>
    %c0_3 = arith.constant 0 : index
    %c0_4 = arith.constant 0 : index
    %3 = vector.load %arg3[%c0_3, %c0_4] : memref<1x128xf32, #tpu.memory_space<vmem>>, vector<1x128xf32>
    %4 = vector.broadcast %3 : vector<1x128xf32> to vector<256x128xf32>
    %5 = arith.addf %2, %4 : vector<256x128xf32>
    %c0_5 = arith.constant 0 : index
    %c0_6 = arith.constant 0 : index
    %6 = vector.load %arg4[%c0_5, %c0_6] : memref<256x128xf32, #tpu.memory_space<vmem>>, vector<256x128xf32>
    tpu.vector_store %arg4[%c0_5, %c0_6], %5 {strides = array<i32>} : memref<256x128xf32, #tpu.memory_space<vmem>>, vector<256x128xf32>,
    return
  }
  func.func @transform_0(%arg0: i32) -> (i32, i32) {
    %c0_i32 = arith.constant 0 : i32
    %c0_i32_0 = arith.constant 0 : i32
    return %arg0, %c0_i32 : i32, i32
  }
  func.func @transform_1(%arg0: i32) -> (i32, i32) {
    %c0_i32 = arith.constant 0 : i32
    %c0_i32_0 = arith.constant 0 : i32
    %c0_i32_1 = arith.constant 0 : i32
    return %c0_i32, %c0_i32_0 : i32, i32
  }
  func.func @transform_2(%arg0: i32) -> (i32, i32) {
    %c0_i32 = arith.constant 0 : i32
    %c0_i32_0 = arith.constant 0 : i32
    %c0_i32_1 = arith.constant 0 : i32
    return %c0_i32, %c0_i32_0 : i32, i32
  }
  func.func @transform_3(%arg0: i32) -> (i32, i32) {
    %c0_i32 = arith.constant 0 : i32
    %c0_i32_0 = arith.constant 0 : i32
    return %arg0, %c0_i32 : i32, i32
  }
}

</mosaic_0001>

<bundles_post_ra>
// kernel: colornet_forward.15
= control target key start
LH: loop header
LB: loop body
LE: loop exit
PB: predicated region body
PF: predicated region fallthrough
CT: control target
= control target key end

     0   :  { %vm377_vm0 = vcmask 1040384   ;;  %vm280_vm1 = vcmask 400384   ;;  %v1958_v5 = vmov 0   ;;  %vm672_vm2 = vcmask 523264   ;;  %s3969_s1 = inlined_call_operand.vmem [shape: bf16[49,64], index: 1, kind: input, shape index: {}]   ;;  %s3970_s0 = inlined_call_operand.vmem [shape: bf16[512,49], index: 0, kind: input, shape index: {}]   ;;  %s3971_s2 = inlined_call_operand.vmem [shape: f32[1,64], index: 2, kind: input, shape index: {}]   ;;  %s3972_s3 = inlined_call_operand.vmem [shape: f32[1,64], index: 3, kind: input, shape index: {}]   ;;  %s3973_s4 = inlined_call_operand.vmem [shape: f32[1,64], index: 4, kind: input, shape index: {}]   ;;  %s3974_s5 = inlined_call_operand.vmem [shape: bf16[512,64], index: 5, kind: output, shape index: {}]  }
   0x1   :  { %v1920_v0 = vld [vmem:[%s3969_s1] sm:$0xff]   ;;  %v1921_v1 = vld [vmem:[%s3969_s1 + $0x8] sm:$0xff]   ;;  %v1922_v2 = vld [vmem:[%s3969_s1 + $0x10] sm:$0xff]   ;;  %v379_v6 = vsel %vm377_vm0, 65535, %v1958_v5  ;;  %vm1536_vm3 = vcmask 519168  }
   0x2   :  { %1839 = vmatprep.subr.bf16.mxu0 %v1920_v0  ;;  %1911 = vmatprep.subr.bf16.mxu1 %v1920_v0  ;;  %v1923_v3 = vld [vmem:[%s3969_s1 + $0x18] ss:$0 sps:$4 sm:$0x11]   ;;  %v1924_v4 = vld [vmem:[%s3970_s0] sm:$0xff]   ;;  %v1925_v8 = vld [vmem:[%s3970_s0 + $0x8] sm:$0xff]  }
   0x3   :  { %1840 = vmatpush3.bf16.msra.mxu0 %v1920_v0  ;;  %1915 = vmatpush3.bf16.msra.mxu1 %v1920_v0  ;;  %v381_v7 = vand.u32 %v1923_v3, %v379_v6  ;;  %v1926_v9 = vld [vmem:[%s3970_s0 + $0x10] sm:$0xff]   ;;  %v1927_v10 = vld [vmem:[%s3970_s0 + $0x18] sm:$0xff]   ;;  %v1940_v11 = vld [vmem:[%s3970_s0 + $0x80] sm:$0xff]  }
   0x4   :  { %1841 = vmatprep.subr.bf16.mxu0 %v1921_v1  ;;  %1912 = vmatprep.subr.bf16.mxu1 %v1921_v1  ;;  %v1941_v12 = vld [vmem:[%s3970_s0 + $0x88] sm:$0xff]   ;;  %v1942_v13 = vld [vmem:[%s3970_s0 + $0x90] sm:$0xff]   ;;  %v1928_v14 = vld [vmem:[%s3970_s0 + $0x20] sm:$0xff]  }
   0x5   :  { %1847 = vmatprep.mubr.msk.bf16.mxu0 %vm280_vm1, %v1924_v4  ;;  %1879 = vmatprep.mubr.msk.bf16.mxu1 %vm280_vm1, %v1940_v11  ;;  %v1943_v15 = vld [vmem:[%s3970_s0 + $0x98] sm:$0xff]   ;;  %v1944_v16 = vld [vmem:[%s3970_s0 + $0xa0] sm:$0xff]   ;;  %v1929_v17 = vld [vmem:[%s3970_s0 + $0x28] sm:$0xff]  }
   0x6   :  { %v1930_v18 = vld [vmem:[%s3970_s0 + $0x30] sm:$0xff]   ;;  %v1945_v19 = vld [vmem:[%s3970_s0 + $0xa8] sm:$0xff]   ;;  %v1931_v21 = vld [vmem:[%s3970_s0 + $0x38] sm:$0xff]  }
   0x7   :  { %1842 = vmatpush3.bf16.msra.mxu0 %v1921_v1  ;;  %1916 = vmatpush3.bf16.msra.mxu1 %v1921_v1  ;;  %v1946_v20 = vld [vmem:[%s3970_s0 + $0xb0] sm:$0xff]   ;;  %v1932_v22 = vld [vmem:[%s3970_s0 + $0x40] sm:$0xff]   ;;  %v1947_v23 = vld [vmem:[%s3970_s0 + $0xb8] sm:$0xff]  }
   0x8   :  { %1843 = vmatprep.subr.bf16.mxu0 %v1922_v2  ;;  %1913 = vmatprep.subr.bf16.mxu1 %v1922_v2  ;;  %v1948_v24 = vld [vmem:[%s3970_s0 + $0xc0] sm:$0xff]   ;;  %v1933_v25 = vld [vmem:[%s3970_s0 + $0x48] sm:$0xff]   ;;  %v1934_v26 = vld [vmem:[%s3970_s0 + $0x50] sm:$0xff]  }
   0x9   :  { %v1949_v27 = vld [vmem:[%s3970_s0 + $0xc8] sm:$0xff]   ;;  %v1950_v28 = vld [vmem:[%s3970_s0 + $0xd0] sm:$0xff]   ;;  %v1935_v29 = vld [vmem:[%s3970_s0 + $0x58] sm:$0xff]  }
   0xa   :  { %v1936_v30 = vld [vmem:[%s3970_s0 + $0x60] sm:$0xff]   ;;  %v1951_v31 = vld [vmem:[%s3970_s0 + $0xd8] sm:$0xff]   ;;  %v1937_v33 = vld [vmem:[%s3970_s0 + $0x68] sm:$0xff]  }
   0xb   :  { %1844 = vmatpush3.bf16.msra.mxu0 %v1922_v2  ;;  %1917 = vmatpush3.bf16.msra.mxu1 %v1922_v2  ;;  %v1952_v32 = vld [vmem:[%s3970_s0 + $0xe0] sm:$0xff]   ;;  %v1938_v34 = vld [vmem:[%s3970_s0 + $0x70] sm:$0xff]   ;;  %v1953_v35 = vld [vmem:[%s3970_s0 + $0xe8] sm:$0xff]  }
   0xc   :  { %1845 = vmatprep.subr.bf16.mxu0 %v381_v7  ;;  %1914 = vmatprep.subr.bf16.mxu1 %v381_v7  ;;  %v1954_v36 = vld [vmem:[%s3970_s0 + $0xf0] sm:$0xff]   ;;  %v1939_v37 = vld [vmem:[%s3970_s0 + $0x78] sm:$0xff]   ;;  %v2132_v39 = vld [vmem:[%s3971_s2] ss:$0 sm:$0xff] }
   0xd   :  { %v1955_v38 = vld [vmem:[%s3970_s0 + $0xf8] sm:$0xff]  }
   0xf   :  { %1846 = vmatpush3.bf16.msra.mxu0 %v381_v7  ;;  %1918 = vmatpush3.bf16.msra.mxu1 %v381_v7 }
  0x12   :  { %1848 = vmatmul.mubr.msk.bf16.vlgmr.msra.gmra.mrb[0].mxu0 %vm280_vm1, %v1925_v8  ;;  %1880 = vmatmul.mubr.msk.bf16.vlgmr.msra.gmra.mrb[0].mxu1 %vm280_vm1, %v1941_v12 }
  0x13   :  { %1851 = vmatprep.mubr.msk.bf16.mxu0 %vm280_vm1, %v1926_v9  ;;  %1883 = vmatprep.mubr.msk.bf16.mxu1 %vm280_vm1, %v1942_v13 }
  0x1a   :  { %1852 = vmatmul.mubr.msk.bf16.gmra.mrb[4].mxu0 %vm280_vm1, %v1927_v10  ;;  %1884 = vmatmul.mubr.msk.bf16.gmra.mrb[4].mxu1 %vm280_vm1, %v1943_v15 }
  0x1b   :  { %1855 = vmatprep.mubr.msk.bf16.mxu0 %vm280_vm1, %v1928_v14  ;;  %1887 = vmatprep.mubr.msk.bf16.mxu1 %vm280_vm1, %v1944_v16 }
  0x22   :  { %1856 = vmatmul.mubr.msk.bf16.gmra.mrb[8].mxu0 %vm280_vm1, %v1929_v17  ;;  %1888 = vmatmul.mubr.msk.bf16.gmra.mrb[8].mxu1 %vm280_vm1, %v1945_v19 }
  0x23   :  { %1859 = vmatprep.mubr.msk.bf16.mxu0 %vm280_vm1, %v1930_v18  ;;  %1891 = vmatprep.mubr.msk.bf16.mxu1 %vm280_vm1, %v1946_v20 }
  0x2a   :  { %1860 = vmatmul.mubr.msk.bf16.gmra.mrb[12].mxu0 %vm280_vm1, %v1931_v21  ;;  %1892 = vmatmul.mubr.msk.bf16.gmra.mrb[12].mxu1 %vm280_vm1, %v1947_v23 }
  0x2b   :  { %1863 = vmatprep.mubr.msk.bf16.mxu0 %vm280_vm1, %v1932_v22  ;;  %1895 = vmatprep.mubr.msk.bf16.mxu1 %vm280_vm1, %v1948_v24 }
  0x32   :  { %1864 = vmatmul.mubr.msk.bf16.gmra.mrb[16].mxu0 %vm280_vm1, %v1933_v25  ;;  %1896 = vmatmul.mubr.msk.bf16.gmra.mrb[16].mxu1 %vm280_vm1, %v1949_v27 }
  0x33   :  { %1867 = vmatprep.mubr.msk.bf16.mxu0 %vm280_vm1, %v1934_v26  ;;  %1899 = vmatprep.mubr.msk.bf16.mxu1 %vm280_vm1, %v1950_v28 }
  0x3a   :  { %1868 = vmatmul.mubr.msk.bf16.gmra.mrb[20].mxu0 %vm280_vm1, %v1935_v29  ;;  %1900 = vmatmul.mubr.msk.bf16.gmra.mrb[20].mxu1 %vm280_vm1, %v1951_v31 }
  0x3b   :  { %1871 = vmatprep.mubr.msk.bf16.mxu0 %vm280_vm1, %v1936_v30  ;;  %1903 = vmatprep.mubr.msk.bf16.mxu1 %vm280_vm1, %v1952_v32 }
  0x42   :  { %1872 = vmatmul.mubr.msk.bf16.gmra.mrb[24].mxu0 %vm280_vm1, %v1937_v33  ;;  %1904 = vmatmul.mubr.msk.bf16.gmra.mrb[24].mxu1 %vm280_vm1, %v1953_v35 }
  0x43   :  { %1875 = vmatprep.mubr.msk.bf16.mxu0 %vm280_vm1, %v1938_v34  ;;  %1907 = vmatprep.mubr.msk.bf16.mxu1 %vm280_vm1, %v1954_v36 }
  0x4a   :  { %1876 = vmatmul.mubr.msk.bf16.gmra.mrb[28].mxu0 %vm280_vm1, %v1939_v37  ;;  %1908 = vmatmul.mubr.msk.bf16.gmra.mrb[28].mxu1 %vm280_vm1, %v1955_v38 }
  0xe5   :  { %v1849_v40 = vpop.f32.mrb[0].mxu0  ;;  %v2148_v49 = vpop.f32.mrb[0].mxu1 }
  0xe6   :  { %v417_v41 = vpop.f32.mrb[1].mxu0  ;;  %v2135_v42 = vadd.f32 %v1849_v40, %v2132_v39  ;;  %v2158_v54 = vpop.f32.mrb[1].mxu1 }
  0xe7   :  { %v2138_v43 = vadd.f32 %v2132_v39, %v417_v41  ;;  %v1850_v44 = vpop.f32.mrb[2].mxu0  ;;  %v2160_v56 = vpop.f32.mrb[2].mxu1 }
  0xe8   :  { %v420_v45 = vpop.f32.mrb[3].mxu0  ;;  %v2143_v47 = vadd.f32 %v1850_v44, %v2132_v39  ;;  %v810_v50 = vmul.f32 %v2135_v42, %v2135_v42  ;;  %v676_v57 = vsel %vm672_vm2, %v2135_v42, 0.0  ;;  %v2168_v62 = vpop.f32.mrb[3].mxu1 }
  0xe9   :  { %v808_v46 = vmul.f32 %v2138_v43, %v2138_v43  ;;  %v2146_v48 = vadd.f32 %v2132_v39, %v420_v45  ;;  %v673_v51 = vsel %vm672_vm2, %v2138_v43, 0.0 }
  0xea   :  { %v811_v59 = vmul.f32 %v2143_v47, %v2143_v47  ;;  %v875_v2 = vsel %vm672_vm2, %v810_v50, 0.0  ;;  %v678_v3 = vsel %vm672_vm2, %v2143_v47, 0.0 }
  0xeb   :  { %v674_v52 = vsel %vm672_vm2, %v2146_v48, 0.0  ;;  %v809_v53 = vmul.f32 %v2146_v48, %v2146_v48  ;;  %v872_v58 = vsel %vm672_vm2, %v808_v46, 0.0 }
  0xec   :  { %v675_v55 = vadd.f32 %v674_v52, %v673_v51  ;;  %v877_v10 = vsel %vm672_vm2, %v811_v59, 0.0 }
  0xed   :  { %v873_v60 = vsel %vm672_vm2, %v809_v53, 0.0  ;;  %v1853_v61 = vpop.f32.mrb[4].mxu0  ;;  %v2190_v17 = vpop.f32.mrb[4].mxu1 }
  0xee   :  { %v677_v63 = vadd.f32 %v676_v57, %v675_v55  ;;  %v874_v0 = vadd.f32 %v873_v60, %v872_v58  ;;  %v433_v1 = vpop.f32.mrb[5].mxu0  ;;  %v2177_v7 = vadd.f32 %v1853_v61, %v2132_v39  ;;  %v2195_v20 = vpop.f32.mrb[5].mxu1 }
  0xef   :  { %v2174_v4 = vadd.f32 %v2132_v39, %v433_v1  ;;  %v1854_v5 = vpop.f32.mrb[6].mxu0  ;;  %v2201_v25 = vpop.f32.mrb[6].mxu1 }
  0xf0   :  { %v876_v6 = vadd.f32 %v875_v2, %v874_v0  ;;  %v679_v8 = vadd.f32 %v678_v3, %v677_v63  ;;  %v436_v9 = vpop.f32.mrb[7].mxu0  ;;  %v2188_v16 = vadd.f32 %v1854_v5, %v2132_v39  ;;  %v814_v21 = vmul.f32 %v2177_v7, %v2177_v7  ;;  %v2205_v28 = vpop.f32.mrb[7].mxu1 }
  0xf1   :  { %v680_v11 = vsel %vm672_vm2, %v2174_v4, 0.0  ;;  %v812_v12 = vmul.f32 %v2174_v4, %v2174_v4  ;;  %v2185_v13 = vadd.f32 %v2132_v39, %v436_v9  ;;  %v684_v26 = vsel %vm672_vm2, %v2177_v7, 0.0 }
  0xf2   :  { %v681_v14 = vadd.f32 %v680_v11, %v679_v8  ;;  %v878_v15 = vadd.f32 %v877_v10, %v876_v6  ;;  %v815_v29 = vmul.f32 %v2188_v16, %v2188_v16  ;;  %v686_v33 = vsel %vm672_vm2, %v2188_v16, 0.0 }
  0xf3   :  { %v879_v18 = vsel %vm672_vm2, %v812_v12, 0.0  ;;  %v682_v19 = vsel %vm672_vm2, %v2185_v13, 0.0  ;;  %v813_v24 = vmul.f32 %v2185_v13, %v2185_v13  ;;  %v883_v37 = vsel %vm672_vm2, %v814_v21, 0.0 }
  0xf4   :  { %v880_v22 = vadd.f32 %v879_v18, %v878_v15  ;;  %v683_v23 = vadd.f32 %v682_v19, %v681_v14  ;;  %v885_v51 = vsel %vm672_vm2, %v815_v29, 0.0 }
  0xf5   :  { %v1857_v27 = vpop.f32.mrb[8].mxu0  ;;  %v881_v31 = vsel %vm672_vm2, %v813_v24, 0.0  ;;  %v2230_v55 = vpop.f32.mrb[8].mxu1 }
  0xf6   :  { %v685_v30 = vadd.f32 %v684_v26, %v683_v23  ;;  %v449_v32 = vpop.f32.mrb[9].mxu0  ;;  %v882_v34 = vadd.f32 %v881_v31, %v880_v22  ;;  %v2217_v38 = vadd.f32 %v1857_v27, %v2132_v39  ;;  %v2237_v61 = vpop.f32.mrb[9].mxu1 }
  0xf7   :  { %v2213_v35 = vadd.f32 %v2132_v39, %v449_v32  ;;  %v1858_v36 = vpop.f32.mrb[10].mxu0  ;;  %v2241_v1 = vpop.f32.mrb[10].mxu1 }
  0xf8   :  { %v687_v40 = vadd.f32 %v686_v33, %v685_v30  ;;  %v452_v41 = vpop.f32.mrb[11].mxu0  ;;  %v884_v44 = vadd.f32 %v883_v37, %v882_v34  ;;  %v2228_v53 = vadd.f32 %v1858_v36, %v2132_v39  ;;  %v818_v63 = vmul.f32 %v2217_v38, %v2217_v38  ;;  %v2246_v8 = vpop.f32.mrb[11].mxu1 }
  0xf9   :  { %v688_v45 = vsel %vm672_vm2, %v2213_v35, 0.0  ;;  %v816_v46 = vmul.f32 %v2213_v35, %v2213_v35  ;;  %v2224_v50 = vadd.f32 %v2132_v39, %v452_v41  ;;  %v692_v2 = vsel %vm672_vm2, %v2217_v38, 0.0 }
  0xfa   :  { %v689_v52 = vadd.f32 %v688_v45, %v687_v40  ;;  %v886_v57 = vadd.f32 %v885_v51, %v884_v44  ;;  %v819_v9 = vmul.f32 %v2228_v53, %v2228_v53  ;;  %v694_v12 = vsel %vm672_vm2, %v2228_v53, 0.0 }
  0xfb   :  { %v887_v58 = vsel %vm672_vm2, %v816_v46, 0.0  ;;  %v690_v59 = vsel %vm672_vm2, %v2224_v50, 0.0  ;;  %v817_v60 = vmul.f32 %v2224_v50, %v2224_v50  ;;  %v891_v19 = vsel %vm672_vm2, %v818_v63, 0.0 }
  0xfc   :  { %v691_v0 = vadd.f32 %v690_v59, %v689_v52  ;;  %v888_v3 = vadd.f32 %v887_v58, %v886_v57  ;;  %v893_v30 = vsel %vm672_vm2, %v819_v9, 0.0 }
  0xfd   :  { %v889_v5 = vsel %vm672_vm2, %v817_v60, 0.0  ;;  %v1861_v6 = vpop.f32.mrb[12].mxu0  ;;  %v2270_v33 = vpop.f32.mrb[12].mxu1 }
  0xfe   :  { %v693_v10 = vadd.f32 %v692_v2, %v691_v0  ;;  %v465_v11 = vpop.f32.mrb[13].mxu0  ;;  %v890_v14 = vadd.f32 %v889_v5, %v888_v3  ;;  %v2257_v21 = vadd.f32 %v1861_v6, %v2132_v39  ;;  %v2277_v41 = vpop.f32.mrb[13].mxu1 }
  0xff   :  { %v2253_v15 = vadd.f32 %v2132_v39, %v465_v11  ;;  %v1862_v18 = vpop.f32.mrb[14].mxu0  ;;  %v2281_v46 = vpop.f32.mrb[14].mxu1 }
 0x100   :  { %4042 = vst [vmem:[#allocation2_spill] sm:$0xff] %v2257_v21  ;;  %v695_v22 = vadd.f32 %v694_v12, %v693_v10  ;;  %v468_v23 = vpop.f32.mrb[15].mxu0  ;;  %v892_v24 = vadd.f32 %v891_v19, %v890_v14  ;;  %v2268_v32 = vadd.f32 %v1862_v18, %v2132_v39  ;;  %v822_v44 = vmul.f32 %v2257_v21, %v2257_v21  ;;  %v2286_v59 = vpop.f32.mrb[15].mxu1 }
 0x101   :  { %v696_v26 = vsel %vm672_vm2, %v2253_v15, 0.0  ;;  %v820_v27 = vmul.f32 %v2253_v15, %v2253_v15  ;;  %v2264_v29 = vadd.f32 %v2132_v39, %v468_v23  ;;  %v700_v51 = vsel %vm672_vm2, %v2257_v21, 0.0 }
 0x102   :  { %v697_v31 = vadd.f32 %v696_v26, %v695_v22  ;;  %4043 = vst [vmem:[#allocation3_spill] sm:$0xff] %v2268_v32  ;;  %v894_v34 = vadd.f32 %v893_v30, %v892_v24  ;;  %v823_v60 = vmul.f32 %v2268_v32, %v2268_v32  ;;  %v702_v2 = vsel %vm672_vm2, %v2268_v32, 0.0 }
 0x103   :  { %v895_v36 = vsel %vm672_vm2, %v820_v27, 0.0  ;;  %v698_v37 = vsel %vm672_vm2, %v2264_v29, 0.0  ;;  %v821_v40 = vmul.f32 %v2264_v29, %v2264_v29  ;;  %v899_v9 = vsel %vm672_vm2, %v822_v44, 0.0 }
 0x104   :  { %v699_v45 = vadd.f32 %v698_v37, %v697_v31  ;;  %v896_v52 = vadd.f32 %v895_v36, %v894_v34  ;;  %v901_v23 = vsel %vm672_vm2, %v823_v60, 0.0 }
 0x105   :  { %v897_v57 = vsel %vm672_vm2, %v821_v40, 0.0  ;;  %v1865_v58 = vpop.f32.mrb[16].mxu0  ;;  %v2310_v27 = vpop.f32.mrb[16].mxu1 }
 0x106   :  { %v701_v63 = vadd.f32 %v700_v51, %v699_v45  ;;  %v481_v0 = vpop.f32.mrb[17].mxu0  ;;  %v898_v3 = vadd.f32 %v897_v57, %v896_v52  ;;  %v2297_v10 = vadd.f32 %v1865_v58, %v2132_v39  ;;  %v2317_v37 = vpop.f32.mrb[17].mxu1 }
 0x107   :  { %v2293_v5 = vadd.f32 %v2132_v39, %v481_v0  ;;  %v1866_v6 = vpop.f32.mrb[18].mxu0  ;;  %v2321_v45 = vpop.f32.mrb[18].mxu1 }
 0x108   :  { %4045 = vst [vmem:[#allocation5_spill] sm:$0xff] %v2297_v10  ;;  %v703_v11 = vadd.f32 %v702_v2, %v701_v63  ;;  %v484_v12 = vpop.f32.mrb[19].mxu0  ;;  %v900_v14 = vadd.f32 %v899_v9, %v898_v3  ;;  %v2308_v26 = vadd.f32 %v1866_v6, %v2132_v39  ;;  %v826_v40 = vmul.f32 %v2297_v10, %v2297_v10  ;;  %v2326_v60 = vpop.f32.mrb[19].mxu1 }
 0x109   :  { %4044 = vst [vmem:[#allocation4_spill] sm:$0xff] %v2293_v5  ;;  %v704_v18 = vsel %vm672_vm2, %v2293_v5, 0.0  ;;  %v824_v19 = vmul.f32 %v2293_v5, %v2293_v5  ;;  %v2304_v22 = vadd.f32 %v2132_v39, %v484_v12  ;;  %v708_v51 = vsel %vm672_vm2, %v2297_v10, 0.0 }
 0x10a   :  { %v705_v24 = vadd.f32 %v704_v18, %v703_v11  ;;  %4047 = vst [vmem:[#allocation7_spill] sm:$0xff] %v2308_v26  ;;  %v902_v30 = vadd.f32 %v901_v23, %v900_v14  ;;  %v827_v63 = vmul.f32 %v2308_v26, %v2308_v26  ;;  %v710_v3 = vsel %vm672_vm2, %v2308_v26, 0.0 }
 0x10b   :  { %4046 = vst [vmem:[#allocation6_spill] sm:$0xff] %v2304_v22  ;;  %v903_v31 = vsel %vm672_vm2, %v824_v19, 0.0  ;;  %v706_v34 = vsel %vm672_vm2, %v2304_v22, 0.0  ;;  %v825_v36 = vmul.f32 %v2304_v22, %v2304_v22  ;;  %v907_v12 = vsel %vm672_vm2, %v826_v40, 0.0 }
 0x10c   :  { %v707_v44 = vadd.f32 %v706_v34, %v705_v24  ;;  %v904_v52 = vadd.f32 %v903_v31, %v902_v30  ;;  %v909_v34 = vsel %vm672_vm2, %v827_v63, 0.0  ;;  %v2421_v5 = vadd.f32 %v2132_v39, %v2158_v54 }
 0x10d   :  { %v905_v57 = vsel %vm672_vm2, %v825_v36, 0.0  ;;  %v1869_v58 = vpop.f32.mrb[20].mxu0 }
 0x10e   :  { %v709_v0 = vadd.f32 %v708_v51, %v707_v44  ;;  %v497_v2 = vpop.f32.mrb[21].mxu0  ;;  %v906_v6 = vadd.f32 %v905_v57, %v904_v52  ;;  %v2337_v14 = vadd.f32 %v1869_v58, %v2132_v39  ;;  %v2350_v44 = vpop.f32.mrb[20].mxu1  ;;  %4058 = vst [vmem:[#allocation18_spill] sm:$0xff] %v2421_v5 }
 0x10f   :  { %v2333_v9 = vadd.f32 %v2132_v39, %v497_v2  ;;  %v1870_v11 = vpop.f32.mrb[22].mxu0 }
 0x110   :  { %4049 = vst [vmem:[#allocation9_spill] sm:$0xff] %v2337_v14  ;;  %v711_v18 = vadd.f32 %v710_v3, %v709_v0  ;;  %v500_v19 = vpop.f32.mrb[23].mxu0  ;;  %v908_v23 = vadd.f32 %v907_v12, %v906_v6  ;;  %v2348_v40 = vadd.f32 %v1870_v11, %v2132_v39  ;;  %v2357_v0 = vpop.f32.mrb[21].mxu1  ;;  %v830_v63 = vmul.f32 %v2337_v14, %v2337_v14 }
 0x111   :  { %4048 = vst [vmem:[#allocation8_spill] sm:$0xff] %v2333_v9  ;;  %v712_v24 = vsel %vm672_vm2, %v2333_v9, 0.0  ;;  %v828_v30 = vmul.f32 %v2333_v9, %v2333_v9  ;;  %v2344_v31 = vadd.f32 %v2132_v39, %v500_v19  ;;  %v2361_v3 = vpop.f32.mrb[22].mxu1  ;;  %v716_v6 = vsel %vm672_vm2, %v2337_v14, 0.0 }
 0x112   :  { %v713_v36 = vadd.f32 %v712_v24, %v711_v18  ;;  %4051 = vst [vmem:[#allocation11_spill] sm:$0xff] %v2348_v40  ;;  %v910_v51 = vadd.f32 %v909_v34, %v908_v23  ;;  %v2366_v19 = vpop.f32.mrb[23].mxu1  ;;  %v831_v23 = vmul.f32 %v2348_v40, %v2348_v40  ;;  %v718_v34 = vsel %vm672_vm2, %v2348_v40, 0.0 }
 0x113   :  { %4050 = vst [vmem:[#allocation10_spill] sm:$0xff] %v2344_v31  ;;  %v911_v52 = vsel %vm672_vm2, %v828_v30, 0.0  ;;  %v714_v57 = vsel %vm672_vm2, %v2344_v31, 0.0  ;;  %v829_v58 = vmul.f32 %v2344_v31, %v2344_v31 }
 0x114   :  { %v715_v2 = vadd.f32 %v714_v57, %v713_v36  ;;  %v912_v11 = vadd.f32 %v911_v52, %v910_v51  ;;  %v915_v51 = vsel %vm672_vm2, %v830_v63, 0.0 }
 0x115   :  { %v913_v12 = vsel %vm672_vm2, %v829_v58, 0.0  ;;  %v1873_v18 = vpop.f32.mrb[24].mxu0 }
 0x116   :  { %v717_v24 = vadd.f32 %v716_v6, %v715_v2  ;;  %v513_v30 = vpop.f32.mrb[25].mxu0  ;;  %v914_v36 = vadd.f32 %v913_v12, %v912_v11  ;;  %v2377_v52 = vadd.f32 %v1873_v18, %v2132_v39  ;;  %v917_v12 = vsel %vm672_vm2, %v831_v23, 0.0  ;;  %v2390_v18 = vpop.f32.mrb[24].mxu1 }
 0x117   :  { %v2373_v57 = vadd.f32 %v2132_v39, %v513_v30  ;;  %v1874_v31 = vpop.f32.mrb[26].mxu0 }
 0x118   :  { %4053 = vst [vmem:[#allocation13_spill] sm:$0xff] %v2377_v52  ;;  %v719_v58 = vadd.f32 %v718_v34, %v717_v24  ;;  %v516_v14 = vpop.f32.mrb[27].mxu0  ;;  %v916_v9 = vadd.f32 %v915_v51, %v914_v36  ;;  %v2388_v63 = vadd.f32 %v1874_v31, %v2132_v39  ;;  %v724_v31 = vsel %vm672_vm2, %v2377_v52, 0.0 }
 0x119   :  { %4052 = vst [vmem:[#allocation12_spill] sm:$0xff] %v2373_v57  ;;  %v720_v2 = vsel %vm672_vm2, %v2373_v57, 0.0  ;;  %v832_v6 = vmul.f32 %v2373_v57, %v2373_v57  ;;  %v2384_v11 = vadd.f32 %v2132_v39, %v516_v14  ;;  %v2397_v57 = vpop.f32.mrb[25].mxu1  ;;  %v834_v14 = vmul.f32 %v2377_v52, %v2377_v52 }
 0x11a   :  { %v721_v30 = vadd.f32 %v720_v2, %v719_v58  ;;  %4055 = vst [vmem:[#allocation15_spill] sm:$0xff] %v2388_v63  ;;  %v918_v24 = vadd.f32 %v917_v12, %v916_v9  ;;  %v2401_v58 = vpop.f32.mrb[26].mxu1  ;;  %v726_v10 = vsel %vm672_vm2, %v2388_v63, 0.0 }
 0x11b   :  { %4054 = vst [vmem:[#allocation14_spill] sm:$0xff] %v2384_v11  ;;  %v919_v34 = vsel %vm672_vm2, %v832_v6, 0.0  ;;  %v722_v36 = vsel %vm672_vm2, %v2384_v11, 0.0  ;;  %v833_v51 = vmul.f32 %v2384_v11, %v2384_v11  ;;  %v2406_v12 = vpop.f32.mrb[27].mxu1  ;;  %v835_v11 = vmul.f32 %v2388_v63, %v2388_v63 }
 0x11c   :  { %v723_v23 = vadd.f32 %v722_v36, %v721_v30  ;;  %v920_v9 = vadd.f32 %v919_v34, %v918_v24  ;;  %v923_v24 = vsel %vm672_vm2, %v834_v14, 0.0 }
 0x11d   :  { %v921_v2 = vsel %vm672_vm2, %v833_v51, 0.0  ;;  %v1877_v6 = vpop.f32.mrb[28].mxu0  ;;  %v925_v14 = vsel %vm672_vm2, %v835_v11, 0.0 }
 0x11e   :  { %v725_v40 = vadd.f32 %v724_v31, %v723_v23  ;;  %v529_v26 = vpop.f32.mrb[29].mxu0  ;;  %v922_v30 = vadd.f32 %v921_v2, %v920_v9  ;;  %v2417_v34 = vadd.f32 %v1877_v6, %v2132_v39 }
 0x11f   :  { %v2413_v36 = vadd.f32 %v2132_v39, %v529_v26  ;;  %v1878_v22 = vpop.f32.mrb[30].mxu0 }
 0x120   :  { %4057 = vst [vmem:[#allocation17_spill] sm:$0xff] %v2417_v34  ;;  %v727_v51 = vadd.f32 %v726_v10, %v725_v40  ;;  %v532_v52 = vpop.f32.mrb[31].mxu0  ;;  %v924_v23 = vadd.f32 %v923_v24, %v922_v30  ;;  %v2432_v10 = vadd.f32 %v1878_v22, %v2132_v39  ;;  %v2434_v40 = vpop.f32.mrb[28].mxu1  ;;  %v732_v22 = vsel %vm672_vm2, %v2417_v34, 0.0 }
 0x121   :  { %4056 = vst [vmem:[#allocation16_spill] sm:$0xff] %v2413_v36  ;;  %v728_v31 = vsel %vm672_vm2, %v2413_v36, 0.0  ;;  %v836_v26 = vmul.f32 %v2413_v36, %v2413_v36  ;;  %v2428_v9 = vadd.f32 %v2132_v39, %v532_v52  ;;  %v2441_v36 = vpop.f32.mrb[29].mxu1  ;;  %v838_v52 = vmul.f32 %v2417_v34, %v2417_v34 }
 0x122   :  { %v729_v2 = vadd.f32 %v728_v31, %v727_v51  ;;  %4060 = vst [vmem:[#allocation20_spill] sm:$0xff] %v2432_v10  ;;  %v926_v54 = vadd.f32 %v925_v14, %v924_v23  ;;  %v2445_v51 = vpop.f32.mrb[30].mxu1 }
 0x123   :  { %4059 = vst [vmem:[#allocation19_spill] sm:$0xff] %v2428_v9  ;;  %v927_v6 = vsel %vm672_vm2, %v836_v26, 0.0  ;;  %v730_v30 = vsel %vm672_vm2, %v2428_v9, 0.0  ;;  %v837_v24 = vmul.f32 %v2428_v9, %v2428_v9  ;;  %v840_v26 = vmul.f32 %v2421_v5, %v2421_v5  ;;  %v2452_v14 = vpop.f32.mrb[31].mxu1 }
 0x124   :  { %v731_v11 = vadd.f32 %v730_v30, %v729_v2  ;;  %v928_v23 = vadd.f32 %v927_v6, %v926_v54  ;;  %v839_v9 = vmul.f32 %v2432_v10, %v2432_v10  ;;  %v2458_v2 = vadd.f32 %v2132_v39, %v2168_v62 }
 0x125   :  { %v929_v31 = vsel %vm672_vm2, %v837_v24, 0.0  ;;  %v734_v30 = vsel %vm672_vm2, %v2432_v10, 0.0  ;;  %v736_v54 = vsel %vm672_vm2, %v2421_v5, 0.0  ;;  %v931_v6 = vsel %vm672_vm2, %v838_v52, 0.0 }
 0x126   :  { %v733_v63 = vadd.f32 %v732_v22, %v731_v11  ;;  %v930_v34 = vadd.f32 %v929_v31, %v928_v23  ;;  %v2467_v24 = vadd.f32 %v2148_v49, %v2132_v39  ;;  %v935_v11 = vsel %vm672_vm2, %v840_v26, 0.0 }
 0x127   :  { %v2472_v62 = vadd.f32 %v2160_v56, %v2132_v39  ;;  %v933_v22 = vsel %vm672_vm2, %v839_v9, 0.0  ;;  %v841_v31 = vmul.f32 %v2458_v2, %v2458_v2  ;;  %v2479_v52 = vadd.f32 %v2132_v39, %v2195_v20 }
 0x128   :  { %v735_v32 = vadd.f32 %v734_v30, %v733_v63  ;;  %v932_v21 = vadd.f32 %v931_v6, %v930_v34  ;;  %v738_v63 = vsel %vm672_vm2, %v2458_v2, 0.0  ;;  %v842_v34 = vmul.f32 %v2467_v24, %v2467_v24 }
 0x129   :  { %v740_v56 = vsel %vm672_vm2, %v2467_v24, 0.0  ;;  %v844_v20 = vmul.f32 %v2479_v52, %v2479_v52  ;;  %v742_v6 = vsel %vm672_vm2, %v2472_v62, 0.0 }
 0x12a   :  { %v737_v23 = vadd.f32 %v736_v54, %v735_v32  ;;  %v934_v49 = vadd.f32 %v933_v22, %v932_v21  ;;  %v843_v32 = vmul.f32 %v2472_v62, %v2472_v62  ;;  %v937_v54 = vsel %vm672_vm2, %v841_v31, 0.0 }
 0x12b   :  { %v2494_v21 = vadd.f32 %v2132_v39, %v2205_v28  ;;  %v2508_v28 = vadd.f32 %v2201_v25, %v2132_v39 }
 0x12c   :  { %v739_v26 = vadd.f32 %v738_v63, %v737_v23  ;;  %v936_v9 = vadd.f32 %v935_v11, %v934_v49  ;;  %v744_v11 = vsel %vm672_vm2, %v2479_v52, 0.0  ;;  %v939_v23 = vsel %vm672_vm2, %v842_v34, 0.0 }
 0x12d   :  { %v2503_v49 = vadd.f32 %v2190_v17, %v2132_v39  ;;  %v941_v63 = vsel %vm672_vm2, %v843_v32, 0.0  ;;  %v2515_v34 = vadd.f32 %v2132_v39, %v2237_v61 }
 0x12e   :  { %v741_v30 = vadd.f32 %v740_v56, %v739_v26  ;;  %v938_v22 = vadd.f32 %v937_v54, %v936_v9  ;;  %v943_v9 = vsel %vm672_vm2, %v844_v20, 0.0  ;;  %v845_v54 = vmul.f32 %v2494_v21, %v2494_v21 }
 0x12f   :  { %v846_v32 = vmul.f32 %v2503_v49, %v2503_v49  ;;  %v748_v25 = vsel %vm672_vm2, %v2503_v49, 0.0  ;;  %v847_v20 = vmul.f32 %v2508_v28, %v2508_v28  ;;  %v848_v61 = vmul.f32 %v2515_v34, %v2515_v34 }
 0x130   :  { %v743_v31 = vadd.f32 %v742_v6, %v741_v30  ;;  %v940_v26 = vadd.f32 %v939_v23, %v938_v22  ;;  %v746_v30 = vsel %vm672_vm2, %v2494_v21, 0.0  ;;  %v945_v23 = vsel %vm672_vm2, %v845_v54, 0.0 }
 0x132   :  { %v745_v56 = vadd.f32 %v744_v11, %v743_v31  ;;  %v942_v17 = vadd.f32 %v941_v63, %v940_v26  ;;  %v2530_v31 = vadd.f32 %v2132_v39, %v2246_v8  ;;  %v750_v63 = vsel %vm672_vm2, %v2508_v28, 0.0 }
 0x133   :  { %v2544_v8 = vadd.f32 %v2241_v1, %v2132_v39 }
 0x134   :  { %v747_v6 = vadd.f32 %v746_v30, %v745_v56  ;;  %v944_v22 = vadd.f32 %v943_v9, %v942_v17  ;;  %v752_v56 = vsel %vm672_vm2, %v2515_v34, 0.0  ;;  %v947_v9 = vsel %vm672_vm2, %v846_v32, 0.0 }
 0x135   :  { %v2539_v17 = vadd.f32 %v2230_v55, %v2132_v39  ;;  %v949_v30 = vsel %vm672_vm2, %v847_v20, 0.0  ;;  %v2551_v32 = vadd.f32 %v2132_v39, %v2277_v41 }
 0x136   :  { %v749_v11 = vadd.f32 %v748_v25, %v747_v6  ;;  %v946_v26 = vadd.f32 %v945_v23, %v944_v22  ;;  %v951_v22 = vsel %vm672_vm2, %v848_v61, 0.0  ;;  %v849_v23 = vmul.f32 %v2530_v31, %v2530_v31 }
 0x137   :  { %v850_v20 = vmul.f32 %v2539_v17, %v2539_v17  ;;  %v756_v1 = vsel %vm672_vm2, %v2539_v17, 0.0  ;;  %v851_v61 = vmul.f32 %v2544_v8, %v2544_v8  ;;  %v852_v41 = vmul.f32 %v2551_v32, %v2551_v32 }
 0x138   :  { %v751_v54 = vadd.f32 %v750_v63, %v749_v11  ;;  %v948_v6 = vadd.f32 %v947_v9, %v946_v26  ;;  %v754_v11 = vsel %vm672_vm2, %v2530_v31, 0.0  ;;  %v953_v9 = vsel %vm672_vm2, %v849_v23, 0.0 }
 0x13a   :  { %v753_v25 = vadd.f32 %v752_v56, %v751_v54  ;;  %v950_v55 = vadd.f32 %v949_v30, %v948_v6  ;;  %v2566_v54 = vadd.f32 %v2132_v39, %v2286_v59  ;;  %v758_v30 = vsel %vm672_vm2, %v2544_v8, 0.0 }
 0x13b   :  { %v2580_v59 = vadd.f32 %v2281_v46, %v2132_v39 }
 0x13c   :  { %v755_v63 = vadd.f32 %v754_v11, %v753_v25  ;;  %v952_v26 = vadd.f32 %v951_v22, %v950_v55  ;;  %v760_v25 = vsel %vm672_vm2, %v2551_v32, 0.0  ;;  %v955_v22 = vsel %vm672_vm2, %v850_v20, 0.0 }
 0x13d   :  { %v2575_v55 = vadd.f32 %v2270_v33, %v2132_v39  ;;  %v957_v11 = vsel %vm672_vm2, %v851_v61, 0.0  ;;  %v2587_v20 = vadd.f32 %v2132_v39, %v2317_v37 }
 0x13e   :  { %v757_v56 = vadd.f32 %v756_v1, %v755_v63  ;;  %v954_v6 = vadd.f32 %v953_v9, %v952_v26  ;;  %v959_v26 = vsel %vm672_vm2, %v852_v41, 0.0  ;;  %v853_v9 = vmul.f32 %v2566_v54, %v2566_v54 }
 0x13f   :  { %v854_v61 = vmul.f32 %v2575_v55, %v2575_v55  ;;  %v764_v46 = vsel %vm672_vm2, %v2575_v55, 0.0  ;;  %v855_v41 = vmul.f32 %v2580_v59, %v2580_v59  ;;  %v856_v37 = vmul.f32 %v2587_v20, %v2587_v20 }
 0x140   :  { %v759_v23 = vadd.f32 %v758_v30, %v757_v56  ;;  %v956_v63 = vadd.f32 %v955_v22, %v954_v6  ;;  %v762_v56 = vsel %vm672_vm2, %v2566_v54, 0.0  ;;  %v961_v22 = vsel %vm672_vm2, %v853_v9, 0.0 }
 0x142   :  { %v761_v1 = vadd.f32 %v760_v25, %v759_v23  ;;  %v958_v33 = vadd.f32 %v957_v11, %v956_v63  ;;  %v2602_v23 = vadd.f32 %v2132_v39, %v2326_v60  ;;  %v766_v11 = vsel %vm672_vm2, %v2580_v59, 0.0 }
 0x143   :  { %v2616_v60 = vadd.f32 %v2321_v45, %v2132_v39 }
 0x144   :  { %v763_v30 = vadd.f32 %v762_v56, %v761_v1  ;;  %v960_v6 = vadd.f32 %v959_v26, %v958_v33  ;;  %v768_v1 = vsel %vm672_vm2, %v2587_v20, 0.0  ;;  %v963_v26 = vsel %vm672_vm2, %v854_v61, 0.0 }
 0x145   :  { %v2611_v33 = vadd.f32 %v2310_v27, %v2132_v39  ;;  %v965_v56 = vsel %vm672_vm2, %v855_v41, 0.0  ;;  %4062 = vst [vmem:[#allocation22_spill] sm:$0xff] %v2616_v60  ;;  %v2623_v61 = vadd.f32 %v2132_v39, %v2357_v0 }
 0x146   :  { %v765_v25 = vadd.f32 %v764_v46, %v763_v30  ;;  %v962_v63 = vadd.f32 %v961_v22, %v960_v6  ;;  %v967_v6 = vsel %vm672_vm2, %v856_v37, 0.0  ;;  %v857_v22 = vmul.f32 %v2602_v23, %v2602_v23 }
 0x147   :  { %4061 = vst [vmem:[#allocation21_spill] sm:$0xff] %v2611_v33  ;;  %4063 = vst [vmem:[#allocation23_spill] sm:$0xff] %v2623_v61  ;;  %v858_v41 = vmul.f32 %v2611_v33, %v2611_v33  ;;  %v772_v45 = vsel %vm672_vm2, %v2611_v33, 0.0  ;;  %v859_v37 = vmul.f32 %v2616_v60, %v2616_v60  ;;  %v860_v0 = vmul.f32 %v2623_v61, %v2623_v61 }
 0x148   :  { %v767_v9 = vadd.f32 %v766_v11, %v765_v25  ;;  %v964_v30 = vadd.f32 %v963_v26, %v962_v63  ;;  %v770_v25 = vsel %vm672_vm2, %v2602_v23, 0.0  ;;  %v969_v26 = vsel %vm672_vm2, %v857_v22, 0.0 }
 0x14a   :  { %v769_v46 = vadd.f32 %v768_v1, %v767_v9  ;;  %v966_v27 = vadd.f32 %v965_v56, %v964_v30  ;;  %v2638_v9 = vadd.f32 %v2132_v39, %v2366_v19  ;;  %v774_v56 = vsel %vm672_vm2, %v2616_v60, 0.0 }
 0x14b   :  { %v2652_v19 = vadd.f32 %v2361_v3, %v2132_v39 }
 0x14c   :  { %v771_v11 = vadd.f32 %v770_v25, %v769_v46  ;;  %v968_v63 = vadd.f32 %v967_v6, %v966_v27  ;;  %4064 = vst [vmem:[#allocation24_spill] sm:$0xff] %v2638_v9  ;;  %v776_v46 = vsel %vm672_vm2, %v2623_v61, 0.0  ;;  %v971_v6 = vsel %vm672_vm2, %v858_v41, 0.0 }
 0x14d   :  { %v2647_v27 = vadd.f32 %v2350_v44, %v2132_v39  ;;  %v973_v25 = vsel %vm672_vm2, %v859_v37, 0.0  ;;  %4066 = vst [vmem:[#allocation26_spill] sm:$0xff] %v2652_v19  ;;  %v2659_v41 = vadd.f32 %v2132_v39, %v2397_v57 }
 0x14e   :  { %v773_v1 = vadd.f32 %v772_v45, %v771_v11  ;;  %v970_v30 = vadd.f32 %v969_v26, %v968_v63  ;;  %v975_v63 = vsel %vm672_vm2, %v860_v0, 0.0  ;;  %v861_v26 = vmul.f32 %v2638_v9, %v2638_v9 }
 0x14f   :  { %4065 = vst [vmem:[#allocation25_spill] sm:$0xff] %v2647_v27  ;;  %4067 = vst [vmem:[#allocation27_spill] sm:$0xff] %v2659_v41  ;;  %v862_v37 = vmul.f32 %v2647_v27, %v2647_v27  ;;  %v780_v3 = vsel %vm672_vm2, %v2647_v27, 0.0  ;;  %v863_v0 = vmul.f32 %v2652_v19, %v2652_v19  ;;  %v864_v57 = vmul.f32 %v2659_v41, %v2659_v41 }
 0x150   :  { %v775_v22 = vadd.f32 %v774_v56, %v773_v1  ;;  %v972_v11 = vadd.f32 %v971_v6, %v970_v30  ;;  %v778_v1 = vsel %vm672_vm2, %v2638_v9, 0.0  ;;  %v977_v6 = vsel %vm672_vm2, %v861_v26, 0.0 }
 0x152   :  { %v777_v45 = vadd.f32 %v776_v46, %v775_v22  ;;  %v974_v44 = vadd.f32 %v973_v25, %v972_v11  ;;  %v2674_v22 = vadd.f32 %v2132_v39, %v2406_v12  ;;  %v782_v25 = vsel %vm672_vm2, %v2652_v19, 0.0 }
 0x153   :  { %v2688_v12 = vadd.f32 %v2401_v58, %v2132_v39 }
 0x154   :  { %v779_v56 = vadd.f32 %v778_v1, %v777_v45  ;;  %v976_v30 = vadd.f32 %v975_v63, %v974_v44  ;;  %4068 = vst [vmem:[#allocation28_spill] sm:$0xff] %v2674_v22  ;;  %v784_v45 = vsel %vm672_vm2, %v2659_v41, 0.0  ;;  %v979_v63 = vsel %vm672_vm2, %v862_v37, 0.0 }
 0x155   :  { %v2683_v44 = vadd.f32 %v2390_v18, %v2132_v39  ;;  %v981_v1 = vsel %vm672_vm2, %v863_v0, 0.0  ;;  %4070 = vst [vmem:[#allocation30_spill] sm:$0xff] %v2688_v12  ;;  %v2695_v37 = vadd.f32 %v2132_v39, %v2441_v36  ;;  %v2725_v41 = vadd.f32 %v2445_v51, %v2132_v39 }
 0x156   :  { %v781_v46 = vadd.f32 %v780_v3, %v779_v56  ;;  %v978_v11 = vadd.f32 %v977_v6, %v976_v30  ;;  %v983_v30 = vsel %vm672_vm2, %v864_v57, 0.0  ;;  %v865_v6 = vmul.f32 %v2674_v22, %v2674_v22 }
 0x157   :  { %4069 = vst [vmem:[#allocation29_spill] sm:$0xff] %v2683_v44  ;;  %4071 = vst [vmem:[#allocation31_spill] sm:$0xff] %v2695_v37  ;;  %v866_v0 = vmul.f32 %v2683_v44, %v2683_v44  ;;  %v788_v58 = vsel %vm672_vm2, %v2683_v44, 0.0  ;;  %v867_v57 = vmul.f32 %v2688_v12, %v2688_v12  ;;  %v868_v36 = vmul.f32 %v2695_v37, %v2695_v37 }
 0x158   :  { %v783_v26 = vadd.f32 %v782_v25, %v781_v46  ;;  %v980_v56 = vadd.f32 %v979_v63, %v978_v11  ;;  %v786_v46 = vsel %vm672_vm2, %v2674_v22, 0.0  ;;  %v985_v63 = vsel %vm672_vm2, %v865_v6, 0.0  ;;  %4074 = vst [vmem:[#allocation34_spill] sm:$0xff] %v2725_v41 }
 0x15a   :  { %v785_v3 = vadd.f32 %v784_v45, %v783_v26  ;;  %v982_v18 = vadd.f32 %v981_v1, %v980_v56  ;;  %v2710_v26 = vadd.f32 %v2132_v39, %v2452_v14  ;;  %v790_v1 = vsel %vm672_vm2, %v2688_v12, 0.0 }
 0x15b   :  { %v991_v14 = vsel %vm672_vm2, %v868_v36, 0.0  ;;  %v871_v36 = vmul.f32 %v2725_v41, %v2725_v41 }
 0x15c   :  { %v787_v25 = vadd.f32 %v786_v46, %v785_v3  ;;  %v984_v11 = vadd.f32 %v983_v30, %v982_v18  ;;  %4072 = vst [vmem:[#allocation32_spill] sm:$0xff] %v2710_v26  ;;  %v792_v3 = vsel %vm672_vm2, %v2695_v37, 0.0  ;;  %v987_v30 = vsel %vm672_vm2, %v866_v0, 0.0 }
 0x15d   :  { %v2719_v18 = vadd.f32 %v2434_v40, %v2132_v39  ;;  %v989_v46 = vsel %vm672_vm2, %v867_v57, 0.0  ;;  %v794_v0 = vsel %vm672_vm2, %v2710_v26, 0.0 }
 0x15e   :  { %v789_v45 = vadd.f32 %v788_v58, %v787_v25  ;;  %v986_v56 = vadd.f32 %v985_v63, %v984_v11  ;;  %v869_v11 = vmul.f32 %v2710_v26, %v2710_v26 }
 0x15f   :  { %4073 = vst [vmem:[#allocation33_spill] sm:$0xff] %v2719_v18  ;;  %v870_v40 = vmul.f32 %v2719_v18, %v2719_v18  ;;  %v796_v57 = vsel %vm672_vm2, %v2719_v18, 0.0 }
 0x160   :  { %v791_v6 = vadd.f32 %v790_v1, %v789_v45  ;;  %v988_v25 = vadd.f32 %v987_v30, %v986_v56  ;;  %v993_v51 = vsel %vm672_vm2, %v869_v11, 0.0  ;;  %v798_v56 = vsel %vm672_vm2, %v2725_v41, 0.0 }
 0x161   :  { %v995_v30 = vsel %vm672_vm2, %v870_v40, 0.0 }
 0x162   :  { %v793_v58 = vadd.f32 %v792_v3, %v791_v6  ;;  %v990_v63 = vadd.f32 %v989_v46, %v988_v25  ;;  %v997_v25 = vsel %vm672_vm2, %v871_v36, 0.0 }
 0x164   :  { %v795_v45 = vadd.f32 %v794_v0, %v793_v58  ;;  %v992_v1 = vadd.f32 %v991_v14, %v990_v63 }
 0x166   :  { %v797_v39 = vadd.f32 %v796_v57, %v795_v45  ;;  %v994_v3 = vadd.f32 %v993_v51, %v992_v1  ;;  %v1077_v1 = vlaneseq }
 0x168   :  { %v799_v6 = vadd.f32 %v798_v56, %v797_v39  ;;  %v996_v46 = vadd.f32 %v995_v30, %v994_v3  ;;  %v2746_v51 = vshrl.u32 %v1077_v1, 7  ;;  %v4075_v1 = vld [vmem:[#allocation2_spill] sm:$0xff] }
 0x16a   :  { %v800_v58 = vrot.slane %v799_v6, 4  ;;  %v998_v0 = vadd.f32 %v997_v25, %v996_v46  ;;  %v4089_v25 = vld [vmem:[#allocation16_spill] sm:$0xff]  ;;  %v4090_v46 = vld [vmem:[#allocation19_spill] sm:$0xff] }
 0x16c   :  { %v801_v19 = vadd.f32 %v800_v58, %v799_v6  ;;  %v999_v14 = vrot.slane %v998_v0, 4  ;;  %v4088_v58 = vld [vmem:[#allocation15_spill] sm:$0xff]  ;;  %v4091_v6 = vld [vmem:[#allocation17_spill] sm:$0xff] }
 0x16e   :  { %v802_v63 = vrot.slane %v801_v19, 2  ;;  %v1000_v27 = vadd.f32 %v999_v14, %v998_v0  ;;  %v4086_v14 = vld [vmem:[#allocation14_spill] sm:$0xff]  ;;  %v4087_v0 = vld [vmem:[#allocation13_spill] sm:$0xff] }
 0x170   :  { %v803_v9 = vadd.f32 %v802_v63, %v801_v19  ;;  %v1001_v45 = vrot.slane %v1000_v27, 2  ;;  %v4085_v63 = vld [vmem:[#allocation12_spill] sm:$0xff] }
 0x172   :  { %v804_v57 = vrot.slane %v803_v9, 1  ;;  %v1002_v11 = vadd.f32 %v1001_v45, %v1000_v27  ;;  %v4079_v45 = vld [vmem:[#allocation5_spill] sm:$0xff] }
 0x174   :  { %v805_v61 = vadd.f32 %v804_v57, %v803_v9  ;;  %v1003_v60 = vrot.slane %v1002_v11, 1  ;;  %v4080_v57 = vld [vmem:[#allocation7_spill] sm:$0xff]  ;;  %v1011_v9 = vld [vmem:[%s3972_s3] sm:$0x1] }
 0x176   :  { %v2742_v33 = vmul.f32 0.001953125, %v805_v61  ;;  %v1004_v40 = vadd.f32 %v1003_v60, %v1002_v11  ;;  %v4081_v11 = vld [vmem:[#allocation8_spill] sm:$0xff] }
 0x178   :  { %v1006_v39 = vmul.f32 %v2742_v33, %v2742_v33  ;;  %v1005_v36 = vmul.f32 0.001953125, %v1004_v40  ;;  %v4082_v40 = vld [vmem:[#allocation10_spill] sm:$0xff]  ;;  %v1046_v60 = vsub.f32 %v2458_v2, %v2742_v33  ;;  %v1047_v61 = vsub.f32 %v2467_v24, %v2742_v33 }
 0x179   :  { %v1050_v26 = vsub.f32 %v2494_v21, %v2742_v33  ;;  %v1051_v2 = vsub.f32 %v2503_v49, %v2742_v33  ;;  %v1052_v24 = vsub.f32 %v2508_v28, %v2742_v33  ;;  %v1053_v27 = vsub.f32 %v2515_v34, %v2742_v33 }
 0x17a   :  { %v1007_v56 = vsub.f32 %v1005_v36, %v1006_v39  ;;  %v4076_v39 = vld [vmem:[#allocation3_spill] sm:$0xff]  ;;  %v1048_v36 = vsub.f32 %v2472_v62, %v2742_v33  ;;  %v1054_v30 = vsub.f32 %v2530_v31, %v2742_v33  ;;  %v1055_v62 = vsub.f32 %v2539_v17, %v2742_v33 }
 0x17b   :  { %v1056_v21 = vsub.f32 %v2544_v8, %v2742_v33  ;;  %v1057_v49 = vsub.f32 %v2551_v32, %v2742_v33  ;;  %v1058_v41 = vsub.f32 %v2566_v54, %v2742_v33  ;;  %v1059_v28 = vsub.f32 %v2575_v55, %v2742_v33  ;;  %v4092_v8 = vld [vmem:[#allocation21_spill] sm:$0xff]  ;;  %v4093_v32 = vld [vmem:[#allocation22_spill] sm:$0xff]  ;;  %v4094_v54 = vld [vmem:[#allocation23_spill] sm:$0xff] }
 0x17c   :  { %v1008_v3 = vmax.f32 %v1007_v56, 0.0  ;;  %v4077_v56 = vld [vmem:[#allocation4_spill] sm:$0xff]  ;;  %v1060_v34 = vsub.f32 %v2580_v59, %v2742_v33  ;;  %v1061_v31 = vsub.f32 %v2587_v20, %v2742_v33  ;;  %v1062_v17 = vsub.f32 %v2602_v23, %v2742_v33  ;;  %v4097_v20 = vld [vmem:[#allocation25_spill] sm:$0xff]  ;;  %v4098_v23 = vld [vmem:[#allocation26_spill] sm:$0xff] }
 0x17d   :  { %v1065_v18 = vsub.f32 %v4094_v54, %v2742_v33  ;;  %v4095_v55 = vsub.s32 0, %v2746_v51  ;;  %v4096_v59 = vld [vmem:[#allocation24_spill] sm:$0xff]  ;;  %v1067_v22 = vsub.f32 %v4097_v20, %v2742_v33  ;;  %v1068_v5 = vsub.f32 %v4098_v23, %v2742_v33 }
 0x17e   :  { %v1009_v19 = vadd.f32 1e-05, %v1008_v3  ;;  %v1049_v3 = vsub.f32 %v2479_v52, %v2742_v33  ;;  %v1066_v44 = vsub.f32 %v4096_v59, %v2742_v33  ;;  %v4101_v51 = vsub.f32 %v2146_v48, %v2742_v33 }
 0x17f   :  { %v4103_v20 = vsub.f32 %v2143_v47, %v2742_v33  ;;  %v4104_v23 = vsub.f32 %v2174_v4, %v2742_v33 }
 0x180   :  { %1956 = vrsqrt.f32 %v1009_v19  ;;  %v4078_v19 = vld [vmem:[#allocation6_spill] sm:$0xff] }
 0x18a   :  { %v1957_v37 = vpop.eup %1956 }
 0x18b   :  { %v1012_v52 = vmul.f32 %v1957_v37, %v1011_v9  ;;  %v1063_v37 = vsub.f32 %v4092_v8, %v2742_v33  ;;  %v1064_v9 = vsub.f32 %v4093_v32, %v2742_v33  ;;  %v4099_v8 = vld [vmem:[#allocation27_spill] sm:$0xff]  ;;  %v4100_v32 = vsub.f32 %v2138_v43, %v2742_v33 }
 0x18c   :  { %v1069_v10 = vsub.f32 %v4099_v8, %v2742_v33  ;;  %v4105_v8 = vsub.f32 %v2185_v13, %v2742_v33 }
 0x18d   :  { %v2874_v12 = vrot.slane %v1012_v52, %v4095_v55  ;;  %v4102_v55 = vsub.f32 %v2135_v42, %v2742_v33 }
 0x18f   :  { %v2888_v54 = vmul.f32 %v2874_v12, %v4100_v32  ;;  %v2894_v52 = vmul.f32 %v2874_v12, %v4101_v51  ;;  %v2900_v59 = vmul.f32 %v2874_v12, %v4102_v55  ;;  %v2906_v43 = vmul.f32 %v2874_v12, %v4103_v20 }
 0x190   :  { %v2912_v48 = vmul.f32 %v2874_v12, %v4104_v23  ;;  %v2918_v42 = vmul.f32 %v2874_v12, %v4105_v8  ;;  %v4106_v32 = vsub.f32 %v2177_v7, %v2742_v33  ;;  %v4107_v51 = vsub.f32 %v2188_v16, %v2742_v33 }
 0x191   :  { %v4108_v55 = vsub.f32 %v2213_v35, %v2742_v33  ;;  %v4109_v20 = vsub.f32 %v2224_v50, %v2742_v33  ;;  %v4110_v23 = vsub.f32 %v2217_v38, %v2742_v33  ;;  %v4111_v8 = vsub.f32 %v2228_v53, %v2742_v33 }
 0x192   :  { %v2924_v47 = vmul.f32 %v2874_v12, %v4106_v32  ;;  %v2930_v4 = vmul.f32 %v2874_v12, %v4107_v51  ;;  %v4112_v32 = vsub.f32 %v2253_v15, %v2742_v33  ;;  %v4113_v51 = vsub.f32 %v2264_v29, %v2742_v33 }
 0x193   :  { %v2936_v13 = vmul.f32 %v2874_v12, %v4108_v55  ;;  %v2942_v7 = vmul.f32 %v2874_v12, %v4109_v20  ;;  %v2948_v16 = vmul.f32 %v2874_v12, %v4110_v23  ;;  %v2954_v35 = vmul.f32 %v2874_v12, %v4111_v8 }
 0x194   :  { %v2960_v50 = vmul.f32 %v2874_v12, %v4112_v32  ;;  %v2966_v38 = vmul.f32 %v2874_v12, %v4113_v51  ;;  %v4114_v55 = vsub.f32 %v4075_v1, %v2742_v33  ;;  %v4115_v20 = vsub.f32 %v4076_v39, %v2742_v33 }
 0x195   :  { %v4116_v23 = vsub.f32 %v4077_v56, %v2742_v33  ;;  %v4117_v8 = vsub.f32 %v4078_v19, %v2742_v33  ;;  %v4118_v32 = vsub.f32 %v4079_v45, %v2742_v33  ;;  %v4119_v51 = vsub.f32 %v4080_v57, %v2742_v33 }
 0x196   :  { %v2972_v53 = vmul.f32 %v2874_v12, %v4114_v55  ;;  %v2978_v15 = vmul.f32 %v2874_v12, %v4115_v20  ;;  %v4120_v55 = vsub.f32 %v4081_v11, %v2742_v33  ;;  %v4121_v20 = vsub.f32 %v4082_v40, %v2742_v33 }
 0x197   :  { %v2984_v29 = vmul.f32 %v2874_v12, %v4116_v23  ;;  %v2990_v1 = vmul.f32 %v2874_v12, %v4117_v8  ;;  %v2996_v39 = vmul.f32 %v2874_v12, %v4118_v32  ;;  %v3002_v56 = vmul.f32 %v2874_v12, %v4119_v51  ;;  %v4122_v23 = vld [vmem:[#allocation9_spill] sm:$0xff]  ;;  %v4124_v32 = vld [vmem:[#allocation11_spill] sm:$0xff] }
 0x198   :  { %v3008_v19 = vmul.f32 %v2874_v12, %v4120_v55  ;;  %v3014_v45 = vmul.f32 %v2874_v12, %v4121_v20  ;;  %v4123_v8 = vsub.f32 %v4122_v23, %v2742_v33  ;;  %v4125_v51 = vsub.f32 %v4124_v32, %v2742_v33 }
 0x199   :  { %v4126_v55 = vsub.f32 %v4085_v63, %v2742_v33  ;;  %v4127_v20 = vsub.f32 %v4086_v14, %v2742_v33 }
 0x19a   :  { %v3020_v57 = vmul.f32 %v2874_v12, %v4123_v8  ;;  %v3026_v11 = vmul.f32 %v2874_v12, %v4125_v51  ;;  %v4128_v8 = vsub.f32 %v4087_v0, %v2742_v33  ;;  %v4129_v51 = vsub.f32 %v4088_v58, %v2742_v33 }
 0x19b   :  { %v3032_v40 = vmul.f32 %v2874_v12, %v4126_v55  ;;  %v3038_v23 = vmul.f32 %v2874_v12, %v4127_v20  ;;  %v4131_v55 = vsub.f32 %v4089_v25, %v2742_v33  ;;  %v4133_v20 = vsub.f32 %v4090_v46, %v2742_v33 }
 0x19c   :  { %v3044_v32 = vmul.f32 %v2874_v12, %v4128_v8  ;;  %v3050_v63 = vmul.f32 %v2874_v12, %v4129_v51  ;;  %v4134_v8 = vsub.f32 %v4091_v6, %v2742_v33  ;;  %v4135_v51 = vld [vmem:[#allocation20_spill] sm:$0xff]  ;;  %v3086_v6 = vmul.f32 %v2874_v12, %v1047_v61 }
 0x19d   :  { %v3056_v14 = vmul.f32 %v2874_v12, %v4131_v55  ;;  %v3062_v0 = vmul.f32 %v2874_v12, %v4133_v20  ;;  %v4137_v55 = vld [vmem:[#allocation18_spill] sm:$0xff]  ;;  %v3083_v20 = vmul.f32 %v2874_v12, %v1046_v60  ;;  %v3104_v60 = vmul.f32 %v2874_v12, %v1053_v27 }
 0x19e   :  { %4130 = vst [vmem:[#allocation2_spill] sm:$0xff] %v3050_v63  ;;  %v3068_v58 = vmul.f32 %v2874_v12, %v4134_v8  ;;  %v4136_v63 = vsub.f32 %v4135_v51, %v2742_v33  ;;  %v3089_v8 = vmul.f32 %v2874_v12, %v1048_v36  ;;  %v3092_v51 = vmul.f32 %v2874_v12, %v1049_v3 }
 0x19f   :  { %4132 = vst [vmem:[#allocation3_spill] sm:$0xff] %v3056_v14  ;;  %v4138_v14 = vsub.f32 %v4137_v55, %v2742_v33  ;;  %v3098_v55 = vmul.f32 %v2874_v12, %v1051_v2  ;;  %v3107_v61 = vmul.f32 %v2874_v12, %v1054_v30  ;;  %v3110_v36 = vmul.f32 %v2874_v12, %v1055_v62 }
 0x1a0   :  { %v3074_v25 = vmul.f32 %v2874_v12, %v4136_v63  ;;  %v3095_v63 = vmul.f32 %v2874_v12, %v1050_v26  ;;  %v3113_v3 = vmul.f32 %v2874_v12, %v1056_v21  ;;  %v3116_v26 = vmul.f32 %v2874_v12, %v1057_v49 }
 0x1a1   :  { %v3080_v46 = vmul.f32 %v2874_v12, %v4138_v14  ;;  %v3101_v14 = vmul.f32 %v2874_v12, %v1052_v24  ;;  %v3119_v2 = vmul.f32 %v2874_v12, %v1058_v41  ;;  %v3122_v24 = vmul.f32 %v2874_v12, %v1059_v28 }
 0x1a2   :  { %v3125_v27 = vmul.f32 %v2874_v12, %v1060_v34  ;;  %v3128_v30 = vmul.f32 %v2874_v12, %v1061_v31  ;;  %v3131_v62 = vmul.f32 %v2874_v12, %v1062_v17  ;;  %v3134_v21 = vmul.f32 %v2874_v12, %v1063_v37  ;;  %v3154_v17 = vld [vmem:[%s3973_s4] ss:$0 sm:$0xff] }
 0x1a3   :  { %v3137_v49 = vmul.f32 %v2874_v12, %v1064_v9  ;;  %v3140_v41 = vmul.f32 %v2874_v12, %v1065_v18  ;;  %v3143_v28 = vmul.f32 %v2874_v12, %v1066_v44  ;;  %v3146_v34 = vmul.f32 %v2874_v12, %v1067_v22  ;;  %v4144_v9 = vld [vmem:[#allocation28_spill] sm:$0xff] }
 0x1a4   :  { %v3149_v31 = vmul.f32 %v2874_v12, %v1068_v5  ;;  %v3157_v37 = vmul.f32 %v2874_v12, %v1069_v10  ;;  %v4145_v18 = vsub.f32 %v4144_v9, %v2742_v33  ;;  %v4153_v10 = vld [vmem:[#allocation31_spill] sm:$0xff] }
 0x1a5   :  { %4139 = vst [vmem:[#allocation4_spill] sm:$0xff] %v3140_v41  ;;  %4140 = vst [vmem:[#allocation6_spill] sm:$0xff] %v3143_v28  ;;  %v4147_v28 = vld [vmem:[#allocation29_spill] sm:$0xff] }
 0x1a6   :  { %4141 = vst [vmem:[#allocation5_spill] sm:$0xff] %v3146_v34  ;;  %4142 = vst [vmem:[#allocation7_spill] sm:$0xff] %v3149_v31  ;;  %v3163_v44 = vmul.f32 %v2874_v12, %v4145_v18  ;;  %v4148_v22 = vsub.f32 %v4147_v28, %v2742_v33  ;;  %v4150_v31 = vld [vmem:[#allocation30_spill] sm:$0xff]  ;;  %v4155_v18 = vld [vmem:[#allocation32_spill] sm:$0xff] }
 0x1a7   :  { %4143 = vst [vmem:[#allocation8_spill] sm:$0xff] %v3157_v37  ;;  %v4151_v34 = vsub.f32 %v4150_v31, %v2742_v33  ;;  %v4154_v37 = vsub.f32 %v4153_v10, %v2742_v33 }
 0x1a8   :  { %4146 = vst [vmem:[#allocation10_spill] sm:$0xff] %v3163_v44  ;;  %v3169_v5 = vmul.f32 %v2874_v12, %v4148_v22  ;;  %v4156_v44 = vsub.f32 %v4155_v18, %v2742_v33  ;;  %v4157_v22 = vld [vmem:[#allocation33_spill] sm:$0xff]  ;;  %v3211_v18 = vadd.f32 %v3154_v17, %v2900_v59  ;;  %v3235_v59 = vadd.f32 %v3154_v17, %v2936_v13 }
 0x1a9   :  { %v3175_v41 = vmul.f32 %v2874_v12, %v4151_v34  ;;  %v3181_v9 = vmul.f32 %v2874_v12, %v4154_v37  ;;  %v4159_v34 = vld [vmem:[#allocation34_spill] sm:$0xff]  ;;  %v3203_v37 = vadd.f32 %v3154_v17, %v2888_v54  ;;  %v3227_v54 = vadd.f32 %v3154_v17, %v2924_v47 }
 0x1aa   :  { %4149 = vst [vmem:[#allocation12_spill] sm:$0xff] %v3169_v5  ;;  %v3187_v28 = vmul.f32 %v2874_v12, %v4156_v44  ;;  %v4158_v5 = vsub.f32 %v4157_v22, %v2742_v33  ;;  %v3207_v44 = vadd.f32 %v3154_v17, %v2894_v52  ;;  %v3231_v52 = vadd.f32 %v3154_v17, %v2930_v4 }
 0x1ab   :  { %4152 = vst [vmem:[#allocation14_spill] sm:$0xff] %v3175_v41  ;;  %v4160_v41 = vsub.f32 %v4159_v34, %v2742_v33  ;;  %v3219_v33 = vadd.f32 %v3154_v17, %v2912_v48  ;;  %v3243_v48 = vadd.f32 %v3154_v17, %v2948_v16  ;;  %v3251_v47 = vadd.f32 %v3154_v17, %v2960_v50 }
 0x1ac   :  { %v3193_v31 = vmul.f32 %v2874_v12, %v4158_v5  ;;  %v3215_v5 = vadd.f32 %v3154_v17, %v2906_v43  ;;  %v3239_v43 = vadd.f32 %v3154_v17, %v2942_v7  ;;  %v3255_v4 = vadd.f32 %v3154_v17, %v2966_v38 }
 0x1ad   :  { %v3199_v10 = vmul.f32 %v2874_v12, %v4160_v41  ;;  %v3223_v12 = vadd.f32 %v3154_v17, %v2918_v42  ;;  %v3247_v42 = vadd.f32 %v3154_v17, %v2954_v35  ;;  %v3259_v13 = vadd.f32 %v3154_v17, %v2972_v53  ;;  %v4162_v41 = vld [vmem:[#allocation3_spill] sm:$0xff] }
 0x1ae   :  { %v3263_v7 = vadd.f32 %v3154_v17, %v2978_v15  ;;  %v3267_v16 = vadd.f32 %v3154_v17, %v2984_v29  ;;  %v3271_v35 = vadd.f32 %v3154_v17, %v2990_v1  ;;  %v3275_v50 = vadd.f32 %v3154_v17, %v2996_v39 }
 0x1af   :  { %v3279_v38 = vadd.f32 %v3154_v17, %v3002_v56  ;;  %v3283_v53 = vadd.f32 %v3154_v17, %v3008_v19  ;;  %v3287_v15 = vadd.f32 %v3154_v17, %v3014_v45  ;;  %v3291_v29 = vadd.f32 %v3154_v17, %v3020_v57  ;;  %v4161_v45 = vld [vmem:[#allocation2_spill] sm:$0xff] }
 0x1b0   :  { %v3295_v1 = vadd.f32 %v3154_v17, %v3026_v11  ;;  %v3299_v39 = vadd.f32 %v3154_v17, %v3032_v40  ;;  %v3303_v56 = vadd.f32 %v3154_v17, %v3038_v23  ;;  %v3307_v19 = vadd.f32 %v3154_v17, %v3044_v32 }
 0x1b1   :  { %v3311_v57 = vadd.f32 %v3154_v17, %v4161_v45  ;;  %v3315_v11 = vadd.f32 %v3154_v17, %v4162_v41  ;;  %v3319_v40 = vadd.f32 %v3154_v17, %v3062_v0  ;;  %v3323_v23 = vadd.f32 %v3154_v17, %v3068_v58  ;;  %v4173_v45 = vld [vmem:[#allocation4_spill] sm:$0xff]  ;;  %v4175_v41 = vld [vmem:[#allocation6_spill] sm:$0xff] }
 0x1b2   :  { %v3327_v32 = vadd.f32 %v3154_v17, %v3074_v25  ;;  %v3331_v22 = vadd.f32 %v3154_v17, %v3080_v46  ;;  %v3335_v34 = vadd.f32 %v3154_v17, %v3083_v20  ;;  %v3339_v0 = vadd.f32 %v3154_v17, %v3086_v6 }
 0x1b3   :  { %v3343_v58 = vadd.f32 %v3154_v17, %v3089_v8  ;;  %v3347_v25 = vadd.f32 %v3154_v17, %v3092_v51  ;;  %v3351_v46 = vadd.f32 %v3154_v17, %v3095_v63  ;;  %v3355_v20 = vadd.f32 %v3154_v17, %v3098_v55 }
 0x1b4   :  { %v3359_v6 = vadd.f32 %v3154_v17, %v3101_v14  ;;  %v3363_v8 = vadd.f32 %v3154_v17, %v3104_v60  ;;  %v3367_v51 = vadd.f32 %v3154_v17, %v3107_v61  ;;  %v3371_v63 = vadd.f32 %v3154_v17, %v3110_v36 }
 0x1b5   :  { %4163 = vst [vmem:[#allocation13_spill] sm:$0xff] %v3355_v20  ;;  %v3375_v55 = vadd.f32 %v3154_v17, %v3113_v3  ;;  %v3379_v14 = vadd.f32 %v3154_v17, %v3116_v26  ;;  %v3383_v60 = vadd.f32 %v3154_v17, %v3119_v2  ;;  %v3387_v61 = vadd.f32 %v3154_v17, %v3122_v24 }
 0x1b6   :  { %4164 = vst [vmem:[#allocation15_spill] sm:$0xff] %v3359_v6  ;;  %4165 = vst [vmem:[#allocation16_spill] sm:$0xff] %v3363_v8  ;;  %v3391_v36 = vadd.f32 %v3154_v17, %v3125_v27  ;;  %v3395_v3 = vadd.f32 %v3154_v17, %v3128_v30  ;;  %v3399_v26 = vadd.f32 %v3154_v17, %v3131_v62 }
 0x1b7   :  { %4166 = vst [vmem:[#allocation19_spill] sm:$0xff] %v3367_v51  ;;  %4167 = vst [vmem:[#allocation17_spill] sm:$0xff] %v3371_v63  ;;  %v3403_v2 = vadd.f32 %v3154_v17, %v3134_v21  ;;  %v3407_v24 = vadd.f32 %v3154_v17, %v3137_v49  ;;  %v3411_v27 = vadd.f32 %v3154_v17, %v4173_v45 }
 0x1b8   :  { %4168 = vst [vmem:[#allocation21_spill] sm:$0xff] %v3391_v36  ;;  %4169 = vst [vmem:[#allocation22_spill] sm:$0xff] %v3395_v3  ;;  %v3415_v30 = vadd.f32 %v3154_v17, %v4175_v41  ;;  %v4177_v3 = vld [vmem:[#allocation5_spill] sm:$0xff] }
 0x1b9   :  { %4170 = vst [vmem:[#allocation23_spill] sm:$0xff] %v3399_v26  ;;  %4171 = vst [vmem:[#allocation24_spill] sm:$0xff] %v3403_v2  ;;  %v3419_v62 = vadd.f32 %v3154_v17, %v4177_v3  ;;  %v4178_v26 = vld [vmem:[#allocation7_spill] sm:$0xff]  ;;  %v4179_v2 = vld [vmem:[#allocation8_spill] sm:$0xff] }
 0x1ba   :  { %4172 = vst [vmem:[#allocation25_spill] sm:$0xff] %v3407_v24  ;;  %4174 = vst [vmem:[#allocation26_spill] sm:$0xff] %v3411_v27  ;;  %v3423_v21 = vadd.f32 %v3154_v17, %v4178_v26  ;;  %v3427_v49 = vadd.f32 %v3154_v17, %v4179_v2  ;;  %v4180_v24 = vld [vmem:[#allocation10_spill] sm:$0xff]  ;;  %v4181_v27 = vld [vmem:[#allocation12_spill] sm:$0xff]  ;;  %v3443_v26 = vadd.f32 %v3154_v17, %v3181_v9 }
 0x1bb   :  { %4176 = vst [vmem:[#allocation27_spill] sm:$0xff] %v3415_v30  ;;  %v3431_v45 = vadd.f32 %v3154_v17, %v4180_v24  ;;  %v3435_v41 = vadd.f32 %v3154_v17, %v4181_v27  ;;  %v4183_v30 = vld [vmem:[#allocation14_spill] sm:$0xff]  ;;  %v3447_v2 = vadd.f32 %v3154_v17, %v3187_v28  ;;  %v3451_v24 = vadd.f32 %v3154_v17, %v3193_v31 }
 0x1bc   :  { %v3439_v3 = vadd.f32 %v3154_v17, %v4183_v30  ;;  %4185 = vst [vmem:[#allocation20_spill] sm:$0xff] %v3443_v26  ;;  %v3455_v27 = vadd.f32 %v3154_v17, %v3199_v10  ;;  %v4196_v20 = vmov %v3443_v26  ;;  %v4199_v26 = vmax.f32 %v3203_v37, 0.0 }
 0x1bd   :  { %4182 = vst [vmem:[#allocation9_spill] sm:$0xff] %v3435_v41  ;;  %4186 = vst [vmem:[#allocation18_spill] sm:$0xff] %v3447_v2  ;;  %v4197_v6 = vmov %v3447_v2  ;;  %v4198_v8 = vmov %v3451_v24  ;;  %v4200_v2 = vmax.f32 %v3207_v44, 0.0  ;;  %v4202_v10 = vmax.f32 %v3215_v5, 0.0 }
 0x1be   :  { %4184 = vst [vmem:[#allocation11_spill] sm:$0xff] %v3439_v3  ;;  %4187 = vst [vmem:[#allocation28_spill] sm:$0xff] %v3451_v24  ;;  %v4195_v41 = vmov %v3439_v3  ;;  %v1739_v28 = vpack.c.bf16 %v4199_v26, %v4199_v26  ;;  %v4201_v24 = vmax.f32 %v3211_v18, 0.0  ;;  %v4203_v3 = vmax.f32 %v3219_v33, 0.0 }
 0x1bf   :  { %v1740_v31 = vpack.c.bf16 %v4200_v2, %v4200_v2  ;;  %v1742_v30 = vpack.c.bf16 %v4202_v10, %v4202_v10  ;;  %v4204_v37 = vmax.f32 %v3223_v12, 0.0  ;;  %v4205_v44 = vmax.f32 %v3227_v54, 0.0 }
 0x1c0   :  { %v1741_v17 = vpack.c.bf16 %v4201_v24, %v4201_v24  ;;  %v1743_v9 = vpack.c.bf16 %v4203_v3, %v4203_v3  ;;  %v4206_v18 = vmax.f32 %v3231_v52, 0.0  ;;  %v4207_v5 = vmax.f32 %v3235_v59, 0.0  ;;  %1537 = vst.msk [vmem:[%s3974_s5] sm:$0xf] %vm1536_vm3, %v1739_v28 }
 0x1c1   :  { %v4192_v51 = vld [vmem:[#allocation26_spill] sm:$0xff]  ;;  %v1744_v26 = vpack.c.bf16 %v4204_v37, %v4204_v37  ;;  %v1745_v2 = vpack.c.bf16 %v4205_v44, %v4205_v44  ;;  %v4208_v33 = vmax.f32 %v3239_v43, 0.0  ;;  %v4209_v12 = vmax.f32 %v3243_v48, 0.0  ;;  %1538 = vst.msk [vmem:[%s3974_s5 + $0x4] sm:$0xf] %vm1536_vm3, %v1740_v31 }
 0x1c2   :  { %v4193_v63 = vld [vmem:[#allocation27_spill] sm:$0xff]  ;;  %v1746_v24 = vpack.c.bf16 %v4206_v18, %v4206_v18  ;;  %v1747_v10 = vpack.c.bf16 %v4207_v5, %v4207_v5  ;;  %v4210_v54 = vmax.f32 %v3247_v42, 0.0  ;;  %1539 = vst.msk [vmem:[%s3974_s5 + $0x8] sm:$0xf] %vm1536_vm3, %v1741_v17  ;;  %1540 = vst.msk [vmem:[%s3974_s5 + $0xc] sm:$0xf] %vm1536_vm3, %v1742_v30 }
 0x1c3   :  { %v1748_v3 = vpack.c.bf16 %v4208_v33, %v4208_v33  ;;  %v1749_v37 = vpack.c.bf16 %v4209_v12, %v4209_v12  ;;  %v4211_v52 = vmax.f32 %v3251_v47, 0.0  ;;  %v4212_v43 = vmax.f32 %v3255_v4, 0.0  ;;  %1541 = vst.msk [vmem:[%s3974_s5 + $0x10] sm:$0xf] %vm1536_vm3, %v1743_v9  ;;  %1542 = vst.msk [vmem:[%s3974_s5 + $0x14] sm:$0xf] %vm1536_vm3, %v1744_v26 }
 0x1c4   :  { %v4194_v36 = vld [vmem:[#allocation9_spill] sm:$0xff]  ;;  %v1750_v44 = vpack.c.bf16 %v4210_v54, %v4210_v54  ;;  %v4213_v42 = vmax.f32 %v3259_v13, 0.0  ;;  %v4214_v31 = vmax.f32 %v3263_v7, 0.0  ;;  %1543 = vst.msk [vmem:[%s3974_s5 + $0x18] sm:$0xf] %vm1536_vm3, %v1745_v2  ;;  %v4215_v47 = vmax.f32 %v3267_v16, 0.0 }
 0x1c5   :  { %v1751_v59 = vpack.c.bf16 %v4211_v52, %v4211_v52  ;;  %v1752_v48 = vpack.c.bf16 %v4212_v43, %v4212_v43  ;;  %1544 = vst.msk [vmem:[%s3974_s5 + $0x1c] sm:$0xf] %vm1536_vm3, %v1746_v24  ;;  %v4216_v13 = vmax.f32 %v3271_v35, 0.0  ;;  %v4217_v30 = vmax.f32 %v3275_v50, 0.0  ;;  %1545 = vst.msk [vmem:[%s3974_s5 + $0x20] sm:$0xf] %vm1536_vm3, %v1747_v10 }
 0x1c6   :  { %v1753_v28 = vpack.c.bf16 %v4213_v42, %v4213_v42  ;;  %v1754_v17 = vpack.c.bf16 %v4214_v31, %v4214_v31  ;;  %v1755_v4 = vpack.c.bf16 %v4215_v47, %v4215_v47  ;;  %v4218_v26 = vmax.f32 %v3279_v38, 0.0  ;;  %1546 = vst.msk [vmem:[%s3974_s5 + $0x24] sm:$0xf] %vm1536_vm3, %v1748_v3  ;;  %1547 = vst.msk [vmem:[%s3974_s5 + $0x28] sm:$0xf] %vm1536_vm3, %v1749_v37  ;;  %v4237_v31 = vld [vmem:[#allocation13_spill] sm:$0xff] }
 0x1c7   :  { %v1756_v7 = vpack.c.bf16 %v4216_v13, %v4216_v13  ;;  %v1757_v9 = vpack.c.bf16 %v4217_v30, %v4217_v30  ;;  %1548 = vst.msk [vmem:[%s3974_s5 + $0x2c] sm:$0xf] %vm1536_vm3, %v1750_v44  ;;  %v4219_v16 = vmax.f32 %v3283_v53, 0.0  ;;  %v4220_v50 = vmax.f32 %v3287_v15, 0.0  ;;  %1549 = vst.msk [vmem:[%s3974_s5 + $0x30] sm:$0xf] %vm1536_vm3, %v1751_v59 }
 0x1c8   :  { %v1758_v2 = vpack.c.bf16 %v4218_v26, %v4218_v26  ;;  %v4221_v18 = vmax.f32 %v3291_v29, 0.0  ;;  %v4222_v5 = vmax.f32 %v3295_v1, 0.0  ;;  %1550 = vst.msk [vmem:[%s3974_s5 + $0x34] sm:$0xf] %vm1536_vm3, %v1752_v48  ;;  %1551 = vst.msk [vmem:[%s3974_s5 + $0x38] sm:$0xf] %vm1536_vm3, %v1753_v28 }
 0x1c9   :  { %v1759_v35 = vpack.c.bf16 %v4219_v16, %v4219_v16  ;;  %v1760_v38 = vpack.c.bf16 %v4220_v50, %v4220_v50  ;;  %1552 = vst.msk [vmem:[%s3974_s5 + $0x3c] sm:$0xf] %vm1536_vm3, %v1754_v17  ;;  %v4223_v53 = vmax.f32 %v3299_v39, 0.0  ;;  %v4224_v29 = vmax.f32 %v3303_v56, 0.0  ;;  %1553 = vst.msk [vmem:[%s3974_s5 + $0x40] sm:$0xf] %vm1536_vm3, %v1755_v4 }
 0x1ca   :  { %v1761_v24 = vpack.c.bf16 %v4221_v18, %v4221_v18  ;;  %v1762_v10 = vpack.c.bf16 %v4222_v5, %v4222_v5  ;;  %v4225_v33 = vmax.f32 %v3307_v19, 0.0  ;;  %v4226_v12 = vmax.f32 %v3311_v57, 0.0  ;;  %1554 = vst.msk [vmem:[%s3974_s5 + $0x44] sm:$0xf] %vm1536_vm3, %v1756_v7  ;;  %1555 = vst.msk [vmem:[%s3974_s5 + $0x48] sm:$0xf] %vm1536_vm3, %v1757_v9 }
 0x1cb   :  { %v1763_v15 = vpack.c.bf16 %v4223_v53, %v4223_v53  ;;  %v1764_v1 = vpack.c.bf16 %v4224_v29, %v4224_v29  ;;  %1556 = vst.msk [vmem:[%s3974_s5 + $0x4c] sm:$0xf] %vm1536_vm3, %v1758_v2  ;;  %v4227_v39 = vmax.f32 %v3315_v11, 0.0  ;;  %v4228_v19 = vmax.f32 %v3319_v40, 0.0  ;;  %1557 = vst.msk [vmem:[%s3974_s5 + $0x50] sm:$0xf] %vm1536_vm3, %v1759_v35 }
 0x1cc   :  { %v1765_v3 = vpack.c.bf16 %v4225_v33, %v4225_v33  ;;  %v1766_v37 = vpack.c.bf16 %v4226_v12, %v4226_v12  ;;  %v4229_v54 = vmax.f32 %v3323_v23, 0.0  ;;  %v4230_v52 = vmax.f32 %v3327_v32, 0.0  ;;  %1558 = vst.msk [vmem:[%s3974_s5 + $0x54] sm:$0xf] %vm1536_vm3, %v1760_v38  ;;  %1559 = vst.msk [vmem:[%s3974_s5 + $0x58] sm:$0xf] %vm1536_vm3, %v1761_v24 }
 0x1cd   :  { %v1767_v56 = vpack.c.bf16 %v4227_v39, %v4227_v39  ;;  %v1768_v57 = vpack.c.bf16 %v4228_v19, %v4228_v19  ;;  %1560 = vst.msk [vmem:[%s3974_s5 + $0x5c] sm:$0xf] %vm1536_vm3, %v1762_v10  ;;  %v4231_v11 = vmax.f32 %v3331_v22, 0.0  ;;  %v4232_v23 = vmax.f32 %v3335_v34, 0.0  ;;  %1561 = vst.msk [vmem:[%s3974_s5 + $0x60] sm:$0xf] %vm1536_vm3, %v1763_v15 }
 0x1ce   :  { %v1769_v44 = vpack.c.bf16 %v4229_v54, %v4229_v54  ;;  %v1770_v59 = vpack.c.bf16 %v4230_v52, %v4230_v52  ;;  %v4233_v43 = vmax.f32 %v3339_v0, 0.0  ;;  %v4234_v42 = vmax.f32 %v3343_v58, 0.0  ;;  %1562 = vst.msk [vmem:[%s3974_s5 + $0x64] sm:$0xf] %vm1536_vm3, %v1764_v1  ;;  %1563 = vst.msk [vmem:[%s3974_s5 + $0x68] sm:$0xf] %vm1536_vm3, %v1765_v3 }
 0x1cf   :  { %v1771_v40 = vpack.c.bf16 %v4231_v11, %v4231_v11  ;;  %v1772_v32 = vpack.c.bf16 %v4232_v23, %v4232_v23  ;;  %1564 = vst.msk [vmem:[%s3974_s5 + $0x6c] sm:$0xf] %vm1536_vm3, %v1766_v37  ;;  %v4235_v22 = vmax.f32 %v3347_v25, 0.0  ;;  %v4236_v0 = vmax.f32 %v3351_v46, 0.0  ;;  %v4239_v4 = vld [vmem:[#allocation15_spill] sm:$0xff]  ;;  %v4241_v25 = vld [vmem:[#allocation16_spill] sm:$0xff] }
 0x1d0   :  { %v1773_v48 = vpack.c.bf16 %v4233_v43, %v4233_v43  ;;  %v1774_v28 = vpack.c.bf16 %v4234_v42, %v4234_v42  ;;  %v4238_v17 = vmax.f32 %v4237_v31, 0.0  ;;  %v4240_v13 = vmax.f32 %v4239_v4, 0.0  ;;  %1565 = vst.msk [vmem:[%s3974_s5 + $0x70] sm:$0xf] %vm1536_vm3, %v1767_v56  ;;  %1566 = vst.msk [vmem:[%s3974_s5 + $0x74] sm:$0xf] %vm1536_vm3, %v1768_v57 }
 0x1d1   :  { %v1775_v34 = vpack.c.bf16 %v4235_v22, %v4235_v22  ;;  %v1776_v58 = vpack.c.bf16 %v4236_v0, %v4236_v0  ;;  %1567 = vst.msk [vmem:[%s3974_s5 + $0x78] sm:$0xf] %vm1536_vm3, %v1769_v44  ;;  %1568 = vst.msk [vmem:[%s3974_s5 + $0x7c] sm:$0xf] %vm1536_vm3, %v1770_v59  ;;  %v4242_v46 = vmax.f32 %v4241_v25, 0.0  ;;  %v4243_v9 = vld [vmem:[#allocation19_spill] sm:$0xff] }
 0x1d2   :  { %v1777_v47 = vpack.c.bf16 %v4238_v17, %v4238_v17  ;;  %v1778_v7 = vpack.c.bf16 %v4240_v13, %v4240_v13  ;;  %v4244_v26 = vmax.f32 %v4243_v9, 0.0  ;;  %v4245_v16 = vld [vmem:[#allocation17_spill] sm:$0xff]  ;;  %v4247_v38 = vmax.f32 %v3375_v55, 0.0  ;;  %1569 = vst.msk [vmem:[%s3974_s5 + $0x80] sm:$0xf] %vm1536_vm3, %v1771_v40  ;;  %v4255_v3 = vld [vmem:[#allocation23_spill] sm:$0xff] }
 0x1d3   :  { %v1779_v30 = vpack.c.bf16 %v4242_v46, %v4242_v46  ;;  %v4246_v35 = vmax.f32 %v4245_v16, 0.0  ;;  %1570 = vst.msk [vmem:[%s3974_s5 + $0x84] sm:$0xf] %vm1536_vm3, %v1772_v32  ;;  %1571 = vst.msk [vmem:[%s3974_s5 + $0x88] sm:$0xf] %vm1536_vm3, %v1773_v48  ;;  %v4248_v55 = vmax.f32 %v3379_v14, 0.0 }
 0x1d4   :  { %v1780_v2 = vpack.c.bf16 %v4244_v26, %v4244_v26  ;;  %v1782_v18 = vpack.c.bf16 %v4247_v38, %v4247_v38  ;;  %1572 = vst.msk [vmem:[%s3974_s5 + $0x8c] sm:$0xf] %vm1536_vm3, %v1774_v28  ;;  %v4249_v5 = vmax.f32 %v3383_v60, 0.0  ;;  %v4250_v53 = vmax.f32 %v3387_v61, 0.0  ;;  %v4251_v29 = vld [vmem:[#allocation21_spill] sm:$0xff]  ;;  %v4253_v14 = vld [vmem:[#allocation22_spill] sm:$0xff] }
 0x1d5   :  { %v1781_v50 = vpack.c.bf16 %v4246_v35, %v4246_v35  ;;  %v1783_v24 = vpack.c.bf16 %v4248_v55, %v4248_v55  ;;  %v4252_v1 = vmax.f32 %v4251_v29, 0.0  ;;  %1573 = vst.msk [vmem:[%s3974_s5 + $0x90] sm:$0xf] %vm1536_vm3, %v1775_v34  ;;  %1574 = vst.msk [vmem:[%s3974_s5 + $0x94] sm:$0xf] %vm1536_vm3, %v1776_v58  ;;  %v4254_v60 = vmax.f32 %v4253_v14, 0.0 }
 0x1d6   :  { %v1784_v10 = vpack.c.bf16 %v4249_v5, %v4249_v5  ;;  %v1785_v15 = vpack.c.bf16 %v4250_v53, %v4250_v53  ;;  %1575 = vst.msk [vmem:[%s3974_s5 + $0x98] sm:$0xf] %vm1536_vm3, %v1777_v47  ;;  %1576 = vst.msk [vmem:[%s3974_s5 + $0x9c] sm:$0xf] %vm1536_vm3, %v1778_v7  ;;  %v4256_v12 = vmax.f32 %v4255_v3, 0.0  ;;  %v4257_v39 = vld [vmem:[#allocation24_spill] sm:$0xff] }
 0x1d7   :  { %v1786_v33 = vpack.c.bf16 %v4252_v1, %v4252_v1  ;;  %v1787_v61 = vpack.c.bf16 %v4254_v60, %v4254_v60  ;;  %v4258_v56 = vmax.f32 %v4257_v39, 0.0  ;;  %v4259_v57 = vld [vmem:[#allocation25_spill] sm:$0xff]  ;;  %1577 = vst.msk [vmem:[%s3974_s5 + $0xa0] sm:$0xf] %vm1536_vm3, %v1779_v30  ;;  %1578 = vst.msk [vmem:[%s3974_s5 + $0xa4] sm:$0xf] %vm1536_vm3, %v1780_v2 }
 0x1d8   :  { %v1788_v37 = vpack.c.bf16 %v4256_v12, %v4256_v12  ;;  %v4260_v54 = vmax.f32 %v4259_v57, 0.0  ;;  %1579 = vst.msk [vmem:[%s3974_s5 + $0xa8] sm:$0xf] %vm1536_vm3, %v1781_v50  ;;  %1580 = vst.msk [vmem:[%s3974_s5 + $0xac] sm:$0xf] %vm1536_vm3, %v1782_v18  ;;  %v4261_v52 = vmax.f32 %v4192_v51, 0.0 }
 0x1d9   :  { %v1789_v19 = vpack.c.bf16 %v4258_v56, %v4258_v56  ;;  %v4262_v11 = vmax.f32 %v4193_v63, 0.0  ;;  %v4263_v23 = vmax.f32 %v3419_v62, 0.0  ;;  %v4264_v43 = vmax.f32 %v3423_v21, 0.0  ;;  %1581 = vst.msk [vmem:[%s3974_s5 + $0xb0] sm:$0xf] %vm1536_vm3, %v1783_v24 }
 0x1da   :  { %v1790_v44 = vpack.c.bf16 %v4260_v54, %v4260_v54  ;;  %v1791_v59 = vpack.c.bf16 %v4261_v52, %v4261_v52  ;;  %1582 = vst.msk [vmem:[%s3974_s5 + $0xb4] sm:$0xf] %vm1536_vm3, %v1784_v10  ;;  %1583 = vst.msk [vmem:[%s3974_s5 + $0xb8] sm:$0xf] %vm1536_vm3, %v1785_v15  ;;  %v4265_v51 = vmax.f32 %v3427_v49, 0.0  ;;  %v4266_v62 = vmax.f32 %v3431_v45, 0.0 }
 0x1db   :  { %v1792_v40 = vpack.c.bf16 %v4262_v11, %v4262_v11  ;;  %v1793_v32 = vpack.c.bf16 %v4263_v23, %v4263_v23  ;;  %v1794_v48 = vpack.c.bf16 %v4264_v43, %v4264_v43  ;;  %1584 = vst.msk [vmem:[%s3974_s5 + $0xbc] sm:$0xf] %vm1536_vm3, %v1786_v33  ;;  %v4267_v42 = vmax.f32 %v4194_v36, 0.0  ;;  %1585 = vst.msk [vmem:[%s3974_s5 + $0xc0] sm:$0xf] %vm1536_vm3, %v1787_v61 }
 0x1dc   :  { %v1795_v63 = vpack.c.bf16 %v4265_v51, %v4265_v51  ;;  %v1796_v21 = vpack.c.bf16 %v4266_v62, %v4266_v62  ;;  %v4268_v22 = vmax.f32 %v4195_v41, 0.0  ;;  %1586 = vst.msk [vmem:[%s3974_s5 + $0xc4] sm:$0xf] %vm1536_vm3, %v1788_v37  ;;  %1587 = vst.msk [vmem:[%s3974_s5 + $0xc8] sm:$0xf] %vm1536_vm3, %v1789_v19  ;;  %v4269_v36 = vmax.f32 %v4196_v20, 0.0 }
 0x1dd   :  { %v1797_v28 = vpack.c.bf16 %v4267_v42, %v4267_v42  ;;  %1588 = vst.msk [vmem:[%s3974_s5 + $0xcc] sm:$0xf] %vm1536_vm3, %v1790_v44  ;;  %v4270_v45 = vmax.f32 %v4197_v6, 0.0  ;;  %v4271_v0 = vmax.f32 %v4198_v8, 0.0  ;;  %v4272_v31 = vmax.f32 %v3455_v27, 0.0 }
 0x1de   :  { %v1798_v34 = vpack.c.bf16 %v4268_v22, %v4268_v22  ;;  %v1799_v49 = vpack.c.bf16 %v4269_v36, %v4269_v36  ;;  %1589 = vst.msk [vmem:[%s3974_s5 + $0xd0] sm:$0xf] %vm1536_vm3, %v1791_v59  ;;  %1590 = vst.msk [vmem:[%s3974_s5 + $0xd4] sm:$0xf] %vm1536_vm3, %v1792_v40 }
 0x1df   :  { %v1800_v41 = vpack.c.bf16 %v4270_v45, %v4270_v45  ;;  %v1801_v58 = vpack.c.bf16 %v4271_v0, %v4271_v0  ;;  %v1802_v17 = vpack.c.bf16 %v4272_v31, %v4272_v31  ;;  %1591 = vst.msk [vmem:[%s3974_s5 + $0xd8] sm:$0xf] %vm1536_vm3, %v1793_v32  ;;  %1592 = vst.msk [vmem:[%s3974_s5 + $0xdc] sm:$0xf] %vm1536_vm3, %v1794_v48 }
 0x1e0   :  { %1593 = vst.msk [vmem:[%s3974_s5 + $0xe0] sm:$0xf] %vm1536_vm3, %v1795_v63  ;;  %1594 = vst.msk [vmem:[%s3974_s5 + $0xe4] sm:$0xf] %vm1536_vm3, %v1796_v21 }
 0x1e1   :  { %1595 = vst.msk [vmem:[%s3974_s5 + $0xe8] sm:$0xf] %vm1536_vm3, %v1797_v28  ;;  %1596 = vst.msk [vmem:[%s3974_s5 + $0xec] sm:$0xf] %vm1536_vm3, %v1798_v34 }
 0x1e2   :  { %1597 = vst.msk [vmem:[%s3974_s5 + $0xf0] sm:$0xf] %vm1536_vm3, %v1799_v49  ;;  %1598 = vst.msk [vmem:[%s3974_s5 + $0xf4] sm:$0xf] %vm1536_vm3, %v1800_v41 }
 0x1e3   :  { %1599 = vst.msk [vmem:[%s3974_s5 + $0xf8] sm:$0xf] %vm1536_vm3, %v1801_v58  ;;  %1600 = vst.msk [vmem:[%s3974_s5 + $0xfc] sm:$0xf] %vm1536_vm3, %v1802_v17 }

// kernel: colornet_forward.16
= control target key start
LH: loop header
LB: loop body
LE: loop exit
PB: predicated region body
PF: predicated region fallthrough
CT: control target
= control target key end

     0   :  { %vm564_vm0 = vcmask 523264   ;;  %vm1119_vm1 = vcmask 519168   ;;  %s2039_s1 = inlined_call_operand.vmem [shape: bf16[576,64], index: 1, kind: input, shape index: {}]   ;;  %s2040_s0 = inlined_call_operand.vmem [shape: bf16[128,576], index: 0, kind: input, shape index: {}]   ;;  %s2041_s2 = inlined_call_operand.vmem [shape: f32[1,64], index: 2, kind: input, shape index: {}]   ;;  %s2042_s3 = inlined_call_operand.vmem [shape: f32[1,64], index: 3, kind: input, shape index: {}]   ;;  %s2043_s4 = inlined_call_operand.vmem [shape: f32[1,64], index: 4, kind: input, shape index: {}]   ;;  %s2044_s5 = inlined_call_operand.vmem [shape: bf16[128,64], index: 5, kind: output, shape index: {}]  }
   0x1   :  { %v1430_v0 = vld [vmem:[%s2039_s1 + $0x40] sm:$0xff]   ;;  %v1434_v4 = vld [vmem:[%s2039_s1 + $0x48] sm:$0xff]   ;;  %v1438_v8 = vld [vmem:[%s2039_s1 + $0x50] sm:$0xff]  }
   0x2   :  { %v1431_v1 = vld [vmem:[%s2039_s1 + $0xc0] sm:$0xff]   ;;  %1258 = vmatprep.subr.bf16.mxu0 %v1430_v0  ;;  %v1435_v5 = vld [vmem:[%s2039_s1 + $0xc8] sm:$0xff]   ;;  %v1439_v9 = vld [vmem:[%s2039_s1 + $0xd0] sm:$0xff]  }
   0x3   :  { %v1432_v2 = vld [vmem:[%s2039_s1] sm:$0xff]   ;;  %1322 = vmatprep.subr.bf16.mxu1 %v1431_v1  ;;  %v1436_v6 = vld [vmem:[%s2039_s1 + $0x8] sm:$0xff]   ;;  %v1440_v10 = vld [vmem:[%s2039_s1 + $0x10] sm:$0xff]  }
   0x4   :  { %v1433_v3 = vld [vmem:[%s2039_s1 + $0x80] sm:$0xff]   ;;  %1259 = vmatpush3.bf16.msra.mxu0 %v1432_v2  ;;  %v1437_v7 = vld [vmem:[%s2039_s1 + $0x88] sm:$0xff]   ;;  %v1441_v11 = vld [vmem:[%s2039_s1 + $0x90] sm:$0xff]  }
   0x5   :  { %1323 = vmatpush3.bf16.msra.mxu1 %v1433_v3  ;;  %1260 = vmatprep.subr.bf16.mxu0 %v1434_v4  ;;  %v1442_v12 = vld [vmem:[%s2039_s1 + $0x58] sm:$0xff]   ;;  %v1446_v16 = vld [vmem:[%s2039_s1 + $0x60] sm:$0xff]   ;;  %v1450_v20 = vld [vmem:[%s2039_s1 + $0x68] sm:$0xff]  }
   0x6   :  { %1324 = vmatprep.subr.bf16.mxu1 %v1435_v5  ;;  %v1443_v13 = vld [vmem:[%s2039_s1 + $0xd8] sm:$0xff]   ;;  %v1447_v17 = vld [vmem:[%s2039_s1 + $0xe0] sm:$0xff]   ;;  %v1451_v21 = vld [vmem:[%s2039_s1 + $0xe8] sm:$0xff]  }
   0x7   :  { %v1444_v14 = vld [vmem:[%s2039_s1 + $0x18] sm:$0xff]   ;;  %v1448_v18 = vld [vmem:[%s2039_s1 + $0x20] sm:$0xff]   ;;  %v1452_v22 = vld [vmem:[%s2039_s1 + $0x28] sm:$0xff]  }
   0x8   :  { %1261 = vmatpush3.bf16.msra.mxu0 %v1436_v6  ;;  %v1445_v15 = vld [vmem:[%s2039_s1 + $0x98] sm:$0xff]   ;;  %v1449_v19 = vld [vmem:[%s2039_s1 + $0xa0] sm:$0xff]   ;;  %v1453_v23 = vld [vmem:[%s2039_s1 + $0xa8] sm:$0xff]  }
   0x9   :  { %1325 = vmatpush3.bf16.msra.mxu1 %v1437_v7  ;;  %1262 = vmatprep.subr.bf16.mxu0 %v1438_v8  ;;  %v1454_v24 = vld [vmem:[%s2039_s1 + $0x70] sm:$0xff]   ;;  %v1458_v28 = vld [vmem:[%s2039_s1 + $0x78] sm:$0xff]   ;;  %v1467_v35 = vld [vmem:[%s2040_s0 + $0xc] ss:$20 sps:$4 sm:$0xff]  }
   0xa   :  { %1326 = vmatprep.subr.bf16.mxu1 %v1439_v9  ;;  %v1455_v25 = vld [vmem:[%s2039_s1 + $0xf0] sm:$0xff]   ;;  %v1459_v29 = vld [vmem:[%s2039_s1 + $0xf8] sm:$0xff]   ;;  %v1468_v36 = vld [vmem:[%s2039_s1 + $0x100] sm:$0xff]   ;;  %718 = vmatprep.mubr.bf16.mxu1 %v1467_v35 }
   0xb   :  { %v1456_v26 = vld [vmem:[%s2039_s1 + $0x30] sm:$0xff]   ;;  %v1460_v30 = vld [vmem:[%s2039_s1 + $0x38] sm:$0xff]   ;;  %v1469_v37 = vld [vmem:[%s2040_s0 + $0x2c] ss:$20 sps:$4 sm:$0xff]  }
   0xc   :  { %1263 = vmatpush3.bf16.msra.mxu0 %v1440_v10  ;;  %v1457_v27 = vld [vmem:[%s2039_s1 + $0xb0] sm:$0xff]   ;;  %v1461_v31 = vld [vmem:[%s2039_s1 + $0xb8] sm:$0xff]   ;;  %v1481_v42 = vld [vmem:[%s2039_s1 + $0x108] sm:$0xff]  }
   0xd   :  { %1327 = vmatpush3.bf16.msra.mxu1 %v1441_v11  ;;  %1264 = vmatprep.subr.bf16.mxu0 %v1442_v12  ;;  %v1462_v32 = vld [vmem:[%s2040_s0] ss:$20 sps:$4 sm:$0xff]   ;;  %v1464_v33 = vld [vmem:[%s2040_s0 + $0x4] ss:$20 sps:$4 sm:$0xff]   ;;  %v1465_v34 = vld [vmem:[%s2040_s0 + $0x8] ss:$20 sps:$4 sm:$0xff]  }
   0xe   :  { %1328 = vmatprep.subr.bf16.mxu1 %v1443_v13  ;;  %621 = vmatprep.mubr.bf16.mxu0 %v1464_v33  ;;  %v1471_v38 = vld [vmem:[%s2040_s0 + $0x34] ss:$20 sps:$4 sm:$0xff]   ;;  %v1474_v40 = vld [vmem:[%s2040_s0 + $0x30] ss:$20 sps:$4 sm:$0xff]   ;;  %v1480_v45 = vld [vmem:[%s2040_s0 + $0x58] ss:$20 sps:$4 sm:$0xff]  }
   0xf   :  { %v1473_v39 = vld [vmem:[%s2040_s0 + $0x28] ss:$20 sps:$4 sm:$0xff]   ;;  %v1479_v44 = vld [vmem:[%s2040_s0 + $0x50] ss:$20 sps:$4 sm:$0xff]   ;;  %v1486_v50 = vld [vmem:[%s2040_s0 + $0x78] ss:$20 sps:$4 sm:$0xff]  }
  0x10   :  { %1265 = vmatpush3.bf16.msra.mxu0 %v1444_v14  ;;  %v1475_v41 = vld [vmem:[%s2040_s0 + $0x54] ss:$20 sps:$4 sm:$0xff]   ;;  %v1477_v43 = vld [vmem:[%s2040_s0 + $0x5c] ss:$20 sps:$4 sm:$0xff]   ;;  %v1484_v48 = vld [vmem:[%s2040_s0 + $0x84] ss:$20 sps:$4 sm:$0xff]  }
  0x11   :  { %1329 = vmatpush3.bf16.msra.mxu1 %v1445_v15  ;;  %1266 = vmatprep.subr.bf16.mxu0 %v1446_v16  ;;  %v1494_v46 = vld [vmem:[%s2039_s1 + $0x110] sm:$0xff]   ;;  %v1507_v49 = vld [vmem:[%s2039_s1 + $0x118] sm:$0xff]   ;;  %v1490_v53 = vld [vmem:[%s2040_s0 + $0xac] ss:$20 sps:$4 sm:$0xff]  }
  0x12   :  { %1330 = vmatprep.subr.bf16.mxu1 %v1447_v17  ;;  %v1482_v47 = vld [vmem:[%s2040_s0 + $0x7c] ss:$20 sps:$4 sm:$0xff]   ;;  %v1487_v51 = vld [vmem:[%s2040_s0 + $0x80] ss:$20 sps:$4 sm:$0xff]   ;;  %v1488_v52 = vld [vmem:[%s2040_s0 + $0xa4] ss:$20 sps:$4 sm:$0xff]  }
  0x13   :  { %v1492_v54 = vld [vmem:[%s2040_s0 + $0xa0] ss:$20 sps:$4 sm:$0xff]   ;;  %v1493_v55 = vld [vmem:[%s2040_s0 + $0xa8] ss:$20 sps:$4 sm:$0xff]   ;;  %v1500_v59 = vld [vmem:[%s2040_s0 + $0xd0] ss:$20 sps:$4 sm:$0xff]  }
  0x14   :  { %1267 = vmatpush3.bf16.msra.mxu0 %v1448_v18  ;;  %v1495_v56 = vld [vmem:[%s2040_s0 + $0xcc] ss:$20 sps:$4 sm:$0xff]   ;;  %v1497_v57 = vld [vmem:[%s2040_s0 + $0xd4] ss:$20 sps:$4 sm:$0xff]   ;;  %v1503_v61 = vld [vmem:[%s2040_s0 + $0xfc] ss:$20 sps:$4 sm:$0xff]  }
  0x15   :  { %1331 = vmatpush3.bf16.msra.mxu1 %v1449_v19  ;;  %1268 = vmatprep.subr.bf16.mxu0 %v1450_v20  ;;  %v1499_v58 = vld [vmem:[%s2040_s0 + $0xc8] ss:$20 sps:$4 sm:$0xff]   ;;  %v1505_v62 = vld [vmem:[%s2040_s0 + $0xf0] ss:$20 sps:$4 sm:$0xff]   ;;  %v1506_v63 = vld [vmem:[%s2040_s0 + $0xf8] ss:$20 sps:$4 sm:$0xff]  }
  0x16   :  { %1332 = vmatprep.subr.bf16.mxu1 %v1451_v21  ;;  %v1501_v60 = vld [vmem:[%s2040_s0 + $0xf4] ss:$20 sps:$4 sm:$0xff]   ;;  %v1508_v0 = vld [vmem:[%s2040_s0 + $0x11c] ss:$20 sps:$4 sm:$0xff]   ;;  %v1510_v1 = vld [vmem:[%s2040_s0 + $0x124] ss:$20 sps:$4 sm:$0xff]  }
  0x17   :  { %v1512_v2 = vld [vmem:[%s2040_s0 + $0x118] ss:$20 sps:$4 sm:$0xff]   ;;  %v1513_v3 = vld [vmem:[%s2040_s0 + $0x120] ss:$20 sps:$4 sm:$0xff]   ;;  %v1514_v4 = vld [vmem:[%s2040_s0 + $0x10] ss:$20 sps:$4 sm:$0xff]  }
  0x18   :  { %1269 = vmatpush3.bf16.msra.mxu0 %v1452_v22  ;;  %v1515_v5 = vld [vmem:[%s2040_s0 + $0xb0] ss:$20 sps:$4 sm:$0xff]   ;;  %v1516_v6 = vld [vmem:[%s2040_s0 + $0x38] ss:$20 sps:$4 sm:$0xff]   ;;  %v1518_v8 = vld [vmem:[%s2040_s0 + $0x60] ss:$20 sps:$4 sm:$0xff]  }
  0x19   :  { %1333 = vmatpush3.bf16.msra.mxu1 %v1453_v23  ;;  %1270 = vmatprep.subr.bf16.mxu0 %v1454_v24  ;;  %v1517_v7 = vld [vmem:[%s2040_s0 + $0xd8] ss:$20 sps:$4 sm:$0xff]   ;;  %v1519_v9 = vld [vmem:[%s2040_s0 + $0x100] ss:$20 sps:$4 sm:$0xff]   ;;  %v1520_v10 = vld [vmem:[%s2040_s0 + $0x88] ss:$20 sps:$4 sm:$0xff]  }
  0x1a   :  { %1334 = vmatprep.subr.bf16.mxu1 %v1455_v25  ;;  %v1521_v11 = vld [vmem:[%s2040_s0 + $0x128] ss:$20 sps:$4 sm:$0xff]   ;;  %v1793_v13 = vld [vmem:[%s2041_s2] ss:$0 sm:$0xff] }
  0x1c   :  { %1271 = vmatpush3.bf16.msra.mxu0 %v1456_v26 }
  0x1d   :  { %1335 = vmatpush3.bf16.msra.mxu1 %v1457_v27  ;;  %1272 = vmatprep.subr.bf16.mxu0 %v1458_v28 }
  0x1e   :  { %1336 = vmatprep.subr.bf16.mxu1 %v1459_v29 }
  0x20   :  { %1273 = vmatpush3.bf16.msra.mxu0 %v1460_v30 }
  0x21   :  { %1337 = vmatpush3.bf16.msra.mxu1 %v1461_v31  ;;  %1398 = vmatprep.subr.bf16.mxu0 %v1468_v36 }
  0x22   :  { %1422 = vmatprep.subr.bf16.mxu1 %v1468_v36 }
  0x23   :  { %622 = vmatmul.mubr.bf16.vlgmr.msra.gmra.mrb[0].mxu0 %v1462_v32 }
  0x24   :  { %719 = vmatmul.mubr.bf16.vlgmr.msra.gmra.mrb[0].mxu1 %v1465_v34  ;;  %1399 = vmatpush3.bf16.msra.mxu0 %v1468_v36 }
  0x25   :  { %629 = vmatprep.mubr.bf16.mxu0 %v1469_v37  ;;  %726 = vmatprep.mubr.bf16.mxu1 %v1471_v38 }
  0x26   :  { %1426 = vmatpush3.bf16.msra.mxu1 %v1468_v36  ;;  %1400 = vmatprep.subr.bf16.mxu0 %v1481_v42 }
  0x27   :  { %1423 = vmatprep.subr.bf16.mxu1 %v1481_v42 }
  0x28   :  { %1401 = vmatpush3.bf16.msra.mxu0 %v1481_v42 }
  0x29   :  { %1402 = vmatprep.subr.bf16.mxu0 %v1494_v46 }
  0x2a   :  { %1427 = vmatpush3.bf16.msra.mxu1 %v1481_v42 }
  0x2b   :  { %630 = vmatmul.mubr.bf16.gmra.mrb[4].mxu0 %v1473_v39  ;;  %1424 = vmatprep.subr.bf16.mxu1 %v1494_v46 }
  0x2c   :  { %727 = vmatmul.mubr.bf16.gmra.mrb[4].mxu1 %v1474_v40  ;;  %637 = vmatprep.mubr.bf16.mxu0 %v1475_v41 }
  0x2d   :  { %734 = vmatprep.mubr.bf16.mxu1 %v1477_v43  ;;  %1403 = vmatpush3.bf16.msra.mxu0 %v1494_v46 }
  0x2e   :  { %1428 = vmatpush3.bf16.msra.mxu1 %v1494_v46  ;;  %1404 = vmatprep.subr.bf16.mxu0 %v1507_v49 }
  0x2f   :  { %1425 = vmatprep.subr.bf16.mxu1 %v1507_v49 }
  0x31   :  { %1405 = vmatpush3.bf16.msra.mxu0 %v1507_v49 }
  0x32   :  { %1429 = vmatpush3.bf16.msra.mxu1 %v1507_v49 }
  0x33   :  { %638 = vmatmul.mubr.bf16.gmra.mrb[8].mxu0 %v1479_v44 }
  0x34   :  { %735 = vmatmul.mubr.bf16.gmra.mrb[8].mxu1 %v1480_v45  ;;  %645 = vmatprep.mubr.bf16.mxu0 %v1482_v47 }
  0x35   :  { %742 = vmatprep.mubr.bf16.mxu1 %v1484_v48 }
  0x3b   :  { %646 = vmatmul.mubr.bf16.gmra.mrb[12].mxu0 %v1486_v50 }
  0x3c   :  { %743 = vmatmul.mubr.bf16.gmra.mrb[12].mxu1 %v1487_v51  ;;  %653 = vmatprep.mubr.bf16.mxu0 %v1488_v52 }
  0x3d   :  { %750 = vmatprep.mubr.bf16.mxu1 %v1490_v53 }
  0x43   :  { %654 = vmatmul.mubr.bf16.gmra.mrb[16].mxu0 %v1492_v54 }
  0x44   :  { %751 = vmatmul.mubr.bf16.gmra.mrb[16].mxu1 %v1493_v55  ;;  %661 = vmatprep.mubr.bf16.mxu0 %v1495_v56 }
  0x45   :  { %758 = vmatprep.mubr.bf16.mxu1 %v1497_v57 }
  0x4b   :  { %662 = vmatmul.mubr.bf16.gmra.mrb[20].mxu0 %v1499_v58 }
  0x4c   :  { %759 = vmatmul.mubr.bf16.gmra.mrb[20].mxu1 %v1500_v59  ;;  %669 = vmatprep.mubr.bf16.mxu0 %v1501_v60 }
  0x4d   :  { %766 = vmatprep.mubr.bf16.mxu1 %v1503_v61 }
  0x53   :  { %670 = vmatmul.mubr.bf16.gmra.mrb[24].mxu0 %v1505_v62 }
  0x54   :  { %767 = vmatmul.mubr.bf16.gmra.mrb[24].mxu1 %v1506_v63  ;;  %677 = vmatprep.mubr.bf16.mxu0 %v1508_v0 }
  0x55   :  { %774 = vmatprep.mubr.bf16.mxu1 %v1510_v1 }
  0x5b   :  { %678 = vmatmul.mubr.bf16.gmra.mrb[28].mxu0 %v1512_v2 }
  0x5c   :  { %775 = vmatmul.mubr.bf16.gmra.mrb[28].mxu1 %v1513_v3  ;;  %1406 = vmatprep.mubr.msk.bf16.mxu0 %vm564_vm0, %v1514_v4 }
  0x5d   :  { %1414 = vmatprep.mubr.msk.bf16.mxu1 %vm564_vm0, %v1515_v5 }
  0x63   :  { %1407 = vmatmul.mubr.msk.bf16.vlgmr.msra.gmra.mrb[32].mxu0 %vm564_vm0, %v1516_v6 }
  0x64   :  { %1415 = vmatmul.mubr.msk.bf16.vlgmr.msra.gmra.mrb[32].mxu1 %vm564_vm0, %v1517_v7  ;;  %1410 = vmatprep.mubr.msk.bf16.mxu0 %vm564_vm0, %v1518_v8 }
  0x65   :  { %1418 = vmatprep.mubr.msk.bf16.mxu1 %vm564_vm0, %v1519_v9 }
  0x6b   :  { %1411 = vmatmul.mubr.msk.bf16.gmra.mrb[36].mxu0 %vm564_vm0, %v1520_v10 }
  0x6c   :  { %1419 = vmatmul.mubr.msk.bf16.gmra.mrb[36].mxu1 %vm564_vm0, %v1521_v11 }
  0xf6   :  { %v1274_v12 = vpop.f32.mrb[0].mxu0 }
  0xf7   :  { %v1275_v14 = vpop.f32.mrb[1].mxu0  ;;  %v1338_v15 = vpop.f32.mrb[0].mxu1 }
  0xf8   :  { %v1276_v16 = vadd.f32 %v1275_v14, %v1274_v12  ;;  %v1277_v17 = vpop.f32.mrb[2].mxu0  ;;  %v1339_v18 = vpop.f32.mrb[1].mxu1 }
  0xf9   :  { %v1278_v19 = vpop.f32.mrb[3].mxu0  ;;  %v1340_v20 = vadd.f32 %v1339_v18, %v1338_v15  ;;  %v1341_v21 = vpop.f32.mrb[2].mxu1 }
  0xfa   :  { %v624_v22 = vadd.f32 %v1276_v16, %v1793_v13  ;;  %v1279_v23 = vadd.f32 %v1278_v19, %v1277_v17  ;;  %v1342_v24 = vpop.f32.mrb[3].mxu1 }
  0xfb   :  { %v1343_v25 = vadd.f32 %v1342_v24, %v1341_v21 }
  0xfc   :  { %v627_v26 = vadd.f32 %v1279_v23, %v1793_v13  ;;  %v1797_v27 = vadd.f32 %v1340_v20, %v624_v22 }
  0xfe   :  { %v1280_v28 = vpop.f32.mrb[4].mxu0  ;;  %v1799_v29 = vadd.f32 %v1343_v25, %v627_v26 }
  0xff   :  { %v1281_v30 = vpop.f32.mrb[5].mxu0  ;;  %v1344_v31 = vpop.f32.mrb[4].mxu1 }
 0x100   :  { %v1282_v32 = vadd.f32 %v1281_v30, %v1280_v28  ;;  %v1283_v33 = vpop.f32.mrb[6].mxu0  ;;  %v1345_v34 = vpop.f32.mrb[5].mxu1 }
 0x101   :  { %v1284_v35 = vpop.f32.mrb[7].mxu0  ;;  %v1346_v36 = vadd.f32 %v1345_v34, %v1344_v31  ;;  %v1347_v37 = vpop.f32.mrb[6].mxu1 }
 0x102   :  { %v632_v38 = vadd.f32 %v1282_v32, %v1793_v13  ;;  %v1285_v39 = vadd.f32 %v1284_v35, %v1283_v33  ;;  %v1348_v40 = vpop.f32.mrb[7].mxu1 }
 0x103   :  { %v1349_v41 = vadd.f32 %v1348_v40, %v1347_v37 }
 0x104   :  { %v635_v42 = vadd.f32 %v1285_v39, %v1793_v13  ;;  %v1803_v43 = vadd.f32 %v1346_v36, %v632_v38 }
 0x106   :  { %v1286_v44 = vpop.f32.mrb[8].mxu0  ;;  %v1805_v45 = vadd.f32 %v1349_v41, %v635_v42 }
 0x107   :  { %v1287_v46 = vpop.f32.mrb[9].mxu0  ;;  %v1350_v47 = vpop.f32.mrb[8].mxu1 }
 0x108   :  { %v1288_v48 = vadd.f32 %v1287_v46, %v1286_v44  ;;  %v1289_v49 = vpop.f32.mrb[10].mxu0  ;;  %v1351_v50 = vpop.f32.mrb[9].mxu1 }
 0x109   :  { %v1290_v51 = vpop.f32.mrb[11].mxu0  ;;  %v1352_v52 = vadd.f32 %v1351_v50, %v1350_v47  ;;  %v1353_v53 = vpop.f32.mrb[10].mxu1 }
 0x10a   :  { %v640_v54 = vadd.f32 %v1288_v48, %v1793_v13  ;;  %v1291_v55 = vadd.f32 %v1290_v51, %v1289_v49  ;;  %v1354_v56 = vpop.f32.mrb[11].mxu1 }
 0x10b   :  { %v1355_v57 = vadd.f32 %v1354_v56, %v1353_v53 }
 0x10c   :  { %v643_v58 = vadd.f32 %v1291_v55, %v1793_v13  ;;  %v1809_v59 = vadd.f32 %v1352_v52, %v640_v54 }
 0x10e   :  { %v1292_v60 = vpop.f32.mrb[12].mxu0  ;;  %v1811_v61 = vadd.f32 %v1355_v57, %v643_v58 }
 0x10f   :  { %v1293_v62 = vpop.f32.mrb[13].mxu0  ;;  %v1356_v63 = vpop.f32.mrb[12].mxu1 }
 0x110   :  { %v1294_v0 = vadd.f32 %v1293_v62, %v1292_v60  ;;  %v1295_v1 = vpop.f32.mrb[14].mxu0  ;;  %v1357_v2 = vpop.f32.mrb[13].mxu1 }
 0x111   :  { %v1296_v3 = vpop.f32.mrb[15].mxu0  ;;  %v1358_v4 = vadd.f32 %v1357_v2, %v1356_v63  ;;  %v1359_v5 = vpop.f32.mrb[14].mxu1 }
 0x112   :  { %v648_v6 = vadd.f32 %v1294_v0, %v1793_v13  ;;  %v1297_v7 = vadd.f32 %v1296_v3, %v1295_v1  ;;  %v1360_v8 = vpop.f32.mrb[15].mxu1 }
 0x113   :  { %v1361_v9 = vadd.f32 %v1360_v8, %v1359_v5 }
 0x114   :  { %v651_v10 = vadd.f32 %v1297_v7, %v1793_v13  ;;  %v1815_v11 = vadd.f32 %v1358_v4, %v648_v6 }
 0x116   :  { %v1298_v12 = vpop.f32.mrb[16].mxu0  ;;  %v1817_v14 = vadd.f32 %v1361_v9, %v651_v10 }
 0x117   :  { %v1299_v15 = vpop.f32.mrb[17].mxu0  ;;  %v1362_v16 = vpop.f32.mrb[16].mxu1 }
 0x118   :  { %v1300_v17 = vadd.f32 %v1299_v15, %v1298_v12  ;;  %v1301_v18 = vpop.f32.mrb[18].mxu0  ;;  %v1363_v19 = vpop.f32.mrb[17].mxu1 }
 0x119   :  { %v1302_v20 = vpop.f32.mrb[19].mxu0  ;;  %v1364_v21 = vadd.f32 %v1363_v19, %v1362_v16  ;;  %v1365_v22 = vpop.f32.mrb[18].mxu1 }
 0x11a   :  { %v656_v23 = vadd.f32 %v1300_v17, %v1793_v13  ;;  %v1303_v24 = vadd.f32 %v1302_v20, %v1301_v18  ;;  %v1366_v25 = vpop.f32.mrb[19].mxu1 }
 0x11b   :  { %v1367_v26 = vadd.f32 %v1366_v25, %v1365_v22 }
 0x11c   :  { %v659_v28 = vadd.f32 %v1303_v24, %v1793_v13  ;;  %v753_v30 = vadd.f32 %v1364_v21, %v656_v23 }
 0x11e   :  { %v1304_v31 = vpop.f32.mrb[20].mxu0  ;;  %v1821_v32 = vadd.f32 %v1367_v26, %v659_v28 }
 0x11f   :  { %v1305_v33 = vpop.f32.mrb[21].mxu0  ;;  %v1368_v34 = vpop.f32.mrb[20].mxu1 }
 0x120   :  { %v1306_v35 = vadd.f32 %v1305_v33, %v1304_v31  ;;  %v1307_v36 = vpop.f32.mrb[22].mxu0  ;;  %v1369_v37 = vpop.f32.mrb[21].mxu1 }
 0x121   :  { %v1308_v38 = vpop.f32.mrb[23].mxu0  ;;  %v1370_v39 = vadd.f32 %v1369_v37, %v1368_v34  ;;  %v1371_v40 = vpop.f32.mrb[22].mxu1 }
 0x122   :  { %v664_v41 = vadd.f32 %v1306_v35, %v1793_v13  ;;  %v1309_v42 = vadd.f32 %v1308_v38, %v1307_v36  ;;  %v1372_v44 = vpop.f32.mrb[23].mxu1 }
 0x123   :  { %v1373_v46 = vadd.f32 %v1372_v44, %v1371_v40 }
 0x124   :  { %v667_v47 = vadd.f32 %v1309_v42, %v1793_v13  ;;  %v761_v48 = vadd.f32 %v1370_v39, %v664_v41 }
 0x126   :  { %v1310_v49 = vpop.f32.mrb[24].mxu0  ;;  %v764_v50 = vadd.f32 %v1373_v46, %v667_v47 }
 0x127   :  { %v1311_v51 = vpop.f32.mrb[25].mxu0  ;;  %v1374_v52 = vpop.f32.mrb[24].mxu1 }
 0x128   :  { %v1312_v53 = vadd.f32 %v1311_v51, %v1310_v49  ;;  %v1313_v54 = vpop.f32.mrb[26].mxu0  ;;  %v1375_v55 = vpop.f32.mrb[25].mxu1 }
 0x129   :  { %v1314_v56 = vpop.f32.mrb[27].mxu0  ;;  %v1376_v57 = vadd.f32 %v1375_v55, %v1374_v52  ;;  %v1377_v58 = vpop.f32.mrb[26].mxu1 }
 0x12a   :  { %v672_v60 = vadd.f32 %v1312_v53, %v1793_v13  ;;  %v1315_v62 = vadd.f32 %v1314_v56, %v1313_v54  ;;  %v1378_v63 = vpop.f32.mrb[27].mxu1 }
 0x12b   :  { %v1379_v0 = vadd.f32 %v1378_v63, %v1377_v58 }
 0x12c   :  { %v675_v1 = vadd.f32 %v1315_v62, %v1793_v13  ;;  %v769_v2 = vadd.f32 %v1376_v57, %v672_v60 }
 0x12e   :  { %v1316_v3 = vpop.f32.mrb[28].mxu0  ;;  %v1827_v4 = vadd.f32 %v1379_v0, %v675_v1 }
 0x12f   :  { %v1317_v5 = vpop.f32.mrb[29].mxu0  ;;  %v1380_v6 = vpop.f32.mrb[28].mxu1 }
 0x130   :  { %v1318_v7 = vadd.f32 %v1317_v5, %v1316_v3  ;;  %v1319_v8 = vpop.f32.mrb[30].mxu0  ;;  %v1381_v9 = vpop.f32.mrb[29].mxu1 }
 0x131   :  { %v1320_v10 = vpop.f32.mrb[31].mxu0  ;;  %v1382_v12 = vadd.f32 %v1381_v9, %v1380_v6  ;;  %v1383_v15 = vpop.f32.mrb[30].mxu1 }
 0x132   :  { %v680_v16 = vadd.f32 %v1318_v7, %v1793_v13  ;;  %v1321_v17 = vadd.f32 %v1320_v10, %v1319_v8  ;;  %v1384_v18 = vpop.f32.mrb[31].mxu1 }
 0x133   :  { %v1385_v19 = vadd.f32 %v1384_v18, %v1383_v15 }
 0x134   :  { %v683_v20 = vadd.f32 %v1321_v17, %v1793_v13  ;;  %v777_v21 = vadd.f32 %v1382_v12, %v680_v16 }
 0x136   :  { %v1408_v22 = vpop.f32.mrb[32].mxu0  ;;  %v780_v23 = vadd.f32 %v1385_v19, %v683_v20 }
 0x137   :  { %v1832_v24 = vadd.f32 %v1408_v22, %v1803_v43  ;;  %v1416_v25 = vpop.f32.mrb[32].mxu1  ;;  %v817_v26 = vpop.f32.mrb[33].mxu0 }
 0x138   :  { %v1834_v28 = vadd.f32 %v1416_v25, %v761_v48  ;;  %v1837_v31 = vadd.f32 %v817_v26, %v1797_v27  ;;  %v849_v33 = vpop.f32.mrb[33].mxu1  ;;  %v1409_v34 = vpop.f32.mrb[34].mxu0 }
 0x139   :  { %v1839_v35 = vadd.f32 %v849_v33, %v753_v30  ;;  %v1842_v36 = vadd.f32 %v1409_v34, %v1805_v45  ;;  %v1417_v13 = vpop.f32.mrb[34].mxu1  ;;  %v820_v37 = vpop.f32.mrb[35].mxu0  ;;  %v883_v30 = vsel %vm564_vm0, %v1832_v24, 0.0  ;;  %v921_v45 = vmul.f32 %v1832_v24, %v1832_v24 }
 0x13a   :  { %v852_v38 = vpop.f32.mrb[35].mxu1  ;;  %v919_v43 = vmul.f32 %v1837_v31, %v1837_v31  ;;  %v1846_v39 = vadd.f32 %v1417_v13, %v764_v50  ;;  %v1849_v40 = vadd.f32 %v820_v37, %v1799_v29  ;;  %v880_v42 = vsel %vm564_vm0, %v1837_v31, 0.0 }
 0x13b   :  { %v1852_v27 = vadd.f32 %v852_v38, %v1821_v32  ;;  %v922_v53 = vmul.f32 %v1842_v36, %v1842_v36  ;;  %v938_v63 = vsel %vm564_vm0, %v921_v45, 0.0  ;;  %v885_v0 = vsel %vm564_vm0, %v1842_v36, 0.0 }
 0x13c   :  { %v881_v44 = vsel %vm564_vm0, %v1849_v40, 0.0  ;;  %v920_v29 = vmul.f32 %v1849_v40, %v1849_v40  ;;  %v935_v32 = vsel %vm564_vm0, %v919_v43, 0.0  ;;  %v927_v25 = vmul.f32 %v1839_v35, %v1839_v35 }
 0x13d   :  { %v882_v48 = vadd.f32 %v881_v44, %v880_v42  ;;  %v895_v34 = vsel %vm564_vm0, %v1839_v35, 0.0  ;;  %v928_v37 = vmul.f32 %v1852_v27, %v1852_v27  ;;  %v929_v45 = vmul.f32 %v1834_v28, %v1834_v28 }
 0x13e   :  { %v1412_v41 = vpop.f32.mrb[36].mxu0  ;;  %v936_v54 = vsel %vm564_vm0, %v920_v29, 0.0  ;;  %v950_v42 = vsel %vm564_vm0, %v927_v25, 0.0  ;;  %v899_v29 = vsel %vm564_vm0, %v1834_v28, 0.0 }
 0x13f   :  { %v1420_v46 = vpop.f32.mrb[36].mxu1  ;;  %v833_v47 = vpop.f32.mrb[37].mxu0  ;;  %v1866_v49 = vadd.f32 %v1412_v41, %v1815_v11  ;;  %v884_v60 = vadd.f32 %v883_v30, %v882_v48  ;;  %v937_v62 = vadd.f32 %v936_v54, %v935_v32  ;;  %v897_v30 = vsel %vm564_vm0, %v1852_v27, 0.0 }
 0x140   :  { %v1868_v50 = vadd.f32 %v1420_v46, %v777_v21  ;;  %v865_v51 = vpop.f32.mrb[37].mxu1  ;;  %v1413_v52 = vpop.f32.mrb[38].mxu0  ;;  %v1874_v55 = vadd.f32 %v833_v47, %v1809_v59  ;;  %v930_v47 = vmul.f32 %v1846_v39, %v1846_v39  ;;  %v952_v32 = vsel %vm564_vm0, %v928_v37, 0.0 }
 0x141   :  { %v1876_v56 = vadd.f32 %v865_v51, %v769_v2  ;;  %v1421_v57 = vpop.f32.mrb[38].mxu1  ;;  %v836_v58 = vpop.f32.mrb[39].mxu0  ;;  %v939_v59 = vadd.f32 %v938_v63, %v937_v62  ;;  %v886_v5 = vadd.f32 %v885_v0, %v884_v60  ;;  %v940_v2 = vsel %vm564_vm0, %v922_v53, 0.0 }
 0x142   :  { %v868_v11 = vpop.f32.mrb[39].mxu1  ;;  %v887_v1 = vsel %vm564_vm0, %v1874_v55, 0.0  ;;  %v923_v3 = vmul.f32 %v1874_v55, %v1874_v55  ;;  %v1888_v7 = vadd.f32 %v1413_v52, %v1817_v14  ;;  %v1890_v10 = vadd.f32 %v1421_v57, %v780_v23 }
 0x143   :  { %v888_v8 = vadd.f32 %v887_v1, %v886_v5  ;;  %v941_v9 = vadd.f32 %v940_v2, %v939_v59  ;;  %v1893_v12 = vadd.f32 %v836_v58, %v1811_v61  ;;  %v1896_v15 = vadd.f32 %v868_v11, %v1827_v4 }
 0x144   :  { %v942_v6 = vsel %vm564_vm0, %v923_v3, 0.0  ;;  %v925_v18 = vmul.f32 %v1866_v49, %v1866_v49  ;;  %v891_v20 = vsel %vm564_vm0, %v1866_v49, 0.0  ;;  %v926_v61 = vmul.f32 %v1888_v7, %v1888_v7 }
 0x145   :  { %v943_v16 = vadd.f32 %v942_v6, %v941_v9  ;;  %v889_v17 = vsel %vm564_vm0, %v1893_v12, 0.0  ;;  %v924_v14 = vmul.f32 %v1893_v12, %v1893_v12  ;;  %v893_v22 = vsel %vm564_vm0, %v1888_v7, 0.0 }
 0x146   :  { %v890_v19 = vadd.f32 %v889_v17, %v888_v8  ;;  %v946_v26 = vsel %vm564_vm0, %v925_v18, 0.0  ;;  %v948_v38 = vsel %vm564_vm0, %v926_v61, 0.0  ;;  %v901_v51 = vsel %vm564_vm0, %v1846_v39, 0.0 }
 0x147   :  { %v944_v4 = vsel %vm564_vm0, %v924_v14, 0.0  ;;  %v954_v53 = vsel %vm564_vm0, %v929_v45, 0.0  ;;  %v931_v54 = vmul.f32 %v1876_v56, %v1876_v56  ;;  %v903_v58 = vsel %vm564_vm0, %v1876_v56, 0.0 }
 0x148   :  { %v892_v21 = vadd.f32 %v891_v20, %v890_v19  ;;  %v945_v23 = vadd.f32 %v944_v4, %v943_v16  ;;  %v956_v62 = vsel %vm564_vm0, %v930_v47, 0.0  ;;  %v932_v63 = vmul.f32 %v1896_v15, %v1896_v15 }
 0x149   :  { %v905_v0 = vsel %vm564_vm0, %v1896_v15, 0.0  ;;  %v933_v3 = vmul.f32 %v1868_v50, %v1868_v50  ;;  %v958_v59 = vsel %vm564_vm0, %v931_v54, 0.0  ;;  %v907_v2 = vsel %vm564_vm0, %v1868_v50, 0.0 }
 0x14a   :  { %v894_v33 = vadd.f32 %v893_v22, %v892_v21  ;;  %v947_v13 = vadd.f32 %v946_v26, %v945_v23  ;;  %v934_v8 = vmul.f32 %v1890_v10, %v1890_v10  ;;  %v960_v16 = vsel %vm564_vm0, %v932_v63, 0.0 }
 0x14b   :  { %v909_v17 = vsel %vm564_vm0, %v1890_v10, 0.0  ;;  %v962_v19 = vsel %vm564_vm0, %v933_v3, 0.0  ;;  %v1225_v3 = vld [vmem:[%s2043_s4] ss:$0 sm:$0xff] }
 0x14c   :  { %v896_v43 = vadd.f32 %v895_v34, %v894_v33  ;;  %v949_v41 = vadd.f32 %v948_v38, %v947_v13  ;;  %v964_v61 = vsel %vm564_vm0, %v934_v8, 0.0 }
 0x14e   :  { %v898_v44 = vadd.f32 %v897_v30, %v896_v43  ;;  %v951_v46 = vadd.f32 %v950_v42, %v949_v41 }
 0x150   :  { %v900_v48 = vadd.f32 %v899_v29, %v898_v44  ;;  %v953_v52 = vadd.f32 %v952_v32, %v951_v46 }
 0x152   :  { %v902_v57 = vadd.f32 %v901_v51, %v900_v48  ;;  %v955_v60 = vadd.f32 %v954_v53, %v953_v52 }
 0x154   :  { %v904_v11 = vadd.f32 %v903_v58, %v902_v57  ;;  %v957_v1 = vadd.f32 %v956_v62, %v955_v60 }
 0x156   :  { %v906_v5 = vadd.f32 %v905_v0, %v904_v11  ;;  %v959_v6 = vadd.f32 %v958_v59, %v957_v1 }
 0x158   :  { %v908_v9 = vadd.f32 %v907_v2, %v906_v5  ;;  %v961_v18 = vadd.f32 %v960_v16, %v959_v6 }
 0x15a   :  { %v910_v14 = vadd.f32 %v909_v17, %v908_v9  ;;  %v963_v20 = vadd.f32 %v962_v19, %v961_v18 }
 0x15c   :  { %v911_v21 = vrot.slane %v910_v14, 4  ;;  %v965_v4 = vadd.f32 %v964_v61, %v963_v20 }
 0x15e   :  { %v912_v22 = vadd.f32 %v911_v21, %v910_v14  ;;  %v966_v23 = vrot.slane %v965_v4, 4 }
 0x160   :  { %v913_v25 = vrot.slane %v912_v22, 2  ;;  %v967_v26 = vadd.f32 %v966_v23, %v965_v4 }
 0x162   :  { %v914_v33 = vadd.f32 %v913_v25, %v912_v22  ;;  %v968_v34 = vrot.slane %v967_v26, 2 }
 0x164   :  { %v915_v13 = vrot.slane %v914_v33, 1  ;;  %v969_v37 = vadd.f32 %v968_v34, %v967_v26 }
 0x166   :  { %v916_v38 = vadd.f32 %v915_v13, %v914_v33  ;;  %v970_v43 = vrot.slane %v969_v37, 1 }
 0x168   :  { %v918_v30 = vmul.f32 0.0078125, %v916_v38  ;;  %v971_v41 = vadd.f32 %v970_v43, %v969_v37 }
 0x16a   :  { %v973_v45 = vmul.f32 %v918_v30, %v918_v30  ;;  %v980_v42 = vsub.f32 %v1837_v31, %v918_v30  ;;  %v981_v44 = vsub.f32 %v1849_v40, %v918_v30  ;;  %v982_v29 = vsub.f32 %v1832_v24, %v918_v30 }
 0x16b   :  { %v972_v46 = vmul.f32 0.0078125, %v971_v41  ;;  %v983_v47 = vsub.f32 %v1842_v36, %v918_v30  ;;  %v984_v32 = vsub.f32 %v1874_v55, %v918_v30  ;;  %v985_v48 = vsub.f32 %v1893_v12, %v918_v30 }
 0x16c   :  { %v986_v51 = vsub.f32 %v1866_v49, %v918_v30  ;;  %v987_v52 = vsub.f32 %v1888_v7, %v918_v30  ;;  %v988_v53 = vsub.f32 %v1839_v35, %v918_v30  ;;  %v989_v54 = vsub.f32 %v1852_v27, %v918_v30  ;;  %v978_v27 = vld [vmem:[%s2042_s3] sm:$0x1] }
 0x16d   :  { %v974_v31 = vsub.f32 %v972_v46, %v973_v45  ;;  %v990_v40 = vsub.f32 %v1834_v28, %v918_v30  ;;  %v991_v24 = vsub.f32 %v1846_v39, %v918_v30  ;;  %v992_v57 = vsub.f32 %v1876_v56, %v918_v30 }
 0x16e   :  { %v993_v36 = vsub.f32 %v1896_v15, %v918_v30  ;;  %v994_v55 = vsub.f32 %v1868_v50, %v918_v30  ;;  %v995_v12 = vsub.f32 %v1890_v10, %v918_v30  ;;  %v996_v7 = vlaneseq }
 0x16f   :  { %v975_v49 = vmax.f32 %v974_v31, 0.0 }
 0x170   :  { %v997_v35 = vshrl.u32 %v996_v7, 7 }
 0x171   :  { %v976_v58 = vadd.f32 1e-05, %v975_v49 }
 0x172   :  { %v998_v28 = vsub.s32 0, %v997_v35 }
 0x173   :  { %1522 = vrsqrt.f32 %v976_v58 }
 0x17d   :  { %v1523_v60 = vpop.eup %1522 }
 0x17e   :  { %v979_v39 = vmul.f32 %v1523_v60, %v978_v27 }
 0x180   :  { %v999_v62 = vrot.slane %v979_v39, %v998_v28 }
 0x182   :  { %v1000_v56 = vmul.f32 %v999_v62, %v980_v42  ;;  %v1001_v11 = vmul.f32 %v999_v62, %v981_v44  ;;  %v1002_v15 = vmul.f32 %v999_v62, %v982_v29  ;;  %v1003_v63 = vmul.f32 %v999_v62, %v983_v47 }
 0x183   :  { %v1004_v50 = vmul.f32 %v999_v62, %v984_v32  ;;  %v1005_v0 = vmul.f32 %v999_v62, %v985_v48  ;;  %v1006_v10 = vmul.f32 %v999_v62, %v986_v51  ;;  %v1007_v1 = vmul.f32 %v999_v62, %v987_v52 }
 0x184   :  { %v1008_v59 = vmul.f32 %v999_v62, %v988_v53  ;;  %v1009_v5 = vmul.f32 %v999_v62, %v989_v54  ;;  %v1010_v2 = vmul.f32 %v999_v62, %v990_v40  ;;  %v1011_v6 = vmul.f32 %v999_v62, %v991_v24 }
 0x185   :  { %v1012_v8 = vmul.f32 %v999_v62, %v992_v57  ;;  %v1013_v9 = vmul.f32 %v999_v62, %v993_v36  ;;  %v1014_v16 = vmul.f32 %v999_v62, %v994_v55  ;;  %v1015_v17 = vmul.f32 %v999_v62, %v995_v12 }
 0x186   :  { %v1023_v18 = vadd.f32 %v1225_v3, %v1000_v56  ;;  %v1024_v19 = vadd.f32 %v1225_v3, %v1001_v11  ;;  %v1025_v14 = vadd.f32 %v1225_v3, %v1002_v15  ;;  %v1026_v20 = vadd.f32 %v1225_v3, %v1003_v63 }
 0x187   :  { %v1027_v61 = vadd.f32 %v1225_v3, %v1004_v50  ;;  %v1028_v21 = vadd.f32 %v1225_v3, %v1005_v0  ;;  %v1029_v4 = vadd.f32 %v1225_v3, %v1006_v10  ;;  %v1030_v22 = vadd.f32 %v1225_v3, %v1007_v1 }
 0x188   :  { %v1031_v23 = vadd.f32 %v1225_v3, %v1008_v59  ;;  %v1032_v25 = vadd.f32 %v1225_v3, %v1009_v5  ;;  %v1033_v26 = vadd.f32 %v1225_v3, %v1010_v2  ;;  %v1034_v33 = vadd.f32 %v1225_v3, %v1011_v6 }
 0x189   :  { %v1035_v34 = vadd.f32 %v1225_v3, %v1012_v8  ;;  %v1036_v13 = vadd.f32 %v1225_v3, %v1013_v9  ;;  %v1037_v37 = vadd.f32 %v1225_v3, %v1014_v16  ;;  %v1038_v38 = vadd.f32 %v1225_v3, %v1015_v17 }
 0x18a   :  { %v1039_v43 = vmax.f32 %v1023_v18, 0.0  ;;  %v1040_v30 = vmax.f32 %v1024_v19, 0.0  ;;  %v1041_v41 = vmax.f32 %v1025_v14, 0.0  ;;  %v1042_v45 = vmax.f32 %v1026_v20, 0.0 }
 0x18b   :  { %v1043_v42 = vmax.f32 %v1027_v61, 0.0  ;;  %v1044_v44 = vmax.f32 %v1028_v21, 0.0  ;;  %v1045_v29 = vmax.f32 %v1029_v4, 0.0  ;;  %v1046_v46 = vmax.f32 %v1030_v22, 0.0 }
 0x18c   :  { %v1047_v47 = vmax.f32 %v1031_v23, 0.0  ;;  %v1048_v32 = vmax.f32 %v1032_v25, 0.0  ;;  %v1049_v48 = vmax.f32 %v1033_v26, 0.0  ;;  %v1050_v51 = vmax.f32 %v1034_v33, 0.0 }
 0x18d   :  { %v1051_v52 = vmax.f32 %v1035_v34, 0.0  ;;  %v1052_v53 = vmax.f32 %v1036_v13, 0.0  ;;  %v1053_v54 = vmax.f32 %v1037_v37, 0.0  ;;  %v1054_v31 = vmax.f32 %v1038_v38, 0.0 }
 0x18e   :  { %v1242_v40 = vpack.c.bf16 %v1039_v43, %v1039_v43  ;;  %v1243_v24 = vpack.c.bf16 %v1040_v30, %v1040_v30  ;;  %v1244_v57 = vpack.c.bf16 %v1041_v41, %v1041_v41  ;;  %v1245_v36 = vpack.c.bf16 %v1042_v45, %v1042_v45 }
 0x18f   :  { %v1246_v55 = vpack.c.bf16 %v1043_v42, %v1043_v42  ;;  %v1247_v12 = vpack.c.bf16 %v1044_v44, %v1044_v44  ;;  %v1248_v49 = vpack.c.bf16 %v1045_v29, %v1045_v29  ;;  %v1249_v58 = vpack.c.bf16 %v1046_v46, %v1046_v46 }
 0x190   :  { %v1250_v7 = vpack.c.bf16 %v1047_v47, %v1047_v47  ;;  %v1251_v35 = vpack.c.bf16 %v1048_v32, %v1048_v32  ;;  %v1252_v27 = vpack.c.bf16 %v1049_v48, %v1049_v48  ;;  %v1253_v28 = vpack.c.bf16 %v1050_v51, %v1050_v51  ;;  %1120 = vst.msk [vmem:[%s2044_s5] sm:$0xf] %vm1119_vm1, %v1242_v40 }
 0x191   :  { %1121 = vst.msk [vmem:[%s2044_s5 + $0x4] sm:$0xf] %vm1119_vm1, %v1243_v24  ;;  %1122 = vst.msk [vmem:[%s2044_s5 + $0x8] sm:$0xf] %vm1119_vm1, %v1244_v57  ;;  %v1254_v60 = vpack.c.bf16 %v1051_v52, %v1051_v52  ;;  %v1255_v39 = vpack.c.bf16 %v1052_v53, %v1052_v53  ;;  %v1256_v62 = vpack.c.bf16 %v1053_v54, %v1053_v54 }
 0x192   :  { %1123 = vst.msk [vmem:[%s2044_s5 + $0xc] sm:$0xf] %vm1119_vm1, %v1245_v36  ;;  %v1257_v56 = vpack.c.bf16 %v1054_v31, %v1054_v31  ;;  %1124 = vst.msk [vmem:[%s2044_s5 + $0x10] sm:$0xf] %vm1119_vm1, %v1246_v55 }
 0x193   :  { %1125 = vst.msk [vmem:[%s2044_s5 + $0x14] sm:$0xf] %vm1119_vm1, %v1247_v12  ;;  %1126 = vst.msk [vmem:[%s2044_s5 + $0x18] sm:$0xf] %vm1119_vm1, %v1248_v49 }
 0x194   :  { %1127 = vst.msk [vmem:[%s2044_s5 + $0x1c] sm:$0xf] %vm1119_vm1, %v1249_v58  ;;  %1128 = vst.msk [vmem:[%s2044_s5 + $0x20] sm:$0xf] %vm1119_vm1, %v1250_v7 }
 0x195   :  { %1129 = vst.msk [vmem:[%s2044_s5 + $0x24] sm:$0xf] %vm1119_vm1, %v1251_v35  ;;  %1130 = vst.msk [vmem:[%s2044_s5 + $0x28] sm:$0xf] %vm1119_vm1, %v1252_v27 }
 0x196   :  { %1131 = vst.msk [vmem:[%s2044_s5 + $0x2c] sm:$0xf] %vm1119_vm1, %v1253_v28  ;;  %1132 = vst.msk [vmem:[%s2044_s5 + $0x30] sm:$0xf] %vm1119_vm1, %v1254_v60 }
 0x197   :  { %1133 = vst.msk [vmem:[%s2044_s5 + $0x34] sm:$0xf] %vm1119_vm1, %v1255_v39  ;;  %1134 = vst.msk [vmem:[%s2044_s5 + $0x38] sm:$0xf] %vm1119_vm1, %v1256_v62 }
 0x198   :  { %1135 = vst.msk [vmem:[%s2044_s5 + $0x3c] sm:$0xf] %vm1119_vm1, %v1257_v56 }

// kernel: colornet_forward.17
= control target key start
LH: loop header
LB: loop body
LE: loop exit
PB: predicated region body
PF: predicated region fallthrough
CT: control target
= control target key end

     0   :  { %vm567_vm0 = vcmask 523264   ;;  %vm1170_vm1 = vcmask 519168   ;;  %s2210_s1 = inlined_call_operand.vmem [shape: bf16[576,64], index: 1, kind: input, shape index: {}]   ;;  %s2211_s0 = inlined_call_operand.vmem [shape: bf16[128,576], index: 0, kind: input, shape index: {}]   ;;  %s2212_s2 = inlined_call_operand.vmem [shape: f32[1,64], index: 2, kind: input, shape index: {}]   ;;  %s2213_s5 = inlined_call_operand.vmem [shape: bf16[128,64], index: 5, kind: input, shape index: {}]   ;;  %s2214_s3 = inlined_call_operand.vmem [shape: f32[1,64], index: 3, kind: input, shape index: {}]   ;;  %s2215_s4 = inlined_call_operand.vmem [shape: f32[1,64], index: 4, kind: input, shape index: {}]   ;;  %s2216_s6 = inlined_call_operand.vmem [shape: bf16[128,64], index: 6, kind: output, shape index: {}]  }
   0x1   :  { %v1520_v0 = vld [vmem:[%s2210_s1 + $0x40] sm:$0xff]   ;;  %v1524_v4 = vld [vmem:[%s2210_s1 + $0x48] sm:$0xff]   ;;  %v1528_v8 = vld [vmem:[%s2210_s1 + $0x50] sm:$0xff]  }
   0x2   :  { %v1521_v1 = vld [vmem:[%s2210_s1 + $0xc0] sm:$0xff]   ;;  %1348 = vmatprep.subr.bf16.mxu0 %v1520_v0  ;;  %v1525_v5 = vld [vmem:[%s2210_s1 + $0xc8] sm:$0xff]   ;;  %v1529_v9 = vld [vmem:[%s2210_s1 + $0xd0] sm:$0xff]  }
   0x3   :  { %v1522_v2 = vld [vmem:[%s2210_s1] sm:$0xff]   ;;  %1412 = vmatprep.subr.bf16.mxu1 %v1521_v1  ;;  %v1526_v6 = vld [vmem:[%s2210_s1 + $0x8] sm:$0xff]   ;;  %v1530_v10 = vld [vmem:[%s2210_s1 + $0x10] sm:$0xff]  }
   0x4   :  { %v1523_v3 = vld [vmem:[%s2210_s1 + $0x80] sm:$0xff]   ;;  %1349 = vmatpush3.bf16.msra.mxu0 %v1522_v2  ;;  %v1527_v7 = vld [vmem:[%s2210_s1 + $0x88] sm:$0xff]   ;;  %v1531_v11 = vld [vmem:[%s2210_s1 + $0x90] sm:$0xff]  }
   0x5   :  { %1413 = vmatpush3.bf16.msra.mxu1 %v1523_v3  ;;  %1350 = vmatprep.subr.bf16.mxu0 %v1524_v4  ;;  %v1532_v12 = vld [vmem:[%s2210_s1 + $0x58] sm:$0xff]   ;;  %v1536_v16 = vld [vmem:[%s2210_s1 + $0x60] sm:$0xff]   ;;  %v1540_v20 = vld [vmem:[%s2210_s1 + $0x68] sm:$0xff]  }
   0x6   :  { %1414 = vmatprep.subr.bf16.mxu1 %v1525_v5  ;;  %v1533_v13 = vld [vmem:[%s2210_s1 + $0xd8] sm:$0xff]   ;;  %v1537_v17 = vld [vmem:[%s2210_s1 + $0xe0] sm:$0xff]   ;;  %v1541_v21 = vld [vmem:[%s2210_s1 + $0xe8] sm:$0xff]  }
   0x7   :  { %v1534_v14 = vld [vmem:[%s2210_s1 + $0x18] sm:$0xff]   ;;  %v1538_v18 = vld [vmem:[%s2210_s1 + $0x20] sm:$0xff]   ;;  %v1542_v22 = vld [vmem:[%s2210_s1 + $0x28] sm:$0xff]  }
   0x8   :  { %1351 = vmatpush3.bf16.msra.mxu0 %v1526_v6  ;;  %v1535_v15 = vld [vmem:[%s2210_s1 + $0x98] sm:$0xff]   ;;  %v1539_v19 = vld [vmem:[%s2210_s1 + $0xa0] sm:$0xff]   ;;  %v1543_v23 = vld [vmem:[%s2210_s1 + $0xa8] sm:$0xff]  }
   0x9   :  { %1415 = vmatpush3.bf16.msra.mxu1 %v1527_v7  ;;  %1352 = vmatprep.subr.bf16.mxu0 %v1528_v8  ;;  %v1544_v24 = vld [vmem:[%s2210_s1 + $0x70] sm:$0xff]   ;;  %v1548_v28 = vld [vmem:[%s2210_s1 + $0x78] sm:$0xff]   ;;  %v1557_v35 = vld [vmem:[%s2211_s0 + $0xc] ss:$20 sps:$4 sm:$0xff]  }
   0xa   :  { %1416 = vmatprep.subr.bf16.mxu1 %v1529_v9  ;;  %v1545_v25 = vld [vmem:[%s2210_s1 + $0xf0] sm:$0xff]   ;;  %v1549_v29 = vld [vmem:[%s2210_s1 + $0xf8] sm:$0xff]   ;;  %v1558_v36 = vld [vmem:[%s2210_s1 + $0x100] sm:$0xff]   ;;  %721 = vmatprep.mubr.bf16.mxu1 %v1557_v35 }
   0xb   :  { %v1546_v26 = vld [vmem:[%s2210_s1 + $0x30] sm:$0xff]   ;;  %v1550_v30 = vld [vmem:[%s2210_s1 + $0x38] sm:$0xff]   ;;  %v1559_v37 = vld [vmem:[%s2211_s0 + $0x2c] ss:$20 sps:$4 sm:$0xff]  }
   0xc   :  { %1353 = vmatpush3.bf16.msra.mxu0 %v1530_v10  ;;  %v1547_v27 = vld [vmem:[%s2210_s1 + $0xb0] sm:$0xff]   ;;  %v1551_v31 = vld [vmem:[%s2210_s1 + $0xb8] sm:$0xff]   ;;  %v1571_v42 = vld [vmem:[%s2210_s1 + $0x108] sm:$0xff]  }
   0xd   :  { %1417 = vmatpush3.bf16.msra.mxu1 %v1531_v11  ;;  %1354 = vmatprep.subr.bf16.mxu0 %v1532_v12  ;;  %v1552_v32 = vld [vmem:[%s2211_s0] ss:$20 sps:$4 sm:$0xff]   ;;  %v1554_v33 = vld [vmem:[%s2211_s0 + $0x4] ss:$20 sps:$4 sm:$0xff]   ;;  %v1555_v34 = vld [vmem:[%s2211_s0 + $0x8] ss:$20 sps:$4 sm:$0xff]  }
   0xe   :  { %1418 = vmatprep.subr.bf16.mxu1 %v1533_v13  ;;  %624 = vmatprep.mubr.bf16.mxu0 %v1554_v33  ;;  %v1561_v38 = vld [vmem:[%s2211_s0 + $0x34] ss:$20 sps:$4 sm:$0xff]   ;;  %v1564_v40 = vld [vmem:[%s2211_s0 + $0x30] ss:$20 sps:$4 sm:$0xff]   ;;  %v1570_v45 = vld [vmem:[%s2211_s0 + $0x58] ss:$20 sps:$4 sm:$0xff]  }
   0xf   :  { %v1563_v39 = vld [vmem:[%s2211_s0 + $0x28] ss:$20 sps:$4 sm:$0xff]   ;;  %v1569_v44 = vld [vmem:[%s2211_s0 + $0x50] ss:$20 sps:$4 sm:$0xff]   ;;  %v1576_v50 = vld [vmem:[%s2211_s0 + $0x78] ss:$20 sps:$4 sm:$0xff]  }
  0x10   :  { %1355 = vmatpush3.bf16.msra.mxu0 %v1534_v14  ;;  %v1565_v41 = vld [vmem:[%s2211_s0 + $0x54] ss:$20 sps:$4 sm:$0xff]   ;;  %v1567_v43 = vld [vmem:[%s2211_s0 + $0x5c] ss:$20 sps:$4 sm:$0xff]   ;;  %v1574_v48 = vld [vmem:[%s2211_s0 + $0x84] ss:$20 sps:$4 sm:$0xff]  }
  0x11   :  { %1419 = vmatpush3.bf16.msra.mxu1 %v1535_v15  ;;  %1356 = vmatprep.subr.bf16.mxu0 %v1536_v16  ;;  %v1584_v46 = vld [vmem:[%s2210_s1 + $0x110] sm:$0xff]   ;;  %v1597_v49 = vld [vmem:[%s2210_s1 + $0x118] sm:$0xff]   ;;  %v1580_v53 = vld [vmem:[%s2211_s0 + $0xac] ss:$20 sps:$4 sm:$0xff]  }
  0x12   :  { %1420 = vmatprep.subr.bf16.mxu1 %v1537_v17  ;;  %v1572_v47 = vld [vmem:[%s2211_s0 + $0x7c] ss:$20 sps:$4 sm:$0xff]   ;;  %v1577_v51 = vld [vmem:[%s2211_s0 + $0x80] ss:$20 sps:$4 sm:$0xff]   ;;  %v1578_v52 = vld [vmem:[%s2211_s0 + $0xa4] ss:$20 sps:$4 sm:$0xff]  }
  0x13   :  { %v1582_v54 = vld [vmem:[%s2211_s0 + $0xa0] ss:$20 sps:$4 sm:$0xff]   ;;  %v1583_v55 = vld [vmem:[%s2211_s0 + $0xa8] ss:$20 sps:$4 sm:$0xff]   ;;  %v1590_v59 = vld [vmem:[%s2211_s0 + $0xd0] ss:$20 sps:$4 sm:$0xff]  }
  0x14   :  { %1357 = vmatpush3.bf16.msra.mxu0 %v1538_v18  ;;  %v1585_v56 = vld [vmem:[%s2211_s0 + $0xcc] ss:$20 sps:$4 sm:$0xff]   ;;  %v1587_v57 = vld [vmem:[%s2211_s0 + $0xd4] ss:$20 sps:$4 sm:$0xff]   ;;  %v1593_v61 = vld [vmem:[%s2211_s0 + $0xfc] ss:$20 sps:$4 sm:$0xff]  }
  0x15   :  { %1421 = vmatpush3.bf16.msra.mxu1 %v1539_v19  ;;  %1358 = vmatprep.subr.bf16.mxu0 %v1540_v20  ;;  %v1589_v58 = vld [vmem:[%s2211_s0 + $0xc8] ss:$20 sps:$4 sm:$0xff]   ;;  %v1595_v62 = vld [vmem:[%s2211_s0 + $0xf0] ss:$20 sps:$4 sm:$0xff]   ;;  %v1596_v63 = vld [vmem:[%s2211_s0 + $0xf8] ss:$20 sps:$4 sm:$0xff]  }
  0x16   :  { %1422 = vmatprep.subr.bf16.mxu1 %v1541_v21  ;;  %v1591_v60 = vld [vmem:[%s2211_s0 + $0xf4] ss:$20 sps:$4 sm:$0xff]   ;;  %v1598_v0 = vld [vmem:[%s2211_s0 + $0x11c] ss:$20 sps:$4 sm:$0xff]   ;;  %v1600_v1 = vld [vmem:[%s2211_s0 + $0x124] ss:$20 sps:$4 sm:$0xff]  }
  0x17   :  { %v1602_v2 = vld [vmem:[%s2211_s0 + $0x118] ss:$20 sps:$4 sm:$0xff]   ;;  %v1603_v3 = vld [vmem:[%s2211_s0 + $0x120] ss:$20 sps:$4 sm:$0xff]   ;;  %v1604_v4 = vld [vmem:[%s2211_s0 + $0x10] ss:$20 sps:$4 sm:$0xff]  }
  0x18   :  { %1359 = vmatpush3.bf16.msra.mxu0 %v1542_v22  ;;  %v1605_v5 = vld [vmem:[%s2211_s0 + $0xb0] ss:$20 sps:$4 sm:$0xff]   ;;  %v1606_v6 = vld [vmem:[%s2211_s0 + $0x38] ss:$20 sps:$4 sm:$0xff]   ;;  %v1608_v8 = vld [vmem:[%s2211_s0 + $0x60] ss:$20 sps:$4 sm:$0xff]  }
  0x19   :  { %1423 = vmatpush3.bf16.msra.mxu1 %v1543_v23  ;;  %1360 = vmatprep.subr.bf16.mxu0 %v1544_v24  ;;  %v1607_v7 = vld [vmem:[%s2211_s0 + $0xd8] ss:$20 sps:$4 sm:$0xff]   ;;  %v1609_v9 = vld [vmem:[%s2211_s0 + $0x100] ss:$20 sps:$4 sm:$0xff]   ;;  %v1610_v10 = vld [vmem:[%s2211_s0 + $0x88] ss:$20 sps:$4 sm:$0xff]  }
  0x1a   :  { %1424 = vmatprep.subr.bf16.mxu1 %v1545_v25  ;;  %v1611_v11 = vld [vmem:[%s2211_s0 + $0x128] ss:$20 sps:$4 sm:$0xff]   ;;  %v1888_v13 = vld [vmem:[%s2212_s2] ss:$0 sm:$0xff] }
  0x1c   :  { %1361 = vmatpush3.bf16.msra.mxu0 %v1546_v26 }
  0x1d   :  { %1425 = vmatpush3.bf16.msra.mxu1 %v1547_v27  ;;  %1362 = vmatprep.subr.bf16.mxu0 %v1548_v28 }
  0x1e   :  { %1426 = vmatprep.subr.bf16.mxu1 %v1549_v29 }
  0x20   :  { %1363 = vmatpush3.bf16.msra.mxu0 %v1550_v30 }
  0x21   :  { %1427 = vmatpush3.bf16.msra.mxu1 %v1551_v31  ;;  %1488 = vmatprep.subr.bf16.mxu0 %v1558_v36 }
  0x22   :  { %1512 = vmatprep.subr.bf16.mxu1 %v1558_v36 }
  0x23   :  { %625 = vmatmul.mubr.bf16.vlgmr.msra.gmra.mrb[0].mxu0 %v1552_v32 }
  0x24   :  { %722 = vmatmul.mubr.bf16.vlgmr.msra.gmra.mrb[0].mxu1 %v1555_v34  ;;  %1489 = vmatpush3.bf16.msra.mxu0 %v1558_v36 }
  0x25   :  { %632 = vmatprep.mubr.bf16.mxu0 %v1559_v37  ;;  %729 = vmatprep.mubr.bf16.mxu1 %v1561_v38 }
  0x26   :  { %1516 = vmatpush3.bf16.msra.mxu1 %v1558_v36  ;;  %1490 = vmatprep.subr.bf16.mxu0 %v1571_v42 }
  0x27   :  { %1513 = vmatprep.subr.bf16.mxu1 %v1571_v42 }
  0x28   :  { %1491 = vmatpush3.bf16.msra.mxu0 %v1571_v42 }
  0x29   :  { %1492 = vmatprep.subr.bf16.mxu0 %v1584_v46 }
  0x2a   :  { %1517 = vmatpush3.bf16.msra.mxu1 %v1571_v42 }
  0x2b   :  { %633 = vmatmul.mubr.bf16.gmra.mrb[4].mxu0 %v1563_v39  ;;  %1514 = vmatprep.subr.bf16.mxu1 %v1584_v46 }
  0x2c   :  { %730 = vmatmul.mubr.bf16.gmra.mrb[4].mxu1 %v1564_v40  ;;  %640 = vmatprep.mubr.bf16.mxu0 %v1565_v41 }
  0x2d   :  { %737 = vmatprep.mubr.bf16.mxu1 %v1567_v43  ;;  %1493 = vmatpush3.bf16.msra.mxu0 %v1584_v46 }
  0x2e   :  { %1518 = vmatpush3.bf16.msra.mxu1 %v1584_v46  ;;  %1494 = vmatprep.subr.bf16.mxu0 %v1597_v49 }
  0x2f   :  { %1515 = vmatprep.subr.bf16.mxu1 %v1597_v49 }
  0x31   :  { %1495 = vmatpush3.bf16.msra.mxu0 %v1597_v49 }
  0x32   :  { %1519 = vmatpush3.bf16.msra.mxu1 %v1597_v49 }
  0x33   :  { %641 = vmatmul.mubr.bf16.gmra.mrb[8].mxu0 %v1569_v44 }
  0x34   :  { %738 = vmatmul.mubr.bf16.gmra.mrb[8].mxu1 %v1570_v45  ;;  %648 = vmatprep.mubr.bf16.mxu0 %v1572_v47 }
  0x35   :  { %745 = vmatprep.mubr.bf16.mxu1 %v1574_v48 }
  0x3b   :  { %649 = vmatmul.mubr.bf16.gmra.mrb[12].mxu0 %v1576_v50 }
  0x3c   :  { %746 = vmatmul.mubr.bf16.gmra.mrb[12].mxu1 %v1577_v51  ;;  %656 = vmatprep.mubr.bf16.mxu0 %v1578_v52 }
  0x3d   :  { %753 = vmatprep.mubr.bf16.mxu1 %v1580_v53 }
  0x43   :  { %657 = vmatmul.mubr.bf16.gmra.mrb[16].mxu0 %v1582_v54 }
  0x44   :  { %754 = vmatmul.mubr.bf16.gmra.mrb[16].mxu1 %v1583_v55  ;;  %664 = vmatprep.mubr.bf16.mxu0 %v1585_v56 }
  0x45   :  { %761 = vmatprep.mubr.bf16.mxu1 %v1587_v57 }
  0x4b   :  { %665 = vmatmul.mubr.bf16.gmra.mrb[20].mxu0 %v1589_v58 }
  0x4c   :  { %762 = vmatmul.mubr.bf16.gmra.mrb[20].mxu1 %v1590_v59  ;;  %672 = vmatprep.mubr.bf16.mxu0 %v1591_v60 }
  0x4d   :  { %769 = vmatprep.mubr.bf16.mxu1 %v1593_v61 }
  0x53   :  { %673 = vmatmul.mubr.bf16.gmra.mrb[24].mxu0 %v1595_v62 }
  0x54   :  { %770 = vmatmul.mubr.bf16.gmra.mrb[24].mxu1 %v1596_v63  ;;  %680 = vmatprep.mubr.bf16.mxu0 %v1598_v0 }
  0x55   :  { %777 = vmatprep.mubr.bf16.mxu1 %v1600_v1 }
  0x5b   :  { %681 = vmatmul.mubr.bf16.gmra.mrb[28].mxu0 %v1602_v2 }
  0x5c   :  { %778 = vmatmul.mubr.bf16.gmra.mrb[28].mxu1 %v1603_v3  ;;  %1496 = vmatprep.mubr.msk.bf16.mxu0 %vm567_vm0, %v1604_v4 }
  0x5d   :  { %1504 = vmatprep.mubr.msk.bf16.mxu1 %vm567_vm0, %v1605_v5 }
  0x63   :  { %1497 = vmatmul.mubr.msk.bf16.vlgmr.msra.gmra.mrb[32].mxu0 %vm567_vm0, %v1606_v6 }
  0x64   :  { %1505 = vmatmul.mubr.msk.bf16.vlgmr.msra.gmra.mrb[32].mxu1 %vm567_vm0, %v1607_v7  ;;  %1500 = vmatprep.mubr.msk.bf16.mxu0 %vm567_vm0, %v1608_v8 }
  0x65   :  { %1508 = vmatprep.mubr.msk.bf16.mxu1 %vm567_vm0, %v1609_v9 }
  0x6b   :  { %1501 = vmatmul.mubr.msk.bf16.gmra.mrb[36].mxu0 %vm567_vm0, %v1610_v10 }
  0x6c   :  { %1509 = vmatmul.mubr.msk.bf16.gmra.mrb[36].mxu1 %vm567_vm0, %v1611_v11 }
  0xf6   :  { %v1364_v12 = vpop.f32.mrb[0].mxu0 }
  0xf7   :  { %v1365_v14 = vpop.f32.mrb[1].mxu0  ;;  %v1428_v15 = vpop.f32.mrb[0].mxu1 }
  0xf8   :  { %v1366_v16 = vadd.f32 %v1365_v14, %v1364_v12  ;;  %v1367_v17 = vpop.f32.mrb[2].mxu0  ;;  %v1429_v18 = vpop.f32.mrb[1].mxu1 }
  0xf9   :  { %v1368_v19 = vpop.f32.mrb[3].mxu0  ;;  %v1430_v20 = vadd.f32 %v1429_v18, %v1428_v15  ;;  %v1431_v21 = vpop.f32.mrb[2].mxu1 }
  0xfa   :  { %v627_v22 = vadd.f32 %v1366_v16, %v1888_v13  ;;  %v1369_v23 = vadd.f32 %v1368_v19, %v1367_v17  ;;  %v1432_v24 = vpop.f32.mrb[3].mxu1 }
  0xfb   :  { %v1433_v25 = vadd.f32 %v1432_v24, %v1431_v21 }
  0xfc   :  { %v630_v26 = vadd.f32 %v1369_v23, %v1888_v13  ;;  %v1892_v27 = vadd.f32 %v1430_v20, %v627_v22 }
  0xfe   :  { %v1370_v28 = vpop.f32.mrb[4].mxu0  ;;  %v1894_v29 = vadd.f32 %v1433_v25, %v630_v26 }
  0xff   :  { %v1371_v30 = vpop.f32.mrb[5].mxu0  ;;  %v1434_v31 = vpop.f32.mrb[4].mxu1 }
 0x100   :  { %v1372_v32 = vadd.f32 %v1371_v30, %v1370_v28  ;;  %v1373_v33 = vpop.f32.mrb[6].mxu0  ;;  %v1435_v34 = vpop.f32.mrb[5].mxu1 }
 0x101   :  { %v1374_v35 = vpop.f32.mrb[7].mxu0  ;;  %v1436_v36 = vadd.f32 %v1435_v34, %v1434_v31  ;;  %v1437_v37 = vpop.f32.mrb[6].mxu1 }
 0x102   :  { %v635_v38 = vadd.f32 %v1372_v32, %v1888_v13  ;;  %v1375_v39 = vadd.f32 %v1374_v35, %v1373_v33  ;;  %v1438_v40 = vpop.f32.mrb[7].mxu1 }
 0x103   :  { %v1439_v41 = vadd.f32 %v1438_v40, %v1437_v37 }
 0x104   :  { %v638_v42 = vadd.f32 %v1375_v39, %v1888_v13  ;;  %v1898_v43 = vadd.f32 %v1436_v36, %v635_v38 }
 0x106   :  { %v1376_v44 = vpop.f32.mrb[8].mxu0  ;;  %v1900_v45 = vadd.f32 %v1439_v41, %v638_v42 }
 0x107   :  { %v1377_v46 = vpop.f32.mrb[9].mxu0  ;;  %v1440_v47 = vpop.f32.mrb[8].mxu1 }
 0x108   :  { %v1378_v48 = vadd.f32 %v1377_v46, %v1376_v44  ;;  %v1379_v49 = vpop.f32.mrb[10].mxu0  ;;  %v1441_v50 = vpop.f32.mrb[9].mxu1 }
 0x109   :  { %v1380_v51 = vpop.f32.mrb[11].mxu0  ;;  %v1442_v52 = vadd.f32 %v1441_v50, %v1440_v47  ;;  %v1443_v53 = vpop.f32.mrb[10].mxu1 }
 0x10a   :  { %v643_v54 = vadd.f32 %v1378_v48, %v1888_v13  ;;  %v1381_v55 = vadd.f32 %v1380_v51, %v1379_v49  ;;  %v1444_v56 = vpop.f32.mrb[11].mxu1 }
 0x10b   :  { %v1445_v57 = vadd.f32 %v1444_v56, %v1443_v53 }
 0x10c   :  { %v646_v58 = vadd.f32 %v1381_v55, %v1888_v13  ;;  %v1904_v59 = vadd.f32 %v1442_v52, %v643_v54 }
 0x10e   :  { %v1382_v60 = vpop.f32.mrb[12].mxu0  ;;  %v1906_v61 = vadd.f32 %v1445_v57, %v646_v58 }
 0x10f   :  { %v1383_v62 = vpop.f32.mrb[13].mxu0  ;;  %v1446_v63 = vpop.f32.mrb[12].mxu1 }
 0x110   :  { %v1384_v0 = vadd.f32 %v1383_v62, %v1382_v60  ;;  %v1385_v1 = vpop.f32.mrb[14].mxu0  ;;  %v1447_v2 = vpop.f32.mrb[13].mxu1 }
 0x111   :  { %v1386_v3 = vpop.f32.mrb[15].mxu0  ;;  %v1448_v4 = vadd.f32 %v1447_v2, %v1446_v63  ;;  %v1449_v5 = vpop.f32.mrb[14].mxu1 }
 0x112   :  { %v651_v6 = vadd.f32 %v1384_v0, %v1888_v13  ;;  %v1387_v7 = vadd.f32 %v1386_v3, %v1385_v1  ;;  %v1450_v8 = vpop.f32.mrb[15].mxu1 }
 0x113   :  { %v1451_v9 = vadd.f32 %v1450_v8, %v1449_v5 }
 0x114   :  { %v654_v10 = vadd.f32 %v1387_v7, %v1888_v13  ;;  %v1910_v11 = vadd.f32 %v1448_v4, %v651_v6 }
 0x116   :  { %v1388_v12 = vpop.f32.mrb[16].mxu0  ;;  %v1912_v14 = vadd.f32 %v1451_v9, %v654_v10 }
 0x117   :  { %v1389_v15 = vpop.f32.mrb[17].mxu0  ;;  %v1452_v16 = vpop.f32.mrb[16].mxu1 }
 0x118   :  { %v1390_v17 = vadd.f32 %v1389_v15, %v1388_v12  ;;  %v1391_v18 = vpop.f32.mrb[18].mxu0  ;;  %v1453_v19 = vpop.f32.mrb[17].mxu1 }
 0x119   :  { %v1392_v20 = vpop.f32.mrb[19].mxu0  ;;  %v1454_v21 = vadd.f32 %v1453_v19, %v1452_v16  ;;  %v1455_v22 = vpop.f32.mrb[18].mxu1 }
 0x11a   :  { %v659_v23 = vadd.f32 %v1390_v17, %v1888_v13  ;;  %v1393_v24 = vadd.f32 %v1392_v20, %v1391_v18  ;;  %v1456_v25 = vpop.f32.mrb[19].mxu1 }
 0x11b   :  { %v1457_v26 = vadd.f32 %v1456_v25, %v1455_v22 }
 0x11c   :  { %v662_v28 = vadd.f32 %v1393_v24, %v1888_v13  ;;  %v756_v30 = vadd.f32 %v1454_v21, %v659_v23 }
 0x11e   :  { %v1394_v31 = vpop.f32.mrb[20].mxu0  ;;  %v1916_v32 = vadd.f32 %v1457_v26, %v662_v28 }
 0x11f   :  { %v1395_v33 = vpop.f32.mrb[21].mxu0  ;;  %v1458_v34 = vpop.f32.mrb[20].mxu1 }
 0x120   :  { %v1396_v35 = vadd.f32 %v1395_v33, %v1394_v31  ;;  %v1397_v36 = vpop.f32.mrb[22].mxu0  ;;  %v1459_v37 = vpop.f32.mrb[21].mxu1 }
 0x121   :  { %v1398_v38 = vpop.f32.mrb[23].mxu0  ;;  %v1460_v39 = vadd.f32 %v1459_v37, %v1458_v34  ;;  %v1461_v40 = vpop.f32.mrb[22].mxu1 }
 0x122   :  { %v667_v41 = vadd.f32 %v1396_v35, %v1888_v13  ;;  %v1399_v42 = vadd.f32 %v1398_v38, %v1397_v36  ;;  %v1462_v44 = vpop.f32.mrb[23].mxu1 }
 0x123   :  { %v1463_v46 = vadd.f32 %v1462_v44, %v1461_v40 }
 0x124   :  { %v670_v47 = vadd.f32 %v1399_v42, %v1888_v13  ;;  %v764_v48 = vadd.f32 %v1460_v39, %v667_v41 }
 0x126   :  { %v1400_v49 = vpop.f32.mrb[24].mxu0  ;;  %v767_v50 = vadd.f32 %v1463_v46, %v670_v47 }
 0x127   :  { %v1401_v51 = vpop.f32.mrb[25].mxu0  ;;  %v1464_v52 = vpop.f32.mrb[24].mxu1 }
 0x128   :  { %v1402_v53 = vadd.f32 %v1401_v51, %v1400_v49  ;;  %v1403_v54 = vpop.f32.mrb[26].mxu0  ;;  %v1465_v55 = vpop.f32.mrb[25].mxu1 }
 0x129   :  { %v1404_v56 = vpop.f32.mrb[27].mxu0  ;;  %v1466_v57 = vadd.f32 %v1465_v55, %v1464_v52  ;;  %v1467_v58 = vpop.f32.mrb[26].mxu1 }
 0x12a   :  { %v675_v60 = vadd.f32 %v1402_v53, %v1888_v13  ;;  %v1405_v62 = vadd.f32 %v1404_v56, %v1403_v54  ;;  %v1468_v63 = vpop.f32.mrb[27].mxu1 }
 0x12b   :  { %v1469_v0 = vadd.f32 %v1468_v63, %v1467_v58 }
 0x12c   :  { %v678_v1 = vadd.f32 %v1405_v62, %v1888_v13  ;;  %v772_v2 = vadd.f32 %v1466_v57, %v675_v60 }
 0x12e   :  { %v1406_v3 = vpop.f32.mrb[28].mxu0  ;;  %v1922_v4 = vadd.f32 %v1469_v0, %v678_v1 }
 0x12f   :  { %v1407_v5 = vpop.f32.mrb[29].mxu0  ;;  %v1470_v6 = vpop.f32.mrb[28].mxu1 }
 0x130   :  { %v1408_v7 = vadd.f32 %v1407_v5, %v1406_v3  ;;  %v1409_v8 = vpop.f32.mrb[30].mxu0  ;;  %v1471_v9 = vpop.f32.mrb[29].mxu1 }
 0x131   :  { %v1410_v10 = vpop.f32.mrb[31].mxu0  ;;  %v1472_v12 = vadd.f32 %v1471_v9, %v1470_v6  ;;  %v1473_v15 = vpop.f32.mrb[30].mxu1 }
 0x132   :  { %v683_v16 = vadd.f32 %v1408_v7, %v1888_v13  ;;  %v1411_v17 = vadd.f32 %v1410_v10, %v1409_v8  ;;  %v1474_v18 = vpop.f32.mrb[31].mxu1 }
 0x133   :  { %v1475_v19 = vadd.f32 %v1474_v18, %v1473_v15 }
 0x134   :  { %v686_v20 = vadd.f32 %v1411_v17, %v1888_v13  ;;  %v780_v21 = vadd.f32 %v1472_v12, %v683_v16 }
 0x136   :  { %v1498_v22 = vpop.f32.mrb[32].mxu0  ;;  %v783_v23 = vadd.f32 %v1475_v19, %v686_v20 }
 0x137   :  { %v1927_v24 = vadd.f32 %v1498_v22, %v1898_v43  ;;  %v1506_v25 = vpop.f32.mrb[32].mxu1  ;;  %v820_v26 = vpop.f32.mrb[33].mxu0 }
 0x138   :  { %v1929_v28 = vadd.f32 %v1506_v25, %v764_v48  ;;  %v1932_v31 = vadd.f32 %v820_v26, %v1892_v27  ;;  %v852_v33 = vpop.f32.mrb[33].mxu1  ;;  %v1499_v34 = vpop.f32.mrb[34].mxu0 }
 0x139   :  { %v1934_v35 = vadd.f32 %v852_v33, %v756_v30  ;;  %v1937_v36 = vadd.f32 %v1499_v34, %v1900_v45  ;;  %v1507_v13 = vpop.f32.mrb[34].mxu1  ;;  %v823_v37 = vpop.f32.mrb[35].mxu0  ;;  %v886_v30 = vsel %vm567_vm0, %v1927_v24, 0.0  ;;  %v924_v45 = vmul.f32 %v1927_v24, %v1927_v24 }
 0x13a   :  { %v855_v38 = vpop.f32.mrb[35].mxu1  ;;  %v922_v43 = vmul.f32 %v1932_v31, %v1932_v31  ;;  %v1941_v39 = vadd.f32 %v1507_v13, %v767_v50  ;;  %v1944_v40 = vadd.f32 %v823_v37, %v1894_v29  ;;  %v883_v42 = vsel %vm567_vm0, %v1932_v31, 0.0 }
 0x13b   :  { %v1947_v27 = vadd.f32 %v855_v38, %v1916_v32  ;;  %v925_v53 = vmul.f32 %v1937_v36, %v1937_v36  ;;  %v941_v63 = vsel %vm567_vm0, %v924_v45, 0.0  ;;  %v888_v0 = vsel %vm567_vm0, %v1937_v36, 0.0 }
 0x13c   :  { %v884_v44 = vsel %vm567_vm0, %v1944_v40, 0.0  ;;  %v923_v29 = vmul.f32 %v1944_v40, %v1944_v40  ;;  %v938_v32 = vsel %vm567_vm0, %v922_v43, 0.0  ;;  %v930_v25 = vmul.f32 %v1934_v35, %v1934_v35 }
 0x13d   :  { %v885_v48 = vadd.f32 %v884_v44, %v883_v42  ;;  %v898_v34 = vsel %vm567_vm0, %v1934_v35, 0.0  ;;  %v931_v37 = vmul.f32 %v1947_v27, %v1947_v27  ;;  %v932_v45 = vmul.f32 %v1929_v28, %v1929_v28 }
 0x13e   :  { %v1502_v41 = vpop.f32.mrb[36].mxu0  ;;  %v939_v54 = vsel %vm567_vm0, %v923_v29, 0.0  ;;  %v953_v42 = vsel %vm567_vm0, %v930_v25, 0.0  ;;  %v902_v29 = vsel %vm567_vm0, %v1929_v28, 0.0 }
 0x13f   :  { %v1510_v46 = vpop.f32.mrb[36].mxu1  ;;  %v836_v47 = vpop.f32.mrb[37].mxu0  ;;  %v1961_v49 = vadd.f32 %v1502_v41, %v1910_v11  ;;  %v887_v60 = vadd.f32 %v886_v30, %v885_v48  ;;  %v940_v62 = vadd.f32 %v939_v54, %v938_v32  ;;  %v900_v30 = vsel %vm567_vm0, %v1947_v27, 0.0 }
 0x140   :  { %v1963_v50 = vadd.f32 %v1510_v46, %v780_v21  ;;  %v868_v51 = vpop.f32.mrb[37].mxu1  ;;  %v1503_v52 = vpop.f32.mrb[38].mxu0  ;;  %v1969_v55 = vadd.f32 %v836_v47, %v1904_v59  ;;  %v933_v47 = vmul.f32 %v1941_v39, %v1941_v39  ;;  %v955_v32 = vsel %vm567_vm0, %v931_v37, 0.0 }
 0x141   :  { %v1971_v56 = vadd.f32 %v868_v51, %v772_v2  ;;  %v1511_v57 = vpop.f32.mrb[38].mxu1  ;;  %v839_v58 = vpop.f32.mrb[39].mxu0  ;;  %v942_v59 = vadd.f32 %v941_v63, %v940_v62  ;;  %v889_v5 = vadd.f32 %v888_v0, %v887_v60  ;;  %v943_v2 = vsel %vm567_vm0, %v925_v53, 0.0 }
 0x142   :  { %v871_v11 = vpop.f32.mrb[39].mxu1  ;;  %v890_v1 = vsel %vm567_vm0, %v1969_v55, 0.0  ;;  %v926_v3 = vmul.f32 %v1969_v55, %v1969_v55  ;;  %v1983_v7 = vadd.f32 %v1503_v52, %v1912_v14  ;;  %v1985_v10 = vadd.f32 %v1511_v57, %v783_v23 }
 0x143   :  { %v891_v8 = vadd.f32 %v890_v1, %v889_v5  ;;  %v944_v9 = vadd.f32 %v943_v2, %v942_v59  ;;  %v1988_v12 = vadd.f32 %v839_v58, %v1906_v61  ;;  %v1991_v15 = vadd.f32 %v871_v11, %v1922_v4 }
 0x144   :  { %v945_v6 = vsel %vm567_vm0, %v926_v3, 0.0  ;;  %v928_v18 = vmul.f32 %v1961_v49, %v1961_v49  ;;  %v894_v20 = vsel %vm567_vm0, %v1961_v49, 0.0  ;;  %v929_v61 = vmul.f32 %v1983_v7, %v1983_v7 }
 0x145   :  { %v946_v16 = vadd.f32 %v945_v6, %v944_v9  ;;  %v892_v17 = vsel %vm567_vm0, %v1988_v12, 0.0  ;;  %v927_v14 = vmul.f32 %v1988_v12, %v1988_v12  ;;  %v896_v22 = vsel %vm567_vm0, %v1983_v7, 0.0 }
 0x146   :  { %v893_v19 = vadd.f32 %v892_v17, %v891_v8  ;;  %v949_v26 = vsel %vm567_vm0, %v928_v18, 0.0  ;;  %v951_v38 = vsel %vm567_vm0, %v929_v61, 0.0  ;;  %v904_v51 = vsel %vm567_vm0, %v1941_v39, 0.0 }
 0x147   :  { %v947_v4 = vsel %vm567_vm0, %v927_v14, 0.0  ;;  %v957_v53 = vsel %vm567_vm0, %v932_v45, 0.0  ;;  %v934_v54 = vmul.f32 %v1971_v56, %v1971_v56  ;;  %v906_v58 = vsel %vm567_vm0, %v1971_v56, 0.0 }
 0x148   :  { %v895_v21 = vadd.f32 %v894_v20, %v893_v19  ;;  %v948_v23 = vadd.f32 %v947_v4, %v946_v16  ;;  %v959_v62 = vsel %vm567_vm0, %v933_v47, 0.0  ;;  %v935_v63 = vmul.f32 %v1991_v15, %v1991_v15 }
 0x149   :  { %v908_v0 = vsel %vm567_vm0, %v1991_v15, 0.0  ;;  %v936_v3 = vmul.f32 %v1963_v50, %v1963_v50  ;;  %v961_v59 = vsel %vm567_vm0, %v934_v54, 0.0  ;;  %v910_v2 = vsel %vm567_vm0, %v1963_v50, 0.0 }
 0x14a   :  { %v897_v33 = vadd.f32 %v896_v22, %v895_v21  ;;  %v950_v13 = vadd.f32 %v949_v26, %v948_v23  ;;  %v937_v8 = vmul.f32 %v1985_v10, %v1985_v10  ;;  %v963_v16 = vsel %vm567_vm0, %v935_v63, 0.0  ;;  %v2117_v63 = vld [vmem:[%s2213_s5 + $0x28] sm:$0xff]  }
 0x14b   :  { %v912_v17 = vsel %vm567_vm0, %v1985_v10, 0.0  ;;  %v965_v19 = vsel %vm567_vm0, %v936_v3, 0.0  ;;  %v999_v54 = vlaneseq }
 0x14c   :  { %v899_v43 = vadd.f32 %v898_v34, %v897_v33  ;;  %v952_v41 = vadd.f32 %v951_v38, %v950_v13  ;;  %v967_v61 = vsel %vm567_vm0, %v937_v8, 0.0 }
 0x14e   :  { %v901_v44 = vadd.f32 %v900_v30, %v899_v43  ;;  %v954_v46 = vadd.f32 %v953_v42, %v952_v41 }
 0x150   :  { %v903_v48 = vadd.f32 %v902_v29, %v901_v44  ;;  %v956_v52 = vadd.f32 %v955_v32, %v954_v46 }
 0x152   :  { %v905_v57 = vadd.f32 %v904_v51, %v903_v48  ;;  %v958_v60 = vadd.f32 %v957_v53, %v956_v52 }
 0x154   :  { %v907_v11 = vadd.f32 %v906_v58, %v905_v57  ;;  %v960_v1 = vadd.f32 %v959_v62, %v958_v60  ;;  %v2105_v57 = vld [vmem:[%s2213_s5 + $0x18] sm:$0xff]   ;;  %v2110_v58 = vld [vmem:[%s2213_s5 + $0x20] sm:$0xff]  }
 0x155   :  { %v1323_v8 = vunpack.c.l.bf16 %v2105_v57 }
 0x156   :  { %v909_v5 = vadd.f32 %v908_v0, %v907_v11  ;;  %v962_v6 = vadd.f32 %v961_v59, %v960_v1 }
 0x158   :  { %v911_v9 = vadd.f32 %v910_v2, %v909_v5  ;;  %v964_v18 = vadd.f32 %v963_v16, %v962_v6  ;;  %v2125_v5 = vld [vmem:[%s2213_s5 + $0x30] sm:$0xff]   ;;  %v2130_v2 = vld [vmem:[%s2213_s5 + $0x38] sm:$0xff]   ;;  %v1327_v16 = vunpack.c.l.bf16 %v2110_v58 }
 0x15a   :  { %v913_v14 = vadd.f32 %v912_v17, %v911_v9  ;;  %v966_v20 = vadd.f32 %v965_v19, %v964_v18  ;;  %v1324_v9 = vunpack.c.h.bf16 %v2105_v57  ;;  %v1328_v18 = vunpack.c.h.bf16 %v2110_v58 }
 0x15b   :  { %v1331_v19 = vunpack.c.l.bf16 %v2117_v63 }
 0x15c   :  { %v914_v21 = vrot.slane %v913_v14, 4  ;;  %v968_v4 = vadd.f32 %v967_v61, %v966_v20  ;;  %v1335_v20 = vunpack.c.l.bf16 %v2125_v5  ;;  %v1336_v61 = vunpack.c.h.bf16 %v2125_v5 }
 0x15e   :  { %v915_v22 = vadd.f32 %v914_v21, %v913_v14  ;;  %v969_v23 = vrot.slane %v968_v4, 4  ;;  %v1332_v14 = vunpack.c.h.bf16 %v2117_v63  ;;  %v1339_v21 = vunpack.c.l.bf16 %v2130_v2 }
 0x160   :  { %v916_v25 = vrot.slane %v915_v22, 2  ;;  %v970_v26 = vadd.f32 %v969_v23, %v968_v4  ;;  %v1340_v4 = vunpack.c.h.bf16 %v2130_v2 }
 0x162   :  { %v917_v33 = vadd.f32 %v916_v25, %v915_v22  ;;  %v971_v34 = vrot.slane %v970_v26, 2 }
 0x164   :  { %v918_v13 = vrot.slane %v917_v33, 1  ;;  %v972_v37 = vadd.f32 %v971_v34, %v970_v26 }
 0x166   :  { %v919_v38 = vadd.f32 %v918_v13, %v917_v33  ;;  %v973_v43 = vrot.slane %v972_v37, 1 }
 0x168   :  { %v2048_v30 = vmul.f32 0.0078125, %v919_v38  ;;  %v974_v41 = vadd.f32 %v973_v43, %v972_v37  ;;  %v1276_v38 = vld [vmem:[%s2215_s4] ss:$0 sm:$0xff] }
 0x16a   :  { %v976_v45 = vmul.f32 %v2048_v30, %v2048_v30  ;;  %v983_v42 = vsub.f32 %v1932_v31, %v2048_v30  ;;  %v984_v44 = vsub.f32 %v1944_v40, %v2048_v30  ;;  %v985_v29 = vsub.f32 %v1927_v24, %v2048_v30 }
 0x16b   :  { %v975_v46 = vmul.f32 0.0078125, %v974_v41  ;;  %v986_v47 = vsub.f32 %v1937_v36, %v2048_v30  ;;  %v987_v32 = vsub.f32 %v1969_v55, %v2048_v30  ;;  %v988_v48 = vsub.f32 %v1988_v12, %v2048_v30 }
 0x16c   :  { %v989_v51 = vsub.f32 %v1961_v49, %v2048_v30  ;;  %v990_v31 = vsub.f32 %v1983_v7, %v2048_v30  ;;  %v991_v40 = vsub.f32 %v1934_v35, %v2048_v30  ;;  %v992_v24 = vsub.f32 %v1947_v27, %v2048_v30 }
 0x16d   :  { %v977_v52 = vsub.f32 %v975_v46, %v976_v45  ;;  %v993_v36 = vsub.f32 %v1929_v28, %v2048_v30  ;;  %v994_v55 = vsub.f32 %v1941_v39, %v2048_v30  ;;  %v995_v12 = vsub.f32 %v1971_v56, %v2048_v30  ;;  %v2087_v39 = vld [vmem:[%s2213_s5] sm:$0xff]  }
 0x16e   :  { %v996_v49 = vsub.f32 %v1991_v15, %v2048_v30  ;;  %v997_v7 = vsub.f32 %v1963_v50, %v2048_v30  ;;  %v998_v35 = vsub.f32 %v1985_v10, %v2048_v30  ;;  %v1000_v28 = vshrl.u32 %v999_v54, 7  ;;  %v981_v56 = vld [vmem:[%s2214_s3] sm:$0x1]  ;;  %v2095_v50 = vld [vmem:[%s2213_s5 + $0x8] sm:$0xff]   ;;  %v2100_v10 = vld [vmem:[%s2213_s5 + $0x10] sm:$0xff]  }
 0x16f   :  { %v978_v27 = vmax.f32 %v977_v52, 0.0  ;;  %v1311_v62 = vunpack.c.l.bf16 %v2087_v39  ;;  %v1312_v11 = vunpack.c.h.bf16 %v2087_v39  ;;  %v1315_v1 = vunpack.c.l.bf16 %v2095_v50 }
 0x170   :  { %v1001_v15 = vsub.s32 0, %v1000_v28  ;;  %v1316_v3 = vunpack.c.h.bf16 %v2095_v50  ;;  %v1319_v59 = vunpack.c.l.bf16 %v2100_v10  ;;  %v1320_v6 = vunpack.c.h.bf16 %v2100_v10 }
 0x171   :  { %v979_v53 = vadd.f32 1e-05, %v978_v27 }
 0x173   :  { %1612 = vrsqrt.f32 %v979_v53 }
 0x17d   :  { %v1613_v60 = vpop.eup %1612 }
 0x17e   :  { %v982_v0 = vmul.f32 %v1613_v60, %v981_v56 }
 0x180   :  { %v1002_v17 = vrot.slane %v982_v0, %v1001_v15 }
 0x182   :  { %v1003_v22 = vmul.f32 %v1002_v17, %v983_v42  ;;  %v1004_v23 = vmul.f32 %v1002_v17, %v984_v44  ;;  %v1005_v25 = vmul.f32 %v1002_v17, %v985_v29  ;;  %v1006_v26 = vmul.f32 %v1002_v17, %v986_v47 }
 0x183   :  { %v1007_v33 = vmul.f32 %v1002_v17, %v987_v32  ;;  %v1008_v34 = vmul.f32 %v1002_v17, %v988_v48  ;;  %v1009_v13 = vmul.f32 %v1002_v17, %v989_v51  ;;  %v1010_v37 = vmul.f32 %v1002_v17, %v990_v31 }
 0x184   :  { %v1011_v43 = vmul.f32 %v1002_v17, %v991_v40  ;;  %v1012_v30 = vmul.f32 %v1002_v17, %v992_v24  ;;  %v1013_v41 = vmul.f32 %v1002_v17, %v993_v36  ;;  %v1014_v45 = vmul.f32 %v1002_v17, %v994_v55 }
 0x185   :  { %v1015_v46 = vmul.f32 %v1002_v17, %v995_v12  ;;  %v1016_v52 = vmul.f32 %v1002_v17, %v996_v49  ;;  %v1017_v27 = vmul.f32 %v1002_v17, %v997_v7  ;;  %v1018_v53 = vmul.f32 %v1002_v17, %v998_v35 }
 0x186   :  { %v1026_v42 = vadd.f32 %v1276_v38, %v1003_v22  ;;  %v1027_v44 = vadd.f32 %v1276_v38, %v1004_v23  ;;  %v1028_v29 = vadd.f32 %v1276_v38, %v1005_v25  ;;  %v1029_v47 = vadd.f32 %v1276_v38, %v1006_v26 }
 0x187   :  { %v1030_v32 = vadd.f32 %v1276_v38, %v1007_v33  ;;  %v1031_v48 = vadd.f32 %v1276_v38, %v1008_v34  ;;  %v1032_v51 = vadd.f32 %v1276_v38, %v1009_v13  ;;  %v1033_v31 = vadd.f32 %v1276_v38, %v1010_v37 }
 0x188   :  { %v1034_v54 = vadd.f32 %v1276_v38, %v1011_v43  ;;  %v1035_v28 = vadd.f32 %v1276_v38, %v1012_v30  ;;  %v1036_v39 = vadd.f32 %v1276_v38, %v1013_v41  ;;  %v1037_v56 = vadd.f32 %v1276_v38, %v1014_v45 }
 0x189   :  { %v1038_v40 = vadd.f32 %v1276_v38, %v1015_v46  ;;  %v1039_v24 = vadd.f32 %v1276_v38, %v1016_v52  ;;  %v1040_v36 = vadd.f32 %v1276_v38, %v1017_v27  ;;  %v1041_v55 = vadd.f32 %v1276_v38, %v1018_v53 }
 0x18a   :  { %v1074_v12 = vadd.f32 %v1311_v62, %v1026_v42  ;;  %v1075_v49 = vadd.f32 %v1312_v11, %v1027_v44  ;;  %v1076_v7 = vadd.f32 %v1315_v1, %v1028_v29  ;;  %v1077_v35 = vadd.f32 %v1316_v3, %v1029_v47 }
 0x18b   :  { %v1078_v50 = vadd.f32 %v1319_v59, %v1030_v32  ;;  %v1079_v10 = vadd.f32 %v1320_v6, %v1031_v48  ;;  %v1080_v15 = vadd.f32 %v1323_v8, %v1032_v51  ;;  %v1081_v57 = vadd.f32 %v1324_v9, %v1033_v31 }
 0x18c   :  { %v1082_v58 = vadd.f32 %v1327_v16, %v1034_v54  ;;  %v1083_v60 = vadd.f32 %v1328_v18, %v1035_v28  ;;  %v1084_v63 = vadd.f32 %v1331_v19, %v1036_v39  ;;  %v1085_v0 = vadd.f32 %v1332_v14, %v1037_v56 }
 0x18d   :  { %v1086_v5 = vadd.f32 %v1335_v20, %v1038_v40  ;;  %v1087_v2 = vadd.f32 %v1336_v61, %v1039_v24  ;;  %v1088_v17 = vadd.f32 %v1339_v21, %v1040_v36  ;;  %v1089_v22 = vadd.f32 %v1340_v4, %v1041_v55 }
 0x18e   :  { %v1090_v23 = vmax.f32 %v1074_v12, 0.0  ;;  %v1091_v25 = vmax.f32 %v1075_v49, 0.0  ;;  %v1092_v26 = vmax.f32 %v1076_v7, 0.0  ;;  %v1093_v33 = vmax.f32 %v1077_v35, 0.0 }
 0x18f   :  { %v1094_v62 = vmax.f32 %v1078_v50, 0.0  ;;  %v1095_v11 = vmax.f32 %v1079_v10, 0.0  ;;  %v1096_v1 = vmax.f32 %v1080_v15, 0.0  ;;  %v1097_v3 = vmax.f32 %v1081_v57, 0.0 }
 0x190   :  { %v1098_v59 = vmax.f32 %v1082_v58, 0.0  ;;  %v1099_v6 = vmax.f32 %v1083_v60, 0.0  ;;  %v1100_v8 = vmax.f32 %v1084_v63, 0.0  ;;  %v1101_v9 = vmax.f32 %v1085_v0, 0.0 }
 0x191   :  { %v1102_v16 = vmax.f32 %v1086_v5, 0.0  ;;  %v1103_v18 = vmax.f32 %v1087_v2, 0.0  ;;  %v1104_v19 = vmax.f32 %v1088_v17, 0.0  ;;  %v1105_v14 = vmax.f32 %v1089_v22, 0.0 }
 0x192   :  { %v1293_v20 = vpack.c.bf16 %v1090_v23, %v1090_v23  ;;  %v1294_v61 = vpack.c.bf16 %v1091_v25, %v1091_v25  ;;  %v1295_v21 = vpack.c.bf16 %v1092_v26, %v1092_v26  ;;  %v1296_v4 = vpack.c.bf16 %v1093_v33, %v1093_v33 }
 0x193   :  { %v1297_v34 = vpack.c.bf16 %v1094_v62, %v1094_v62  ;;  %v1298_v13 = vpack.c.bf16 %v1095_v11, %v1095_v11  ;;  %v1299_v37 = vpack.c.bf16 %v1096_v1, %v1096_v1  ;;  %v1300_v38 = vpack.c.bf16 %v1097_v3, %v1097_v3 }
 0x194   :  { %v1301_v43 = vpack.c.bf16 %v1098_v59, %v1098_v59  ;;  %v1302_v30 = vpack.c.bf16 %v1099_v6, %v1099_v6  ;;  %v1303_v41 = vpack.c.bf16 %v1100_v8, %v1100_v8  ;;  %v1304_v45 = vpack.c.bf16 %v1101_v9, %v1101_v9  ;;  %1171 = vst.msk [vmem:[%s2216_s6] sm:$0xf] %vm1170_vm1, %v1293_v20 }
 0x195   :  { %1172 = vst.msk [vmem:[%s2216_s6 + $0x4] sm:$0xf] %vm1170_vm1, %v1294_v61  ;;  %1173 = vst.msk [vmem:[%s2216_s6 + $0x8] sm:$0xf] %vm1170_vm1, %v1295_v21  ;;  %v1305_v46 = vpack.c.bf16 %v1102_v16, %v1102_v16  ;;  %v1306_v52 = vpack.c.bf16 %v1103_v18, %v1103_v18  ;;  %v1307_v27 = vpack.c.bf16 %v1104_v19, %v1104_v19 }
 0x196   :  { %1174 = vst.msk [vmem:[%s2216_s6 + $0xc] sm:$0xf] %vm1170_vm1, %v1296_v4  ;;  %v1308_v53 = vpack.c.bf16 %v1105_v14, %v1105_v14  ;;  %1175 = vst.msk [vmem:[%s2216_s6 + $0x10] sm:$0xf] %vm1170_vm1, %v1297_v34 }
 0x197   :  { %1176 = vst.msk [vmem:[%s2216_s6 + $0x14] sm:$0xf] %vm1170_vm1, %v1298_v13  ;;  %1177 = vst.msk [vmem:[%s2216_s6 + $0x18] sm:$0xf] %vm1170_vm1, %v1299_v37 }
 0x198   :  { %1178 = vst.msk [vmem:[%s2216_s6 + $0x1c] sm:$0xf] %vm1170_vm1, %v1300_v38  ;;  %1179 = vst.msk [vmem:[%s2216_s6 + $0x20] sm:$0xf] %vm1170_vm1, %v1301_v43 }
 0x199   :  { %1180 = vst.msk [vmem:[%s2216_s6 + $0x24] sm:$0xf] %vm1170_vm1, %v1302_v30  ;;  %1181 = vst.msk [vmem:[%s2216_s6 + $0x28] sm:$0xf] %vm1170_vm1, %v1303_v41 }
 0x19a   :  { %1182 = vst.msk [vmem:[%s2216_s6 + $0x2c] sm:$0xf] %vm1170_vm1, %v1304_v45  ;;  %1183 = vst.msk [vmem:[%s2216_s6 + $0x30] sm:$0xf] %vm1170_vm1, %v1305_v46 }
 0x19b   :  { %1184 = vst.msk [vmem:[%s2216_s6 + $0x34] sm:$0xf] %vm1170_vm1, %v1306_v52  ;;  %1185 = vst.msk [vmem:[%s2216_s6 + $0x38] sm:$0xf] %vm1170_vm1, %v1307_v27 }
 0x19c   :  { %1186 = vst.msk [vmem:[%s2216_s6 + $0x3c] sm:$0xf] %vm1170_vm1, %v1308_v53 }

// kernel: colornet_forward.20
= control target key start
LH: loop header
LB: loop body
LE: loop exit
PB: predicated region body
PF: predicated region fallthrough
CT: control target
= control target key end

     0   :  { %vm378_vm0 = vcmask 523264   ;;  %s993_s1 = inlined_call_operand.vmem [shape: bf16[576,128], index: 1, kind: input, shape index: {}]   ;;  %s994_s0 = inlined_call_operand.vmem [shape: bf16[32,576], index: 0, kind: input, shape index: {}]   ;;  %s995_s2 = inlined_call_operand.vmem [shape: f32[1,128], index: 2, kind: input, shape index: {}]   ;;  %s996_s3 = inlined_call_operand.vmem [shape: f32[1,128], index: 3, kind: input, shape index: {}]   ;;  %s997_s4 = inlined_call_operand.vmem [shape: f32[1,128], index: 4, kind: input, shape index: {}]   ;;  %s998_s5 = inlined_call_operand.vmem [shape: bf16[32,128], index: 5, kind: output, shape index: {}]  }
   0x1   :  { %v758_v0 = vld [vmem:[%s993_s1 + $0x40] sm:$0xff]   ;;  %v762_v4 = vld [vmem:[%s993_s1 + $0x48] sm:$0xff]   ;;  %v766_v8 = vld [vmem:[%s993_s1 + $0x50] sm:$0xff]  }
   0x2   :  { %v759_v1 = vld [vmem:[%s993_s1] sm:$0xff]   ;;  %684 = vmatprep.subr.bf16.mxu0 %v758_v0  ;;  %v763_v5 = vld [vmem:[%s993_s1 + $0x8] sm:$0xff]   ;;  %v767_v9 = vld [vmem:[%s993_s1 + $0x10] sm:$0xff]  }
   0x3   :  { %v760_v2 = vld [vmem:[%s993_s1 + $0xc0] sm:$0xff]   ;;  %685 = vmatpush3.bf16.msra.mxu0 %v759_v1  ;;  %v764_v6 = vld [vmem:[%s993_s1 + $0xc8] sm:$0xff]   ;;  %v768_v10 = vld [vmem:[%s993_s1 + $0xd0] sm:$0xff]  }
   0x4   :  { %v761_v3 = vld [vmem:[%s993_s1 + $0x80] sm:$0xff]   ;;  %712 = vmatprep.subr.bf16.mxu1 %v760_v2  ;;  %686 = vmatprep.subr.bf16.mxu0 %v762_v4  ;;  %v765_v7 = vld [vmem:[%s993_s1 + $0x88] sm:$0xff]   ;;  %v769_v11 = vld [vmem:[%s993_s1 + $0x90] sm:$0xff]  }
   0x5   :  { %713 = vmatpush3.bf16.msra.mxu1 %v761_v3  ;;  %v770_v12 = vld [vmem:[%s993_s1 + $0x58] sm:$0xff]   ;;  %v774_v16 = vld [vmem:[%s993_s1 + $0x60] sm:$0xff]   ;;  %v778_v20 = vld [vmem:[%s993_s1 + $0x68] sm:$0xff]  }
   0x6   :  { %714 = vmatprep.subr.bf16.mxu1 %v764_v6  ;;  %v771_v13 = vld [vmem:[%s993_s1 + $0x18] sm:$0xff]   ;;  %v775_v17 = vld [vmem:[%s993_s1 + $0x20] sm:$0xff]   ;;  %v779_v21 = vld [vmem:[%s993_s1 + $0x28] sm:$0xff]  }
   0x7   :  { %687 = vmatpush3.bf16.msra.mxu0 %v763_v5  ;;  %v772_v14 = vld [vmem:[%s993_s1 + $0xd8] sm:$0xff]   ;;  %v776_v18 = vld [vmem:[%s993_s1 + $0xe0] sm:$0xff]   ;;  %v780_v22 = vld [vmem:[%s993_s1 + $0xe8] sm:$0xff]  }
   0x8   :  { %688 = vmatprep.subr.bf16.mxu0 %v766_v8  ;;  %v773_v15 = vld [vmem:[%s993_s1 + $0x98] sm:$0xff]   ;;  %v777_v19 = vld [vmem:[%s993_s1 + $0xa0] sm:$0xff]   ;;  %v781_v23 = vld [vmem:[%s993_s1 + $0xa8] sm:$0xff]  }
   0x9   :  { %715 = vmatpush3.bf16.msra.mxu1 %v765_v7  ;;  %v782_v24 = vld [vmem:[%s993_s1 + $0x70] sm:$0xff]   ;;  %v786_v28 = vld [vmem:[%s993_s1 + $0x78] sm:$0xff]   ;;  %v793_v34 = vld [vmem:[%s993_s1 + $0x100] sm:$0xff]  }
   0xa   :  { %716 = vmatprep.subr.bf16.mxu1 %v768_v10  ;;  %v783_v25 = vld [vmem:[%s993_s1 + $0x30] sm:$0xff]   ;;  %v787_v29 = vld [vmem:[%s993_s1 + $0x38] sm:$0xff]   ;;  %v796_v36 = vld [vmem:[%s994_s0 + $0xc] ss:$20 sps:$4 sm:$0xff]  }
   0xb   :  { %689 = vmatpush3.bf16.msra.mxu0 %v767_v9  ;;  %v784_v26 = vld [vmem:[%s993_s1 + $0xf0] sm:$0xff]   ;;  %v788_v30 = vld [vmem:[%s993_s1 + $0xf8] sm:$0xff]   ;;  %v797_v37 = vld [vmem:[%s993_s1 + $0x108] sm:$0xff]   ;;  %466 = vmatprep.mubr.bf16.mxu1 %v796_v36 }
   0xc   :  { %690 = vmatprep.subr.bf16.mxu0 %v770_v12  ;;  %v785_v27 = vld [vmem:[%s993_s1 + $0xb0] sm:$0xff]   ;;  %v791_v32 = vld [vmem:[%s994_s0 + $0x4] ss:$20 sps:$4 sm:$0xff]   ;;  %v794_v35 = vld [vmem:[%s994_s0 + $0x8] ss:$20 sps:$4 sm:$0xff]  }
   0xd   :  { %717 = vmatpush3.bf16.msra.mxu1 %v769_v11  ;;  %v789_v31 = vld [vmem:[%s994_s0] ss:$20 sps:$4 sm:$0xff]   ;;  %v792_v33 = vld [vmem:[%s993_s1 + $0xb8] sm:$0xff]   ;;  %417 = vmatprep.mubr.bf16.mxu0 %v791_v32  ;;  %v804_v42 = vld [vmem:[%s994_s0 + $0x30] ss:$20 sps:$4 sm:$0xff]  }
   0xe   :  { %718 = vmatprep.subr.bf16.mxu1 %v772_v14  ;;  %v798_v38 = vld [vmem:[%s994_s0 + $0x2c] ss:$20 sps:$4 sm:$0xff]   ;;  %v800_v39 = vld [vmem:[%s994_s0 + $0x28] ss:$20 sps:$4 sm:$0xff]   ;;  %v801_v40 = vld [vmem:[%s993_s1 + $0x110] sm:$0xff]  }
   0xf   :  { %691 = vmatpush3.bf16.msra.mxu0 %v771_v13  ;;  %v802_v41 = vld [vmem:[%s994_s0 + $0x34] ss:$20 sps:$4 sm:$0xff]   ;;  %v805_v43 = vld [vmem:[%s993_s1 + $0x118] sm:$0xff]   ;;  %v806_v44 = vld [vmem:[%s994_s0 + $0x10] ss:$20 sps:$4 sm:$0xff]  }
  0x10   :  { %692 = vmatprep.subr.bf16.mxu0 %v774_v16  ;;  %v807_v45 = vld [vmem:[%s994_s0 + $0x38] ss:$20 sps:$4 sm:$0xff]   ;;  %v615_v47 = vld [vmem:[%s995_s2] ss:$0 sm:$0xff] }
  0x11   :  { %719 = vmatpush3.bf16.msra.mxu1 %v773_v15 }
  0x12   :  { %720 = vmatprep.subr.bf16.mxu1 %v776_v18 }
  0x13   :  { %693 = vmatpush3.bf16.msra.mxu0 %v775_v17 }
  0x14   :  { %694 = vmatprep.subr.bf16.mxu0 %v778_v20 }
  0x15   :  { %721 = vmatpush3.bf16.msra.mxu1 %v777_v19 }
  0x16   :  { %722 = vmatprep.subr.bf16.mxu1 %v780_v22 }
  0x17   :  { %695 = vmatpush3.bf16.msra.mxu0 %v779_v21 }
  0x18   :  { %696 = vmatprep.subr.bf16.mxu0 %v782_v24 }
  0x19   :  { %723 = vmatpush3.bf16.msra.mxu1 %v781_v23 }
  0x1a   :  { %724 = vmatprep.subr.bf16.mxu1 %v784_v26 }
  0x1b   :  { %697 = vmatpush3.bf16.msra.mxu0 %v783_v25 }
  0x1c   :  { %698 = vmatprep.subr.bf16.mxu0 %v786_v28 }
  0x1d   :  { %725 = vmatpush3.bf16.msra.mxu1 %v785_v27 }
  0x1e   :  { %726 = vmatprep.subr.bf16.mxu1 %v788_v30 }
  0x1f   :  { %699 = vmatpush3.bf16.msra.mxu0 %v787_v29 }
  0x20   :  { %746 = vmatprep.subr.bf16.mxu0 %v793_v34 }
  0x21   :  { %727 = vmatpush3.bf16.msra.mxu1 %v792_v33 }
  0x22   :  { %418 = vmatmul.mubr.bf16.vlgmr.msra.gmra.mrb[0].mxu0 %v789_v31 }
  0x23   :  { %747 = vmatpush3.bf16.msra.mxu0 %v793_v34  ;;  %425 = vmatprep.mubr.bf16.mxu0 %v798_v38 }
  0x24   :  { %467 = vmatmul.mubr.bf16.vlgmr.msra.gmra.mrb[0].mxu1 %v794_v35  ;;  %748 = vmatprep.subr.bf16.mxu0 %v797_v37 }
  0x25   :  { %474 = vmatprep.mubr.bf16.mxu1 %v802_v41 }
  0x27   :  { %749 = vmatpush3.bf16.msra.mxu0 %v797_v37 }
  0x28   :  { %750 = vmatprep.subr.bf16.mxu0 %v801_v40 }
  0x2a   :  { %426 = vmatmul.mubr.bf16.gmra.mrb[4].mxu0 %v800_v39 }
  0x2b   :  { %754 = vmatprep.mubr.msk.bf16.mxu0 %vm378_vm0, %v806_v44  ;;  %751 = vmatpush3.bf16.msra.mxu0 %v801_v40 }
  0x2c   :  { %475 = vmatmul.mubr.bf16.gmra.mrb[4].mxu1 %v804_v42  ;;  %752 = vmatprep.subr.bf16.mxu0 %v805_v43 }
  0x2f   :  { %753 = vmatpush3.bf16.msra.mxu0 %v805_v43 }
  0x32   :  { %755 = vmatmul.mubr.msk.bf16.vlgmr.msra.gmra.mrb[8].mxu0 %vm378_vm0, %v807_v45 }
  0xf5   :  { %v700_v46 = vpop.f32.mrb[0].mxu0 }
  0xf6   :  { %v701_v48 = vpop.f32.mrb[1].mxu0 }
  0xf7   :  { %v702_v49 = vadd.f32 %v701_v48, %v700_v46  ;;  %v703_v50 = vpop.f32.mrb[2].mxu0  ;;  %v728_v51 = vpop.f32.mrb[0].mxu1 }
  0xf8   :  { %v704_v52 = vpop.f32.mrb[3].mxu0  ;;  %v729_v55 = vpop.f32.mrb[1].mxu1 }
  0xf9   :  { %v420_v53 = vadd.f32 %v702_v49, %v615_v47  ;;  %v705_v54 = vadd.f32 %v704_v52, %v703_v50  ;;  %v730_v56 = vadd.f32 %v729_v55, %v728_v51  ;;  %v731_v57 = vpop.f32.mrb[2].mxu1  ;;  %v568_v55 = vlaneseq }
  0xfa   :  { %v732_v59 = vpop.f32.mrb[3].mxu1 }
  0xfb   :  { %v423_v58 = vadd.f32 %v705_v54, %v615_v47  ;;  %v733_v60 = vadd.f32 %v732_v59, %v731_v57  ;;  %v469_v61 = vadd.f32 %v730_v56, %v420_v53  ;;  %v569_v56 = vshrl.u32 %v568_v55, 7  ;;  %v562_v57 = vld [vmem:[%s996_s3] sm:$0x1] }
  0xfd   :  { %v706_v62 = vpop.f32.mrb[4].mxu0  ;;  %v472_v0 = vadd.f32 %v733_v60, %v423_v58  ;;  %v570_v58 = vsub.s32 0, %v569_v56 }
  0xfe   :  { %v707_v63 = vpop.f32.mrb[5].mxu0 }
  0xff   :  { %v708_v1 = vadd.f32 %v707_v63, %v706_v62  ;;  %v709_v2 = vpop.f32.mrb[6].mxu0  ;;  %v734_v3 = vpop.f32.mrb[4].mxu1  ;;  %v664_v62 = vld [vmem:[%s997_s4] ss:$0 sm:$0xff] }
 0x100   :  { %v710_v4 = vpop.f32.mrb[7].mxu0  ;;  %v735_v7 = vpop.f32.mrb[5].mxu1 }
 0x101   :  { %v428_v5 = vadd.f32 %v708_v1, %v615_v47  ;;  %v711_v6 = vadd.f32 %v710_v4, %v709_v2  ;;  %v736_v8 = vadd.f32 %v735_v7, %v734_v3  ;;  %v737_v9 = vpop.f32.mrb[6].mxu1 }
 0x102   :  { %v738_v11 = vpop.f32.mrb[7].mxu1 }
 0x103   :  { %v431_v10 = vadd.f32 %v711_v6, %v615_v47  ;;  %v739_v12 = vadd.f32 %v738_v11, %v737_v9  ;;  %v477_v13 = vadd.f32 %v736_v8, %v428_v5 }
 0x105   :  { %v756_v14 = vpop.f32.mrb[8].mxu0  ;;  %v480_v15 = vadd.f32 %v739_v12, %v431_v10 }
 0x106   :  { %v526_v16 = vadd.f32 %v756_v14, %v477_v13  ;;  %v517_v17 = vpop.f32.mrb[9].mxu0 }
 0x107   :  { %v518_v18 = vadd.f32 %v517_v17, %v469_v61  ;;  %v757_v19 = vpop.f32.mrb[10].mxu0 }
 0x108   :  { %v529_v20 = vadd.f32 %v757_v19, %v480_v15  ;;  %v520_v21 = vpop.f32.mrb[11].mxu0  ;;  %v545_v26 = vmul.f32 %v526_v16, %v526_v16 }
 0x109   :  { %v521_v22 = vadd.f32 %v520_v21, %v472_v0  ;;  %v543_v23 = vmul.f32 %v518_v18, %v518_v18 }
 0x10a   :  { %v546_v29 = vmul.f32 %v529_v20, %v529_v20 }
 0x10b   :  { %v532_v24 = vadd.f32 %v521_v22, %v518_v18  ;;  %v544_v25 = vmul.f32 %v521_v22, %v521_v22 }
 0x10d   :  { %v533_v27 = vadd.f32 %v532_v24, %v526_v16  ;;  %v547_v28 = vadd.f32 %v544_v25, %v543_v23 }
 0x10f   :  { %v534_v30 = vadd.f32 %v533_v27, %v529_v20  ;;  %v548_v31 = vadd.f32 %v547_v28, %v545_v26 }
 0x111   :  { %v535_v32 = vrot.slane %v534_v30, 4  ;;  %v549_v33 = vadd.f32 %v548_v31, %v546_v29 }
 0x113   :  { %v536_v34 = vadd.f32 %v535_v32, %v534_v30  ;;  %v550_v35 = vrot.slane %v549_v33, 4 }
 0x115   :  { %v537_v36 = vrot.slane %v536_v34, 2  ;;  %v551_v37 = vadd.f32 %v550_v35, %v549_v33 }
 0x117   :  { %v538_v38 = vadd.f32 %v537_v36, %v536_v34  ;;  %v552_v39 = vrot.slane %v551_v37, 2 }
 0x119   :  { %v539_v40 = vrot.slane %v538_v38, 1  ;;  %v553_v41 = vadd.f32 %v552_v39, %v551_v37 }
 0x11b   :  { %v540_v42 = vadd.f32 %v539_v40, %v538_v38  ;;  %v554_v43 = vrot.slane %v553_v41, 1 }
 0x11d   :  { %v542_v44 = vmul.f32 0.03125, %v540_v42  ;;  %v555_v45 = vadd.f32 %v554_v43, %v553_v41 }
 0x11f   :  { %v556_v46 = vmul.f32 0.03125, %v555_v45  ;;  %v557_v47 = vmul.f32 %v542_v44, %v542_v44  ;;  %v564_v48 = vsub.f32 %v518_v18, %v542_v44  ;;  %v565_v49 = vsub.f32 %v521_v22, %v542_v44 }
 0x120   :  { %v566_v50 = vsub.f32 %v526_v16, %v542_v44  ;;  %v567_v51 = vsub.f32 %v529_v20, %v542_v44 }
 0x121   :  { %v558_v52 = vsub.f32 %v556_v46, %v557_v47 }
 0x123   :  { %v559_v53 = vmax.f32 %v558_v52, 0.0 }
 0x125   :  { %v560_v54 = vadd.f32 1e-05, %v559_v53 }
 0x127   :  { %808 = vrsqrt.f32 %v560_v54 }
 0x131   :  { %v809_v59 = vpop.eup %808 }
 0x132   :  { %v563_v60 = vmul.f32 %v809_v59, %v562_v57 }
 0x134   :  { %v571_v61 = vrot.slane %v563_v60, %v570_v58 }
 0x136   :  { %v572_v63 = vmul.f32 %v571_v61, %v564_v48  ;;  %v573_v0 = vmul.f32 %v571_v61, %v565_v49  ;;  %v574_v1 = vmul.f32 %v571_v61, %v566_v50  ;;  %v575_v2 = vmul.f32 %v571_v61, %v567_v51 }
 0x138   :  { %v583_v3 = vadd.f32 %v664_v62, %v572_v63  ;;  %v584_v4 = vadd.f32 %v664_v62, %v573_v0  ;;  %v585_v5 = vadd.f32 %v664_v62, %v574_v1  ;;  %v586_v6 = vadd.f32 %v664_v62, %v575_v2 }
 0x13a   :  { %v587_v7 = vmax.f32 %v583_v3, 0.0  ;;  %v588_v8 = vmax.f32 %v584_v4, 0.0  ;;  %v589_v9 = vmax.f32 %v585_v5, 0.0  ;;  %v590_v10 = vmax.f32 %v586_v6, 0.0 }
 0x13c   :  { %v676_v11 = vpack.c.bf16 %v588_v8, %v587_v7  ;;  %v681_v12 = vpack.c.bf16 %v590_v10, %v589_v9 }
 0x13e   :  { %677 = vst [vmem:[%s998_s5] sm:$0xff] %v676_v11   ;;  %683 = vst [vmem:[%s998_s5 + $0x8] sm:$0xff] %v681_v12  }

// kernel: colornet_forward.21
= control target key start
LH: loop header
LB: loop body
LE: loop exit
PB: predicated region body
PF: predicated region fallthrough
CT: control target
= control target key end

     0   :  { %vm74_vm0 = vcmask 523264   ;;  %v166_v47 = vlaneseq  ;;  %s327_s1 = inlined_call_operand.vmem [shape: bf16[64,128], index: 1, kind: input, shape index: {}]   ;;  %s328_s0 = inlined_call_operand.vmem [shape: bf16[32,64], index: 0, kind: input, shape index: {}]   ;;  %s329_s2 = inlined_call_operand.vmem [shape: f32[1,128], index: 2, kind: input, shape index: {}]   ;;  %s330_s3 = inlined_call_operand.vmem [shape: f32[1,128], index: 3, kind: input, shape index: {}]   ;;  %s331_s4 = inlined_call_operand.vmem [shape: f32[1,128], index: 4, kind: input, shape index: {}]   ;;  %s332_s5 = inlined_call_operand.vmem [shape: bf16[32,128], index: 5, kind: output, shape index: {}]  }
   0x1   :  { %v256_v0 = vld [vmem:[%s327_s1] sm:$0xff]   ;;  %v257_v1 = vld [vmem:[%s327_s1 + $0x8] sm:$0xff]   ;;  %v258_v2 = vld [vmem:[%s327_s1 + $0x10] sm:$0xff]  }
   0x2   :  { %244 = vmatprep.subr.bf16.mxu0 %v256_v0  ;;  %v260_v3 = vld [vmem:[%s328_s0] sm:$0xff]   ;;  %v259_v4 = vld [vmem:[%s327_s1 + $0x18] sm:$0xff]   ;;  %v261_v5 = vld [vmem:[%s328_s0 + $0x8] sm:$0xff]   ;;  %v167_v48 = vshrl.u32 %v166_v47, 7 }
   0x3   :  { %245 = vmatpush3.bf16.msra.mxu0 %v256_v0  ;;  %252 = vmatprep.mubr.msk.bf16.mxu0 %vm74_vm0, %v260_v3  ;;  %v209_v6 = vld [vmem:[%s329_s2] ss:$0 sm:$0xff] }
   0x4   :  { %246 = vmatprep.subr.bf16.mxu0 %v257_v1  ;;  %v160_v49 = vld [vmem:[%s330_s3] sm:$0x1]  ;;  %v168_v50 = vsub.s32 0, %v167_v48 }
   0x5   :  { %v218_v54 = vld [vmem:[%s331_s4] ss:$0 sm:$0xff] }
   0x7   :  { %247 = vmatpush3.bf16.msra.mxu0 %v257_v1 }
   0x8   :  { %248 = vmatprep.subr.bf16.mxu0 %v258_v2 }
   0xb   :  { %249 = vmatpush3.bf16.msra.mxu0 %v258_v2 }
   0xc   :  { %250 = vmatprep.subr.bf16.mxu0 %v259_v4 }
   0xf   :  { %251 = vmatpush3.bf16.msra.mxu0 %v259_v4 }
  0x12   :  { %253 = vmatmul.mubr.msk.bf16.vlgmr.msra.gmra.mrb[0].mxu0 %vm74_vm0, %v261_v5 }
  0xe5   :  { %v254_v7 = vpop.f32.mrb[0].mxu0 }
  0xe6   :  { %v115_v8 = vpop.f32.mrb[1].mxu0  ;;  %v124_v12 = vadd.f32 %v254_v7, %v209_v6 }
  0xe7   :  { %v116_v9 = vadd.f32 %v209_v6, %v115_v8  ;;  %v255_v10 = vpop.f32.mrb[2].mxu0 }
  0xe8   :  { %v118_v11 = vpop.f32.mrb[3].mxu0  ;;  %v127_v15 = vadd.f32 %v255_v10, %v209_v6  ;;  %v143_v18 = vmul.f32 %v124_v12, %v124_v12 }
  0xe9   :  { %v119_v13 = vadd.f32 %v209_v6, %v118_v11  ;;  %v141_v14 = vmul.f32 %v116_v9, %v116_v9 }
  0xea   :  { %v144_v21 = vmul.f32 %v127_v15, %v127_v15 }
  0xeb   :  { %v130_v16 = vadd.f32 %v119_v13, %v116_v9  ;;  %v142_v17 = vmul.f32 %v119_v13, %v119_v13 }
  0xed   :  { %v131_v19 = vadd.f32 %v130_v16, %v124_v12  ;;  %v145_v20 = vadd.f32 %v142_v17, %v141_v14 }
  0xef   :  { %v132_v22 = vadd.f32 %v131_v19, %v127_v15  ;;  %v146_v23 = vadd.f32 %v145_v20, %v143_v18 }
  0xf1   :  { %v133_v24 = vrot.slane %v132_v22, 4  ;;  %v147_v25 = vadd.f32 %v146_v23, %v144_v21 }
  0xf3   :  { %v134_v26 = vadd.f32 %v133_v24, %v132_v22  ;;  %v148_v27 = vrot.slane %v147_v25, 4 }
  0xf5   :  { %v135_v28 = vrot.slane %v134_v26, 2  ;;  %v149_v29 = vadd.f32 %v148_v27, %v147_v25 }
  0xf7   :  { %v136_v30 = vadd.f32 %v135_v28, %v134_v26  ;;  %v150_v31 = vrot.slane %v149_v29, 2 }
  0xf9   :  { %v137_v32 = vrot.slane %v136_v30, 1  ;;  %v151_v33 = vadd.f32 %v150_v31, %v149_v29 }
  0xfb   :  { %v138_v34 = vadd.f32 %v137_v32, %v136_v30  ;;  %v152_v35 = vrot.slane %v151_v33, 1 }
  0xfd   :  { %v140_v36 = vmul.f32 0.03125, %v138_v34  ;;  %v153_v37 = vadd.f32 %v152_v35, %v151_v33 }
  0xff   :  { %v154_v38 = vmul.f32 0.03125, %v153_v37  ;;  %v155_v39 = vmul.f32 %v140_v36, %v140_v36  ;;  %v162_v40 = vsub.f32 %v116_v9, %v140_v36  ;;  %v163_v41 = vsub.f32 %v119_v13, %v140_v36 }
 0x100   :  { %v164_v42 = vsub.f32 %v124_v12, %v140_v36  ;;  %v165_v43 = vsub.f32 %v127_v15, %v140_v36 }
 0x101   :  { %v156_v44 = vsub.f32 %v154_v38, %v155_v39 }
 0x103   :  { %v157_v45 = vmax.f32 %v156_v44, 0.0 }
 0x105   :  { %v158_v46 = vadd.f32 1e-05, %v157_v45 }
 0x107   :  { %262 = vrsqrt.f32 %v158_v46 }
 0x111   :  { %v263_v51 = vpop.eup %262 }
 0x112   :  { %v161_v52 = vmul.f32 %v263_v51, %v160_v49 }
 0x114   :  { %v169_v53 = vrot.slane %v161_v52, %v168_v50 }
 0x116   :  { %v170_v55 = vmul.f32 %v169_v53, %v162_v40  ;;  %v171_v56 = vmul.f32 %v169_v53, %v163_v41  ;;  %v172_v57 = vmul.f32 %v169_v53, %v164_v42  ;;  %v173_v58 = vmul.f32 %v169_v53, %v165_v43 }
 0x118   :  { %v181_v59 = vadd.f32 %v218_v54, %v170_v55  ;;  %v182_v60 = vadd.f32 %v218_v54, %v171_v56  ;;  %v183_v61 = vadd.f32 %v218_v54, %v172_v57  ;;  %v184_v62 = vadd.f32 %v218_v54, %v173_v58 }
 0x11a   :  { %v230_v63 = vpack.c.bf16 %v182_v60, %v181_v59  ;;  %v235_v0 = vpack.c.bf16 %v184_v62, %v183_v61 }
 0x11c   :  { %231 = vst [vmem:[%s332_s5] sm:$0xff] %v230_v63   ;;  %237 = vst [vmem:[%s332_s5 + $0x8] sm:$0xff] %v235_v0  }

// kernel: colornet_forward.22
= control target key start
LH: loop header
LB: loop body
LE: loop exit
PB: predicated region body
PF: predicated region fallthrough
CT: control target
= control target key end

     0   :  { %s1747_s1 = inlined_call_operand.vmem [shape: bf16[1152,128], index: 1, kind: input, shape index: {}]   ;;  %s1748_s0 = inlined_call_operand.vmem [shape: bf16[32,1152], index: 0, kind: input, shape index: {}]   ;;  %s1749_s2 = inlined_call_operand.vmem [shape: f32[1,128], index: 2, kind: input, shape index: {}]   ;;  %s1750_s3 = inlined_call_operand.vmem [shape: f32[1,128], index: 3, kind: input, shape index: {}]   ;;  %s1751_s5 = inlined_call_operand.vmem [shape: bf16[32,128], index: 5, kind: input, shape index: {}]   ;;  %s1752_s4 = inlined_call_operand.vmem [shape: f32[1,128], index: 4, kind: input, shape index: {}]   ;;  %s1753_s6 = inlined_call_operand.vmem [shape: bf16[32,128], index: 6, kind: output, shape index: {}]  }
   0x1   :  { %v1321_v0 = vld [vmem:[%s1747_s1 + $0x40] sm:$0xff]   ;;  %v1325_v4 = vld [vmem:[%s1747_s1 + $0x48] sm:$0xff]   ;;  %v1329_v8 = vld [vmem:[%s1747_s1 + $0x50] sm:$0xff]  }
   0x2   :  { %v1322_v1 = vld [vmem:[%s1747_s1] sm:$0xff]   ;;  %1179 = vmatprep.subr.bf16.mxu0 %v1321_v0  ;;  %v1326_v5 = vld [vmem:[%s1747_s1 + $0x8] sm:$0xff]   ;;  %v1330_v9 = vld [vmem:[%s1747_s1 + $0x10] sm:$0xff]  }
   0x3   :  { %v1323_v2 = vld [vmem:[%s1747_s1 + $0xc0] sm:$0xff]   ;;  %1180 = vmatpush3.bf16.msra.mxu0 %v1322_v1  ;;  %v1327_v6 = vld [vmem:[%s1747_s1 + $0xc8] sm:$0xff]   ;;  %v1331_v10 = vld [vmem:[%s1747_s1 + $0xd0] sm:$0xff]  }
   0x4   :  { %v1324_v3 = vld [vmem:[%s1747_s1 + $0x80] sm:$0xff]   ;;  %1207 = vmatprep.subr.bf16.mxu1 %v1323_v2  ;;  %1181 = vmatprep.subr.bf16.mxu0 %v1325_v4  ;;  %v1328_v7 = vld [vmem:[%s1747_s1 + $0x88] sm:$0xff]   ;;  %v1332_v11 = vld [vmem:[%s1747_s1 + $0x90] sm:$0xff]  }
   0x5   :  { %1208 = vmatpush3.bf16.msra.mxu1 %v1324_v3  ;;  %v1333_v12 = vld [vmem:[%s1747_s1 + $0x58] sm:$0xff]   ;;  %v1337_v16 = vld [vmem:[%s1747_s1 + $0x60] sm:$0xff]   ;;  %v1341_v20 = vld [vmem:[%s1747_s1 + $0x68] sm:$0xff]  }
   0x6   :  { %1209 = vmatprep.subr.bf16.mxu1 %v1327_v6  ;;  %v1334_v13 = vld [vmem:[%s1747_s1 + $0x18] sm:$0xff]   ;;  %v1338_v17 = vld [vmem:[%s1747_s1 + $0x20] sm:$0xff]   ;;  %v1342_v21 = vld [vmem:[%s1747_s1 + $0x28] sm:$0xff]  }
   0x7   :  { %1182 = vmatpush3.bf16.msra.mxu0 %v1326_v5  ;;  %v1335_v14 = vld [vmem:[%s1747_s1 + $0xd8] sm:$0xff]   ;;  %v1339_v18 = vld [vmem:[%s1747_s1 + $0xe0] sm:$0xff]   ;;  %v1343_v22 = vld [vmem:[%s1747_s1 + $0xe8] sm:$0xff]  }
   0x8   :  { %1183 = vmatprep.subr.bf16.mxu0 %v1329_v8  ;;  %v1336_v15 = vld [vmem:[%s1747_s1 + $0x98] sm:$0xff]   ;;  %v1340_v19 = vld [vmem:[%s1747_s1 + $0xa0] sm:$0xff]   ;;  %v1344_v23 = vld [vmem:[%s1747_s1 + $0xa8] sm:$0xff]  }
   0x9   :  { %1210 = vmatpush3.bf16.msra.mxu1 %v1328_v7  ;;  %v1345_v24 = vld [vmem:[%s1747_s1 + $0x70] sm:$0xff]   ;;  %v1349_v28 = vld [vmem:[%s1747_s1 + $0x78] sm:$0xff]   ;;  %v1352_v31 = vld [vmem:[%s1748_s0] ss:$36 sps:$4 sm:$0xff]  }
   0xa   :  { %1211 = vmatprep.subr.bf16.mxu1 %v1331_v10  ;;  %v1346_v25 = vld [vmem:[%s1747_s1 + $0x30] sm:$0xff]   ;;  %v1350_v29 = vld [vmem:[%s1747_s1 + $0x38] sm:$0xff]   ;;  %v1354_v32 = vld [vmem:[%s1748_s0 + $0x4] ss:$36 sps:$4 sm:$0xff]  }
   0xb   :  { %1184 = vmatpush3.bf16.msra.mxu0 %v1330_v9  ;;  %v1347_v26 = vld [vmem:[%s1747_s1 + $0xf0] sm:$0xff]   ;;  %v1351_v30 = vld [vmem:[%s1747_s1 + $0xf8] sm:$0xff]   ;;  %751 = vmatprep.mubr.bf16.mxu0 %v1354_v32  ;;  %v1356_v34 = vld [vmem:[%s1747_s1 + $0x140] sm:$0xff]  }
   0xc   :  { %1185 = vmatprep.subr.bf16.mxu0 %v1333_v12  ;;  %v1348_v27 = vld [vmem:[%s1747_s1 + $0xb0] sm:$0xff]   ;;  %v1355_v33 = vld [vmem:[%s1747_s1 + $0xb8] sm:$0xff]   ;;  %v1357_v35 = vld [vmem:[%s1748_s0 + $0x8] ss:$36 sps:$4 sm:$0xff]  }
   0xd   :  { %1212 = vmatpush3.bf16.msra.mxu1 %v1332_v11  ;;  %v1359_v36 = vld [vmem:[%s1748_s0 + $0xc] ss:$36 sps:$4 sm:$0xff]   ;;  %v1360_v37 = vld [vmem:[%s1747_s1 + $0x100] sm:$0xff]   ;;  %v1371_v48 = vld [vmem:[%s1747_s1 + $0x158] sm:$0xff]  }
   0xe   :  { %1213 = vmatprep.subr.bf16.mxu1 %v1335_v14  ;;  %800 = vmatprep.mubr.bf16.mxu1 %v1359_v36  ;;  %v1361_v38 = vld [vmem:[%s1747_s1 + $0x1c0] sm:$0xff]   ;;  %v1363_v40 = vld [vmem:[%s1747_s1 + $0x148] sm:$0xff]   ;;  %v1367_v44 = vld [vmem:[%s1747_s1 + $0x150] sm:$0xff]  }
   0xf   :  { %1186 = vmatpush3.bf16.msra.mxu0 %v1334_v13  ;;  %v1362_v39 = vld [vmem:[%s1747_s1 + $0x180] sm:$0xff]   ;;  %v1364_v41 = vld [vmem:[%s1747_s1 + $0x108] sm:$0xff]   ;;  %v1368_v45 = vld [vmem:[%s1747_s1 + $0x110] sm:$0xff]  }
  0x10   :  { %1187 = vmatprep.subr.bf16.mxu0 %v1337_v16  ;;  %v1365_v42 = vld [vmem:[%s1747_s1 + $0x1c8] sm:$0xff]   ;;  %v1369_v46 = vld [vmem:[%s1747_s1 + $0x1d0] sm:$0xff]   ;;  %v1372_v49 = vld [vmem:[%s1747_s1 + $0x118] sm:$0xff]  }
  0x11   :  { %1214 = vmatpush3.bf16.msra.mxu1 %v1336_v15  ;;  %v1366_v43 = vld [vmem:[%s1747_s1 + $0x188] sm:$0xff]   ;;  %v1370_v47 = vld [vmem:[%s1747_s1 + $0x190] sm:$0xff]   ;;  %v1373_v50 = vld [vmem:[%s1747_s1 + $0x1d8] sm:$0xff]  }
  0x12   :  { %1215 = vmatprep.subr.bf16.mxu1 %v1339_v18  ;;  %v1374_v51 = vld [vmem:[%s1747_s1 + $0x198] sm:$0xff]   ;;  %v1375_v52 = vld [vmem:[%s1747_s1 + $0x160] sm:$0xff]   ;;  %v1379_v56 = vld [vmem:[%s1747_s1 + $0x168] sm:$0xff]  }
  0x13   :  { %1188 = vmatpush3.bf16.msra.mxu0 %v1338_v17  ;;  %v1376_v53 = vld [vmem:[%s1747_s1 + $0x120] sm:$0xff]   ;;  %v1380_v57 = vld [vmem:[%s1748_s0 + $0x4c] ss:$36 sps:$4 sm:$0xff]   ;;  %v1385_v61 = vld [vmem:[%s1748_s0 + $0x54] ss:$36 sps:$4 sm:$0xff]  }
  0x14   :  { %1189 = vmatprep.subr.bf16.mxu0 %v1341_v20  ;;  %v1377_v54 = vld [vmem:[%s1747_s1 + $0x1e0] sm:$0xff]   ;;  %v1382_v58 = vld [vmem:[%s1747_s1 + $0x128] sm:$0xff]   ;;  %v1388_v63 = vld [vmem:[%s1748_s0 + $0x50] ss:$36 sps:$4 sm:$0xff]  }
  0x15   :  { %1216 = vmatpush3.bf16.msra.mxu1 %v1340_v19  ;;  %v1378_v55 = vld [vmem:[%s1747_s1 + $0x1a0] sm:$0xff]   ;;  %v1383_v59 = vld [vmem:[%s1748_s0 + $0x48] ss:$36 sps:$4 sm:$0xff]   ;;  %v1389_v0 = vld [vmem:[%s1747_s1 + $0x170] sm:$0xff]  }
  0x16   :  { %1217 = vmatprep.subr.bf16.mxu1 %v1343_v22  ;;  %v1384_v60 = vld [vmem:[%s1747_s1 + $0x1e8] sm:$0xff]   ;;  %v1390_v1 = vld [vmem:[%s1747_s1 + $0x130] sm:$0xff]   ;;  %v1393_v4 = vld [vmem:[%s1747_s1 + $0x178] sm:$0xff]  }
  0x17   :  { %1190 = vmatpush3.bf16.msra.mxu0 %v1342_v21  ;;  %v1387_v62 = vld [vmem:[%s1747_s1 + $0x1a8] sm:$0xff]   ;;  %v1391_v2 = vld [vmem:[%s1747_s1 + $0x1f0] sm:$0xff]   ;;  %v1394_v5 = vld [vmem:[%s1747_s1 + $0x138] sm:$0xff]  }
  0x18   :  { %1191 = vmatprep.subr.bf16.mxu0 %v1345_v24  ;;  %v1392_v3 = vld [vmem:[%s1747_s1 + $0x1b0] sm:$0xff]   ;;  %v1395_v6 = vld [vmem:[%s1747_s1 + $0x1f8] sm:$0xff]   ;;  %v1400_v10 = vld [vmem:[%s1747_s1 + $0x200] sm:$0xff]  }
  0x19   :  { %1218 = vmatpush3.bf16.msra.mxu1 %v1344_v23  ;;  %v1396_v7 = vld [vmem:[%s1748_s0 + $0x10] ss:$36 sps:$4 sm:$0xff]   ;;  %v1399_v9 = vld [vmem:[%s1747_s1 + $0x1b8] sm:$0xff]   ;;  %v1404_v13 = vld [vmem:[%s1747_s1 + $0x208] sm:$0xff]  }
  0x1a   :  { %1219 = vmatprep.subr.bf16.mxu1 %v1347_v26  ;;  %v1398_v8 = vld [vmem:[%s1748_s0 + $0x14] ss:$36 sps:$4 sm:$0xff]   ;;  %v1403_v12 = vld [vmem:[%s1748_s0 + $0x1c] ss:$36 sps:$4 sm:$0xff]   ;;  %v1409_v17 = vld [vmem:[%s1748_s0 + $0x64] ss:$36 sps:$4 sm:$0xff]  }
  0x1b   :  { %1192 = vmatpush3.bf16.msra.mxu0 %v1346_v25  ;;  %v1401_v11 = vld [vmem:[%s1748_s0 + $0x18] ss:$36 sps:$4 sm:$0xff]   ;;  %v1408_v16 = vld [vmem:[%s1747_s1 + $0x210] sm:$0xff]   ;;  %v1411_v18 = vld [vmem:[%s1748_s0 + $0x60] ss:$36 sps:$4 sm:$0xff]  }
  0x1c   :  { %1193 = vmatprep.subr.bf16.mxu0 %v1349_v28  ;;  %v1405_v14 = vld [vmem:[%s1748_s0 + $0x5c] ss:$36 sps:$4 sm:$0xff]   ;;  %v1414_v22 = vld [vmem:[%s1747_s1 + $0x228] sm:$0xff]   ;;  %v1415_v23 = vld [vmem:[%s1747_s1 + $0x230] sm:$0xff]  }
  0x1d   :  { %1220 = vmatpush3.bf16.msra.mxu1 %v1348_v27  ;;  %v1407_v15 = vld [vmem:[%s1748_s0 + $0x58] ss:$36 sps:$4 sm:$0xff]   ;;  %v1413_v20 = vld [vmem:[%s1747_s1 + $0x220] sm:$0xff]   ;;  %v1418_v25 = vld [vmem:[%s1748_s0 + $0x68] ss:$36 sps:$4 sm:$0xff]  }
  0x1e   :  { %1221 = vmatprep.subr.bf16.mxu1 %v1351_v30  ;;  %v1412_v19 = vld [vmem:[%s1747_s1 + $0x218] sm:$0xff]   ;;  %v1417_v21 = vld [vmem:[%s1748_s0 + $0x20] ss:$36 sps:$4 sm:$0xff]  }
  0x1f   :  { %1194 = vmatpush3.bf16.msra.mxu0 %v1350_v29  ;;  %v1416_v24 = vld [vmem:[%s1747_s1 + $0x238] sm:$0xff]   ;;  %v1059_v27 = vld [vmem:[%s1749_s2] ss:$0 sm:$0xff] }
  0x20   :  { %1235 = vmatprep.subr.bf16.mxu0 %v1356_v34 }
  0x21   :  { %1222 = vmatpush3.bf16.msra.mxu1 %v1355_v33 }
  0x22   :  { %752 = vmatmul.mubr.bf16.vlgmr.msra.gmra.mrb[0].mxu0 %v1352_v31  ;;  %1263 = vmatprep.subr.bf16.mxu1 %v1361_v38 }
  0x23   :  { %1236 = vmatpush3.bf16.msra.mxu0 %v1360_v37  ;;  %759 = vmatprep.mubr.bf16.mxu0 %v1380_v57 }
  0x24   :  { %801 = vmatmul.mubr.bf16.vlgmr.msra.gmra.mrb[0].mxu1 %v1357_v35  ;;  %1237 = vmatprep.subr.bf16.mxu0 %v1363_v40 }
  0x25   :  { %1264 = vmatpush3.bf16.msra.mxu1 %v1362_v39  ;;  %808 = vmatprep.mubr.bf16.mxu1 %v1385_v61 }
  0x26   :  { %1265 = vmatprep.subr.bf16.mxu1 %v1365_v42 }
  0x27   :  { %1238 = vmatpush3.bf16.msra.mxu0 %v1364_v41 }
  0x28   :  { %1239 = vmatprep.subr.bf16.mxu0 %v1367_v44 }
  0x29   :  { %1266 = vmatpush3.bf16.msra.mxu1 %v1366_v43 }
  0x2a   :  { %1267 = vmatprep.subr.bf16.mxu1 %v1369_v46  ;;  %760 = vmatmul.mubr.bf16.gmra.mrb[4].mxu0 %v1383_v59 }
  0x2b   :  { %1240 = vmatpush3.bf16.msra.mxu0 %v1368_v45  ;;  %849 = vmatprep.mubr.bf16.mxu0 %v1398_v8 }
  0x2c   :  { %1241 = vmatprep.subr.bf16.mxu0 %v1371_v48  ;;  %809 = vmatmul.mubr.bf16.gmra.mrb[4].mxu1 %v1388_v63 }
  0x2d   :  { %1268 = vmatpush3.bf16.msra.mxu1 %v1370_v47  ;;  %898 = vmatprep.mubr.bf16.mxu1 %v1403_v12 }
  0x2e   :  { %1269 = vmatprep.subr.bf16.mxu1 %v1373_v50 }
  0x2f   :  { %1242 = vmatpush3.bf16.msra.mxu0 %v1372_v49 }
  0x30   :  { %1243 = vmatprep.subr.bf16.mxu0 %v1375_v52 }
  0x31   :  { %1270 = vmatpush3.bf16.msra.mxu1 %v1374_v51 }
  0x32   :  { %1271 = vmatprep.subr.bf16.mxu1 %v1377_v54 }
  0x33   :  { %1244 = vmatpush3.bf16.msra.mxu0 %v1376_v53 }
  0x34   :  { %1245 = vmatprep.subr.bf16.mxu0 %v1379_v56 }
  0x35   :  { %1272 = vmatpush3.bf16.msra.mxu1 %v1378_v55 }
  0x36   :  { %1273 = vmatprep.subr.bf16.mxu1 %v1384_v60 }
  0x37   :  { %1246 = vmatpush3.bf16.msra.mxu0 %v1382_v58 }
  0x38   :  { %1247 = vmatprep.subr.bf16.mxu0 %v1389_v0 }
  0x39   :  { %1274 = vmatpush3.bf16.msra.mxu1 %v1387_v62 }
  0x3a   :  { %1275 = vmatprep.subr.bf16.mxu1 %v1391_v2 }
  0x3b   :  { %1248 = vmatpush3.bf16.msra.mxu0 %v1390_v1 }
  0x3c   :  { %1249 = vmatprep.subr.bf16.mxu0 %v1393_v4 }
  0x3d   :  { %1276 = vmatpush3.bf16.msra.mxu1 %v1392_v3 }
  0x3e   :  { %1277 = vmatprep.subr.bf16.mxu1 %v1395_v6 }
  0x3f   :  { %1250 = vmatpush3.bf16.msra.mxu0 %v1394_v5 }
  0x40   :  { %1301 = vmatprep.subr.bf16.mxu0 %v1400_v10 }
  0x41   :  { %1278 = vmatpush3.bf16.msra.mxu1 %v1399_v9 }
  0x42   :  { %850 = vmatmul.mubr.bf16.vlgmr.msra.gmra.mrb[8].mxu0 %v1396_v7 }
  0x43   :  { %1302 = vmatpush3.bf16.msra.mxu0 %v1400_v10  ;;  %857 = vmatprep.mubr.bf16.mxu0 %v1405_v14 }
  0x44   :  { %899 = vmatmul.mubr.bf16.vlgmr.msra.gmra.mrb[8].mxu1 %v1401_v11  ;;  %1303 = vmatprep.subr.bf16.mxu0 %v1404_v13 }
  0x45   :  { %906 = vmatprep.mubr.bf16.mxu1 %v1409_v17 }
  0x47   :  { %1304 = vmatpush3.bf16.msra.mxu0 %v1404_v13 }
  0x48   :  { %1305 = vmatprep.subr.bf16.mxu0 %v1408_v16 }
  0x4a   :  { %858 = vmatmul.mubr.bf16.gmra.mrb[12].mxu0 %v1407_v15 }
  0x4b   :  { %1306 = vmatpush3.bf16.msra.mxu0 %v1408_v16  ;;  %1317 = vmatprep.mubr.bf16.mxu0 %v1417_v21 }
  0x4c   :  { %907 = vmatmul.mubr.bf16.gmra.mrb[12].mxu1 %v1411_v18  ;;  %1307 = vmatprep.subr.bf16.mxu0 %v1412_v19 }
  0x4f   :  { %1308 = vmatpush3.bf16.msra.mxu0 %v1412_v19 }
  0x50   :  { %1309 = vmatprep.subr.bf16.mxu0 %v1413_v20 }
  0x53   :  { %1310 = vmatpush3.bf16.msra.mxu0 %v1413_v20 }
  0x54   :  { %1311 = vmatprep.subr.bf16.mxu0 %v1414_v22 }
  0x57   :  { %1312 = vmatpush3.bf16.msra.mxu0 %v1414_v22 }
  0x58   :  { %1313 = vmatprep.subr.bf16.mxu0 %v1415_v23 }
  0x5b   :  { %1314 = vmatpush3.bf16.msra.mxu0 %v1415_v23 }
  0x5c   :  { %1315 = vmatprep.subr.bf16.mxu0 %v1416_v24 }
  0x5f   :  { %1316 = vmatpush3.bf16.msra.mxu0 %v1416_v24 }
  0x62   :  { %1318 = vmatmul.mubr.bf16.vlgmr.msra.gmra.mrb[16].mxu0 %v1418_v25 }
  0xf5   :  { %v1195_v26 = vpop.f32.mrb[0].mxu0 }
  0xf6   :  { %v1196_v28 = vpop.f32.mrb[1].mxu0 }
  0xf7   :  { %v1197_v29 = vadd.f32 %v1196_v28, %v1195_v26  ;;  %v1198_v30 = vpop.f32.mrb[2].mxu0  ;;  %v1223_v31 = vpop.f32.mrb[0].mxu1 }
  0xf8   :  { %v1199_v32 = vpop.f32.mrb[3].mxu0  ;;  %v1224_v35 = vpop.f32.mrb[1].mxu1 }
  0xf9   :  { %v754_v33 = vadd.f32 %v1197_v29, %v1059_v27  ;;  %v1200_v34 = vadd.f32 %v1199_v32, %v1198_v30  ;;  %v1225_v36 = vadd.f32 %v1224_v35, %v1223_v31  ;;  %v1226_v37 = vpop.f32.mrb[2].mxu1 }
  0xfa   :  { %v1227_v39 = vpop.f32.mrb[3].mxu1 }
  0xfb   :  { %v757_v38 = vadd.f32 %v1200_v34, %v1059_v27  ;;  %v803_v40 = vadd.f32 %v1225_v36, %v754_v33  ;;  %v1228_v41 = vadd.f32 %v1227_v39, %v1226_v37 }
  0xfd   :  { %v806_v42 = vadd.f32 %v1228_v41, %v757_v38  ;;  %v1201_v43 = vpop.f32.mrb[4].mxu0 }
  0xfe   :  { %v1202_v44 = vpop.f32.mrb[5].mxu0 }
  0xff   :  { %v1203_v45 = vadd.f32 %v1202_v44, %v1201_v43  ;;  %v1204_v46 = vpop.f32.mrb[6].mxu0  ;;  %v1229_v47 = vpop.f32.mrb[4].mxu1 }
 0x100   :  { %v1205_v48 = vpop.f32.mrb[7].mxu0  ;;  %v1230_v51 = vpop.f32.mrb[5].mxu1 }
 0x101   :  { %v762_v49 = vadd.f32 %v1203_v45, %v1059_v27  ;;  %v1206_v50 = vadd.f32 %v1205_v48, %v1204_v46  ;;  %v1231_v52 = vadd.f32 %v1230_v51, %v1229_v47  ;;  %v1232_v53 = vpop.f32.mrb[6].mxu1 }
 0x102   :  { %v1233_v55 = vpop.f32.mrb[7].mxu1 }
 0x103   :  { %v765_v54 = vadd.f32 %v1206_v50, %v1059_v27  ;;  %v811_v56 = vadd.f32 %v1231_v52, %v762_v49  ;;  %v1234_v57 = vadd.f32 %v1233_v55, %v1232_v53 }
 0x105   :  { %v814_v58 = vadd.f32 %v1234_v57, %v765_v54 }
 0x115   :  { %v1251_v59 = vpop.f32.mrb[8].mxu0 }
 0x116   :  { %v1252_v60 = vpop.f32.mrb[9].mxu0 }
 0x117   :  { %v1253_v61 = vadd.f32 %v1252_v60, %v1251_v59  ;;  %v1254_v62 = vpop.f32.mrb[10].mxu0  ;;  %v1279_v63 = vpop.f32.mrb[8].mxu1 }
 0x118   :  { %v1255_v0 = vpop.f32.mrb[11].mxu0  ;;  %v1280_v3 = vpop.f32.mrb[9].mxu1 }
 0x119   :  { %v852_v1 = vadd.f32 %v1253_v61, %v803_v40  ;;  %v1256_v2 = vadd.f32 %v1255_v0, %v1254_v62  ;;  %v1281_v4 = vadd.f32 %v1280_v3, %v1279_v63  ;;  %v1282_v5 = vpop.f32.mrb[10].mxu1  ;;  %v1000_v3 = vlaneseq }
 0x11a   :  { %v1283_v7 = vpop.f32.mrb[11].mxu1 }
 0x11b   :  { %v855_v6 = vadd.f32 %v1256_v2, %v806_v42  ;;  %v1284_v8 = vadd.f32 %v1283_v7, %v1282_v5  ;;  %v901_v9 = vadd.f32 %v1281_v4, %v852_v1  ;;  %v1001_v4 = vshrl.u32 %v1000_v3, 7  ;;  %v994_v5 = vld [vmem:[%s1750_s3] sm:$0x1] }
 0x11d   :  { %v1257_v10 = vpop.f32.mrb[12].mxu0  ;;  %v904_v12 = vadd.f32 %v1284_v8, %v855_v6  ;;  %v1002_v6 = vsub.s32 0, %v1001_v4 }
 0x11e   :  { %v1258_v11 = vpop.f32.mrb[13].mxu0 }
 0x11f   :  { %v1259_v13 = vadd.f32 %v1258_v11, %v1257_v10  ;;  %v1260_v14 = vpop.f32.mrb[14].mxu0  ;;  %v1285_v15 = vpop.f32.mrb[12].mxu1  ;;  %v1177_v10 = vld [vmem:[%s1751_s5 + $0x8] sm:$0xff]  }
 0x120   :  { %v1261_v16 = vpop.f32.mrb[15].mxu0  ;;  %v1286_v19 = vpop.f32.mrb[13].mxu1 }
 0x121   :  { %v860_v17 = vadd.f32 %v1259_v13, %v811_v56  ;;  %v1262_v18 = vadd.f32 %v1261_v16, %v1260_v14  ;;  %v1287_v20 = vadd.f32 %v1286_v19, %v1285_v15  ;;  %v1288_v21 = vpop.f32.mrb[14].mxu1  ;;  %v1165_v15 = vunpack.c.l.bf16 %v1177_v10 }
 0x122   :  { %v1289_v23 = vpop.f32.mrb[15].mxu1  ;;  %v1166_v16 = vunpack.c.h.bf16 %v1177_v10 }
 0x123   :  { %v863_v22 = vadd.f32 %v1262_v18, %v814_v58  ;;  %v1290_v24 = vadd.f32 %v1289_v23, %v1288_v21  ;;  %v909_v25 = vadd.f32 %v1287_v20, %v860_v17 }
 0x125   :  { %v912_v26 = vadd.f32 %v1290_v24, %v863_v22 }
 0x135   :  { %v1319_v27 = vpop.f32.mrb[16].mxu0 }
 0x136   :  { %v958_v28 = vadd.f32 %v1319_v27, %v909_v25  ;;  %v949_v29 = vpop.f32.mrb[17].mxu0 }
 0x137   :  { %v950_v30 = vadd.f32 %v949_v29, %v901_v9  ;;  %v1320_v31 = vpop.f32.mrb[18].mxu0  ;;  %v1160_v9 = vld [vmem:[%s1751_s5] sm:$0xff]  }
 0x138   :  { %v961_v32 = vadd.f32 %v1320_v31, %v912_v26  ;;  %v952_v33 = vpop.f32.mrb[19].mxu0  ;;  %v977_v38 = vmul.f32 %v958_v28, %v958_v28  ;;  %v1161_v13 = vunpack.c.l.bf16 %v1160_v9  ;;  %v1162_v14 = vunpack.c.h.bf16 %v1160_v9 }
 0x139   :  { %v953_v34 = vadd.f32 %v952_v33, %v904_v12  ;;  %v975_v35 = vmul.f32 %v950_v30, %v950_v30  ;;  %v1150_v12 = vld [vmem:[%s1752_s4] ss:$0 sm:$0xff] }
 0x13a   :  { %v978_v41 = vmul.f32 %v961_v32, %v961_v32 }
 0x13b   :  { %v964_v36 = vadd.f32 %v953_v34, %v950_v30  ;;  %v976_v37 = vmul.f32 %v953_v34, %v953_v34 }
 0x13d   :  { %v965_v39 = vadd.f32 %v964_v36, %v958_v28  ;;  %v979_v40 = vadd.f32 %v976_v37, %v975_v35 }
 0x13f   :  { %v966_v42 = vadd.f32 %v965_v39, %v961_v32  ;;  %v980_v43 = vadd.f32 %v979_v40, %v977_v38 }
 0x141   :  { %v967_v44 = vrot.slane %v966_v42, 4  ;;  %v981_v45 = vadd.f32 %v980_v43, %v978_v41 }
 0x143   :  { %v968_v46 = vadd.f32 %v967_v44, %v966_v42  ;;  %v982_v47 = vrot.slane %v981_v45, 4 }
 0x145   :  { %v969_v48 = vrot.slane %v968_v46, 2  ;;  %v983_v49 = vadd.f32 %v982_v47, %v981_v45 }
 0x147   :  { %v970_v50 = vadd.f32 %v969_v48, %v968_v46  ;;  %v984_v51 = vrot.slane %v983_v49, 2 }
 0x149   :  { %v971_v52 = vrot.slane %v970_v50, 1  ;;  %v985_v53 = vadd.f32 %v984_v51, %v983_v49 }
 0x14b   :  { %v972_v54 = vadd.f32 %v971_v52, %v970_v50  ;;  %v986_v55 = vrot.slane %v985_v53, 1 }
 0x14d   :  { %v974_v56 = vmul.f32 0.03125, %v972_v54  ;;  %v987_v57 = vadd.f32 %v986_v55, %v985_v53 }
 0x14f   :  { %v988_v58 = vmul.f32 0.03125, %v987_v57  ;;  %v989_v59 = vmul.f32 %v974_v56, %v974_v56  ;;  %v996_v60 = vsub.f32 %v950_v30, %v974_v56  ;;  %v997_v61 = vsub.f32 %v953_v34, %v974_v56 }
 0x150   :  { %v998_v62 = vsub.f32 %v958_v28, %v974_v56  ;;  %v999_v63 = vsub.f32 %v961_v32, %v974_v56 }
 0x151   :  { %v990_v0 = vsub.f32 %v988_v58, %v989_v59 }
 0x153   :  { %v991_v1 = vmax.f32 %v990_v0, 0.0 }
 0x155   :  { %v992_v2 = vadd.f32 1e-05, %v991_v1 }
 0x157   :  { %1419 = vrsqrt.f32 %v992_v2 }
 0x161   :  { %v1420_v7 = vpop.eup %1419 }
 0x162   :  { %v995_v8 = vmul.f32 %v1420_v7, %v994_v5 }
 0x164   :  { %v1003_v11 = vrot.slane %v995_v8, %v1002_v6 }
 0x166   :  { %v1004_v17 = vmul.f32 %v1003_v11, %v996_v60  ;;  %v1005_v18 = vmul.f32 %v1003_v11, %v997_v61  ;;  %v1006_v19 = vmul.f32 %v1003_v11, %v998_v62  ;;  %v1007_v20 = vmul.f32 %v1003_v11, %v999_v63 }
 0x168   :  { %v1015_v21 = vadd.f32 %v1150_v12, %v1004_v17  ;;  %v1016_v22 = vadd.f32 %v1150_v12, %v1005_v18  ;;  %v1017_v23 = vadd.f32 %v1150_v12, %v1006_v19  ;;  %v1018_v24 = vadd.f32 %v1150_v12, %v1007_v20 }
 0x16a   :  { %v1027_v25 = vadd.f32 %v1161_v13, %v1015_v21  ;;  %v1028_v26 = vadd.f32 %v1162_v14, %v1016_v22  ;;  %v1029_v27 = vadd.f32 %v1165_v15, %v1017_v23  ;;  %v1030_v28 = vadd.f32 %v1166_v16, %v1018_v24 }
 0x16c   :  { %v1031_v29 = vmax.f32 %v1027_v25, 0.0  ;;  %v1032_v30 = vmax.f32 %v1028_v26, 0.0  ;;  %v1033_v31 = vmax.f32 %v1029_v27, 0.0  ;;  %v1034_v32 = vmax.f32 %v1030_v28, 0.0 }
 0x16e   :  { %v1170_v33 = vpack.c.bf16 %v1032_v30, %v1031_v29  ;;  %v1175_v34 = vpack.c.bf16 %v1034_v32, %v1033_v31 }
 0x170   :  { %1171 = vst [vmem:[%s1753_s6] sm:$0xff] %v1170_v33   ;;  %1178 = vst [vmem:[%s1753_s6 + $0x8] sm:$0xff] %v1175_v34  }

// kernel: colornet_forward.23
= control target key start
LH: loop header
LB: loop body
LE: loop exit
PB: predicated region body
PF: predicated region fallthrough
CT: control target
= control target key end

     0   :  { %s1712_s1 = inlined_call_operand.vmem [shape: bf16[1152,128], index: 1, kind: input, shape index: {}]   ;;  %s1713_s0 = inlined_call_operand.vmem [shape: bf16[32,1152], index: 0, kind: input, shape index: {}]   ;;  %s1714_s2 = inlined_call_operand.vmem [shape: f32[1,128], index: 2, kind: input, shape index: {}]   ;;  %s1715_s3 = inlined_call_operand.vmem [shape: f32[1,128], index: 3, kind: input, shape index: {}]   ;;  %s1716_s4 = inlined_call_operand.vmem [shape: f32[1,128], index: 4, kind: input, shape index: {}]   ;;  %s1717_s5 = inlined_call_operand.vmem [shape: bf16[32,128], index: 5, kind: output, shape index: {}]  }
   0x1   :  { %v1297_v0 = vld [vmem:[%s1712_s1 + $0x40] sm:$0xff]   ;;  %v1301_v4 = vld [vmem:[%s1712_s1 + $0x48] sm:$0xff]   ;;  %v1305_v8 = vld [vmem:[%s1712_s1 + $0x50] sm:$0xff]  }
   0x2   :  { %v1298_v1 = vld [vmem:[%s1712_s1] sm:$0xff]   ;;  %1155 = vmatprep.subr.bf16.mxu0 %v1297_v0  ;;  %v1302_v5 = vld [vmem:[%s1712_s1 + $0x8] sm:$0xff]   ;;  %v1306_v9 = vld [vmem:[%s1712_s1 + $0x10] sm:$0xff]  }
   0x3   :  { %v1299_v2 = vld [vmem:[%s1712_s1 + $0xc0] sm:$0xff]   ;;  %1156 = vmatpush3.bf16.msra.mxu0 %v1298_v1  ;;  %v1303_v6 = vld [vmem:[%s1712_s1 + $0xc8] sm:$0xff]   ;;  %v1307_v10 = vld [vmem:[%s1712_s1 + $0xd0] sm:$0xff]  }
   0x4   :  { %v1300_v3 = vld [vmem:[%s1712_s1 + $0x80] sm:$0xff]   ;;  %1183 = vmatprep.subr.bf16.mxu1 %v1299_v2  ;;  %1157 = vmatprep.subr.bf16.mxu0 %v1301_v4  ;;  %v1304_v7 = vld [vmem:[%s1712_s1 + $0x88] sm:$0xff]   ;;  %v1308_v11 = vld [vmem:[%s1712_s1 + $0x90] sm:$0xff]  }
   0x5   :  { %1184 = vmatpush3.bf16.msra.mxu1 %v1300_v3  ;;  %v1309_v12 = vld [vmem:[%s1712_s1 + $0x58] sm:$0xff]   ;;  %v1313_v16 = vld [vmem:[%s1712_s1 + $0x60] sm:$0xff]   ;;  %v1317_v20 = vld [vmem:[%s1712_s1 + $0x68] sm:$0xff]  }
   0x6   :  { %1185 = vmatprep.subr.bf16.mxu1 %v1303_v6  ;;  %v1310_v13 = vld [vmem:[%s1712_s1 + $0x18] sm:$0xff]   ;;  %v1314_v17 = vld [vmem:[%s1712_s1 + $0x20] sm:$0xff]   ;;  %v1318_v21 = vld [vmem:[%s1712_s1 + $0x28] sm:$0xff]  }
   0x7   :  { %1158 = vmatpush3.bf16.msra.mxu0 %v1302_v5  ;;  %v1311_v14 = vld [vmem:[%s1712_s1 + $0xd8] sm:$0xff]   ;;  %v1315_v18 = vld [vmem:[%s1712_s1 + $0xe0] sm:$0xff]   ;;  %v1319_v22 = vld [vmem:[%s1712_s1 + $0xe8] sm:$0xff]  }
   0x8   :  { %1159 = vmatprep.subr.bf16.mxu0 %v1305_v8  ;;  %v1312_v15 = vld [vmem:[%s1712_s1 + $0x98] sm:$0xff]   ;;  %v1316_v19 = vld [vmem:[%s1712_s1 + $0xa0] sm:$0xff]   ;;  %v1320_v23 = vld [vmem:[%s1712_s1 + $0xa8] sm:$0xff]  }
   0x9   :  { %1186 = vmatpush3.bf16.msra.mxu1 %v1304_v7  ;;  %v1321_v24 = vld [vmem:[%s1712_s1 + $0x70] sm:$0xff]   ;;  %v1325_v28 = vld [vmem:[%s1712_s1 + $0x78] sm:$0xff]   ;;  %v1328_v31 = vld [vmem:[%s1713_s0] ss:$36 sps:$4 sm:$0xff]  }
   0xa   :  { %1187 = vmatprep.subr.bf16.mxu1 %v1307_v10  ;;  %v1322_v25 = vld [vmem:[%s1712_s1 + $0x30] sm:$0xff]   ;;  %v1326_v29 = vld [vmem:[%s1712_s1 + $0x38] sm:$0xff]   ;;  %v1330_v32 = vld [vmem:[%s1713_s0 + $0x4] ss:$36 sps:$4 sm:$0xff]  }
   0xb   :  { %1160 = vmatpush3.bf16.msra.mxu0 %v1306_v9  ;;  %v1323_v26 = vld [vmem:[%s1712_s1 + $0xf0] sm:$0xff]   ;;  %v1327_v30 = vld [vmem:[%s1712_s1 + $0xf8] sm:$0xff]   ;;  %748 = vmatprep.mubr.bf16.mxu0 %v1330_v32  ;;  %v1332_v34 = vld [vmem:[%s1712_s1 + $0x140] sm:$0xff]  }
   0xc   :  { %1161 = vmatprep.subr.bf16.mxu0 %v1309_v12  ;;  %v1324_v27 = vld [vmem:[%s1712_s1 + $0xb0] sm:$0xff]   ;;  %v1331_v33 = vld [vmem:[%s1712_s1 + $0xb8] sm:$0xff]   ;;  %v1333_v35 = vld [vmem:[%s1713_s0 + $0x8] ss:$36 sps:$4 sm:$0xff]  }
   0xd   :  { %1188 = vmatpush3.bf16.msra.mxu1 %v1308_v11  ;;  %v1335_v36 = vld [vmem:[%s1713_s0 + $0xc] ss:$36 sps:$4 sm:$0xff]   ;;  %v1336_v37 = vld [vmem:[%s1712_s1 + $0x100] sm:$0xff]   ;;  %v1347_v48 = vld [vmem:[%s1712_s1 + $0x158] sm:$0xff]  }
   0xe   :  { %1189 = vmatprep.subr.bf16.mxu1 %v1311_v14  ;;  %797 = vmatprep.mubr.bf16.mxu1 %v1335_v36  ;;  %v1337_v38 = vld [vmem:[%s1712_s1 + $0x1c0] sm:$0xff]   ;;  %v1339_v40 = vld [vmem:[%s1712_s1 + $0x148] sm:$0xff]   ;;  %v1343_v44 = vld [vmem:[%s1712_s1 + $0x150] sm:$0xff]  }
   0xf   :  { %1162 = vmatpush3.bf16.msra.mxu0 %v1310_v13  ;;  %v1338_v39 = vld [vmem:[%s1712_s1 + $0x180] sm:$0xff]   ;;  %v1340_v41 = vld [vmem:[%s1712_s1 + $0x108] sm:$0xff]   ;;  %v1344_v45 = vld [vmem:[%s1712_s1 + $0x110] sm:$0xff]  }
  0x10   :  { %1163 = vmatprep.subr.bf16.mxu0 %v1313_v16  ;;  %v1341_v42 = vld [vmem:[%s1712_s1 + $0x1c8] sm:$0xff]   ;;  %v1345_v46 = vld [vmem:[%s1712_s1 + $0x1d0] sm:$0xff]   ;;  %v1348_v49 = vld [vmem:[%s1712_s1 + $0x118] sm:$0xff]  }
  0x11   :  { %1190 = vmatpush3.bf16.msra.mxu1 %v1312_v15  ;;  %v1342_v43 = vld [vmem:[%s1712_s1 + $0x188] sm:$0xff]   ;;  %v1346_v47 = vld [vmem:[%s1712_s1 + $0x190] sm:$0xff]   ;;  %v1349_v50 = vld [vmem:[%s1712_s1 + $0x1d8] sm:$0xff]  }
  0x12   :  { %1191 = vmatprep.subr.bf16.mxu1 %v1315_v18  ;;  %v1350_v51 = vld [vmem:[%s1712_s1 + $0x198] sm:$0xff]   ;;  %v1351_v52 = vld [vmem:[%s1712_s1 + $0x160] sm:$0xff]   ;;  %v1355_v56 = vld [vmem:[%s1712_s1 + $0x168] sm:$0xff]  }
  0x13   :  { %1164 = vmatpush3.bf16.msra.mxu0 %v1314_v17  ;;  %v1352_v53 = vld [vmem:[%s1712_s1 + $0x120] sm:$0xff]   ;;  %v1356_v57 = vld [vmem:[%s1713_s0 + $0x4c] ss:$36 sps:$4 sm:$0xff]   ;;  %v1361_v61 = vld [vmem:[%s1713_s0 + $0x54] ss:$36 sps:$4 sm:$0xff]  }
  0x14   :  { %1165 = vmatprep.subr.bf16.mxu0 %v1317_v20  ;;  %v1353_v54 = vld [vmem:[%s1712_s1 + $0x1e0] sm:$0xff]   ;;  %v1358_v58 = vld [vmem:[%s1712_s1 + $0x128] sm:$0xff]   ;;  %v1364_v63 = vld [vmem:[%s1713_s0 + $0x50] ss:$36 sps:$4 sm:$0xff]  }
  0x15   :  { %1192 = vmatpush3.bf16.msra.mxu1 %v1316_v19  ;;  %v1354_v55 = vld [vmem:[%s1712_s1 + $0x1a0] sm:$0xff]   ;;  %v1359_v59 = vld [vmem:[%s1713_s0 + $0x48] ss:$36 sps:$4 sm:$0xff]   ;;  %v1365_v0 = vld [vmem:[%s1712_s1 + $0x170] sm:$0xff]  }
  0x16   :  { %1193 = vmatprep.subr.bf16.mxu1 %v1319_v22  ;;  %v1360_v60 = vld [vmem:[%s1712_s1 + $0x1e8] sm:$0xff]   ;;  %v1366_v1 = vld [vmem:[%s1712_s1 + $0x130] sm:$0xff]   ;;  %v1369_v4 = vld [vmem:[%s1712_s1 + $0x178] sm:$0xff]  }
  0x17   :  { %1166 = vmatpush3.bf16.msra.mxu0 %v1318_v21  ;;  %v1363_v62 = vld [vmem:[%s1712_s1 + $0x1a8] sm:$0xff]   ;;  %v1367_v2 = vld [vmem:[%s1712_s1 + $0x1f0] sm:$0xff]   ;;  %v1370_v5 = vld [vmem:[%s1712_s1 + $0x138] sm:$0xff]  }
  0x18   :  { %1167 = vmatprep.subr.bf16.mxu0 %v1321_v24  ;;  %v1368_v3 = vld [vmem:[%s1712_s1 + $0x1b0] sm:$0xff]   ;;  %v1371_v6 = vld [vmem:[%s1712_s1 + $0x1f8] sm:$0xff]   ;;  %v1376_v10 = vld [vmem:[%s1712_s1 + $0x200] sm:$0xff]  }
  0x19   :  { %1194 = vmatpush3.bf16.msra.mxu1 %v1320_v23  ;;  %v1372_v7 = vld [vmem:[%s1713_s0 + $0x10] ss:$36 sps:$4 sm:$0xff]   ;;  %v1375_v9 = vld [vmem:[%s1712_s1 + $0x1b8] sm:$0xff]   ;;  %v1380_v13 = vld [vmem:[%s1712_s1 + $0x208] sm:$0xff]  }
  0x1a   :  { %1195 = vmatprep.subr.bf16.mxu1 %v1323_v26  ;;  %v1374_v8 = vld [vmem:[%s1713_s0 + $0x14] ss:$36 sps:$4 sm:$0xff]   ;;  %v1379_v12 = vld [vmem:[%s1713_s0 + $0x1c] ss:$36 sps:$4 sm:$0xff]   ;;  %v1385_v17 = vld [vmem:[%s1713_s0 + $0x64] ss:$36 sps:$4 sm:$0xff]  }
  0x1b   :  { %1168 = vmatpush3.bf16.msra.mxu0 %v1322_v25  ;;  %v1377_v11 = vld [vmem:[%s1713_s0 + $0x18] ss:$36 sps:$4 sm:$0xff]   ;;  %v1384_v16 = vld [vmem:[%s1712_s1 + $0x210] sm:$0xff]   ;;  %v1387_v18 = vld [vmem:[%s1713_s0 + $0x60] ss:$36 sps:$4 sm:$0xff]  }
  0x1c   :  { %1169 = vmatprep.subr.bf16.mxu0 %v1325_v28  ;;  %v1381_v14 = vld [vmem:[%s1713_s0 + $0x5c] ss:$36 sps:$4 sm:$0xff]   ;;  %v1390_v22 = vld [vmem:[%s1712_s1 + $0x228] sm:$0xff]   ;;  %v1391_v23 = vld [vmem:[%s1712_s1 + $0x230] sm:$0xff]  }
  0x1d   :  { %1196 = vmatpush3.bf16.msra.mxu1 %v1324_v27  ;;  %v1383_v15 = vld [vmem:[%s1713_s0 + $0x58] ss:$36 sps:$4 sm:$0xff]   ;;  %v1389_v20 = vld [vmem:[%s1712_s1 + $0x220] sm:$0xff]   ;;  %v1394_v25 = vld [vmem:[%s1713_s0 + $0x68] ss:$36 sps:$4 sm:$0xff]  }
  0x1e   :  { %1197 = vmatprep.subr.bf16.mxu1 %v1327_v30  ;;  %v1388_v19 = vld [vmem:[%s1712_s1 + $0x218] sm:$0xff]   ;;  %v1393_v21 = vld [vmem:[%s1713_s0 + $0x20] ss:$36 sps:$4 sm:$0xff]  }
  0x1f   :  { %1170 = vmatpush3.bf16.msra.mxu0 %v1326_v29  ;;  %v1392_v24 = vld [vmem:[%s1712_s1 + $0x238] sm:$0xff]   ;;  %v1044_v27 = vld [vmem:[%s1714_s2] ss:$0 sm:$0xff] }
  0x20   :  { %1211 = vmatprep.subr.bf16.mxu0 %v1332_v34 }
  0x21   :  { %1198 = vmatpush3.bf16.msra.mxu1 %v1331_v33 }
  0x22   :  { %749 = vmatmul.mubr.bf16.vlgmr.msra.gmra.mrb[0].mxu0 %v1328_v31  ;;  %1239 = vmatprep.subr.bf16.mxu1 %v1337_v38 }
  0x23   :  { %1212 = vmatpush3.bf16.msra.mxu0 %v1336_v37  ;;  %756 = vmatprep.mubr.bf16.mxu0 %v1356_v57 }
  0x24   :  { %798 = vmatmul.mubr.bf16.vlgmr.msra.gmra.mrb[0].mxu1 %v1333_v35  ;;  %1213 = vmatprep.subr.bf16.mxu0 %v1339_v40 }
  0x25   :  { %1240 = vmatpush3.bf16.msra.mxu1 %v1338_v39  ;;  %805 = vmatprep.mubr.bf16.mxu1 %v1361_v61 }
  0x26   :  { %1241 = vmatprep.subr.bf16.mxu1 %v1341_v42 }
  0x27   :  { %1214 = vmatpush3.bf16.msra.mxu0 %v1340_v41 }
  0x28   :  { %1215 = vmatprep.subr.bf16.mxu0 %v1343_v44 }
  0x29   :  { %1242 = vmatpush3.bf16.msra.mxu1 %v1342_v43 }
  0x2a   :  { %1243 = vmatprep.subr.bf16.mxu1 %v1345_v46  ;;  %757 = vmatmul.mubr.bf16.gmra.mrb[4].mxu0 %v1359_v59 }
  0x2b   :  { %1216 = vmatpush3.bf16.msra.mxu0 %v1344_v45  ;;  %846 = vmatprep.mubr.bf16.mxu0 %v1374_v8 }
  0x2c   :  { %1217 = vmatprep.subr.bf16.mxu0 %v1347_v48  ;;  %806 = vmatmul.mubr.bf16.gmra.mrb[4].mxu1 %v1364_v63 }
  0x2d   :  { %1244 = vmatpush3.bf16.msra.mxu1 %v1346_v47  ;;  %895 = vmatprep.mubr.bf16.mxu1 %v1379_v12 }
  0x2e   :  { %1245 = vmatprep.subr.bf16.mxu1 %v1349_v50 }
  0x2f   :  { %1218 = vmatpush3.bf16.msra.mxu0 %v1348_v49 }
  0x30   :  { %1219 = vmatprep.subr.bf16.mxu0 %v1351_v52 }
  0x31   :  { %1246 = vmatpush3.bf16.msra.mxu1 %v1350_v51 }
  0x32   :  { %1247 = vmatprep.subr.bf16.mxu1 %v1353_v54 }
  0x33   :  { %1220 = vmatpush3.bf16.msra.mxu0 %v1352_v53 }
  0x34   :  { %1221 = vmatprep.subr.bf16.mxu0 %v1355_v56 }
  0x35   :  { %1248 = vmatpush3.bf16.msra.mxu1 %v1354_v55 }
  0x36   :  { %1249 = vmatprep.subr.bf16.mxu1 %v1360_v60 }
  0x37   :  { %1222 = vmatpush3.bf16.msra.mxu0 %v1358_v58 }
  0x38   :  { %1223 = vmatprep.subr.bf16.mxu0 %v1365_v0 }
  0x39   :  { %1250 = vmatpush3.bf16.msra.mxu1 %v1363_v62 }
  0x3a   :  { %1251 = vmatprep.subr.bf16.mxu1 %v1367_v2 }
  0x3b   :  { %1224 = vmatpush3.bf16.msra.mxu0 %v1366_v1 }
  0x3c   :  { %1225 = vmatprep.subr.bf16.mxu0 %v1369_v4 }
  0x3d   :  { %1252 = vmatpush3.bf16.msra.mxu1 %v1368_v3 }
  0x3e   :  { %1253 = vmatprep.subr.bf16.mxu1 %v1371_v6 }
  0x3f   :  { %1226 = vmatpush3.bf16.msra.mxu0 %v1370_v5 }
  0x40   :  { %1277 = vmatprep.subr.bf16.mxu0 %v1376_v10 }
  0x41   :  { %1254 = vmatpush3.bf16.msra.mxu1 %v1375_v9 }
  0x42   :  { %847 = vmatmul.mubr.bf16.vlgmr.msra.gmra.mrb[8].mxu0 %v1372_v7 }
  0x43   :  { %1278 = vmatpush3.bf16.msra.mxu0 %v1376_v10  ;;  %854 = vmatprep.mubr.bf16.mxu0 %v1381_v14 }
  0x44   :  { %896 = vmatmul.mubr.bf16.vlgmr.msra.gmra.mrb[8].mxu1 %v1377_v11  ;;  %1279 = vmatprep.subr.bf16.mxu0 %v1380_v13 }
  0x45   :  { %903 = vmatprep.mubr.bf16.mxu1 %v1385_v17 }
  0x47   :  { %1280 = vmatpush3.bf16.msra.mxu0 %v1380_v13 }
  0x48   :  { %1281 = vmatprep.subr.bf16.mxu0 %v1384_v16 }
  0x4a   :  { %855 = vmatmul.mubr.bf16.gmra.mrb[12].mxu0 %v1383_v15 }
  0x4b   :  { %1282 = vmatpush3.bf16.msra.mxu0 %v1384_v16  ;;  %1293 = vmatprep.mubr.bf16.mxu0 %v1393_v21 }
  0x4c   :  { %904 = vmatmul.mubr.bf16.gmra.mrb[12].mxu1 %v1387_v18  ;;  %1283 = vmatprep.subr.bf16.mxu0 %v1388_v19 }
  0x4f   :  { %1284 = vmatpush3.bf16.msra.mxu0 %v1388_v19 }
  0x50   :  { %1285 = vmatprep.subr.bf16.mxu0 %v1389_v20 }
  0x53   :  { %1286 = vmatpush3.bf16.msra.mxu0 %v1389_v20 }
  0x54   :  { %1287 = vmatprep.subr.bf16.mxu0 %v1390_v22 }
  0x57   :  { %1288 = vmatpush3.bf16.msra.mxu0 %v1390_v22 }
  0x58   :  { %1289 = vmatprep.subr.bf16.mxu0 %v1391_v23 }
  0x5b   :  { %1290 = vmatpush3.bf16.msra.mxu0 %v1391_v23 }
  0x5c   :  { %1291 = vmatprep.subr.bf16.mxu0 %v1392_v24 }
  0x5f   :  { %1292 = vmatpush3.bf16.msra.mxu0 %v1392_v24 }
  0x62   :  { %1294 = vmatmul.mubr.bf16.vlgmr.msra.gmra.mrb[16].mxu0 %v1394_v25 }
  0xf5   :  { %v1171_v26 = vpop.f32.mrb[0].mxu0 }
  0xf6   :  { %v1172_v28 = vpop.f32.mrb[1].mxu0 }
  0xf7   :  { %v1173_v29 = vadd.f32 %v1172_v28, %v1171_v26  ;;  %v1174_v30 = vpop.f32.mrb[2].mxu0  ;;  %v1199_v31 = vpop.f32.mrb[0].mxu1 }
  0xf8   :  { %v1175_v32 = vpop.f32.mrb[3].mxu0  ;;  %v1200_v35 = vpop.f32.mrb[1].mxu1 }
  0xf9   :  { %v751_v33 = vadd.f32 %v1173_v29, %v1044_v27  ;;  %v1176_v34 = vadd.f32 %v1175_v32, %v1174_v30  ;;  %v1201_v36 = vadd.f32 %v1200_v35, %v1199_v31  ;;  %v1202_v37 = vpop.f32.mrb[2].mxu1 }
  0xfa   :  { %v1203_v39 = vpop.f32.mrb[3].mxu1 }
  0xfb   :  { %v754_v38 = vadd.f32 %v1176_v34, %v1044_v27  ;;  %v800_v40 = vadd.f32 %v1201_v36, %v751_v33  ;;  %v1204_v41 = vadd.f32 %v1203_v39, %v1202_v37 }
  0xfd   :  { %v803_v42 = vadd.f32 %v1204_v41, %v754_v38  ;;  %v1177_v43 = vpop.f32.mrb[4].mxu0 }
  0xfe   :  { %v1178_v44 = vpop.f32.mrb[5].mxu0 }
  0xff   :  { %v1179_v45 = vadd.f32 %v1178_v44, %v1177_v43  ;;  %v1180_v46 = vpop.f32.mrb[6].mxu0  ;;  %v1205_v47 = vpop.f32.mrb[4].mxu1 }
 0x100   :  { %v1181_v48 = vpop.f32.mrb[7].mxu0  ;;  %v1206_v51 = vpop.f32.mrb[5].mxu1 }
 0x101   :  { %v759_v49 = vadd.f32 %v1179_v45, %v1044_v27  ;;  %v1182_v50 = vadd.f32 %v1181_v48, %v1180_v46  ;;  %v1207_v52 = vadd.f32 %v1206_v51, %v1205_v47  ;;  %v1208_v53 = vpop.f32.mrb[6].mxu1 }
 0x102   :  { %v1209_v55 = vpop.f32.mrb[7].mxu1 }
 0x103   :  { %v762_v54 = vadd.f32 %v1182_v50, %v1044_v27  ;;  %v808_v56 = vadd.f32 %v1207_v52, %v759_v49  ;;  %v1210_v57 = vadd.f32 %v1209_v55, %v1208_v53 }
 0x105   :  { %v811_v58 = vadd.f32 %v1210_v57, %v762_v54 }
 0x115   :  { %v1227_v59 = vpop.f32.mrb[8].mxu0 }
 0x116   :  { %v1228_v60 = vpop.f32.mrb[9].mxu0 }
 0x117   :  { %v1229_v61 = vadd.f32 %v1228_v60, %v1227_v59  ;;  %v1230_v62 = vpop.f32.mrb[10].mxu0  ;;  %v1255_v63 = vpop.f32.mrb[8].mxu1 }
 0x118   :  { %v1231_v0 = vpop.f32.mrb[11].mxu0  ;;  %v1256_v3 = vpop.f32.mrb[9].mxu1 }
 0x119   :  { %v849_v1 = vadd.f32 %v1229_v61, %v800_v40  ;;  %v1232_v2 = vadd.f32 %v1231_v0, %v1230_v62  ;;  %v1257_v4 = vadd.f32 %v1256_v3, %v1255_v63  ;;  %v1258_v5 = vpop.f32.mrb[10].mxu1  ;;  %v997_v3 = vlaneseq }
 0x11a   :  { %v1259_v7 = vpop.f32.mrb[11].mxu1 }
 0x11b   :  { %v852_v6 = vadd.f32 %v1232_v2, %v803_v42  ;;  %v1260_v8 = vadd.f32 %v1259_v7, %v1258_v5  ;;  %v898_v9 = vadd.f32 %v1257_v4, %v849_v1  ;;  %v998_v4 = vshrl.u32 %v997_v3, 7  ;;  %v991_v5 = vld [vmem:[%s1715_s3] sm:$0x1] }
 0x11d   :  { %v1233_v10 = vpop.f32.mrb[12].mxu0  ;;  %v901_v12 = vadd.f32 %v1260_v8, %v852_v6  ;;  %v999_v6 = vsub.s32 0, %v998_v4 }
 0x11e   :  { %v1234_v11 = vpop.f32.mrb[13].mxu0 }
 0x11f   :  { %v1235_v13 = vadd.f32 %v1234_v11, %v1233_v10  ;;  %v1236_v14 = vpop.f32.mrb[14].mxu0  ;;  %v1261_v15 = vpop.f32.mrb[12].mxu1  ;;  %v1135_v10 = vld [vmem:[%s1716_s4] ss:$0 sm:$0xff] }
 0x120   :  { %v1237_v16 = vpop.f32.mrb[15].mxu0  ;;  %v1262_v19 = vpop.f32.mrb[13].mxu1 }
 0x121   :  { %v857_v17 = vadd.f32 %v1235_v13, %v808_v56  ;;  %v1238_v18 = vadd.f32 %v1237_v16, %v1236_v14  ;;  %v1263_v20 = vadd.f32 %v1262_v19, %v1261_v15  ;;  %v1264_v21 = vpop.f32.mrb[14].mxu1 }
 0x122   :  { %v1265_v23 = vpop.f32.mrb[15].mxu1 }
 0x123   :  { %v860_v22 = vadd.f32 %v1238_v18, %v811_v58  ;;  %v1266_v24 = vadd.f32 %v1265_v23, %v1264_v21  ;;  %v906_v25 = vadd.f32 %v1263_v20, %v857_v17 }
 0x125   :  { %v909_v26 = vadd.f32 %v1266_v24, %v860_v22 }
 0x135   :  { %v1295_v27 = vpop.f32.mrb[16].mxu0 }
 0x136   :  { %v955_v28 = vadd.f32 %v1295_v27, %v906_v25  ;;  %v946_v29 = vpop.f32.mrb[17].mxu0 }
 0x137   :  { %v947_v30 = vadd.f32 %v946_v29, %v898_v9  ;;  %v1296_v31 = vpop.f32.mrb[18].mxu0 }
 0x138   :  { %v958_v32 = vadd.f32 %v1296_v31, %v909_v26  ;;  %v949_v33 = vpop.f32.mrb[19].mxu0  ;;  %v974_v38 = vmul.f32 %v955_v28, %v955_v28 }
 0x139   :  { %v950_v34 = vadd.f32 %v949_v33, %v901_v12  ;;  %v972_v35 = vmul.f32 %v947_v30, %v947_v30 }
 0x13a   :  { %v975_v41 = vmul.f32 %v958_v32, %v958_v32 }
 0x13b   :  { %v961_v36 = vadd.f32 %v950_v34, %v947_v30  ;;  %v973_v37 = vmul.f32 %v950_v34, %v950_v34 }
 0x13d   :  { %v962_v39 = vadd.f32 %v961_v36, %v955_v28  ;;  %v976_v40 = vadd.f32 %v973_v37, %v972_v35 }
 0x13f   :  { %v963_v42 = vadd.f32 %v962_v39, %v958_v32  ;;  %v977_v43 = vadd.f32 %v976_v40, %v974_v38 }
 0x141   :  { %v964_v44 = vrot.slane %v963_v42, 4  ;;  %v978_v45 = vadd.f32 %v977_v43, %v975_v41 }
 0x143   :  { %v965_v46 = vadd.f32 %v964_v44, %v963_v42  ;;  %v979_v47 = vrot.slane %v978_v45, 4 }
 0x145   :  { %v966_v48 = vrot.slane %v965_v46, 2  ;;  %v980_v49 = vadd.f32 %v979_v47, %v978_v45 }
 0x147   :  { %v967_v50 = vadd.f32 %v966_v48, %v965_v46  ;;  %v981_v51 = vrot.slane %v980_v49, 2 }
 0x149   :  { %v968_v52 = vrot.slane %v967_v50, 1  ;;  %v982_v53 = vadd.f32 %v981_v51, %v980_v49 }
 0x14b   :  { %v969_v54 = vadd.f32 %v968_v52, %v967_v50  ;;  %v983_v55 = vrot.slane %v982_v53, 1 }
 0x14d   :  { %v971_v56 = vmul.f32 0.03125, %v969_v54  ;;  %v984_v57 = vadd.f32 %v983_v55, %v982_v53 }
 0x14f   :  { %v985_v58 = vmul.f32 0.03125, %v984_v57  ;;  %v986_v59 = vmul.f32 %v971_v56, %v971_v56  ;;  %v993_v60 = vsub.f32 %v947_v30, %v971_v56  ;;  %v994_v61 = vsub.f32 %v950_v34, %v971_v56 }
 0x150   :  { %v995_v62 = vsub.f32 %v955_v28, %v971_v56  ;;  %v996_v63 = vsub.f32 %v958_v32, %v971_v56 }
 0x151   :  { %v987_v0 = vsub.f32 %v985_v58, %v986_v59 }
 0x153   :  { %v988_v1 = vmax.f32 %v987_v0, 0.0 }
 0x155   :  { %v989_v2 = vadd.f32 1e-05, %v988_v1 }
 0x157   :  { %1395 = vrsqrt.f32 %v989_v2 }
 0x161   :  { %v1396_v7 = vpop.eup %1395 }
 0x162   :  { %v992_v8 = vmul.f32 %v1396_v7, %v991_v5 }
 0x164   :  { %v1000_v9 = vrot.slane %v992_v8, %v999_v6 }
 0x166   :  { %v1001_v11 = vmul.f32 %v1000_v9, %v993_v60  ;;  %v1002_v12 = vmul.f32 %v1000_v9, %v994_v61  ;;  %v1003_v13 = vmul.f32 %v1000_v9, %v995_v62  ;;  %v1004_v14 = vmul.f32 %v1000_v9, %v996_v63 }
 0x168   :  { %v1012_v15 = vadd.f32 %v1135_v10, %v1001_v11  ;;  %v1013_v16 = vadd.f32 %v1135_v10, %v1002_v12  ;;  %v1014_v17 = vadd.f32 %v1135_v10, %v1003_v13  ;;  %v1015_v18 = vadd.f32 %v1135_v10, %v1004_v14 }
 0x16a   :  { %v1016_v19 = vmax.f32 %v1012_v15, 0.0  ;;  %v1017_v20 = vmax.f32 %v1013_v16, 0.0  ;;  %v1018_v21 = vmax.f32 %v1014_v17, 0.0  ;;  %v1019_v22 = vmax.f32 %v1015_v18, 0.0 }
 0x16c   :  { %v1147_v23 = vpack.c.bf16 %v1017_v20, %v1016_v19  ;;  %v1152_v24 = vpack.c.bf16 %v1019_v22, %v1018_v21 }
 0x16e   :  { %1148 = vst [vmem:[%s1717_s5] sm:$0xff] %v1147_v23   ;;  %1154 = vst [vmem:[%s1717_s5 + $0x8] sm:$0xff] %v1152_v24  }

// kernel: colornet_forward.27
= control target key start
LH: loop header
LB: loop body
LE: loop exit
PB: predicated region body
PF: predicated region fallthrough
CT: control target
= control target key end

     0   :  { %vm558_vm0 = vcmask 523264   ;;  %vm954_vm1 = vcmask 519168   ;;  %s1730_s1 = inlined_call_operand.vmem [shape: bf16[576,64], index: 1, kind: input, shape index: {}]   ;;  %s1731_s0 = inlined_call_operand.vmem [shape: bf16[128,576], index: 0, kind: input, shape index: {}]   ;;  %s1732_s2 = inlined_call_operand.vmem [shape: f32[1,64], index: 2, kind: input, shape index: {}]   ;;  %s1733_s3 = inlined_call_operand.vmem [shape: bf16[128,64], index: 3, kind: output, shape index: {}]  }
   0x1   :  { %v1264_v0 = vld [vmem:[%s1730_s1 + $0x40] sm:$0xff]   ;;  %v1268_v4 = vld [vmem:[%s1730_s1 + $0x48] sm:$0xff]   ;;  %v1272_v8 = vld [vmem:[%s1730_s1 + $0x50] sm:$0xff]  }
   0x2   :  { %v1265_v1 = vld [vmem:[%s1730_s1 + $0xc0] sm:$0xff]   ;;  %1092 = vmatprep.subr.bf16.mxu0 %v1264_v0  ;;  %v1269_v5 = vld [vmem:[%s1730_s1 + $0xc8] sm:$0xff]   ;;  %v1273_v9 = vld [vmem:[%s1730_s1 + $0xd0] sm:$0xff]  }
   0x3   :  { %v1266_v2 = vld [vmem:[%s1730_s1] sm:$0xff]   ;;  %1156 = vmatprep.subr.bf16.mxu1 %v1265_v1  ;;  %v1270_v6 = vld [vmem:[%s1730_s1 + $0x8] sm:$0xff]   ;;  %v1274_v10 = vld [vmem:[%s1730_s1 + $0x10] sm:$0xff]  }
   0x4   :  { %v1267_v3 = vld [vmem:[%s1730_s1 + $0x80] sm:$0xff]   ;;  %1093 = vmatpush3.bf16.msra.mxu0 %v1266_v2  ;;  %v1271_v7 = vld [vmem:[%s1730_s1 + $0x88] sm:$0xff]   ;;  %v1275_v11 = vld [vmem:[%s1730_s1 + $0x90] sm:$0xff]  }
   0x5   :  { %1157 = vmatpush3.bf16.msra.mxu1 %v1267_v3  ;;  %1094 = vmatprep.subr.bf16.mxu0 %v1268_v4  ;;  %v1276_v12 = vld [vmem:[%s1730_s1 + $0x58] sm:$0xff]   ;;  %v1280_v16 = vld [vmem:[%s1730_s1 + $0x60] sm:$0xff]   ;;  %v1284_v20 = vld [vmem:[%s1730_s1 + $0x68] sm:$0xff]  }
   0x6   :  { %1158 = vmatprep.subr.bf16.mxu1 %v1269_v5  ;;  %v1277_v13 = vld [vmem:[%s1730_s1 + $0xd8] sm:$0xff]   ;;  %v1281_v17 = vld [vmem:[%s1730_s1 + $0xe0] sm:$0xff]   ;;  %v1285_v21 = vld [vmem:[%s1730_s1 + $0xe8] sm:$0xff]  }
   0x7   :  { %v1278_v14 = vld [vmem:[%s1730_s1 + $0x18] sm:$0xff]   ;;  %v1282_v18 = vld [vmem:[%s1730_s1 + $0x20] sm:$0xff]   ;;  %v1286_v22 = vld [vmem:[%s1730_s1 + $0x28] sm:$0xff]  }
   0x8   :  { %1095 = vmatpush3.bf16.msra.mxu0 %v1270_v6  ;;  %v1279_v15 = vld [vmem:[%s1730_s1 + $0x98] sm:$0xff]   ;;  %v1283_v19 = vld [vmem:[%s1730_s1 + $0xa0] sm:$0xff]   ;;  %v1287_v23 = vld [vmem:[%s1730_s1 + $0xa8] sm:$0xff]  }
   0x9   :  { %1159 = vmatpush3.bf16.msra.mxu1 %v1271_v7  ;;  %1096 = vmatprep.subr.bf16.mxu0 %v1272_v8  ;;  %v1288_v24 = vld [vmem:[%s1730_s1 + $0x70] sm:$0xff]   ;;  %v1292_v28 = vld [vmem:[%s1730_s1 + $0x78] sm:$0xff]   ;;  %v1301_v35 = vld [vmem:[%s1731_s0 + $0xc] ss:$20 sps:$4 sm:$0xff]  }
   0xa   :  { %1160 = vmatprep.subr.bf16.mxu1 %v1273_v9  ;;  %v1289_v25 = vld [vmem:[%s1730_s1 + $0xf0] sm:$0xff]   ;;  %v1293_v29 = vld [vmem:[%s1730_s1 + $0xf8] sm:$0xff]   ;;  %v1302_v36 = vld [vmem:[%s1730_s1 + $0x100] sm:$0xff]   ;;  %712 = vmatprep.mubr.bf16.mxu1 %v1301_v35 }
   0xb   :  { %v1290_v26 = vld [vmem:[%s1730_s1 + $0x30] sm:$0xff]   ;;  %v1294_v30 = vld [vmem:[%s1730_s1 + $0x38] sm:$0xff]   ;;  %v1303_v37 = vld [vmem:[%s1731_s0 + $0x2c] ss:$20 sps:$4 sm:$0xff]  }
   0xc   :  { %1097 = vmatpush3.bf16.msra.mxu0 %v1274_v10  ;;  %v1291_v27 = vld [vmem:[%s1730_s1 + $0xb0] sm:$0xff]   ;;  %v1295_v31 = vld [vmem:[%s1730_s1 + $0xb8] sm:$0xff]   ;;  %v1315_v42 = vld [vmem:[%s1730_s1 + $0x108] sm:$0xff]  }
   0xd   :  { %1161 = vmatpush3.bf16.msra.mxu1 %v1275_v11  ;;  %1098 = vmatprep.subr.bf16.mxu0 %v1276_v12  ;;  %v1296_v32 = vld [vmem:[%s1731_s0] ss:$20 sps:$4 sm:$0xff]   ;;  %v1298_v33 = vld [vmem:[%s1731_s0 + $0x4] ss:$20 sps:$4 sm:$0xff]   ;;  %v1299_v34 = vld [vmem:[%s1731_s0 + $0x8] ss:$20 sps:$4 sm:$0xff]  }
   0xe   :  { %1162 = vmatprep.subr.bf16.mxu1 %v1277_v13  ;;  %615 = vmatprep.mubr.bf16.mxu0 %v1298_v33  ;;  %v1305_v38 = vld [vmem:[%s1731_s0 + $0x34] ss:$20 sps:$4 sm:$0xff]   ;;  %v1308_v40 = vld [vmem:[%s1731_s0 + $0x30] ss:$20 sps:$4 sm:$0xff]   ;;  %v1314_v45 = vld [vmem:[%s1731_s0 + $0x58] ss:$20 sps:$4 sm:$0xff]  }
   0xf   :  { %v1307_v39 = vld [vmem:[%s1731_s0 + $0x28] ss:$20 sps:$4 sm:$0xff]   ;;  %v1313_v44 = vld [vmem:[%s1731_s0 + $0x50] ss:$20 sps:$4 sm:$0xff]   ;;  %v1320_v50 = vld [vmem:[%s1731_s0 + $0x78] ss:$20 sps:$4 sm:$0xff]  }
  0x10   :  { %1099 = vmatpush3.bf16.msra.mxu0 %v1278_v14  ;;  %v1309_v41 = vld [vmem:[%s1731_s0 + $0x54] ss:$20 sps:$4 sm:$0xff]   ;;  %v1311_v43 = vld [vmem:[%s1731_s0 + $0x5c] ss:$20 sps:$4 sm:$0xff]   ;;  %v1318_v48 = vld [vmem:[%s1731_s0 + $0x84] ss:$20 sps:$4 sm:$0xff]  }
  0x11   :  { %1163 = vmatpush3.bf16.msra.mxu1 %v1279_v15  ;;  %1100 = vmatprep.subr.bf16.mxu0 %v1280_v16  ;;  %v1328_v46 = vld [vmem:[%s1730_s1 + $0x110] sm:$0xff]   ;;  %v1341_v49 = vld [vmem:[%s1730_s1 + $0x118] sm:$0xff]   ;;  %v1324_v53 = vld [vmem:[%s1731_s0 + $0xac] ss:$20 sps:$4 sm:$0xff]  }
  0x12   :  { %1164 = vmatprep.subr.bf16.mxu1 %v1281_v17  ;;  %v1316_v47 = vld [vmem:[%s1731_s0 + $0x7c] ss:$20 sps:$4 sm:$0xff]   ;;  %v1321_v51 = vld [vmem:[%s1731_s0 + $0x80] ss:$20 sps:$4 sm:$0xff]   ;;  %v1322_v52 = vld [vmem:[%s1731_s0 + $0xa4] ss:$20 sps:$4 sm:$0xff]  }
  0x13   :  { %v1326_v54 = vld [vmem:[%s1731_s0 + $0xa0] ss:$20 sps:$4 sm:$0xff]   ;;  %v1327_v55 = vld [vmem:[%s1731_s0 + $0xa8] ss:$20 sps:$4 sm:$0xff]   ;;  %v1334_v59 = vld [vmem:[%s1731_s0 + $0xd0] ss:$20 sps:$4 sm:$0xff]  }
  0x14   :  { %1101 = vmatpush3.bf16.msra.mxu0 %v1282_v18  ;;  %v1329_v56 = vld [vmem:[%s1731_s0 + $0xcc] ss:$20 sps:$4 sm:$0xff]   ;;  %v1331_v57 = vld [vmem:[%s1731_s0 + $0xd4] ss:$20 sps:$4 sm:$0xff]   ;;  %v1337_v61 = vld [vmem:[%s1731_s0 + $0xfc] ss:$20 sps:$4 sm:$0xff]  }
  0x15   :  { %1165 = vmatpush3.bf16.msra.mxu1 %v1283_v19  ;;  %1102 = vmatprep.subr.bf16.mxu0 %v1284_v20  ;;  %v1333_v58 = vld [vmem:[%s1731_s0 + $0xc8] ss:$20 sps:$4 sm:$0xff]   ;;  %v1339_v62 = vld [vmem:[%s1731_s0 + $0xf0] ss:$20 sps:$4 sm:$0xff]   ;;  %v1340_v63 = vld [vmem:[%s1731_s0 + $0xf8] ss:$20 sps:$4 sm:$0xff]  }
  0x16   :  { %1166 = vmatprep.subr.bf16.mxu1 %v1285_v21  ;;  %v1335_v60 = vld [vmem:[%s1731_s0 + $0xf4] ss:$20 sps:$4 sm:$0xff]   ;;  %v1342_v0 = vld [vmem:[%s1731_s0 + $0x11c] ss:$20 sps:$4 sm:$0xff]   ;;  %v1344_v1 = vld [vmem:[%s1731_s0 + $0x124] ss:$20 sps:$4 sm:$0xff]  }
  0x17   :  { %v1346_v2 = vld [vmem:[%s1731_s0 + $0x118] ss:$20 sps:$4 sm:$0xff]   ;;  %v1347_v3 = vld [vmem:[%s1731_s0 + $0x120] ss:$20 sps:$4 sm:$0xff]   ;;  %v1348_v4 = vld [vmem:[%s1731_s0 + $0x10] ss:$20 sps:$4 sm:$0xff]  }
  0x18   :  { %1103 = vmatpush3.bf16.msra.mxu0 %v1286_v22  ;;  %v1349_v5 = vld [vmem:[%s1731_s0 + $0xb0] ss:$20 sps:$4 sm:$0xff]   ;;  %v1350_v6 = vld [vmem:[%s1731_s0 + $0x38] ss:$20 sps:$4 sm:$0xff]   ;;  %v1352_v8 = vld [vmem:[%s1731_s0 + $0x60] ss:$20 sps:$4 sm:$0xff]  }
  0x19   :  { %1167 = vmatpush3.bf16.msra.mxu1 %v1287_v23  ;;  %1104 = vmatprep.subr.bf16.mxu0 %v1288_v24  ;;  %v1351_v7 = vld [vmem:[%s1731_s0 + $0xd8] ss:$20 sps:$4 sm:$0xff]   ;;  %v1353_v9 = vld [vmem:[%s1731_s0 + $0x100] ss:$20 sps:$4 sm:$0xff]   ;;  %v1354_v10 = vld [vmem:[%s1731_s0 + $0x88] ss:$20 sps:$4 sm:$0xff]  }
  0x1a   :  { %1168 = vmatprep.subr.bf16.mxu1 %v1289_v25  ;;  %v1355_v11 = vld [vmem:[%s1731_s0 + $0x128] ss:$20 sps:$4 sm:$0xff]   ;;  %v1615_v14 = vld [vmem:[%s1732_s2] ss:$0 sm:$0xff] }
  0x1c   :  { %1105 = vmatpush3.bf16.msra.mxu0 %v1290_v26 }
  0x1d   :  { %1169 = vmatpush3.bf16.msra.mxu1 %v1291_v27  ;;  %1106 = vmatprep.subr.bf16.mxu0 %v1292_v28 }
  0x1e   :  { %1170 = vmatprep.subr.bf16.mxu1 %v1293_v29 }
  0x20   :  { %1107 = vmatpush3.bf16.msra.mxu0 %v1294_v30 }
  0x21   :  { %1171 = vmatpush3.bf16.msra.mxu1 %v1295_v31  ;;  %1232 = vmatprep.subr.bf16.mxu0 %v1302_v36 }
  0x22   :  { %1256 = vmatprep.subr.bf16.mxu1 %v1302_v36 }
  0x23   :  { %616 = vmatmul.mubr.bf16.vlgmr.msra.gmra.mrb[0].mxu0 %v1296_v32 }
  0x24   :  { %713 = vmatmul.mubr.bf16.vlgmr.msra.gmra.mrb[0].mxu1 %v1299_v34  ;;  %1233 = vmatpush3.bf16.msra.mxu0 %v1302_v36 }
  0x25   :  { %1260 = vmatpush3.bf16.msra.mxu1 %v1302_v36  ;;  %623 = vmatprep.mubr.bf16.mxu0 %v1303_v37 }
  0x26   :  { %720 = vmatprep.mubr.bf16.mxu1 %v1305_v38  ;;  %1234 = vmatprep.subr.bf16.mxu0 %v1315_v42 }
  0x27   :  { %1257 = vmatprep.subr.bf16.mxu1 %v1315_v42 }
  0x28   :  { %1235 = vmatpush3.bf16.msra.mxu0 %v1315_v42 }
  0x29   :  { %1261 = vmatpush3.bf16.msra.mxu1 %v1315_v42  ;;  %1236 = vmatprep.subr.bf16.mxu0 %v1328_v46 }
  0x2a   :  { %1258 = vmatprep.subr.bf16.mxu1 %v1328_v46 }
  0x2b   :  { %624 = vmatmul.mubr.bf16.gmra.mrb[4].mxu0 %v1307_v39 }
  0x2c   :  { %721 = vmatmul.mubr.bf16.gmra.mrb[4].mxu1 %v1308_v40  ;;  %631 = vmatprep.mubr.bf16.mxu0 %v1309_v41 }
  0x2d   :  { %728 = vmatprep.mubr.bf16.mxu1 %v1311_v43  ;;  %1237 = vmatpush3.bf16.msra.mxu0 %v1328_v46 }
  0x2e   :  { %1262 = vmatpush3.bf16.msra.mxu1 %v1328_v46  ;;  %1238 = vmatprep.subr.bf16.mxu0 %v1341_v49 }
  0x2f   :  { %1259 = vmatprep.subr.bf16.mxu1 %v1341_v49 }
  0x31   :  { %1239 = vmatpush3.bf16.msra.mxu0 %v1341_v49 }
  0x32   :  { %1263 = vmatpush3.bf16.msra.mxu1 %v1341_v49 }
  0x33   :  { %632 = vmatmul.mubr.bf16.gmra.mrb[8].mxu0 %v1313_v44 }
  0x34   :  { %729 = vmatmul.mubr.bf16.gmra.mrb[8].mxu1 %v1314_v45  ;;  %639 = vmatprep.mubr.bf16.mxu0 %v1316_v47 }
  0x35   :  { %736 = vmatprep.mubr.bf16.mxu1 %v1318_v48 }
  0x3b   :  { %640 = vmatmul.mubr.bf16.gmra.mrb[12].mxu0 %v1320_v50 }
  0x3c   :  { %737 = vmatmul.mubr.bf16.gmra.mrb[12].mxu1 %v1321_v51  ;;  %647 = vmatprep.mubr.bf16.mxu0 %v1322_v52 }
  0x3d   :  { %744 = vmatprep.mubr.bf16.mxu1 %v1324_v53 }
  0x43   :  { %648 = vmatmul.mubr.bf16.gmra.mrb[16].mxu0 %v1326_v54 }
  0x44   :  { %745 = vmatmul.mubr.bf16.gmra.mrb[16].mxu1 %v1327_v55  ;;  %655 = vmatprep.mubr.bf16.mxu0 %v1329_v56 }
  0x45   :  { %752 = vmatprep.mubr.bf16.mxu1 %v1331_v57 }
  0x4b   :  { %656 = vmatmul.mubr.bf16.gmra.mrb[20].mxu0 %v1333_v58 }
  0x4c   :  { %753 = vmatmul.mubr.bf16.gmra.mrb[20].mxu1 %v1334_v59  ;;  %663 = vmatprep.mubr.bf16.mxu0 %v1335_v60 }
  0x4d   :  { %760 = vmatprep.mubr.bf16.mxu1 %v1337_v61 }
  0x53   :  { %664 = vmatmul.mubr.bf16.gmra.mrb[24].mxu0 %v1339_v62 }
  0x54   :  { %761 = vmatmul.mubr.bf16.gmra.mrb[24].mxu1 %v1340_v63  ;;  %671 = vmatprep.mubr.bf16.mxu0 %v1342_v0 }
  0x55   :  { %768 = vmatprep.mubr.bf16.mxu1 %v1344_v1 }
  0x5b   :  { %672 = vmatmul.mubr.bf16.gmra.mrb[28].mxu0 %v1346_v2 }
  0x5c   :  { %769 = vmatmul.mubr.bf16.gmra.mrb[28].mxu1 %v1347_v3  ;;  %1240 = vmatprep.mubr.msk.bf16.mxu0 %vm558_vm0, %v1348_v4 }
  0x5d   :  { %1248 = vmatprep.mubr.msk.bf16.mxu1 %vm558_vm0, %v1349_v5 }
  0x63   :  { %1241 = vmatmul.mubr.msk.bf16.vlgmr.msra.gmra.mrb[32].mxu0 %vm558_vm0, %v1350_v6 }
  0x64   :  { %1249 = vmatmul.mubr.msk.bf16.vlgmr.msra.gmra.mrb[32].mxu1 %vm558_vm0, %v1351_v7  ;;  %1244 = vmatprep.mubr.msk.bf16.mxu0 %vm558_vm0, %v1352_v8 }
  0x65   :  { %1252 = vmatprep.mubr.msk.bf16.mxu1 %vm558_vm0, %v1353_v9 }
  0x6b   :  { %1245 = vmatmul.mubr.msk.bf16.gmra.mrb[36].mxu0 %vm558_vm0, %v1354_v10 }
  0x6c   :  { %1253 = vmatmul.mubr.msk.bf16.gmra.mrb[36].mxu1 %vm558_vm0, %v1355_v11 }
  0xf6   :  { %v1108_v12 = vpop.f32.mrb[0].mxu0 }
  0xf7   :  { %v1172_v13 = vpop.f32.mrb[0].mxu1  ;;  %v1109_v15 = vpop.f32.mrb[1].mxu0 }
  0xf8   :  { %v1110_v16 = vadd.f32 %v1109_v15, %v1108_v12  ;;  %v1173_v17 = vpop.f32.mrb[1].mxu1  ;;  %v1111_v18 = vpop.f32.mrb[2].mxu0 }
  0xf9   :  { %v1174_v19 = vadd.f32 %v1173_v17, %v1172_v13  ;;  %v1175_v20 = vpop.f32.mrb[2].mxu1  ;;  %v1112_v21 = vpop.f32.mrb[3].mxu0 }
  0xfa   :  { %v618_v22 = vadd.f32 %v1110_v16, %v1615_v14  ;;  %v1113_v23 = vadd.f32 %v1112_v21, %v1111_v18  ;;  %v1176_v24 = vpop.f32.mrb[3].mxu1 }
  0xfb   :  { %v1177_v25 = vadd.f32 %v1176_v24, %v1175_v20 }
  0xfc   :  { %v621_v26 = vadd.f32 %v1113_v23, %v1615_v14  ;;  %v1619_v27 = vadd.f32 %v1174_v19, %v618_v22 }
  0xfe   :  { %v1114_v28 = vpop.f32.mrb[4].mxu0  ;;  %v1621_v29 = vadd.f32 %v1177_v25, %v621_v26 }
  0xff   :  { %v1178_v30 = vpop.f32.mrb[4].mxu1  ;;  %v1115_v31 = vpop.f32.mrb[5].mxu0 }
 0x100   :  { %v1116_v32 = vadd.f32 %v1115_v31, %v1114_v28  ;;  %v1179_v33 = vpop.f32.mrb[5].mxu1  ;;  %v1117_v34 = vpop.f32.mrb[6].mxu0 }
 0x101   :  { %v1180_v35 = vadd.f32 %v1179_v33, %v1178_v30  ;;  %v1181_v36 = vpop.f32.mrb[6].mxu1  ;;  %v1118_v37 = vpop.f32.mrb[7].mxu0 }
 0x102   :  { %v626_v38 = vadd.f32 %v1116_v32, %v1615_v14  ;;  %v1119_v39 = vadd.f32 %v1118_v37, %v1117_v34  ;;  %v1182_v40 = vpop.f32.mrb[7].mxu1 }
 0x103   :  { %v1183_v41 = vadd.f32 %v1182_v40, %v1181_v36 }
 0x104   :  { %v629_v42 = vadd.f32 %v1119_v39, %v1615_v14  ;;  %v1625_v43 = vadd.f32 %v1180_v35, %v626_v38 }
 0x106   :  { %v1120_v44 = vpop.f32.mrb[8].mxu0  ;;  %v1627_v45 = vadd.f32 %v1183_v41, %v629_v42 }
 0x107   :  { %v1184_v46 = vpop.f32.mrb[8].mxu1  ;;  %v1121_v47 = vpop.f32.mrb[9].mxu0 }
 0x108   :  { %v1122_v48 = vadd.f32 %v1121_v47, %v1120_v44  ;;  %v1185_v49 = vpop.f32.mrb[9].mxu1  ;;  %v1123_v50 = vpop.f32.mrb[10].mxu0 }
 0x109   :  { %v1186_v51 = vadd.f32 %v1185_v49, %v1184_v46  ;;  %v1187_v52 = vpop.f32.mrb[10].mxu1  ;;  %v1124_v53 = vpop.f32.mrb[11].mxu0 }
 0x10a   :  { %v634_v54 = vadd.f32 %v1122_v48, %v1615_v14  ;;  %v1125_v55 = vadd.f32 %v1124_v53, %v1123_v50  ;;  %v1188_v56 = vpop.f32.mrb[11].mxu1 }
 0x10b   :  { %v1189_v57 = vadd.f32 %v1188_v56, %v1187_v52 }
 0x10c   :  { %v637_v58 = vadd.f32 %v1125_v55, %v1615_v14  ;;  %v1631_v59 = vadd.f32 %v1186_v51, %v634_v54 }
 0x10e   :  { %v1126_v60 = vpop.f32.mrb[12].mxu0  ;;  %v1633_v61 = vadd.f32 %v1189_v57, %v637_v58 }
 0x10f   :  { %v1190_v62 = vpop.f32.mrb[12].mxu1  ;;  %v1127_v63 = vpop.f32.mrb[13].mxu0 }
 0x110   :  { %v1128_v0 = vadd.f32 %v1127_v63, %v1126_v60  ;;  %v1191_v1 = vpop.f32.mrb[13].mxu1  ;;  %v1129_v2 = vpop.f32.mrb[14].mxu0 }
 0x111   :  { %v1192_v3 = vadd.f32 %v1191_v1, %v1190_v62  ;;  %v1193_v4 = vpop.f32.mrb[14].mxu1  ;;  %v1130_v5 = vpop.f32.mrb[15].mxu0 }
 0x112   :  { %v642_v6 = vadd.f32 %v1128_v0, %v1615_v14  ;;  %v1131_v7 = vadd.f32 %v1130_v5, %v1129_v2  ;;  %v1194_v8 = vpop.f32.mrb[15].mxu1 }
 0x113   :  { %v1195_v9 = vadd.f32 %v1194_v8, %v1193_v4 }
 0x114   :  { %v645_v10 = vadd.f32 %v1131_v7, %v1615_v14  ;;  %v1637_v11 = vadd.f32 %v1192_v3, %v642_v6 }
 0x116   :  { %v1132_v12 = vpop.f32.mrb[16].mxu0  ;;  %v1639_v13 = vadd.f32 %v1195_v9, %v645_v10 }
 0x117   :  { %v1196_v15 = vpop.f32.mrb[16].mxu1  ;;  %v1133_v16 = vpop.f32.mrb[17].mxu0 }
 0x118   :  { %v1134_v17 = vadd.f32 %v1133_v16, %v1132_v12  ;;  %v1197_v18 = vpop.f32.mrb[17].mxu1  ;;  %v1135_v19 = vpop.f32.mrb[18].mxu0 }
 0x119   :  { %v1198_v20 = vadd.f32 %v1197_v18, %v1196_v15  ;;  %v1199_v21 = vpop.f32.mrb[18].mxu1  ;;  %v1136_v22 = vpop.f32.mrb[19].mxu0 }
 0x11a   :  { %v650_v23 = vadd.f32 %v1134_v17, %v1615_v14  ;;  %v1137_v24 = vadd.f32 %v1136_v22, %v1135_v19  ;;  %v1200_v25 = vpop.f32.mrb[19].mxu1 }
 0x11b   :  { %v1201_v26 = vadd.f32 %v1200_v25, %v1199_v21 }
 0x11c   :  { %v653_v28 = vadd.f32 %v1137_v24, %v1615_v14  ;;  %v747_v30 = vadd.f32 %v1198_v20, %v650_v23 }
 0x11e   :  { %v1138_v31 = vpop.f32.mrb[20].mxu0  ;;  %v1643_v32 = vadd.f32 %v1201_v26, %v653_v28 }
 0x11f   :  { %v1202_v33 = vpop.f32.mrb[20].mxu1  ;;  %v1139_v34 = vpop.f32.mrb[21].mxu0 }
 0x120   :  { %v1140_v35 = vadd.f32 %v1139_v34, %v1138_v31  ;;  %v1203_v36 = vpop.f32.mrb[21].mxu1  ;;  %v1141_v37 = vpop.f32.mrb[22].mxu0 }
 0x121   :  { %v1204_v38 = vadd.f32 %v1203_v36, %v1202_v33  ;;  %v1205_v39 = vpop.f32.mrb[22].mxu1  ;;  %v1142_v40 = vpop.f32.mrb[23].mxu0 }
 0x122   :  { %v658_v41 = vadd.f32 %v1140_v35, %v1615_v14  ;;  %v1143_v42 = vadd.f32 %v1142_v40, %v1141_v37  ;;  %v1206_v44 = vpop.f32.mrb[23].mxu1 }
 0x123   :  { %v1207_v46 = vadd.f32 %v1206_v44, %v1205_v39 }
 0x124   :  { %v661_v47 = vadd.f32 %v1143_v42, %v1615_v14  ;;  %v755_v48 = vadd.f32 %v1204_v38, %v658_v41 }
 0x126   :  { %v1144_v49 = vpop.f32.mrb[24].mxu0  ;;  %v758_v50 = vadd.f32 %v1207_v46, %v661_v47 }
 0x127   :  { %v1208_v51 = vpop.f32.mrb[24].mxu1  ;;  %v1145_v52 = vpop.f32.mrb[25].mxu0 }
 0x128   :  { %v1146_v53 = vadd.f32 %v1145_v52, %v1144_v49  ;;  %v1209_v54 = vpop.f32.mrb[25].mxu1  ;;  %v1147_v55 = vpop.f32.mrb[26].mxu0 }
 0x129   :  { %v1210_v56 = vadd.f32 %v1209_v54, %v1208_v51  ;;  %v1211_v57 = vpop.f32.mrb[26].mxu1  ;;  %v1148_v58 = vpop.f32.mrb[27].mxu0 }
 0x12a   :  { %v666_v60 = vadd.f32 %v1146_v53, %v1615_v14  ;;  %v1149_v62 = vadd.f32 %v1148_v58, %v1147_v55  ;;  %v1212_v63 = vpop.f32.mrb[27].mxu1 }
 0x12b   :  { %v1213_v0 = vadd.f32 %v1212_v63, %v1211_v57 }
 0x12c   :  { %v669_v1 = vadd.f32 %v1149_v62, %v1615_v14  ;;  %v1649_v2 = vadd.f32 %v1210_v56, %v666_v60 }
 0x12e   :  { %v1150_v3 = vpop.f32.mrb[28].mxu0  ;;  %v1651_v4 = vadd.f32 %v1213_v0, %v669_v1 }
 0x12f   :  { %v1214_v5 = vpop.f32.mrb[28].mxu1  ;;  %v1151_v6 = vpop.f32.mrb[29].mxu0 }
 0x130   :  { %v1152_v7 = vadd.f32 %v1151_v6, %v1150_v3  ;;  %v1215_v8 = vpop.f32.mrb[29].mxu1  ;;  %v1153_v9 = vpop.f32.mrb[30].mxu0 }
 0x131   :  { %v1216_v10 = vadd.f32 %v1215_v8, %v1214_v5  ;;  %v1217_v12 = vpop.f32.mrb[30].mxu1  ;;  %v1154_v15 = vpop.f32.mrb[31].mxu0 }
 0x132   :  { %v674_v16 = vadd.f32 %v1152_v7, %v1615_v14  ;;  %v1155_v17 = vadd.f32 %v1154_v15, %v1153_v9  ;;  %v1218_v18 = vpop.f32.mrb[31].mxu1 }
 0x133   :  { %v1219_v19 = vadd.f32 %v1218_v18, %v1217_v12 }
 0x134   :  { %v677_v20 = vadd.f32 %v1155_v17, %v1615_v14  ;;  %v771_v21 = vadd.f32 %v1216_v10, %v674_v16 }
 0x136   :  { %v1242_v22 = vpop.f32.mrb[32].mxu0  ;;  %v774_v23 = vadd.f32 %v1219_v19, %v677_v20 }
 0x137   :  { %v820_v24 = vadd.f32 %v1242_v22, %v1625_v43  ;;  %v1250_v25 = vpop.f32.mrb[32].mxu1  ;;  %v811_v26 = vpop.f32.mrb[33].mxu0 }
 0x138   :  { %v852_v28 = vadd.f32 %v1250_v25, %v755_v48  ;;  %v812_v31 = vadd.f32 %v811_v26, %v1619_v27  ;;  %v843_v33 = vpop.f32.mrb[33].mxu1  ;;  %v1243_v34 = vpop.f32.mrb[34].mxu0 }
 0x139   :  { %v876_v35 = vmax.f32 %v820_v24, 0.0  ;;  %v844_v36 = vadd.f32 %v843_v33, %v747_v30  ;;  %v823_v37 = vadd.f32 %v1243_v34, %v1627_v45  ;;  %v1251_v38 = vpop.f32.mrb[34].mxu1  ;;  %v814_v39 = vpop.f32.mrb[35].mxu0 }
 0x13a   :  { %v884_v14 = vmax.f32 %v852_v28, 0.0  ;;  %v874_v40 = vmax.f32 %v812_v31, 0.0  ;;  %v855_v41 = vadd.f32 %v1251_v38, %v758_v50  ;;  %v815_v42 = vadd.f32 %v814_v39, %v1621_v29  ;;  %v846_v43 = vpop.f32.mrb[35].mxu1 }
 0x13b   :  { %v1078_v44 = vpack.c.bf16 %v876_v35, %v876_v35  ;;  %v882_v46 = vmax.f32 %v844_v36, 0.0  ;;  %v877_v47 = vmax.f32 %v823_v37, 0.0  ;;  %v847_v27 = vadd.f32 %v846_v43, %v1643_v32 }
 0x13c   :  { %v1086_v48 = vpack.c.bf16 %v884_v14, %v884_v14  ;;  %v1076_v49 = vpack.c.bf16 %v874_v40, %v874_v40  ;;  %v885_v51 = vmax.f32 %v855_v41, 0.0  ;;  %v875_v52 = vmax.f32 %v815_v42, 0.0 }
 0x13d   :  { %957 = vst.msk [vmem:[%s1733_s3 + $0x8] sm:$0xf] %vm954_vm1, %v1078_v44  ;;  %v1084_v45 = vpack.c.bf16 %v882_v46, %v882_v46  ;;  %v1079_v30 = vpack.c.bf16 %v877_v47, %v877_v47  ;;  %v883_v50 = vmax.f32 %v847_v27, 0.0 }
 0x13e   :  { %965 = vst.msk [vmem:[%s1733_s3 + $0x28] sm:$0xf] %vm954_vm1, %v1086_v48  ;;  %955 = vst.msk [vmem:[%s1733_s3] sm:$0xf] %vm954_vm1, %v1076_v49  ;;  %v1087_v29 = vpack.c.bf16 %v885_v51, %v885_v51  ;;  %v1077_v32 = vpack.c.bf16 %v875_v52, %v875_v52  ;;  %v1246_v53 = vpop.f32.mrb[36].mxu0 }
 0x13f   :  { %963 = vst.msk [vmem:[%s1733_s3 + $0x20] sm:$0xf] %vm954_vm1, %v1084_v45  ;;  %958 = vst.msk [vmem:[%s1733_s3 + $0xc] sm:$0xf] %vm954_vm1, %v1079_v30  ;;  %v1085_v54 = vpack.c.bf16 %v883_v50, %v883_v50  ;;  %v836_v55 = vadd.f32 %v1246_v53, %v1637_v11  ;;  %v1254_v56 = vpop.f32.mrb[36].mxu1  ;;  %v827_v57 = vpop.f32.mrb[37].mxu0 }
 0x140   :  { %966 = vst.msk [vmem:[%s1733_s3 + $0x2c] sm:$0xf] %vm954_vm1, %v1087_v29  ;;  %956 = vst.msk [vmem:[%s1733_s3 + $0x4] sm:$0xf] %vm954_vm1, %v1077_v32  ;;  %v868_v58 = vadd.f32 %v1254_v56, %v771_v21  ;;  %v828_v60 = vadd.f32 %v827_v57, %v1631_v59  ;;  %v859_v62 = vpop.f32.mrb[37].mxu1  ;;  %v1247_v63 = vpop.f32.mrb[38].mxu0 }
 0x141   :  { %964 = vst.msk [vmem:[%s1733_s3 + $0x24] sm:$0xf] %vm954_vm1, %v1085_v54  ;;  %v880_v11 = vmax.f32 %v836_v55, 0.0  ;;  %v860_v0 = vadd.f32 %v859_v62, %v1649_v2  ;;  %v839_v1 = vadd.f32 %v1247_v63, %v1639_v13  ;;  %v1255_v3 = vpop.f32.mrb[38].mxu1  ;;  %v830_v5 = vpop.f32.mrb[39].mxu0 }
 0x142   :  { %v888_v6 = vmax.f32 %v868_v58, 0.0  ;;  %v878_v7 = vmax.f32 %v828_v60, 0.0  ;;  %v871_v8 = vadd.f32 %v1255_v3, %v774_v23  ;;  %v831_v9 = vadd.f32 %v830_v5, %v1633_v61  ;;  %v862_v59 = vpop.f32.mrb[39].mxu1 }
 0x143   :  { %v1082_v10 = vpack.c.bf16 %v880_v11, %v880_v11  ;;  %v886_v12 = vmax.f32 %v860_v0, 0.0  ;;  %v881_v15 = vmax.f32 %v839_v1, 0.0  ;;  %v863_v16 = vadd.f32 %v862_v59, %v1651_v4 }
 0x144   :  { %v1090_v17 = vpack.c.bf16 %v888_v6, %v888_v6  ;;  %v1080_v18 = vpack.c.bf16 %v878_v7, %v878_v7  ;;  %v889_v19 = vmax.f32 %v871_v8, 0.0  ;;  %v879_v20 = vmax.f32 %v831_v9, 0.0 }
 0x145   :  { %961 = vst.msk [vmem:[%s1733_s3 + $0x18] sm:$0xf] %vm954_vm1, %v1082_v10  ;;  %v1088_v13 = vpack.c.bf16 %v886_v12, %v886_v12  ;;  %v1083_v2 = vpack.c.bf16 %v881_v15, %v881_v15  ;;  %v887_v21 = vmax.f32 %v863_v16, 0.0 }
 0x146   :  { %969 = vst.msk [vmem:[%s1733_s3 + $0x38] sm:$0xf] %vm954_vm1, %v1090_v17  ;;  %959 = vst.msk [vmem:[%s1733_s3 + $0x10] sm:$0xf] %vm954_vm1, %v1080_v18  ;;  %v1091_v61 = vpack.c.bf16 %v889_v19, %v889_v19  ;;  %v1081_v4 = vpack.c.bf16 %v879_v20, %v879_v20 }
 0x147   :  { %967 = vst.msk [vmem:[%s1733_s3 + $0x30] sm:$0xf] %vm954_vm1, %v1088_v13  ;;  %962 = vst.msk [vmem:[%s1733_s3 + $0x1c] sm:$0xf] %vm954_vm1, %v1083_v2  ;;  %v1089_v22 = vpack.c.bf16 %v887_v21, %v887_v21 }
 0x148   :  { %970 = vst.msk [vmem:[%s1733_s3 + $0x3c] sm:$0xf] %vm954_vm1, %v1091_v61  ;;  %960 = vst.msk [vmem:[%s1733_s3 + $0x14] sm:$0xf] %vm954_vm1, %v1081_v4 }
 0x149   :  { %968 = vst.msk [vmem:[%s1733_s3 + $0x34] sm:$0xf] %vm954_vm1, %v1089_v22 }

// kernel: colornet_forward.26
= control target key start
LH: loop header
LB: loop body
LE: loop exit
PB: predicated region body
PF: predicated region fallthrough
CT: control target
= control target key end

     0   :  { %vm1537_vm0 = vcmask 523264   ;;  %vm1777_vm1 = vcmask 519168   ;;  %s3233_s1 = inlined_call_operand.vmem [shape: bf16[1152,64], index: 1, kind: input, shape index: {}]   ;;  %s3234_s0 = inlined_call_operand.vmem [shape: bf16[128,1152], index: 0, kind: input, shape index: {}]   ;;  %s3235_s2 = inlined_call_operand.vmem [shape: f32[1,64], index: 2, kind: input, shape index: {}]   ;;  %s3236_s3 = inlined_call_operand.vmem [shape: f32[1,64], index: 3, kind: input, shape index: {}]   ;;  %s3237_s4 = inlined_call_operand.vmem [shape: f32[1,64], index: 4, kind: input, shape index: {}]   ;;  %s3238_s5 = inlined_call_operand.vmem [shape: bf16[128,64], index: 5, kind: output, shape index: {}]  }
   0x1   :  { %v2296_v0 = vld [vmem:[%s3233_s1 + $0x40] sm:$0xff]   ;;  %v2300_v4 = vld [vmem:[%s3233_s1 + $0x48] sm:$0xff]   ;;  %v2304_v8 = vld [vmem:[%s3233_s1 + $0x50] sm:$0xff]  }
   0x2   :  { %v2297_v1 = vld [vmem:[%s3233_s1 + $0xc0] sm:$0xff]   ;;  %1976 = vmatprep.subr.bf16.mxu0 %v2296_v0  ;;  %v2301_v5 = vld [vmem:[%s3233_s1 + $0xc8] sm:$0xff]   ;;  %v2305_v9 = vld [vmem:[%s3233_s1 + $0xd0] sm:$0xff]  }
   0x3   :  { %v2298_v2 = vld [vmem:[%s3233_s1] sm:$0xff]   ;;  %2040 = vmatprep.subr.bf16.mxu1 %v2297_v1  ;;  %v2302_v6 = vld [vmem:[%s3233_s1 + $0x8] sm:$0xff]   ;;  %v2306_v10 = vld [vmem:[%s3233_s1 + $0x10] sm:$0xff]  }
   0x4   :  { %v2299_v3 = vld [vmem:[%s3233_s1 + $0x80] sm:$0xff]   ;;  %1977 = vmatpush3.bf16.msra.mxu0 %v2298_v2  ;;  %v2303_v7 = vld [vmem:[%s3233_s1 + $0x88] sm:$0xff]   ;;  %v2307_v11 = vld [vmem:[%s3233_s1 + $0x90] sm:$0xff]  }
   0x5   :  { %2041 = vmatpush3.bf16.msra.mxu1 %v2299_v3  ;;  %1978 = vmatprep.subr.bf16.mxu0 %v2300_v4  ;;  %v2308_v12 = vld [vmem:[%s3233_s1 + $0x58] sm:$0xff]   ;;  %v2312_v16 = vld [vmem:[%s3233_s1 + $0x60] sm:$0xff]   ;;  %v2316_v20 = vld [vmem:[%s3233_s1 + $0x68] sm:$0xff]  }
   0x6   :  { %2042 = vmatprep.subr.bf16.mxu1 %v2301_v5  ;;  %v2309_v13 = vld [vmem:[%s3233_s1 + $0xd8] sm:$0xff]   ;;  %v2313_v17 = vld [vmem:[%s3233_s1 + $0xe0] sm:$0xff]   ;;  %v2317_v21 = vld [vmem:[%s3233_s1 + $0xe8] sm:$0xff]  }
   0x7   :  { %v2310_v14 = vld [vmem:[%s3233_s1 + $0x18] sm:$0xff]   ;;  %v2314_v18 = vld [vmem:[%s3233_s1 + $0x20] sm:$0xff]   ;;  %v2318_v22 = vld [vmem:[%s3233_s1 + $0x28] sm:$0xff]  }
   0x8   :  { %1979 = vmatpush3.bf16.msra.mxu0 %v2302_v6  ;;  %v2311_v15 = vld [vmem:[%s3233_s1 + $0x98] sm:$0xff]   ;;  %v2315_v19 = vld [vmem:[%s3233_s1 + $0xa0] sm:$0xff]   ;;  %v2319_v23 = vld [vmem:[%s3233_s1 + $0xa8] sm:$0xff]  }
   0x9   :  { %2043 = vmatpush3.bf16.msra.mxu1 %v2303_v7  ;;  %1980 = vmatprep.subr.bf16.mxu0 %v2304_v8  ;;  %v2320_v24 = vld [vmem:[%s3233_s1 + $0x70] sm:$0xff]   ;;  %v2324_v28 = vld [vmem:[%s3233_s1 + $0x78] sm:$0xff]   ;;  %v2328_v32 = vld [vmem:[%s3234_s0] ss:$36 sps:$4 sm:$0xff]  }
   0xa   :  { %2044 = vmatprep.subr.bf16.mxu1 %v2305_v9  ;;  %v2321_v25 = vld [vmem:[%s3233_s1 + $0xf0] sm:$0xff]   ;;  %v2325_v29 = vld [vmem:[%s3233_s1 + $0xf8] sm:$0xff]   ;;  %v2330_v33 = vld [vmem:[%s3234_s0 + $0x4] ss:$36 sps:$4 sm:$0xff]  }
   0xb   :  { %v2322_v26 = vld [vmem:[%s3233_s1 + $0x30] sm:$0xff]   ;;  %v2326_v30 = vld [vmem:[%s3233_s1 + $0x38] sm:$0xff]   ;;  %v2331_v34 = vld [vmem:[%s3234_s0 + $0x8] ss:$36 sps:$4 sm:$0xff]   ;;  %1084 = vmatprep.mubr.bf16.mxu0 %v2330_v33 }
   0xc   :  { %1981 = vmatpush3.bf16.msra.mxu0 %v2306_v10  ;;  %v2323_v27 = vld [vmem:[%s3233_s1 + $0xb0] sm:$0xff]   ;;  %v2327_v31 = vld [vmem:[%s3233_s1 + $0xb8] sm:$0xff]   ;;  %v2334_v36 = vld [vmem:[%s3233_s1 + $0x140] sm:$0xff]  }
   0xd   :  { %2045 = vmatpush3.bf16.msra.mxu1 %v2307_v11  ;;  %1982 = vmatprep.subr.bf16.mxu0 %v2308_v12  ;;  %v2333_v35 = vld [vmem:[%s3234_s0 + $0xc] ss:$36 sps:$4 sm:$0xff]   ;;  %v2335_v37 = vld [vmem:[%s3233_s1 + $0x100] sm:$0xff]   ;;  %v2338_v39 = vld [vmem:[%s3234_s0 + $0x54] ss:$36 sps:$4 sm:$0xff]  }
   0xe   :  { %2046 = vmatprep.subr.bf16.mxu1 %v2309_v13  ;;  %1181 = vmatprep.mubr.bf16.mxu1 %v2333_v35  ;;  %v2336_v38 = vld [vmem:[%s3234_s0 + $0x4c] ss:$36 sps:$4 sm:$0xff]   ;;  %v2344_v44 = vld [vmem:[%s3234_s0 + $0x94] ss:$36 sps:$4 sm:$0xff]   ;;  %v2346_v45 = vld [vmem:[%s3234_s0 + $0x9c] ss:$36 sps:$4 sm:$0xff]  }
   0xf   :  { %v2340_v40 = vld [vmem:[%s3234_s0 + $0x48] ss:$36 sps:$4 sm:$0xff]   ;;  %v2341_v41 = vld [vmem:[%s3234_s0 + $0x50] ss:$36 sps:$4 sm:$0xff]   ;;  %v2351_v47 = vld [vmem:[%s3233_s1 + $0x1c0] sm:$0xff]  }
  0x10   :  { %1983 = vmatpush3.bf16.msra.mxu0 %v2310_v14  ;;  %v2342_v42 = vld [vmem:[%s3233_s1 + $0x148] sm:$0xff]   ;;  %v2350_v46 = vld [vmem:[%s3233_s1 + $0x150] sm:$0xff]   ;;  %v2353_v50 = vld [vmem:[%s3233_s1 + $0x180] sm:$0xff]  }
  0x11   :  { %2047 = vmatpush3.bf16.msra.mxu1 %v2311_v15  ;;  %1984 = vmatprep.subr.bf16.mxu0 %v2312_v16  ;;  %v2343_v43 = vld [vmem:[%s3233_s1 + $0x108] sm:$0xff]   ;;  %v2348_v48 = vld [vmem:[%s3234_s0 + $0x90] ss:$36 sps:$4 sm:$0xff]   ;;  %v2349_v51 = vld [vmem:[%s3234_s0 + $0x98] ss:$36 sps:$4 sm:$0xff]  }
  0x12   :  { %2048 = vmatprep.subr.bf16.mxu1 %v2313_v17  ;;  %v2352_v49 = vld [vmem:[%s3233_s1 + $0x110] sm:$0xff]   ;;  %v2354_v52 = vld [vmem:[%s3234_s0 + $0xdc] ss:$36 sps:$4 sm:$0xff]   ;;  %v2356_v53 = vld [vmem:[%s3234_s0 + $0xe4] ss:$36 sps:$4 sm:$0xff]  }
  0x13   :  { %v2360_v54 = vld [vmem:[%s3233_s1 + $0x158] sm:$0xff]   ;;  %v2361_v55 = vld [vmem:[%s3233_s1 + $0x1c8] sm:$0xff]   ;;  %v2359_v59 = vld [vmem:[%s3234_s0 + $0xe0] ss:$36 sps:$4 sm:$0xff]  }
  0x14   :  { %1985 = vmatpush3.bf16.msra.mxu0 %v2314_v18  ;;  %v2362_v56 = vld [vmem:[%s3233_s1 + $0x118] sm:$0xff]   ;;  %v2363_v57 = vld [vmem:[%s3233_s1 + $0x188] sm:$0xff]   ;;  %v2370_v62 = vld [vmem:[%s3233_s1 + $0x160] sm:$0xff]  }
  0x15   :  { %2049 = vmatpush3.bf16.msra.mxu1 %v2315_v19  ;;  %1986 = vmatprep.subr.bf16.mxu0 %v2316_v20  ;;  %v2358_v58 = vld [vmem:[%s3234_s0 + $0xd8] ss:$36 sps:$4 sm:$0xff]   ;;  %v2364_v60 = vld [vmem:[%s3234_s0 + $0x124] ss:$36 sps:$4 sm:$0xff]   ;;  %v2366_v61 = vld [vmem:[%s3234_s0 + $0x12c] ss:$36 sps:$4 sm:$0xff]  }
  0x16   :  { %2050 = vmatprep.subr.bf16.mxu1 %v2317_v21  ;;  %v2371_v63 = vld [vmem:[%s3233_s1 + $0x1d0] sm:$0xff]   ;;  %v2372_v0 = vld [vmem:[%s3233_s1 + $0x120] sm:$0xff]   ;;  %v2369_v3 = vld [vmem:[%s3234_s0 + $0x128] ss:$36 sps:$4 sm:$0xff]  }
  0x17   :  { %v2373_v1 = vld [vmem:[%s3233_s1 + $0x190] sm:$0xff]   ;;  %v2368_v2 = vld [vmem:[%s3234_s0 + $0x120] ss:$36 sps:$4 sm:$0xff]   ;;  %v2380_v6 = vld [vmem:[%s3233_s1 + $0x168] sm:$0xff]  }
  0x18   :  { %1987 = vmatpush3.bf16.msra.mxu0 %v2318_v22  ;;  %v2374_v4 = vld [vmem:[%s3234_s0 + $0x16c] ss:$36 sps:$4 sm:$0xff]   ;;  %v2376_v5 = vld [vmem:[%s3234_s0 + $0x174] ss:$36 sps:$4 sm:$0xff]   ;;  %v2386_v14 = vld [vmem:[%s3234_s0 + $0x1bc] ss:$36 sps:$4 sm:$0xff]  }
  0x19   :  { %2051 = vmatpush3.bf16.msra.mxu1 %v2319_v23  ;;  %1988 = vmatprep.subr.bf16.mxu0 %v2320_v24  ;;  %v2381_v7 = vld [vmem:[%s3233_s1 + $0x1d8] sm:$0xff]   ;;  %v2382_v8 = vld [vmem:[%s3233_s1 + $0x128] sm:$0xff]   ;;  %v2379_v11 = vld [vmem:[%s3234_s0 + $0x170] ss:$36 sps:$4 sm:$0xff]  }
  0x1a   :  { %2052 = vmatprep.subr.bf16.mxu1 %v2321_v25  ;;  %v2383_v9 = vld [vmem:[%s3233_s1 + $0x198] sm:$0xff]   ;;  %v2378_v10 = vld [vmem:[%s3234_s0 + $0x168] ss:$36 sps:$4 sm:$0xff]   ;;  %v2390_v13 = vld [vmem:[%s3233_s1 + $0x170] sm:$0xff]  }
  0x1b   :  { %v2384_v12 = vld [vmem:[%s3234_s0 + $0x1b4] ss:$36 sps:$4 sm:$0xff]   ;;  %v2391_v15 = vld [vmem:[%s3233_s1 + $0x1e0] sm:$0xff]   ;;  %v2394_v18 = vld [vmem:[%s3233_s1 + $0x1e8] sm:$0xff]  }
  0x1c   :  { %1989 = vmatpush3.bf16.msra.mxu0 %v2322_v26  ;;  %v2392_v16 = vld [vmem:[%s3233_s1 + $0x130] sm:$0xff]   ;;  %v2393_v17 = vld [vmem:[%s3233_s1 + $0x1a0] sm:$0xff]   ;;  %v2395_v19 = vld [vmem:[%s3233_s1 + $0x1a8] sm:$0xff]  }
  0x1d   :  { %2053 = vmatpush3.bf16.msra.mxu1 %v2323_v27  ;;  %1990 = vmatprep.subr.bf16.mxu0 %v2324_v28  ;;  %v2388_v20 = vld [vmem:[%s3234_s0 + $0x1b0] ss:$36 sps:$4 sm:$0xff]   ;;  %v2389_v21 = vld [vmem:[%s3234_s0 + $0x1b8] ss:$36 sps:$4 sm:$0xff]   ;;  %v2398_v23 = vld [vmem:[%s3234_s0 + $0x204] ss:$36 sps:$4 sm:$0xff]  }
  0x1e   :  { %2054 = vmatprep.subr.bf16.mxu1 %v2325_v29  ;;  %v2396_v22 = vld [vmem:[%s3234_s0 + $0x1fc] ss:$36 sps:$4 sm:$0xff]   ;;  %v2403_v25 = vld [vmem:[%s3233_s1 + $0x1f0] sm:$0xff]  }
  0x1f   :  { %v2402_v24 = vld [vmem:[%s3233_s1 + $0x178] sm:$0xff]   ;;  %v2405_v27 = vld [vmem:[%s3233_s1 + $0x1b0] sm:$0xff]  }
  0x20   :  { %1991 = vmatpush3.bf16.msra.mxu0 %v2326_v30  ;;  %v2404_v26 = vld [vmem:[%s3233_s1 + $0x138] sm:$0xff]   ;;  %v2401_v30 = vld [vmem:[%s3234_s0 + $0x200] ss:$36 sps:$4 sm:$0xff]   ;;  %v2408_v35 = vld [vmem:[%s3234_s0 + $0x10] ss:$36 sps:$4 sm:$0xff]  }
  0x21   :  { %2055 = vmatpush3.bf16.msra.mxu1 %v2327_v31  ;;  %2104 = vmatprep.subr.bf16.mxu0 %v2334_v36  ;;  %v2406_v28 = vld [vmem:[%s3233_s1 + $0x1f8] sm:$0xff]  }
  0x22   :  { %2168 = vmatprep.subr.bf16.mxu1 %v2351_v47  ;;  %v2400_v29 = vld [vmem:[%s3234_s0 + $0x1f8] ss:$36 sps:$4 sm:$0xff]   ;;  %v2426_v47 = vld [vmem:[%s3234_s0 + $0xa0] ss:$36 sps:$4 sm:$0xff]  }
  0x23   :  { %1085 = vmatmul.mubr.bf16.vlgmr.msra.gmra.mrb[0].mxu0 %v2328_v32  ;;  %v2407_v31 = vld [vmem:[%s3233_s1 + $0x1b8] sm:$0xff]   ;;  %v2414_v32 = vld [vmem:[%s3233_s1 + $0x200] sm:$0xff]  }
  0x24   :  { %1182 = vmatmul.mubr.bf16.vlgmr.msra.gmra.mrb[0].mxu1 %v2331_v34  ;;  %2105 = vmatpush3.bf16.msra.mxu0 %v2335_v37  ;;  %v2410_v33 = vld [vmem:[%s3234_s0 + $0x14] ss:$36 sps:$4 sm:$0xff]   ;;  %v2413_v34 = vld [vmem:[%s3234_s0 + $0x1c] ss:$36 sps:$4 sm:$0xff]  }
  0x25   :  { %1092 = vmatprep.mubr.bf16.mxu0 %v2336_v38  ;;  %1189 = vmatprep.mubr.bf16.mxu1 %v2338_v39  ;;  %v2411_v36 = vld [vmem:[%s3234_s0 + $0x18] ss:$36 sps:$4 sm:$0xff]   ;;  %v2417_v38 = vld [vmem:[%s3234_s0 + $0x64] ss:$36 sps:$4 sm:$0xff]  }
  0x26   :  { %2106 = vmatprep.subr.bf16.mxu0 %v2342_v42  ;;  %2169 = vmatpush3.bf16.msra.mxu1 %v2353_v50  ;;  %v2415_v37 = vld [vmem:[%s3234_s0 + $0x5c] ss:$36 sps:$4 sm:$0xff]   ;;  %v2421_v39 = vld [vmem:[%s3233_s1 + $0x208] sm:$0xff]   ;;  %v2431_v50 = vld [vmem:[%s3234_s0 + $0xf4] ss:$36 sps:$4 sm:$0xff]  }
  0x27   :  { %2170 = vmatprep.subr.bf16.mxu1 %v2361_v55  ;;  %v2420_v42 = vld [vmem:[%s3234_s0 + $0x60] ss:$36 sps:$4 sm:$0xff]   ;;  %v2436_v55 = vld [vmem:[%s3234_s0 + $0x134] ss:$36 sps:$4 sm:$0xff]  }
  0x28   :  { %2107 = vmatpush3.bf16.msra.mxu0 %v2343_v43  ;;  %v2422_v43 = vld [vmem:[%s3234_s0 + $0xa4] ss:$36 sps:$4 sm:$0xff]  }
  0x29   :  { %2108 = vmatprep.subr.bf16.mxu0 %v2350_v46  ;;  %v2442_v46 = vld [vmem:[%s3233_s1 + $0x220] sm:$0xff]  }
  0x2a   :  { %2171 = vmatpush3.bf16.msra.mxu1 %v2363_v57  ;;  %v2463_v57 = vld [vmem:[%s3233_s1 + $0x238] sm:$0xff]  }
  0x2b   :  { %1093 = vmatmul.mubr.bf16.gmra.mrb[4].mxu0 %v2340_v40  ;;  %2172 = vmatprep.subr.bf16.mxu1 %v2371_v63  ;;  %v2428_v40 = vld [vmem:[%s3233_s1 + $0x210] sm:$0xff]   ;;  %v2448_v63 = vld [vmem:[%s3234_s0 + $0x180] ss:$36 sps:$4 sm:$0xff]  }
  0x2c   :  { %1190 = vmatmul.mubr.bf16.gmra.mrb[4].mxu1 %v2341_v41  ;;  %1100 = vmatprep.mubr.bf16.mxu0 %v2344_v44  ;;  %v2419_v41 = vld [vmem:[%s3234_s0 + $0x58] ss:$36 sps:$4 sm:$0xff]   ;;  %v2424_v44 = vld [vmem:[%s3234_s0 + $0xac] ss:$36 sps:$4 sm:$0xff]  }
  0x2d   :  { %1197 = vmatprep.mubr.bf16.mxu1 %v2346_v45  ;;  %2109 = vmatpush3.bf16.msra.mxu0 %v2352_v49  ;;  %v2435_v45 = vld [vmem:[%s3233_s1 + $0x218] sm:$0xff]   ;;  %v2429_v49 = vld [vmem:[%s3234_s0 + $0xec] ss:$36 sps:$4 sm:$0xff]  }
  0x2e   :  { %2110 = vmatprep.subr.bf16.mxu0 %v2360_v54  ;;  %2173 = vmatpush3.bf16.msra.mxu1 %v2373_v1  ;;  %v2434_v54 = vld [vmem:[%s3234_s0 + $0xf0] ss:$36 sps:$4 sm:$0xff]  }
  0x2f   :  { %2174 = vmatprep.subr.bf16.mxu1 %v2381_v7  ;;  %v2452_v1 = vld [vmem:[%s3234_s0 + $0x1cc] ss:$36 sps:$4 sm:$0xff]  }
  0x30   :  { %v2462_v7 = vld [vmem:[%s3234_s0 + $0x210] ss:$36 sps:$4 sm:$0xff]  }
  0x31   :  { %2111 = vmatpush3.bf16.msra.mxu0 %v2362_v56  ;;  %v2438_v56 = vld [vmem:[%s3234_s0 + $0x13c] ss:$36 sps:$4 sm:$0xff]  }
  0x32   :  { %2112 = vmatprep.subr.bf16.mxu0 %v2370_v62  ;;  %2175 = vmatpush3.bf16.msra.mxu1 %v2383_v9  ;;  %v2447_v62 = vld [vmem:[%s3234_s0 + $0x178] ss:$36 sps:$4 sm:$0xff]   ;;  %v2465_v9 = vld [vmem:[%s3234_s0 + $0x140] ss:$36 sps:$4 sm:$0xff]  }
  0x33   :  { %1101 = vmatmul.mubr.bf16.gmra.mrb[8].mxu0 %v2348_v48  ;;  %2176 = vmatprep.subr.bf16.mxu1 %v2391_v15  ;;  %v2427_v48 = vld [vmem:[%s3234_s0 + $0xa8] ss:$36 sps:$4 sm:$0xff]   ;;  %v2471_v15 = vld [vmem:[%s3234_s0 + $0x218] ss:$36 sps:$4 sm:$0xff]  }
  0x34   :  { %1198 = vmatmul.mubr.bf16.gmra.mrb[8].mxu1 %v2349_v51  ;;  %1108 = vmatprep.mubr.bf16.mxu0 %v2354_v52  ;;  %v2449_v51 = vld [vmem:[%s3233_s1 + $0x228] sm:$0xff]  }
  0x35   :  { %1205 = vmatprep.mubr.bf16.mxu1 %v2356_v53  ;;  %2113 = vmatpush3.bf16.msra.mxu0 %v2372_v0  ;;  %v2433_v52 = vld [vmem:[%s3234_s0 + $0xe8] ss:$36 sps:$4 sm:$0xff]   ;;  %v2456_v53 = vld [vmem:[%s3233_s1 + $0x230] sm:$0xff]  }
  0x36   :  { %2114 = vmatprep.subr.bf16.mxu0 %v2380_v6  ;;  %2177 = vmatpush3.bf16.msra.mxu1 %v2393_v17  ;;  %v2450_v0 = vld [vmem:[%s3234_s0 + $0x1c4] ss:$36 sps:$4 sm:$0xff]   ;;  %v2939_v17 = vld [vmem:[%s3235_s2] ss:$0 sm:$0xff] }
  0x37   :  { %2178 = vmatprep.subr.bf16.mxu1 %v2394_v18  ;;  %v2461_v6 = vld [vmem:[%s3234_s0 + $0x208] ss:$36 sps:$4 sm:$0xff]  }
  0x39   :  { %2115 = vmatpush3.bf16.msra.mxu0 %v2382_v8  ;;  %v2464_v8 = vld [vmem:[%s3234_s0 + $0x20] ss:$36 sps:$4 sm:$0xff]  }
  0x3a   :  { %2116 = vmatprep.subr.bf16.mxu0 %v2390_v13  ;;  %2179 = vmatpush3.bf16.msra.mxu1 %v2395_v19  ;;  %v2469_v13 = vld [vmem:[%s3234_s0 + $0x1d0] ss:$36 sps:$4 sm:$0xff]  }
  0x3b   :  { %1109 = vmatmul.mubr.bf16.gmra.mrb[12].mxu0 %v2358_v58  ;;  %2180 = vmatprep.subr.bf16.mxu1 %v2403_v25  ;;  %v2440_v58 = vld [vmem:[%s3234_s0 + $0x130] ss:$36 sps:$4 sm:$0xff]  }
  0x3c   :  { %1206 = vmatmul.mubr.bf16.gmra.mrb[12].mxu1 %v2359_v59  ;;  %1116 = vmatprep.mubr.bf16.mxu0 %v2364_v60  ;;  %v2441_v59 = vld [vmem:[%s3234_s0 + $0x138] ss:$36 sps:$4 sm:$0xff]  }
  0x3d   :  { %1213 = vmatprep.mubr.bf16.mxu1 %v2366_v61  ;;  %2117 = vmatpush3.bf16.msra.mxu0 %v2392_v16  ;;  %v2443_v60 = vld [vmem:[%s3234_s0 + $0x17c] ss:$36 sps:$4 sm:$0xff]   ;;  %v2445_v61 = vld [vmem:[%s3234_s0 + $0x184] ss:$36 sps:$4 sm:$0xff]  }
  0x3e   :  { %2118 = vmatprep.subr.bf16.mxu0 %v2402_v24  ;;  %2181 = vmatpush3.bf16.msra.mxu1 %v2405_v27 }
  0x3f   :  { %2182 = vmatprep.subr.bf16.mxu1 %v2406_v28 }
  0x41   :  { %2119 = vmatpush3.bf16.msra.mxu0 %v2404_v26 }
  0x42   :  { %2248 = vmatprep.subr.bf16.mxu0 %v2414_v32  ;;  %2183 = vmatpush3.bf16.msra.mxu1 %v2407_v31 }
  0x43   :  { %1117 = vmatmul.mubr.bf16.gmra.mrb[16].mxu0 %v2368_v2  ;;  %2280 = vmatprep.subr.bf16.mxu1 %v2414_v32  ;;  %v2454_v2 = vld [vmem:[%s3234_s0 + $0x1c0] ss:$36 sps:$4 sm:$0xff]  }
  0x44   :  { %1214 = vmatmul.mubr.bf16.gmra.mrb[16].mxu1 %v2369_v3  ;;  %1124 = vmatprep.mubr.bf16.mxu0 %v2374_v4  ;;  %v2455_v3 = vld [vmem:[%s3234_s0 + $0x1c8] ss:$36 sps:$4 sm:$0xff]  }
  0x45   :  { %1221 = vmatprep.mubr.bf16.mxu1 %v2376_v5  ;;  %v2457_v4 = vld [vmem:[%s3234_s0 + $0x20c] ss:$36 sps:$4 sm:$0xff]   ;;  %v2459_v5 = vld [vmem:[%s3234_s0 + $0x214] ss:$36 sps:$4 sm:$0xff]  }
  0x4b   :  { %1125 = vmatmul.mubr.bf16.gmra.mrb[20].mxu0 %v2378_v10  ;;  %v2466_v10 = vld [vmem:[%s3234_s0 + $0x68] ss:$36 sps:$4 sm:$0xff]  }
  0x4c   :  { %1222 = vmatmul.mubr.bf16.gmra.mrb[20].mxu1 %v2379_v11  ;;  %1132 = vmatprep.mubr.bf16.mxu0 %v2384_v12  ;;  %v2467_v11 = vld [vmem:[%s3234_s0 + $0x188] ss:$36 sps:$4 sm:$0xff]   ;;  %v2468_v12 = vld [vmem:[%s3234_s0 + $0xb0] ss:$36 sps:$4 sm:$0xff]  }
  0x4d   :  { %1229 = vmatprep.mubr.bf16.mxu1 %v2386_v14  ;;  %v2470_v14 = vld [vmem:[%s3234_s0 + $0xf8] ss:$36 sps:$4 sm:$0xff]  }
  0x53   :  { %1133 = vmatmul.mubr.bf16.gmra.mrb[24].mxu0 %v2388_v20 }
  0x54   :  { %1230 = vmatmul.mubr.bf16.gmra.mrb[24].mxu1 %v2389_v21  ;;  %1140 = vmatprep.mubr.bf16.mxu0 %v2396_v22 }
  0x55   :  { %1237 = vmatprep.mubr.bf16.mxu1 %v2398_v23 }
  0x5b   :  { %1141 = vmatmul.mubr.bf16.gmra.mrb[28].mxu0 %v2400_v29 }
  0x5c   :  { %1238 = vmatmul.mubr.bf16.gmra.mrb[28].mxu1 %v2401_v30  ;;  %1278 = vmatprep.mubr.bf16.mxu0 %v2410_v33 }
  0x5d   :  { %1375 = vmatprep.mubr.bf16.mxu1 %v2413_v34 }
  0x63   :  { %1279 = vmatmul.mubr.bf16.vlgmr.msra.gmra.mrb[32].mxu0 %v2408_v35 }
  0x64   :  { %1376 = vmatmul.mubr.bf16.vlgmr.msra.gmra.mrb[32].mxu1 %v2411_v36  ;;  %2249 = vmatpush3.bf16.msra.mxu0 %v2414_v32 }
  0x65   :  { %1286 = vmatprep.mubr.bf16.mxu0 %v2415_v37  ;;  %1383 = vmatprep.mubr.bf16.mxu1 %v2417_v38 }
  0x66   :  { %2250 = vmatprep.subr.bf16.mxu0 %v2421_v39  ;;  %2288 = vmatpush3.bf16.msra.mxu1 %v2414_v32 }
  0x67   :  { %2281 = vmatprep.subr.bf16.mxu1 %v2421_v39 }
  0x68   :  { %2251 = vmatpush3.bf16.msra.mxu0 %v2421_v39 }
  0x69   :  { %2252 = vmatprep.subr.bf16.mxu0 %v2428_v40 }
  0x6a   :  { %2289 = vmatpush3.bf16.msra.mxu1 %v2421_v39 }
  0x6b   :  { %1287 = vmatmul.mubr.bf16.gmra.mrb[36].mxu0 %v2419_v41  ;;  %2282 = vmatprep.subr.bf16.mxu1 %v2428_v40 }
  0x6c   :  { %1384 = vmatmul.mubr.bf16.gmra.mrb[36].mxu1 %v2420_v42  ;;  %1294 = vmatprep.mubr.bf16.mxu0 %v2422_v43 }
  0x6d   :  { %1391 = vmatprep.mubr.bf16.mxu1 %v2424_v44  ;;  %2253 = vmatpush3.bf16.msra.mxu0 %v2428_v40 }
  0x6e   :  { %2254 = vmatprep.subr.bf16.mxu0 %v2435_v45  ;;  %2290 = vmatpush3.bf16.msra.mxu1 %v2428_v40 }
  0x6f   :  { %2283 = vmatprep.subr.bf16.mxu1 %v2435_v45 }
  0x71   :  { %2255 = vmatpush3.bf16.msra.mxu0 %v2435_v45 }
  0x72   :  { %2256 = vmatprep.subr.bf16.mxu0 %v2442_v46  ;;  %2291 = vmatpush3.bf16.msra.mxu1 %v2435_v45 }
  0x73   :  { %1295 = vmatmul.mubr.bf16.gmra.mrb[40].mxu0 %v2426_v47  ;;  %2284 = vmatprep.subr.bf16.mxu1 %v2442_v46 }
  0x74   :  { %1392 = vmatmul.mubr.bf16.gmra.mrb[40].mxu1 %v2427_v48  ;;  %1302 = vmatprep.mubr.bf16.mxu0 %v2429_v49 }
  0x75   :  { %1399 = vmatprep.mubr.bf16.mxu1 %v2431_v50  ;;  %2257 = vmatpush3.bf16.msra.mxu0 %v2442_v46 }
  0x76   :  { %2258 = vmatprep.subr.bf16.mxu0 %v2449_v51  ;;  %2292 = vmatpush3.bf16.msra.mxu1 %v2442_v46 }
  0x77   :  { %2285 = vmatprep.subr.bf16.mxu1 %v2449_v51 }
  0x79   :  { %2259 = vmatpush3.bf16.msra.mxu0 %v2449_v51 }
  0x7a   :  { %2260 = vmatprep.subr.bf16.mxu0 %v2456_v53  ;;  %2293 = vmatpush3.bf16.msra.mxu1 %v2449_v51 }
  0x7b   :  { %1303 = vmatmul.mubr.bf16.gmra.mrb[44].mxu0 %v2433_v52  ;;  %2286 = vmatprep.subr.bf16.mxu1 %v2456_v53 }
  0x7c   :  { %1400 = vmatmul.mubr.bf16.gmra.mrb[44].mxu1 %v2434_v54  ;;  %1310 = vmatprep.mubr.bf16.mxu0 %v2436_v55 }
  0x7d   :  { %1407 = vmatprep.mubr.bf16.mxu1 %v2438_v56  ;;  %2261 = vmatpush3.bf16.msra.mxu0 %v2456_v53 }
  0x7e   :  { %2262 = vmatprep.subr.bf16.mxu0 %v2463_v57  ;;  %2294 = vmatpush3.bf16.msra.mxu1 %v2456_v53 }
  0x7f   :  { %2287 = vmatprep.subr.bf16.mxu1 %v2463_v57 }
  0x81   :  { %2263 = vmatpush3.bf16.msra.mxu0 %v2463_v57 }
  0x82   :  { %2295 = vmatpush3.bf16.msra.mxu1 %v2463_v57 }
  0x83   :  { %1311 = vmatmul.mubr.bf16.gmra.mrb[48].mxu0 %v2440_v58 }
  0x84   :  { %1408 = vmatmul.mubr.bf16.gmra.mrb[48].mxu1 %v2441_v59  ;;  %1318 = vmatprep.mubr.bf16.mxu0 %v2443_v60 }
  0x85   :  { %1415 = vmatprep.mubr.bf16.mxu1 %v2445_v61 }
  0x8b   :  { %1319 = vmatmul.mubr.bf16.gmra.mrb[52].mxu0 %v2447_v62 }
  0x8c   :  { %1416 = vmatmul.mubr.bf16.gmra.mrb[52].mxu1 %v2448_v63  ;;  %1326 = vmatprep.mubr.bf16.mxu0 %v2450_v0 }
  0x8d   :  { %1423 = vmatprep.mubr.bf16.mxu1 %v2452_v1 }
  0x93   :  { %1327 = vmatmul.mubr.bf16.gmra.mrb[56].mxu0 %v2454_v2 }
  0x94   :  { %1424 = vmatmul.mubr.bf16.gmra.mrb[56].mxu1 %v2455_v3  ;;  %1334 = vmatprep.mubr.bf16.mxu0 %v2457_v4 }
  0x95   :  { %1431 = vmatprep.mubr.bf16.mxu1 %v2459_v5 }
  0x9b   :  { %1335 = vmatmul.mubr.bf16.gmra.mrb[60].mxu0 %v2461_v6 }
  0x9c   :  { %1432 = vmatmul.mubr.bf16.gmra.mrb[60].mxu1 %v2462_v7  ;;  %2264 = vmatprep.mubr.bf16.mxu0 %v2464_v8 }
  0x9d   :  { %2272 = vmatprep.mubr.bf16.mxu1 %v2465_v9 }
  0xa3   :  { %2265 = vmatmul.mubr.bf16.vlgmr.msra.gmra.mrb[64].mxu0 %v2466_v10 }
  0xa4   :  { %2273 = vmatmul.mubr.bf16.vlgmr.msra.gmra.mrb[64].mxu1 %v2467_v11  ;;  %2268 = vmatprep.mubr.bf16.mxu0 %v2468_v12 }
  0xa5   :  { %2276 = vmatprep.mubr.bf16.mxu1 %v2469_v13 }
  0xab   :  { %2269 = vmatmul.mubr.bf16.gmra.mrb[68].mxu0 %v2470_v14 }
  0xac   :  { %2277 = vmatmul.mubr.bf16.gmra.mrb[68].mxu1 %v2471_v15 }
  0xf6   :  { %v1992_v16 = vpop.f32.mrb[0].mxu0 }
  0xf7   :  { %v1993_v18 = vpop.f32.mrb[1].mxu0  ;;  %v2056_v19 = vpop.f32.mrb[0].mxu1 }
  0xf8   :  { %v1994_v20 = vadd.f32 %v1993_v18, %v1992_v16  ;;  %v1995_v21 = vpop.f32.mrb[2].mxu0  ;;  %v2057_v22 = vpop.f32.mrb[1].mxu1 }
  0xf9   :  { %v1996_v23 = vpop.f32.mrb[3].mxu0  ;;  %v2058_v24 = vadd.f32 %v2057_v22, %v2056_v19  ;;  %v2059_v25 = vpop.f32.mrb[2].mxu1 }
  0xfa   :  { %v1087_v26 = vadd.f32 %v1994_v20, %v2939_v17  ;;  %v1997_v27 = vadd.f32 %v1996_v23, %v1995_v21  ;;  %v2060_v28 = vpop.f32.mrb[3].mxu1 }
  0xfb   :  { %v2061_v29 = vadd.f32 %v2060_v28, %v2059_v25 }
  0xfc   :  { %v1090_v30 = vadd.f32 %v1997_v27, %v2939_v17  ;;  %v2943_v31 = vadd.f32 %v2058_v24, %v1087_v26 }
  0xfe   :  { %v2945_v32 = vadd.f32 %v2061_v29, %v1090_v30  ;;  %v1998_v33 = vpop.f32.mrb[4].mxu0 }
  0xff   :  { %v1999_v34 = vpop.f32.mrb[5].mxu0  ;;  %v2062_v35 = vpop.f32.mrb[4].mxu1 }
 0x100   :  { %v2000_v36 = vadd.f32 %v1999_v34, %v1998_v33  ;;  %v2001_v37 = vpop.f32.mrb[6].mxu0  ;;  %v2063_v38 = vpop.f32.mrb[5].mxu1 }
 0x101   :  { %v2002_v39 = vpop.f32.mrb[7].mxu0  ;;  %v2064_v40 = vadd.f32 %v2063_v38, %v2062_v35  ;;  %v2065_v41 = vpop.f32.mrb[6].mxu1 }
 0x102   :  { %v1095_v42 = vadd.f32 %v2000_v36, %v2939_v17  ;;  %v2003_v43 = vadd.f32 %v2002_v39, %v2001_v37  ;;  %v2066_v44 = vpop.f32.mrb[7].mxu1 }
 0x103   :  { %v2067_v45 = vadd.f32 %v2066_v44, %v2065_v41 }
 0x104   :  { %v1098_v46 = vadd.f32 %v2003_v43, %v2939_v17  ;;  %v2949_v47 = vadd.f32 %v2064_v40, %v1095_v42 }
 0x106   :  { %v2951_v48 = vadd.f32 %v2067_v45, %v1098_v46  ;;  %v2004_v49 = vpop.f32.mrb[8].mxu0 }
 0x107   :  { %v2005_v50 = vpop.f32.mrb[9].mxu0  ;;  %v2068_v51 = vpop.f32.mrb[8].mxu1 }
 0x108   :  { %v2006_v52 = vadd.f32 %v2005_v50, %v2004_v49  ;;  %v2007_v53 = vpop.f32.mrb[10].mxu0  ;;  %v2069_v54 = vpop.f32.mrb[9].mxu1 }
 0x109   :  { %v2008_v55 = vpop.f32.mrb[11].mxu0  ;;  %v2070_v56 = vadd.f32 %v2069_v54, %v2068_v51  ;;  %v2071_v57 = vpop.f32.mrb[10].mxu1 }
 0x10a   :  { %v1103_v58 = vadd.f32 %v2006_v52, %v2939_v17  ;;  %v2009_v59 = vadd.f32 %v2008_v55, %v2007_v53  ;;  %v2072_v60 = vpop.f32.mrb[11].mxu1 }
 0x10b   :  { %v2073_v61 = vadd.f32 %v2072_v60, %v2071_v57 }
 0x10c   :  { %v1106_v62 = vadd.f32 %v2009_v59, %v2939_v17  ;;  %v2955_v63 = vadd.f32 %v2070_v56, %v1103_v58 }
 0x10e   :  { %v2957_v0 = vadd.f32 %v2073_v61, %v1106_v62  ;;  %v2010_v1 = vpop.f32.mrb[12].mxu0 }
 0x10f   :  { %v2011_v2 = vpop.f32.mrb[13].mxu0  ;;  %v2074_v3 = vpop.f32.mrb[12].mxu1 }
 0x110   :  { %v2012_v4 = vadd.f32 %v2011_v2, %v2010_v1  ;;  %v2013_v5 = vpop.f32.mrb[14].mxu0  ;;  %v2075_v6 = vpop.f32.mrb[13].mxu1 }
 0x111   :  { %v2014_v7 = vpop.f32.mrb[15].mxu0  ;;  %v2076_v8 = vadd.f32 %v2075_v6, %v2074_v3  ;;  %v2077_v9 = vpop.f32.mrb[14].mxu1 }
 0x112   :  { %v1111_v10 = vadd.f32 %v2012_v4, %v2939_v17  ;;  %v2015_v11 = vadd.f32 %v2014_v7, %v2013_v5  ;;  %v2078_v12 = vpop.f32.mrb[15].mxu1 }
 0x113   :  { %v2079_v13 = vadd.f32 %v2078_v12, %v2077_v9 }
 0x114   :  { %v1114_v14 = vadd.f32 %v2015_v11, %v2939_v17  ;;  %v2961_v15 = vadd.f32 %v2076_v8, %v1111_v10 }
 0x116   :  { %v2963_v16 = vadd.f32 %v2079_v13, %v1114_v14  ;;  %v2016_v18 = vpop.f32.mrb[16].mxu0 }
 0x117   :  { %v2017_v19 = vpop.f32.mrb[17].mxu0  ;;  %v2080_v20 = vpop.f32.mrb[16].mxu1 }
 0x118   :  { %v2018_v21 = vadd.f32 %v2017_v19, %v2016_v18  ;;  %v2019_v22 = vpop.f32.mrb[18].mxu0  ;;  %v2081_v23 = vpop.f32.mrb[17].mxu1 }
 0x119   :  { %v2020_v24 = vpop.f32.mrb[19].mxu0  ;;  %v2082_v25 = vadd.f32 %v2081_v23, %v2080_v20  ;;  %v2083_v26 = vpop.f32.mrb[18].mxu1 }
 0x11a   :  { %v1119_v27 = vadd.f32 %v2018_v21, %v2939_v17  ;;  %v2021_v28 = vadd.f32 %v2020_v24, %v2019_v22  ;;  %v2084_v29 = vpop.f32.mrb[19].mxu1 }
 0x11b   :  { %v2085_v30 = vadd.f32 %v2084_v29, %v2083_v26 }
 0x11c   :  { %v1122_v33 = vadd.f32 %v2021_v28, %v2939_v17  ;;  %v2967_v34 = vadd.f32 %v2082_v25, %v1119_v27 }
 0x11e   :  { %v2969_v35 = vadd.f32 %v2085_v30, %v1122_v33  ;;  %v2022_v36 = vpop.f32.mrb[20].mxu0 }
 0x11f   :  { %v2023_v37 = vpop.f32.mrb[21].mxu0  ;;  %v2086_v38 = vpop.f32.mrb[20].mxu1 }
 0x120   :  { %v2024_v39 = vadd.f32 %v2023_v37, %v2022_v36  ;;  %v2025_v40 = vpop.f32.mrb[22].mxu0  ;;  %v2087_v41 = vpop.f32.mrb[21].mxu1 }
 0x121   :  { %v2026_v42 = vpop.f32.mrb[23].mxu0  ;;  %v2088_v43 = vadd.f32 %v2087_v41, %v2086_v38  ;;  %v2089_v44 = vpop.f32.mrb[22].mxu1 }
 0x122   :  { %v1127_v45 = vadd.f32 %v2024_v39, %v2939_v17  ;;  %v2027_v46 = vadd.f32 %v2026_v42, %v2025_v40  ;;  %v2090_v49 = vpop.f32.mrb[23].mxu1 }
 0x123   :  { %v2091_v50 = vadd.f32 %v2090_v49, %v2089_v44 }
 0x124   :  { %v1130_v51 = vadd.f32 %v2027_v46, %v2939_v17  ;;  %v2973_v52 = vadd.f32 %v2088_v43, %v1127_v45 }
 0x126   :  { %v2975_v53 = vadd.f32 %v2091_v50, %v1130_v51  ;;  %v2028_v54 = vpop.f32.mrb[24].mxu0 }
 0x127   :  { %v2029_v55 = vpop.f32.mrb[25].mxu0  ;;  %v2092_v56 = vpop.f32.mrb[24].mxu1 }
 0x128   :  { %v2030_v57 = vadd.f32 %v2029_v55, %v2028_v54  ;;  %v2031_v58 = vpop.f32.mrb[26].mxu0  ;;  %v2093_v59 = vpop.f32.mrb[25].mxu1 }
 0x129   :  { %v2032_v60 = vpop.f32.mrb[27].mxu0  ;;  %v2094_v61 = vadd.f32 %v2093_v59, %v2092_v56  ;;  %v2095_v62 = vpop.f32.mrb[26].mxu1 }
 0x12a   :  { %v1135_v1 = vadd.f32 %v2030_v57, %v2939_v17  ;;  %v2033_v2 = vadd.f32 %v2032_v60, %v2031_v58  ;;  %v2096_v3 = vpop.f32.mrb[27].mxu1 }
 0x12b   :  { %v2097_v4 = vadd.f32 %v2096_v3, %v2095_v62 }
 0x12c   :  { %v1138_v5 = vadd.f32 %v2033_v2, %v2939_v17  ;;  %v2979_v6 = vadd.f32 %v2094_v61, %v1135_v1 }
 0x12e   :  { %v2981_v7 = vadd.f32 %v2097_v4, %v1138_v5  ;;  %v2034_v8 = vpop.f32.mrb[28].mxu0 }
 0x12f   :  { %v2035_v9 = vpop.f32.mrb[29].mxu0  ;;  %v2098_v10 = vpop.f32.mrb[28].mxu1 }
 0x130   :  { %v2036_v11 = vadd.f32 %v2035_v9, %v2034_v8  ;;  %v2037_v12 = vpop.f32.mrb[30].mxu0  ;;  %v2099_v13 = vpop.f32.mrb[29].mxu1 }
 0x131   :  { %v2038_v14 = vpop.f32.mrb[31].mxu0  ;;  %v2100_v18 = vadd.f32 %v2099_v13, %v2098_v10  ;;  %v2101_v19 = vpop.f32.mrb[30].mxu1 }
 0x132   :  { %v1143_v20 = vadd.f32 %v2036_v11, %v2939_v17  ;;  %v2039_v21 = vadd.f32 %v2038_v14, %v2037_v12  ;;  %v2102_v22 = vpop.f32.mrb[31].mxu1 }
 0x133   :  { %v2103_v23 = vadd.f32 %v2102_v22, %v2101_v19 }
 0x134   :  { %v1146_v24 = vadd.f32 %v2039_v21, %v2939_v17  ;;  %v2985_v25 = vadd.f32 %v2100_v18, %v1143_v20 }
 0x136   :  { %v2987_v26 = vadd.f32 %v2103_v23, %v1146_v24  ;;  %v2120_v27 = vpop.f32.mrb[32].mxu0 }
 0x137   :  { %v2121_v28 = vpop.f32.mrb[33].mxu0  ;;  %v2184_v29 = vpop.f32.mrb[32].mxu1 }
 0x138   :  { %v2122_v30 = vadd.f32 %v2121_v28, %v2120_v27  ;;  %v2123_v33 = vpop.f32.mrb[34].mxu0  ;;  %v2185_v36 = vpop.f32.mrb[33].mxu1 }
 0x139   :  { %v2124_v37 = vpop.f32.mrb[35].mxu0  ;;  %v2186_v38 = vadd.f32 %v2185_v36, %v2184_v29  ;;  %v2187_v39 = vpop.f32.mrb[34].mxu1 }
 0x13a   :  { %v1281_v40 = vadd.f32 %v2122_v30, %v2943_v31  ;;  %v2125_v41 = vadd.f32 %v2124_v37, %v2123_v33  ;;  %v2188_v42 = vpop.f32.mrb[35].mxu1 }
 0x13b   :  { %v2189_v43 = vadd.f32 %v2188_v42, %v2187_v39 }
 0x13c   :  { %v1284_v17 = vadd.f32 %v2125_v41, %v2945_v32  ;;  %v2991_v44 = vadd.f32 %v2186_v38, %v1281_v40 }
 0x13e   :  { %v2126_v45 = vpop.f32.mrb[36].mxu0  ;;  %v2993_v46 = vadd.f32 %v2189_v43, %v1284_v17 }
 0x13f   :  { %v2127_v49 = vpop.f32.mrb[37].mxu0  ;;  %v2190_v50 = vpop.f32.mrb[36].mxu1 }
 0x140   :  { %v2128_v51 = vadd.f32 %v2127_v49, %v2126_v45  ;;  %v2129_v54 = vpop.f32.mrb[38].mxu0  ;;  %v2191_v55 = vpop.f32.mrb[37].mxu1 }
 0x141   :  { %v2130_v56 = vpop.f32.mrb[39].mxu0  ;;  %v2192_v57 = vadd.f32 %v2191_v55, %v2190_v50  ;;  %v2193_v58 = vpop.f32.mrb[38].mxu1 }
 0x142   :  { %v1289_v31 = vadd.f32 %v2128_v51, %v2949_v47  ;;  %v2131_v59 = vadd.f32 %v2130_v56, %v2129_v54  ;;  %v2194_v60 = vpop.f32.mrb[39].mxu1 }
 0x143   :  { %v2195_v61 = vadd.f32 %v2194_v60, %v2193_v58 }
 0x144   :  { %v1292_v32 = vadd.f32 %v2131_v59, %v2951_v48  ;;  %v2997_v62 = vadd.f32 %v2192_v57, %v1289_v31 }
 0x146   :  { %v2132_v1 = vpop.f32.mrb[40].mxu0  ;;  %v2999_v2 = vadd.f32 %v2195_v61, %v1292_v32 }
 0x147   :  { %v2133_v3 = vpop.f32.mrb[41].mxu0  ;;  %v2196_v4 = vpop.f32.mrb[40].mxu1 }
 0x148   :  { %v2134_v5 = vadd.f32 %v2133_v3, %v2132_v1  ;;  %v2135_v8 = vpop.f32.mrb[42].mxu0  ;;  %v2197_v9 = vpop.f32.mrb[41].mxu1 }
 0x149   :  { %v2136_v10 = vpop.f32.mrb[43].mxu0  ;;  %v2198_v11 = vadd.f32 %v2197_v9, %v2196_v4  ;;  %v2199_v12 = vpop.f32.mrb[42].mxu1 }
 0x14a   :  { %v1297_v47 = vadd.f32 %v2134_v5, %v2955_v63  ;;  %v2137_v13 = vadd.f32 %v2136_v10, %v2135_v8  ;;  %v2200_v14 = vpop.f32.mrb[43].mxu1 }
 0x14b   :  { %v2201_v18 = vadd.f32 %v2200_v14, %v2199_v12 }
 0x14c   :  { %v1300_v48 = vadd.f32 %v2137_v13, %v2957_v0  ;;  %v3003_v19 = vadd.f32 %v2198_v11, %v1297_v47 }
 0x14e   :  { %v2138_v20 = vpop.f32.mrb[44].mxu0  ;;  %v3005_v21 = vadd.f32 %v2201_v18, %v1300_v48 }
 0x14f   :  { %v2139_v22 = vpop.f32.mrb[45].mxu0  ;;  %v2202_v23 = vpop.f32.mrb[44].mxu1 }
 0x150   :  { %v2140_v24 = vadd.f32 %v2139_v22, %v2138_v20  ;;  %v2141_v27 = vpop.f32.mrb[46].mxu0  ;;  %v2203_v28 = vpop.f32.mrb[45].mxu1 }
 0x151   :  { %v2142_v29 = vpop.f32.mrb[47].mxu0  ;;  %v2204_v30 = vadd.f32 %v2203_v28, %v2202_v23  ;;  %v2205_v33 = vpop.f32.mrb[46].mxu1 }
 0x152   :  { %v1305_v63 = vadd.f32 %v2140_v24, %v2961_v15  ;;  %v2143_v36 = vadd.f32 %v2142_v29, %v2141_v27  ;;  %v2206_v37 = vpop.f32.mrb[47].mxu1 }
 0x153   :  { %v2207_v38 = vadd.f32 %v2206_v37, %v2205_v33 }
 0x154   :  { %v1308_v0 = vadd.f32 %v2143_v36, %v2963_v16  ;;  %v3009_v39 = vadd.f32 %v2204_v30, %v1305_v63 }
 0x156   :  { %v2144_v40 = vpop.f32.mrb[48].mxu0  ;;  %v3011_v41 = vadd.f32 %v2207_v38, %v1308_v0 }
 0x157   :  { %v2145_v42 = vpop.f32.mrb[49].mxu0  ;;  %v2208_v43 = vpop.f32.mrb[48].mxu1 }
 0x158   :  { %v2146_v17 = vadd.f32 %v2145_v42, %v2144_v40  ;;  %v2147_v45 = vpop.f32.mrb[50].mxu0  ;;  %v2209_v49 = vpop.f32.mrb[49].mxu1 }
 0x159   :  { %v2148_v50 = vpop.f32.mrb[51].mxu0  ;;  %v2210_v51 = vadd.f32 %v2209_v49, %v2208_v43  ;;  %v2211_v54 = vpop.f32.mrb[50].mxu1 }
 0x15a   :  { %v1313_v15 = vadd.f32 %v2146_v17, %v2967_v34  ;;  %v2149_v55 = vadd.f32 %v2148_v50, %v2147_v45  ;;  %v2212_v56 = vpop.f32.mrb[51].mxu1 }
 0x15b   :  { %v2213_v57 = vadd.f32 %v2212_v56, %v2211_v54 }
 0x15c   :  { %v1316_v16 = vadd.f32 %v2149_v55, %v2969_v35  ;;  %v1410_v58 = vadd.f32 %v2210_v51, %v1313_v15 }
 0x15e   :  { %v2150_v31 = vpop.f32.mrb[52].mxu0  ;;  %v3015_v59 = vadd.f32 %v2213_v57, %v1316_v16 }
 0x15f   :  { %v2151_v60 = vpop.f32.mrb[53].mxu0  ;;  %v2214_v61 = vpop.f32.mrb[52].mxu1 }
 0x160   :  { %v2152_v32 = vadd.f32 %v2151_v60, %v2150_v31  ;;  %v2153_v1 = vpop.f32.mrb[54].mxu0  ;;  %v2215_v3 = vpop.f32.mrb[53].mxu1 }
 0x161   :  { %v2154_v4 = vpop.f32.mrb[55].mxu0  ;;  %v2216_v5 = vadd.f32 %v2215_v3, %v2214_v61  ;;  %v2217_v8 = vpop.f32.mrb[54].mxu1 }
 0x162   :  { %v1321_v9 = vadd.f32 %v2152_v32, %v2973_v52  ;;  %v2155_v34 = vadd.f32 %v2154_v4, %v2153_v1  ;;  %v2218_v10 = vpop.f32.mrb[55].mxu1 }
 0x163   :  { %v2219_v11 = vadd.f32 %v2218_v10, %v2217_v8 }
 0x164   :  { %v1324_v12 = vadd.f32 %v2155_v34, %v2975_v53  ;;  %v1418_v35 = vadd.f32 %v2216_v5, %v1321_v9 }
 0x166   :  { %v2156_v47 = vpop.f32.mrb[56].mxu0  ;;  %v1421_v13 = vadd.f32 %v2219_v11, %v1324_v12 }
 0x167   :  { %v2157_v14 = vpop.f32.mrb[57].mxu0  ;;  %v2220_v18 = vpop.f32.mrb[56].mxu1 }
 0x168   :  { %v2158_v48 = vadd.f32 %v2157_v14, %v2156_v47  ;;  %v2159_v20 = vpop.f32.mrb[58].mxu0  ;;  %v2221_v22 = vpop.f32.mrb[57].mxu1 }
 0x169   :  { %v2160_v23 = vpop.f32.mrb[59].mxu0  ;;  %v2222_v24 = vadd.f32 %v2221_v22, %v2220_v18  ;;  %v2223_v27 = vpop.f32.mrb[58].mxu1 }
 0x16a   :  { %v1329_v28 = vadd.f32 %v2158_v48, %v2979_v6  ;;  %v2161_v29 = vadd.f32 %v2160_v23, %v2159_v20  ;;  %v2224_v52 = vpop.f32.mrb[59].mxu1 }
 0x16b   :  { %v2225_v30 = vadd.f32 %v2224_v52, %v2223_v27 }
 0x16c   :  { %v1332_v33 = vadd.f32 %v2161_v29, %v2981_v7  ;;  %v1426_v63 = vadd.f32 %v2222_v24, %v1329_v28 }
 0x16e   :  { %v2162_v53 = vpop.f32.mrb[60].mxu0  ;;  %v3021_v36 = vadd.f32 %v2225_v30, %v1332_v33 }
 0x16f   :  { %v2163_v37 = vpop.f32.mrb[61].mxu0  ;;  %v2226_v38 = vpop.f32.mrb[60].mxu1 }
 0x170   :  { %v2164_v0 = vadd.f32 %v2163_v37, %v2162_v53  ;;  %v2165_v40 = vpop.f32.mrb[62].mxu0  ;;  %v2227_v42 = vpop.f32.mrb[61].mxu1 }
 0x171   :  { %v2166_v43 = vpop.f32.mrb[63].mxu0  ;;  %v2228_v17 = vadd.f32 %v2227_v42, %v2226_v38  ;;  %v2229_v45 = vpop.f32.mrb[62].mxu1 }
 0x172   :  { %v1337_v49 = vadd.f32 %v2164_v0, %v2985_v25  ;;  %v2167_v6 = vadd.f32 %v2166_v43, %v2165_v40  ;;  %v2230_v50 = vpop.f32.mrb[63].mxu1 }
 0x173   :  { %v2231_v51 = vadd.f32 %v2230_v50, %v2229_v45 }
 0x174   :  { %v1340_v54 = vadd.f32 %v2167_v6, %v2987_v26  ;;  %v1434_v7 = vadd.f32 %v2228_v17, %v1337_v49 }
 0x176   :  { %v2266_v15 = vpop.f32.mrb[64].mxu0  ;;  %v1437_v55 = vadd.f32 %v2231_v51, %v1340_v54 }
 0x177   :  { %v3026_v56 = vadd.f32 %v2266_v15, %v2997_v62  ;;  %v2274_v57 = vpop.f32.mrb[64].mxu1  ;;  %v1474_v16 = vpop.f32.mrb[65].mxu0 }
 0x178   :  { %v3028_v31 = vadd.f32 %v2274_v57, %v1418_v35  ;;  %v3031_v60 = vadd.f32 %v1474_v16, %v2991_v44  ;;  %v1506_v61 = vpop.f32.mrb[65].mxu1  ;;  %v2267_v25 = vpop.f32.mrb[66].mxu0 }
 0x179   :  { %v3033_v32 = vadd.f32 %v1506_v61, %v1410_v58  ;;  %v3036_v1 = vadd.f32 %v2267_v25, %v2999_v2  ;;  %v2275_v26 = vpop.f32.mrb[66].mxu1  ;;  %v1477_v3 = vpop.f32.mrb[67].mxu0  ;;  %v1541_v58 = vsel %vm1537_vm0, %v3026_v56, 0.0  ;;  %v1579_v9 = vmul.f32 %v3026_v56, %v3026_v56 }
 0x17a   :  { %v1509_v4 = vpop.f32.mrb[67].mxu1  ;;  %v1577_v62 = vmul.f32 %v3031_v60, %v3031_v60  ;;  %v3040_v5 = vadd.f32 %v2275_v26, %v1421_v13  ;;  %v3043_v8 = vadd.f32 %v1477_v3, %v2993_v46  ;;  %v1538_v34 = vsel %vm1537_vm0, %v3031_v60, 0.0 }
 0x17b   :  { %v3046_v44 = vadd.f32 %v1509_v4, %v3015_v59  ;;  %v1580_v48 = vmul.f32 %v3036_v1, %v3036_v1  ;;  %v1596_v52 = vsel %vm1537_vm0, %v1579_v9, 0.0  ;;  %v1543_v30 = vsel %vm1537_vm0, %v3036_v1, 0.0 }
 0x17c   :  { %v1539_v10 = vsel %vm1537_vm0, %v3043_v8, 0.0  ;;  %v1578_v46 = vmul.f32 %v3043_v8, %v3043_v8  ;;  %v1593_v59 = vsel %vm1537_vm0, %v1577_v62, 0.0  ;;  %v1585_v57 = vmul.f32 %v3033_v32, %v3033_v32 }
 0x17d   :  { %v1540_v35 = vadd.f32 %v1539_v10, %v1538_v34  ;;  %v1553_v25 = vsel %vm1537_vm0, %v3033_v32, 0.0  ;;  %v1586_v3 = vmul.f32 %v3046_v44, %v3046_v44  ;;  %v1587_v9 = vmul.f32 %v3028_v31, %v3028_v31 }
 0x17e   :  { %v2270_v2 = vpop.f32.mrb[68].mxu0  ;;  %v1594_v20 = vsel %vm1537_vm0, %v1578_v46, 0.0  ;;  %v1608_v34 = vsel %vm1537_vm0, %v1585_v57, 0.0  ;;  %v1557_v46 = vsel %vm1537_vm0, %v3028_v31, 0.0 }
 0x17f   :  { %v2278_v11 = vpop.f32.mrb[68].mxu1  ;;  %v1490_v12 = vpop.f32.mrb[69].mxu0  ;;  %v3060_v47 = vadd.f32 %v2270_v2, %v3009_v39  ;;  %v1542_v28 = vadd.f32 %v1541_v58, %v1540_v35  ;;  %v1595_v29 = vadd.f32 %v1594_v20, %v1593_v59  ;;  %v1555_v58 = vsel %vm1537_vm0, %v3046_v44, 0.0 }
 0x180   :  { %v3062_v13 = vadd.f32 %v2278_v11, %v1434_v7  ;;  %v1522_v14 = vpop.f32.mrb[69].mxu1  ;;  %v2271_v18 = vpop.f32.mrb[70].mxu0  ;;  %v3068_v22 = vadd.f32 %v1490_v12, %v3003_v19  ;;  %v1588_v12 = vmul.f32 %v3040_v5, %v3040_v5  ;;  %v1610_v59 = vsel %vm1537_vm0, %v1586_v3, 0.0 }
 0x181   :  { %v3070_v23 = vadd.f32 %v1522_v14, %v1426_v63  ;;  %v2279_v24 = vpop.f32.mrb[70].mxu1  ;;  %v1493_v27 = vpop.f32.mrb[71].mxu0  ;;  %v1597_v19 = vadd.f32 %v1596_v52, %v1595_v29  ;;  %v1544_v37 = vadd.f32 %v1543_v30, %v1542_v28  ;;  %v1598_v63 = vsel %vm1537_vm0, %v1580_v48, 0.0 }
 0x182   :  { %v1525_v39 = vpop.f32.mrb[71].mxu1  ;;  %v1545_v33 = vsel %vm1537_vm0, %v3068_v22, 0.0  ;;  %v1581_v53 = vmul.f32 %v3068_v22, %v3068_v22  ;;  %v3082_v0 = vadd.f32 %v2271_v18, %v3011_v41  ;;  %v3084_v43 = vadd.f32 %v2279_v24, %v1437_v55 }
 0x183   :  { %v1546_v40 = vadd.f32 %v1545_v33, %v1544_v37  ;;  %v1599_v42 = vadd.f32 %v1598_v63, %v1597_v19  ;;  %v3087_v17 = vadd.f32 %v1493_v27, %v3005_v21  ;;  %v3090_v45 = vadd.f32 %v1525_v39, %v3021_v36 }
 0x184   :  { %v1600_v38 = vsel %vm1537_vm0, %v1581_v53, 0.0  ;;  %v1583_v50 = vmul.f32 %v3060_v47, %v3060_v47  ;;  %v1549_v54 = vsel %vm1537_vm0, %v3060_v47, 0.0  ;;  %v1584_v21 = vmul.f32 %v3082_v0, %v3082_v0 }
 0x185   :  { %v1601_v49 = vadd.f32 %v1600_v38, %v1599_v42  ;;  %v1547_v6 = vsel %vm1537_vm0, %v3087_v17, 0.0  ;;  %v1582_v41 = vmul.f32 %v3087_v17, %v3087_v17  ;;  %v1551_v15 = vsel %vm1537_vm0, %v3082_v0, 0.0 }
 0x186   :  { %v1548_v51 = vadd.f32 %v1547_v6, %v1546_v40  ;;  %v1604_v16 = vsel %vm1537_vm0, %v1583_v50, 0.0  ;;  %v1606_v4 = vsel %vm1537_vm0, %v1584_v21, 0.0  ;;  %v1559_v14 = vsel %vm1537_vm0, %v3040_v5, 0.0 }
 0x187   :  { %v1602_v36 = vsel %vm1537_vm0, %v1582_v41, 0.0  ;;  %v1612_v48 = vsel %vm1537_vm0, %v1587_v9, 0.0  ;;  %v1589_v20 = vmul.f32 %v3070_v23, %v3070_v23  ;;  %v1561_v27 = vsel %vm1537_vm0, %v3070_v23, 0.0 }
 0x188   :  { %v1550_v7 = vadd.f32 %v1549_v54, %v1548_v51  ;;  %v1603_v55 = vadd.f32 %v1602_v36, %v1601_v49  ;;  %v1614_v29 = vsel %vm1537_vm0, %v1588_v12, 0.0  ;;  %v1590_v52 = vmul.f32 %v3090_v45, %v3090_v45 }
 0x189   :  { %v1563_v30 = vsel %vm1537_vm0, %v3090_v45, 0.0  ;;  %v1591_v53 = vmul.f32 %v3062_v13, %v3062_v13  ;;  %v1616_v19 = vsel %vm1537_vm0, %v1589_v20, 0.0  ;;  %v1565_v63 = vsel %vm1537_vm0, %v3062_v13, 0.0 }
 0x18a   :  { %v1552_v61 = vadd.f32 %v1551_v15, %v1550_v7  ;;  %v1605_v26 = vadd.f32 %v1604_v16, %v1603_v55  ;;  %v1592_v40 = vmul.f32 %v3084_v43, %v3084_v43  ;;  %v1618_v49 = vsel %vm1537_vm0, %v1590_v52, 0.0 }
 0x18b   :  { %v1567_v6 = vsel %vm1537_vm0, %v3084_v43, 0.0  ;;  %v1620_v51 = vsel %vm1537_vm0, %v1591_v53, 0.0  ;;  %v1943_v53 = vld [vmem:[%s3237_s4] ss:$0 sm:$0xff] }
 0x18c   :  { %v1554_v62 = vadd.f32 %v1553_v25, %v1552_v61  ;;  %v1607_v2 = vadd.f32 %v1606_v4, %v1605_v26  ;;  %v1622_v21 = vsel %vm1537_vm0, %v1592_v40, 0.0 }
 0x18e   :  { %v1556_v10 = vadd.f32 %v1555_v58, %v1554_v62  ;;  %v1609_v11 = vadd.f32 %v1608_v34, %v1607_v2 }
 0x190   :  { %v1558_v35 = vadd.f32 %v1557_v46, %v1556_v10  ;;  %v1611_v18 = vadd.f32 %v1610_v59, %v1609_v11 }
 0x192   :  { %v1560_v24 = vadd.f32 %v1559_v14, %v1558_v35  ;;  %v1613_v28 = vadd.f32 %v1612_v48, %v1611_v18 }
 0x194   :  { %v1562_v39 = vadd.f32 %v1561_v27, %v1560_v24  ;;  %v1615_v33 = vadd.f32 %v1614_v29, %v1613_v28 }
 0x196   :  { %v1564_v37 = vadd.f32 %v1563_v30, %v1562_v39  ;;  %v1617_v38 = vadd.f32 %v1616_v19, %v1615_v33 }
 0x198   :  { %v1566_v42 = vadd.f32 %v1565_v63, %v1564_v37  ;;  %v1619_v50 = vadd.f32 %v1618_v49, %v1617_v38 }
 0x19a   :  { %v1568_v41 = vadd.f32 %v1567_v6, %v1566_v42  ;;  %v1621_v54 = vadd.f32 %v1620_v51, %v1619_v50 }
 0x19c   :  { %v1569_v7 = vrot.slane %v1568_v41, 4  ;;  %v1623_v36 = vadd.f32 %v1622_v21, %v1621_v54 }
 0x19e   :  { %v1570_v15 = vadd.f32 %v1569_v7, %v1568_v41  ;;  %v1624_v55 = vrot.slane %v1623_v36, 4 }
 0x1a0   :  { %v1571_v57 = vrot.slane %v1570_v15, 2  ;;  %v1625_v16 = vadd.f32 %v1624_v55, %v1623_v36 }
 0x1a2   :  { %v1572_v61 = vadd.f32 %v1571_v57, %v1570_v15  ;;  %v1626_v25 = vrot.slane %v1625_v16, 2 }
 0x1a4   :  { %v1573_v26 = vrot.slane %v1572_v61, 1  ;;  %v1627_v3 = vadd.f32 %v1626_v25, %v1625_v16 }
 0x1a6   :  { %v1574_v4 = vadd.f32 %v1573_v26, %v1572_v61  ;;  %v1628_v62 = vrot.slane %v1627_v3, 1 }
 0x1a8   :  { %v1576_v58 = vmul.f32 0.0078125, %v1574_v4  ;;  %v1629_v2 = vadd.f32 %v1628_v62, %v1627_v3 }
 0x1aa   :  { %v1631_v9 = vmul.f32 %v1576_v58, %v1576_v58  ;;  %v1638_v34 = vsub.f32 %v3031_v60, %v1576_v58  ;;  %v1639_v10 = vsub.f32 %v3043_v8, %v1576_v58  ;;  %v1640_v46 = vsub.f32 %v3026_v56, %v1576_v58 }
 0x1ab   :  { %v1630_v11 = vmul.f32 0.0078125, %v1629_v2  ;;  %v1641_v12 = vsub.f32 %v3036_v1, %v1576_v58  ;;  %v1642_v59 = vsub.f32 %v3068_v22, %v1576_v58  ;;  %v1643_v35 = vsub.f32 %v3087_v17, %v1576_v58 }
 0x1ac   :  { %v1644_v14 = vsub.f32 %v3060_v47, %v1576_v58  ;;  %v1645_v18 = vsub.f32 %v3082_v0, %v1576_v58  ;;  %v1646_v48 = vsub.f32 %v3033_v32, %v1576_v58  ;;  %v1647_v20 = vsub.f32 %v3046_v44, %v1576_v58  ;;  %v1636_v44 = vld [vmem:[%s3236_s3] sm:$0x1] }
 0x1ad   :  { %v1632_v60 = vsub.f32 %v1630_v11, %v1631_v9  ;;  %v1648_v8 = vsub.f32 %v3028_v31, %v1576_v58  ;;  %v1649_v56 = vsub.f32 %v3040_v5, %v1576_v58  ;;  %v1650_v24 = vsub.f32 %v3070_v23, %v1576_v58 }
 0x1ae   :  { %v1651_v1 = vsub.f32 %v3090_v45, %v1576_v58  ;;  %v1652_v22 = vsub.f32 %v3062_v13, %v1576_v58  ;;  %v1653_v17 = vsub.f32 %v3084_v43, %v1576_v58  ;;  %v1654_v0 = vlaneseq }
 0x1af   :  { %v1633_v47 = vmax.f32 %v1632_v60, 0.0 }
 0x1b0   :  { %v1655_v32 = vshrl.u32 %v1654_v0, 7 }
 0x1b1   :  { %v1634_v27 = vadd.f32 1e-05, %v1633_v47 }
 0x1b2   :  { %v1656_v31 = vsub.s32 0, %v1655_v32 }
 0x1b3   :  { %2472 = vrsqrt.f32 %v1634_v27 }
 0x1bd   :  { %v2473_v28 = vpop.eup %2472 }
 0x1be   :  { %v1637_v5 = vmul.f32 %v2473_v28, %v1636_v44 }
 0x1c0   :  { %v1657_v29 = vrot.slane %v1637_v5, %v1656_v31 }
 0x1c2   :  { %v1658_v23 = vmul.f32 %v1657_v29, %v1638_v34  ;;  %v1659_v39 = vmul.f32 %v1657_v29, %v1639_v10  ;;  %v1660_v45 = vmul.f32 %v1657_v29, %v1640_v46  ;;  %v1661_v52 = vmul.f32 %v1657_v29, %v1641_v12 }
 0x1c3   :  { %v1662_v13 = vmul.f32 %v1657_v29, %v1642_v59  ;;  %v1663_v30 = vmul.f32 %v1657_v29, %v1643_v35  ;;  %v1664_v43 = vmul.f32 %v1657_v29, %v1644_v14  ;;  %v1665_v33 = vmul.f32 %v1657_v29, %v1645_v18 }
 0x1c4   :  { %v1666_v19 = vmul.f32 %v1657_v29, %v1646_v48  ;;  %v1667_v37 = vmul.f32 %v1657_v29, %v1647_v20  ;;  %v1668_v63 = vmul.f32 %v1657_v29, %v1648_v8  ;;  %v1669_v38 = vmul.f32 %v1657_v29, %v1649_v56 }
 0x1c5   :  { %v1670_v40 = vmul.f32 %v1657_v29, %v1650_v24  ;;  %v1671_v42 = vmul.f32 %v1657_v29, %v1651_v1  ;;  %v1672_v49 = vmul.f32 %v1657_v29, %v1652_v22  ;;  %v1673_v6 = vmul.f32 %v1657_v29, %v1653_v17 }
 0x1c6   :  { %v1681_v50 = vadd.f32 %v1943_v53, %v1658_v23  ;;  %v1682_v51 = vadd.f32 %v1943_v53, %v1659_v39  ;;  %v1683_v41 = vadd.f32 %v1943_v53, %v1660_v45  ;;  %v1684_v54 = vadd.f32 %v1943_v53, %v1661_v52 }
 0x1c7   :  { %v1685_v21 = vadd.f32 %v1943_v53, %v1662_v13  ;;  %v1686_v7 = vadd.f32 %v1943_v53, %v1663_v30  ;;  %v1687_v36 = vadd.f32 %v1943_v53, %v1664_v43  ;;  %v1688_v15 = vadd.f32 %v1943_v53, %v1665_v33 }
 0x1c8   :  { %v1689_v55 = vadd.f32 %v1943_v53, %v1666_v19  ;;  %v1690_v57 = vadd.f32 %v1943_v53, %v1667_v37  ;;  %v1691_v16 = vadd.f32 %v1943_v53, %v1668_v63  ;;  %v1692_v61 = vadd.f32 %v1943_v53, %v1669_v38 }
 0x1c9   :  { %v1693_v25 = vadd.f32 %v1943_v53, %v1670_v40  ;;  %v1694_v26 = vadd.f32 %v1943_v53, %v1671_v42  ;;  %v1695_v3 = vadd.f32 %v1943_v53, %v1672_v49  ;;  %v1696_v4 = vadd.f32 %v1943_v53, %v1673_v6 }
 0x1ca   :  { %v1697_v62 = vmax.f32 %v1681_v50, 0.0  ;;  %v1698_v58 = vmax.f32 %v1682_v51, 0.0  ;;  %v1699_v2 = vmax.f32 %v1683_v41, 0.0  ;;  %v1700_v9 = vmax.f32 %v1684_v54, 0.0 }
 0x1cb   :  { %v1701_v34 = vmax.f32 %v1685_v21, 0.0  ;;  %v1702_v10 = vmax.f32 %v1686_v7, 0.0  ;;  %v1703_v46 = vmax.f32 %v1687_v36, 0.0  ;;  %v1704_v11 = vmax.f32 %v1688_v15, 0.0 }
 0x1cc   :  { %v1705_v12 = vmax.f32 %v1689_v55, 0.0  ;;  %v1706_v59 = vmax.f32 %v1690_v57, 0.0  ;;  %v1707_v35 = vmax.f32 %v1691_v16, 0.0  ;;  %v1708_v14 = vmax.f32 %v1692_v61, 0.0 }
 0x1cd   :  { %v1709_v18 = vmax.f32 %v1693_v25, 0.0  ;;  %v1710_v48 = vmax.f32 %v1694_v26, 0.0  ;;  %v1711_v20 = vmax.f32 %v1695_v3, 0.0  ;;  %v1712_v60 = vmax.f32 %v1696_v4, 0.0 }
 0x1ce   :  { %v1960_v8 = vpack.c.bf16 %v1697_v62, %v1697_v62  ;;  %v1961_v56 = vpack.c.bf16 %v1698_v58, %v1698_v58  ;;  %v1962_v24 = vpack.c.bf16 %v1699_v2, %v1699_v2  ;;  %v1963_v1 = vpack.c.bf16 %v1700_v9, %v1700_v9 }
 0x1cf   :  { %v1964_v22 = vpack.c.bf16 %v1701_v34, %v1701_v34  ;;  %v1965_v17 = vpack.c.bf16 %v1702_v10, %v1702_v10  ;;  %v1966_v47 = vpack.c.bf16 %v1703_v46, %v1703_v46  ;;  %v1967_v27 = vpack.c.bf16 %v1704_v11, %v1704_v11 }
 0x1d0   :  { %v1968_v0 = vpack.c.bf16 %v1705_v12, %v1705_v12  ;;  %v1969_v32 = vpack.c.bf16 %v1706_v59, %v1706_v59  ;;  %v1970_v44 = vpack.c.bf16 %v1707_v35, %v1707_v35  ;;  %v1971_v31 = vpack.c.bf16 %v1708_v14, %v1708_v14  ;;  %1778 = vst.msk [vmem:[%s3238_s5] sm:$0xf] %vm1777_vm1, %v1960_v8 }
 0x1d1   :  { %1779 = vst.msk [vmem:[%s3238_s5 + $0x4] sm:$0xf] %vm1777_vm1, %v1961_v56  ;;  %1780 = vst.msk [vmem:[%s3238_s5 + $0x8] sm:$0xf] %vm1777_vm1, %v1962_v24  ;;  %v1972_v28 = vpack.c.bf16 %v1709_v18, %v1709_v18  ;;  %v1973_v5 = vpack.c.bf16 %v1710_v48, %v1710_v48  ;;  %v1974_v29 = vpack.c.bf16 %v1711_v20, %v1711_v20 }
 0x1d2   :  { %1781 = vst.msk [vmem:[%s3238_s5 + $0xc] sm:$0xf] %vm1777_vm1, %v1963_v1  ;;  %v1975_v23 = vpack.c.bf16 %v1712_v60, %v1712_v60  ;;  %1782 = vst.msk [vmem:[%s3238_s5 + $0x10] sm:$0xf] %vm1777_vm1, %v1964_v22 }
 0x1d3   :  { %1783 = vst.msk [vmem:[%s3238_s5 + $0x14] sm:$0xf] %vm1777_vm1, %v1965_v17  ;;  %1784 = vst.msk [vmem:[%s3238_s5 + $0x18] sm:$0xf] %vm1777_vm1, %v1966_v47 }
 0x1d4   :  { %1785 = vst.msk [vmem:[%s3238_s5 + $0x1c] sm:$0xf] %vm1777_vm1, %v1967_v27  ;;  %1786 = vst.msk [vmem:[%s3238_s5 + $0x20] sm:$0xf] %vm1777_vm1, %v1968_v0 }
 0x1d5   :  { %1787 = vst.msk [vmem:[%s3238_s5 + $0x24] sm:$0xf] %vm1777_vm1, %v1969_v32  ;;  %1788 = vst.msk [vmem:[%s3238_s5 + $0x28] sm:$0xf] %vm1777_vm1, %v1970_v44 }
 0x1d6   :  { %1789 = vst.msk [vmem:[%s3238_s5 + $0x2c] sm:$0xf] %vm1777_vm1, %v1971_v31  ;;  %1790 = vst.msk [vmem:[%s3238_s5 + $0x30] sm:$0xf] %vm1777_vm1, %v1972_v28 }
 0x1d7   :  { %1791 = vst.msk [vmem:[%s3238_s5 + $0x34] sm:$0xf] %vm1777_vm1, %v1973_v5  ;;  %1792 = vst.msk [vmem:[%s3238_s5 + $0x38] sm:$0xf] %vm1777_vm1, %v1974_v29 }
 0x1d8   :  { %1793 = vst.msk [vmem:[%s3238_s5 + $0x3c] sm:$0xf] %vm1777_vm1, %v1975_v23 }

// kernel: colornet_forward.28
= control target key start
LH: loop header
LB: loop body
LE: loop exit
PB: predicated region body
PF: predicated region fallthrough
CT: control target
= control target key end

     0   :  { %s2763_s12 = smov 0   ;;  %s3213_s0 = inlined_call_operand.vmem [shape: bf16[512,576], index: 0, kind: input, shape index: {}]   ;;  %s3214_s1 = inlined_call_operand.vmem [shape: bf16[576,32], index: 1, kind: input, shape index: {}]   ;;  %s3215_s2 = inlined_call_operand.vmem [shape: f32[1,32], index: 2, kind: input, shape index: {}]   ;;  %s3216_s3 = inlined_call_operand.vmem [shape: bf16[512,32], index: 3, kind: output, shape index: {}]  }
   0x1 LB: > { %s1910_s13 = sadd.s32 4294967295, %s2741_s12   ;;  %p1914_p0 = scmp.ge.s32.totalorder %s2741_s12, 1  ;;  %s2741_s12 = sphi %s2763_s12, %s13_s12  }
   0x2   : > { %p139_p1 = scmp.lt.s32.totalorder %s2741_s12, 3 }
   0x4   : > { %p140_p2 = pnand %p1914_p0, %p139_p1 }
   0x5   : > { %v2459_v0 = vld [vmem:[%s3214_s1 + $0x40] sm:$0xff] (!%p140_p2)   ;;  %s1915_s16 = sshll.u32 (!%p140_p2), %s1910_s13, 5  ;;  %v2461_v2 = vld [vmem:[%s3214_s1 + $0x48] sm:$0xff] (!%p140_p2)   ;;  %v2463_v4 = vld [vmem:[%s3214_s1 + $0x50] sm:$0xff] (!%p140_p2)   ;;  %vm969_vm0 = vcmask (!%p140_p2), 523264   ;;  %vm1821_vm1 = vcmask (!%p140_p2), 257024  }
   0x6   : > { %143 = sbr.rel (%p140_p2) target bundleno = 448 (0x1c0), region = 32  ;;  %v2460_v1 = vld [vmem:[%s3214_s1] sm:$0xff] (!%p140_p2)   ;;  %2150 = vmatprep.subr.bf16.mxu0 (!%p140_p2), %v2459_v0  ;;  %2434 = vmatprep.subr.bf16.mxu1 (!%p140_p2), %v2459_v0  ;;  %p165_p3 = scmp.lt.s32.totalorder (!%p140_p2), %s1915_s16, 63  ;;  %v2462_v3 = vld [vmem:[%s3214_s1 + $0x8] sm:$0xff] (!%p140_p2)   ;;  %v2464_v5 = vld [vmem:[%s3214_s1 + $0x10] sm:$0xff] (!%p140_p2)  }
   0x7   : > { %2151 = vmatpush3.bf16.msra.mxu0 (!%p140_p2), %v2460_v1  ;;  %2442 = vmatpush3.bf16.msra.mxu1 (!%p140_p2), %v2460_v1  ;;  %v2465_v6 = vld [vmem:[%s3214_s1 + $0x58] sm:$0xff] (!%p140_p2)   ;;  %v2467_v8 = vld [vmem:[%s3214_s1 + $0x60] sm:$0xff] (!%p140_p2)   ;;  %v2469_v10 = vld [vmem:[%s3214_s1 + $0x68] sm:$0xff] (!%p140_p2)  }
   0x8   : > { %2152 = vmatprep.subr.bf16.mxu0 (!%p140_p2), %v2461_v2  ;;  %2435 = vmatprep.subr.bf16.mxu1 (!%p140_p2), %v2461_v2  ;;  %v2466_v7 = vld [vmem:[%s3214_s1 + $0x18] sm:$0xff] (!%p140_p2)   ;;  %v2468_v9 = vld [vmem:[%s3214_s1 + $0x20] sm:$0xff] (!%p140_p2)   ;;  %v2470_v13 = vld [vmem:[%s3214_s1 + $0x28] sm:$0xff] (!%p140_p2)  }
   0x9   : > { %v2471_v14 = vld [vmem:[%s3214_s1 + $0x70] sm:$0xff] (!%p140_p2)   ;;  %v2473_v16 = vld [vmem:[%s3214_s1 + $0x78] sm:$0xff] (!%p140_p2)   ;;  %v2481_v18 = vld [vmem:[%s3214_s1 + $0xc0] sm:$0xff] (!%p140_p2)  }
   0xa   : > { %v2472_v15 = vld [vmem:[%s3214_s1 + $0x30] sm:$0xff] (!%p140_p2)   ;;  %v2474_v17 = vld [vmem:[%s3214_s1 + $0x38] sm:$0xff] (!%p140_p2)   ;;  %v2484_v19 = vld [vmem:[%s3214_s1 + $0x100] sm:$0xff] (!%p140_p2)  }
   0xb   : > { %2153 = vmatpush3.bf16.msra.mxu0 (!%p140_p2), %v2462_v3  ;;  %2443 = vmatpush3.bf16.msra.mxu1 (!%p140_p2), %v2462_v3  ;;  %v2482_v22 = vld [vmem:[%s3214_s1 + $0x80] sm:$0xff] (!%p140_p2)   ;;  %v2483_v23 = vld [vmem:[%s3214_s1 + $0xc8] sm:$0xff] (!%p140_p2)   ;;  %v2492_v28 = vld [vmem:[%s3214_s1 + $0xd0] sm:$0xff] (!%p140_p2)  }
   0xc   : > { %2154 = vmatprep.subr.bf16.mxu0 (!%p140_p2), %v2463_v4  ;;  %2436 = vmatprep.subr.bf16.mxu1 (!%p140_p2), %v2463_v4  ;;  %v2485_v26 = vld [vmem:[%s3214_s1 + $0x88] sm:$0xff] (!%p140_p2)   ;;  %v2493_v30 = vld [vmem:[%s3214_s1 + $0x90] sm:$0xff] (!%p140_p2)   ;;  %v2494_v31 = vld [vmem:[%s3214_s1 + $0xd8] sm:$0xff] (!%p140_p2)  }
   0xd   : > { %s3218_s16 = smov (!%p165_p3, %s1915_s16), 63  ;;  %v2495_v34 = vld [vmem:[%s3214_s1 + $0x98] sm:$0xff]   ;;  %v2515_v35 = vld [vmem:[%s3214_s1 + $0x108] sm:$0xff]   ;;  %v2502_v37 = vld [vmem:[%s3214_s1 + $0xe0] sm:$0xff]  }
   0xe   : > { %s2450_s29 = smul.u32 20, %s3218_s16  ;;  %v2503_v39 = vld [vmem:[%s3214_s1 + $0xa0] sm:$0xff]   ;;  %v2504_v40 = vld [vmem:[%s3214_s1 + $0xe8] sm:$0xff]   ;;  %v2512_v46 = vld [vmem:[%s3214_s1 + $0xf0] sm:$0xff]   ;;  %s1918_s19 = sshll.u32 %s3218_s16, 2 }
   0xf   : > { %2155 = vmatpush3.bf16.msra.mxu0 %v2464_v5  ;;  %2444 = vmatpush3.bf16.msra.mxu1 %v2464_v5  ;;  %v2505_v43 = vld [vmem:[%s3214_s1 + $0xa8] sm:$0xff]   ;;  %v2535_v47 = vld [vmem:[%s3214_s1 + $0x110] sm:$0xff]   ;;  %v2514_v49 = vld [vmem:[%s3214_s1 + $0xf8] sm:$0xff]   ;;  %s3109_s21 = scalar_lea.vmem %s3216_s3, %s1918_s19 }
  0x10   : > { %2156 = vmatprep.subr.bf16.mxu0 %v2465_v6  ;;  %2437 = vmatprep.subr.bf16.mxu1 %v2465_v6  ;;  %s2804_s9 = scalar_lea.vmem %s3213_s0, %s2450_s29  ;;  %v2513_v48 = vld [vmem:[%s3214_s1 + $0xb0] sm:$0xff]   ;;  %v2516_v52 = vld [vmem:[%s3214_s1 + $0xb8] sm:$0xff]  }
  0x11   : > { %v2477_v11 = vld [vmem:[%s2804_s9 + $0x4] ss:$20 sps:$4 sm:$0xff]   ;;  %v2475_v20 = vld [vmem:[%s2804_s9] ss:$20 sps:$4 sm:$0xff]   ;;  %v2490_v27 = vld [vmem:[%s2804_s9 + $0x28] ss:$20 sps:$4 sm:$0xff]  }
  0x12   : > { %v2480_v12 = vld [vmem:[%s2804_s9 + $0x1e4] ss:$20 sps:$4 sm:$0xff]   ;;  %1050 = vmatprep.mubr.bf16.mxu0 %v2477_v11  ;;  %v2478_v21 = vld [vmem:[%s2804_s9 + $0x1e0] ss:$20 sps:$4 sm:$0xff]   ;;  %v2491_v29 = vld [vmem:[%s2804_s9 + $0x208] ss:$20 sps:$4 sm:$0xff]  }
  0x13   : > { %2157 = vmatpush3.bf16.msra.mxu0 %v2466_v7  ;;  %2445 = vmatpush3.bf16.msra.mxu1 %v2466_v7  ;;  %v2486_v24 = vld [vmem:[%s2804_s9 + $0x2c] ss:$20 sps:$4 sm:$0xff]   ;;  %v2496_v32 = vld [vmem:[%s2804_s9 + $0x54] ss:$20 sps:$4 sm:$0xff]   ;;  %v2500_v36 = vld [vmem:[%s2804_s9 + $0x50] ss:$20 sps:$4 sm:$0xff]  }
  0x14   : > { %2158 = vmatprep.subr.bf16.mxu0 %v2467_v8  ;;  %2438 = vmatprep.subr.bf16.mxu1 %v2467_v8  ;;  %v2488_v25 = vld [vmem:[%s2804_s9 + $0x20c] ss:$20 sps:$4 sm:$0xff]   ;;  %v2498_v33 = vld [vmem:[%s2804_s9 + $0x234] ss:$20 sps:$4 sm:$0xff]   ;;  %v2501_v38 = vld [vmem:[%s2804_s9 + $0x230] ss:$20 sps:$4 sm:$0xff]  }
  0x15   : > { %1146 = vmatprep.mubr.bf16.mxu1 %v2480_v12  ;;  %v2506_v41 = vld [vmem:[%s2804_s9 + $0x7c] ss:$20 sps:$4 sm:$0xff]   ;;  %v2510_v44 = vld [vmem:[%s2804_s9 + $0x78] ss:$20 sps:$4 sm:$0xff]   ;;  %v2522_v54 = vld [vmem:[%s2804_s9 + $0xa0] ss:$20 sps:$4 sm:$0xff]  }
  0x16   : > { %v2508_v42 = vld [vmem:[%s2804_s9 + $0x25c] ss:$20 sps:$4 sm:$0xff]   ;;  %v2511_v45 = vld [vmem:[%s2804_s9 + $0x258] ss:$20 sps:$4 sm:$0xff]   ;;  %v2525_v57 = vld [vmem:[%s2804_s9 + $0x34] ss:$20 sps:$4 sm:$0xff]  }
  0x17   : > { %2159 = vmatpush3.bf16.msra.mxu0 %v2468_v9  ;;  %2446 = vmatpush3.bf16.msra.mxu1 %v2468_v9  ;;  %v2517_v50 = vld [vmem:[%s2804_s9 + $0xa4] ss:$20 sps:$4 sm:$0xff]   ;;  %v2521_v51 = vld [vmem:[%s2804_s9 + $0xc] ss:$20 sps:$4 sm:$0xff]   ;;  %v2519_v53 = vld [vmem:[%s2804_s9 + $0x8] ss:$20 sps:$4 sm:$0xff]  }
  0x18   : > { %2160 = vmatprep.subr.bf16.mxu0 %v2469_v10  ;;  %2439 = vmatprep.subr.bf16.mxu1 %v2469_v10  ;;  %v2523_v55 = vld [vmem:[%s2804_s9 + $0xcc] ss:$20 sps:$4 sm:$0xff]   ;;  %v2554_v56 = vld [vmem:[%s3214_s1 + $0x118] sm:$0xff]   ;;  %v2528_v59 = vld [vmem:[%s2804_s9 + $0x30] ss:$20 sps:$4 sm:$0xff]  }
  0x19   : > { %v2527_v58 = vld [vmem:[%s2804_s9 + $0xc8] ss:$20 sps:$4 sm:$0xff]   ;;  %v2533_v62 = vld [vmem:[%s2804_s9 + $0xf0] ss:$20 sps:$4 sm:$0xff]   ;;  %v2534_v63 = vld [vmem:[%s2804_s9 + $0x58] ss:$20 sps:$4 sm:$0xff]  }
  0x1a   : > { %v2529_v60 = vld [vmem:[%s2804_s9 + $0xf4] ss:$20 sps:$4 sm:$0xff]   ;;  %v2531_v61 = vld [vmem:[%s2804_s9 + $0x5c] ss:$20 sps:$4 sm:$0xff]   ;;  %v2538_v1 = vld [vmem:[%s2804_s9 + $0x84] ss:$20 sps:$4 sm:$0xff]  }
  0x1b   : > { %2161 = vmatpush3.bf16.msra.mxu0 %v2470_v13  ;;  %2447 = vmatpush3.bf16.msra.mxu1 %v2470_v13  ;;  %v2536_v0 = vld [vmem:[%s2804_s9 + $0x11c] ss:$20 sps:$4 sm:$0xff]   ;;  %v2540_v2 = vld [vmem:[%s2804_s9 + $0x118] ss:$20 sps:$4 sm:$0xff]   ;;  %v2541_v3 = vld [vmem:[%s2804_s9 + $0x80] ss:$20 sps:$4 sm:$0xff]  }
  0x1c   : > { %2162 = vmatprep.subr.bf16.mxu0 %v2471_v14  ;;  %2440 = vmatprep.subr.bf16.mxu1 %v2471_v14  ;;  %v2542_v4 = vld [vmem:[%s2804_s9 + $0x144] ss:$20 sps:$4 sm:$0xff]   ;;  %v2544_v5 = vld [vmem:[%s2804_s9 + $0xac] ss:$20 sps:$4 sm:$0xff]   ;;  %v2547_v7 = vld [vmem:[%s2804_s9 + $0xa8] ss:$20 sps:$4 sm:$0xff]  }
  0x1d   : > { %v2546_v6 = vld [vmem:[%s2804_s9 + $0x140] ss:$20 sps:$4 sm:$0xff]   ;;  %v2552_v10 = vld [vmem:[%s2804_s9 + $0x168] ss:$20 sps:$4 sm:$0xff]   ;;  %v2553_v11 = vld [vmem:[%s2804_s9 + $0xd0] ss:$20 sps:$4 sm:$0xff]  }
  0x1e   : > { %v2548_v8 = vld [vmem:[%s2804_s9 + $0x16c] ss:$20 sps:$4 sm:$0xff]   ;;  %v2550_v9 = vld [vmem:[%s2804_s9 + $0xd4] ss:$20 sps:$4 sm:$0xff]   ;;  %v2557_v13 = vld [vmem:[%s2804_s9 + $0xfc] ss:$20 sps:$4 sm:$0xff]  }
  0x1f   : > { %2163 = vmatpush3.bf16.msra.mxu0 %v2472_v15  ;;  %2448 = vmatpush3.bf16.msra.mxu1 %v2472_v15  ;;  %v2555_v12 = vld [vmem:[%s2804_s9 + $0x194] ss:$20 sps:$4 sm:$0xff]   ;;  %v2559_v14 = vld [vmem:[%s2804_s9 + $0x190] ss:$20 sps:$4 sm:$0xff]   ;;  %v2560_v15 = vld [vmem:[%s2804_s9 + $0xf8] ss:$20 sps:$4 sm:$0xff]  }
  0x20   : > { %2164 = vmatprep.subr.bf16.mxu0 %v2473_v16  ;;  %2441 = vmatprep.subr.bf16.mxu1 %v2473_v16  ;;  %v2561_v16 = vld [vmem:[%s2804_s9 + $0x1bc] ss:$20 sps:$4 sm:$0xff]  }
  0x23   : > { %2165 = vmatpush3.bf16.msra.mxu0 %v2474_v17  ;;  %2449 = vmatpush3.bf16.msra.mxu1 %v2474_v17  ;;  %v2563_v17 = vld [vmem:[%s2804_s9 + $0x124] ss:$20 sps:$4 sm:$0xff]  }
  0x24   : > { %2262 = vmatprep.subr.bf16.mxu1 %v2481_v18  ;;  %2394 = vmatprep.subr.bf16.mxu0 %v2484_v19  ;;  %v2565_v18 = vld [vmem:[%s2804_s9 + $0x1b8] ss:$20 sps:$4 sm:$0xff]  }
  0x26   : > { %1051 = vmatmul.mubr.bf16.vlgmr.msra.gmra.mrb[0].mxu0 %v2475_v20  ;;  %1147 = vmatmul.mubr.bf16.vlgmr.msra.gmra.mrb[0].mxu1 %v2478_v21  ;;  %v2567_v20 = vld [vmem:[%s2804_s9 + $0x14c] ss:$20 sps:$4 sm:$0xff]   ;;  %v2569_v21 = vld [vmem:[%s2804_s9 + $0x10] ss:$20 sps:$4 sm:$0xff]  }
  0x27   : > { %2263 = vmatpush3.bf16.msra.mxu1 %v2482_v22  ;;  %2395 = vmatpush3.bf16.msra.mxu0 %v2484_v19  ;;  %v2566_v19 = vld [vmem:[%s2804_s9 + $0x120] ss:$20 sps:$4 sm:$0xff]   ;;  %v2570_v22 = vld [vmem:[%s2804_s9 + $0x148] ss:$20 sps:$4 sm:$0xff]  }
  0x28   : > { %2264 = vmatprep.subr.bf16.mxu1 %v2483_v23  ;;  %1058 = vmatprep.mubr.bf16.mxu0 %v2486_v24  ;;  %v2571_v23 = vld [vmem:[%s2804_s9 + $0x38] ss:$20 sps:$4 sm:$0xff]   ;;  %v2572_v24 = vld [vmem:[%s2804_s9 + $0x174] ss:$20 sps:$4 sm:$0xff]  }
  0x29   : > { %1154 = vmatprep.mubr.bf16.mxu1 %v2488_v25  ;;  %2396 = vmatprep.subr.bf16.mxu0 %v2515_v35  ;;  %v2574_v25 = vld [vmem:[%s2804_s9 + $0x60] ss:$20 sps:$4 sm:$0xff]  }
  0x2b   : > { %2265 = vmatpush3.bf16.msra.mxu1 %v2485_v26  ;;  %2397 = vmatpush3.bf16.msra.mxu0 %v2515_v35  ;;  %v2575_v26 = vld [vmem:[%s2804_s9 + $0x170] ss:$20 sps:$4 sm:$0xff]   ;;  %v2586_v35 = vld [vmem:[%s2804_s9 + $0x128] ss:$20 sps:$4 sm:$0xff]  }
  0x2c   : > { %2266 = vmatprep.subr.bf16.mxu1 %v2492_v28  ;;  %2398 = vmatprep.subr.bf16.mxu0 %v2535_v47  ;;  %v2577_v28 = vld [vmem:[%s2804_s9 + $0x19c] ss:$20 sps:$4 sm:$0xff]  }
  0x2e   : > { %1059 = vmatmul.mubr.bf16.gmra.mrb[4].mxu0 %v2490_v27  ;;  %1155 = vmatmul.mubr.bf16.gmra.mrb[4].mxu1 %v2491_v29  ;;  %v2576_v27 = vld [vmem:[%s2804_s9 + $0x88] ss:$20 sps:$4 sm:$0xff]   ;;  %v2579_v29 = vld [vmem:[%s2804_s9 + $0xb0] ss:$20 sps:$4 sm:$0xff]  }
  0x2f   : > { %2267 = vmatpush3.bf16.msra.mxu1 %v2493_v30  ;;  %1066 = vmatprep.mubr.bf16.mxu0 %v2496_v32  ;;  %v2580_v30 = vld [vmem:[%s2804_s9 + $0x198] ss:$20 sps:$4 sm:$0xff]  }
  0x30   : > { %2268 = vmatprep.subr.bf16.mxu1 %v2494_v31  ;;  %1162 = vmatprep.mubr.bf16.mxu1 %v2498_v33  ;;  %v2581_v31 = vld [vmem:[%s2804_s9 + $0xd8] ss:$20 sps:$4 sm:$0xff]   ;;  %v2584_v33 = vld [vmem:[%s2804_s9 + $0x100] ss:$20 sps:$4 sm:$0xff]  }
  0x31   : > { %2399 = vmatpush3.bf16.msra.mxu0 %v2535_v47  ;;  %v2582_v32 = vld [vmem:[%s2804_s9 + $0x1c4] ss:$20 sps:$4 sm:$0xff]  }
  0x32   : > { %2400 = vmatprep.subr.bf16.mxu0 %v2554_v56  ;;  %v2601_v47 = vld [vmem:[%s2804_s9 + $0x218] ss:$20 sps:$4 sm:$0xff]  }
  0x33   : > { %2269 = vmatpush3.bf16.msra.mxu1 %v2495_v34  ;;  %v2585_v34 = vld [vmem:[%s2804_s9 + $0x1c0] ss:$20 sps:$4 sm:$0xff]  }
  0x34   : > { %2270 = vmatprep.subr.bf16.mxu1 %v2502_v37  ;;  %v2589_v37 = vld [vmem:[%s2804_s9 + $0x150] ss:$20 sps:$4 sm:$0xff]  }
  0x35   : > { %2401 = vmatpush3.bf16.msra.mxu0 %v2554_v56 }
  0x36   : > { %1067 = vmatmul.mubr.bf16.gmra.mrb[8].mxu0 %v2500_v36  ;;  %1163 = vmatmul.mubr.bf16.gmra.mrb[8].mxu1 %v2501_v38  ;;  %v2587_v36 = vld [vmem:[%s2804_s9 + $0x1ec] ss:$20 sps:$4 sm:$0xff]   ;;  %v2590_v38 = vld [vmem:[%s2804_s9 + $0x1e8] ss:$20 sps:$4 sm:$0xff]  }
  0x37   : > { %2271 = vmatpush3.bf16.msra.mxu1 %v2503_v39  ;;  %1074 = vmatprep.mubr.bf16.mxu0 %v2506_v41  ;;  %v2591_v39 = vld [vmem:[%s2804_s9 + $0x178] ss:$20 sps:$4 sm:$0xff]   ;;  %v2594_v41 = vld [vmem:[%s2804_s9 + $0x1a0] ss:$20 sps:$4 sm:$0xff]  }
  0x38   : > { %2272 = vmatprep.subr.bf16.mxu1 %v2504_v40  ;;  %1170 = vmatprep.mubr.bf16.mxu1 %v2508_v42  ;;  %v2592_v40 = vld [vmem:[%s2804_s9 + $0x214] ss:$20 sps:$4 sm:$0xff]   ;;  %v2595_v42 = vld [vmem:[%s2804_s9 + $0x210] ss:$20 sps:$4 sm:$0xff]  }
  0x3b   : > { %2273 = vmatpush3.bf16.msra.mxu1 %v2505_v43  ;;  %v2596_v43 = vld [vmem:[%s2804_s9 + $0x1c8] ss:$20 sps:$4 sm:$0xff]  }
  0x3c   : > { %2274 = vmatprep.subr.bf16.mxu1 %v2512_v46  ;;  %v2600_v46 = vld [vmem:[%s2804_s9 + $0x238] ss:$20 sps:$4 sm:$0xff]  }
  0x3e   : > { %1075 = vmatmul.mubr.bf16.gmra.mrb[12].mxu0 %v2510_v44  ;;  %1171 = vmatmul.mubr.bf16.gmra.mrb[12].mxu1 %v2511_v45  ;;  %v2597_v44 = vld [vmem:[%s2804_s9 + $0x23c] ss:$20 sps:$4 sm:$0xff]  }
  0x3f   : > { %2275 = vmatpush3.bf16.msra.mxu1 %v2513_v48  ;;  %1082 = vmatprep.mubr.bf16.mxu0 %v2517_v50  ;;  %v2599_v45 = vld [vmem:[%s2804_s9 + $0x1f0] ss:$20 sps:$4 sm:$0xff]   ;;  %v2605_v50 = vld [vmem:[%s2804_s9 + $0x260] ss:$20 sps:$4 sm:$0xff]  }
  0x40   : > { %2276 = vmatprep.subr.bf16.mxu1 %v2514_v49  ;;  %1211 = vmatprep.mubr.bf16.mxu1 %v2521_v51  ;;  %v2602_v48 = vld [vmem:[%s2804_s9 + $0x264] ss:$20 sps:$4 sm:$0xff]   ;;  %v2604_v49 = vld [vmem:[%s2804_s9 + $0x240] ss:$20 sps:$4 sm:$0xff]   ;;  %v2606_v51 = vld [vmem:[%s2804_s9 + $0x268] ss:$20 sps:$4 sm:$0xff]  }
  0x43   : > { %2277 = vmatpush3.bf16.msra.mxu1 %v2516_v52 }
  0x46   : > { %1083 = vmatmul.mubr.bf16.gmra.mrb[16].mxu0 %v2522_v54  ;;  %1212 = vmatmul.mubr.bf16.vlgmr.msra.gmra.mrb[16].mxu1 %v2519_v53 }
  0x47   : > { %1090 = vmatprep.mubr.bf16.mxu0 %v2523_v55  ;;  %1219 = vmatprep.mubr.bf16.mxu1 %v2525_v57 }
  0x4e   : > { %1091 = vmatmul.mubr.bf16.gmra.mrb[20].mxu0 %v2527_v58  ;;  %1220 = vmatmul.mubr.bf16.gmra.mrb[20].mxu1 %v2528_v59 }
  0x4f   : > { %1098 = vmatprep.mubr.bf16.mxu0 %v2529_v60  ;;  %1227 = vmatprep.mubr.bf16.mxu1 %v2531_v61 }
  0x56   : > { %1099 = vmatmul.mubr.bf16.gmra.mrb[24].mxu0 %v2533_v62  ;;  %1228 = vmatmul.mubr.bf16.gmra.mrb[24].mxu1 %v2534_v63 }
  0x57   : > { %1106 = vmatprep.mubr.bf16.mxu0 %v2536_v0  ;;  %1235 = vmatprep.mubr.bf16.mxu1 %v2538_v1 }
  0x5e   : > { %1107 = vmatmul.mubr.bf16.gmra.mrb[28].mxu0 %v2540_v2  ;;  %1236 = vmatmul.mubr.bf16.gmra.mrb[28].mxu1 %v2541_v3 }
  0x5f   : > { %1114 = vmatprep.mubr.bf16.mxu0 %v2542_v4  ;;  %1243 = vmatprep.mubr.bf16.mxu1 %v2544_v5 }
  0x66   : > { %1115 = vmatmul.mubr.bf16.gmra.mrb[32].mxu0 %v2546_v6  ;;  %1244 = vmatmul.mubr.bf16.gmra.mrb[32].mxu1 %v2547_v7 }
  0x67   : > { %1122 = vmatprep.mubr.bf16.mxu0 %v2548_v8  ;;  %1251 = vmatprep.mubr.bf16.mxu1 %v2550_v9 }
  0x6e   : > { %1123 = vmatmul.mubr.bf16.gmra.mrb[36].mxu0 %v2552_v10  ;;  %1252 = vmatmul.mubr.bf16.gmra.mrb[36].mxu1 %v2553_v11 }
  0x6f   : > { %1130 = vmatprep.mubr.bf16.mxu0 %v2555_v12  ;;  %1259 = vmatprep.mubr.bf16.mxu1 %v2557_v13 }
  0x76   : > { %1131 = vmatmul.mubr.bf16.gmra.mrb[40].mxu0 %v2559_v14  ;;  %1260 = vmatmul.mubr.bf16.gmra.mrb[40].mxu1 %v2560_v15 }
  0x77   : > { %1138 = vmatprep.mubr.bf16.mxu0 %v2561_v16  ;;  %1267 = vmatprep.mubr.bf16.mxu1 %v2563_v17 }
  0x7e   : > { %1139 = vmatmul.mubr.bf16.gmra.mrb[44].mxu0 %v2565_v18  ;;  %1268 = vmatmul.mubr.bf16.gmra.mrb[44].mxu1 %v2566_v19 }
  0x7f   : > { %1275 = vmatprep.mubr.bf16.mxu1 %v2567_v20  ;;  %2402 = vmatprep.mubr.msk.bf16.mxu0 %vm969_vm0, %v2569_v21 }
  0x86   : > { %1276 = vmatmul.mubr.bf16.gmra.mrb[48].mxu1 %v2570_v22  ;;  %2403 = vmatmul.mubr.msk.bf16.vlgmr.msra.gmra.mrb[48].mxu0 %vm969_vm0, %v2571_v23 }
  0x87   : > { %1283 = vmatprep.mubr.bf16.mxu1 %v2572_v24  ;;  %2406 = vmatprep.mubr.msk.bf16.mxu0 %vm969_vm0, %v2574_v25 }
  0x8e   : > { %1284 = vmatmul.mubr.bf16.gmra.mrb[52].mxu1 %v2575_v26  ;;  %2407 = vmatmul.mubr.msk.bf16.gmra.mrb[52].mxu0 %vm969_vm0, %v2576_v27 }
  0x8f   : > { %1291 = vmatprep.mubr.bf16.mxu1 %v2577_v28  ;;  %2410 = vmatprep.mubr.msk.bf16.mxu0 %vm969_vm0, %v2579_v29 }
  0x96   : > { %1292 = vmatmul.mubr.bf16.gmra.mrb[56].mxu1 %v2580_v30  ;;  %2411 = vmatmul.mubr.msk.bf16.gmra.mrb[56].mxu0 %vm969_vm0, %v2581_v31 }
  0x97   : > { %1299 = vmatprep.mubr.bf16.mxu1 %v2582_v32  ;;  %2414 = vmatprep.mubr.msk.bf16.mxu0 %vm969_vm0, %v2584_v33 }
  0x9e   : > { %1300 = vmatmul.mubr.bf16.gmra.mrb[60].mxu1 %v2585_v34  ;;  %2415 = vmatmul.mubr.msk.bf16.gmra.mrb[60].mxu0 %vm969_vm0, %v2586_v35 }
  0x9f   : > { %1307 = vmatprep.mubr.bf16.mxu1 %v2587_v36  ;;  %2418 = vmatprep.mubr.msk.bf16.mxu0 %vm969_vm0, %v2589_v37 }
  0xa6   : > { %1308 = vmatmul.mubr.bf16.gmra.mrb[64].mxu1 %v2590_v38  ;;  %2419 = vmatmul.mubr.msk.bf16.gmra.mrb[64].mxu0 %vm969_vm0, %v2591_v39  ;;  %v3002_v38 = vld [vmem:[%s3215_s2] ss:$0 sm:$0xff] }
  0xa7   : > { %1315 = vmatprep.mubr.bf16.mxu1 %v2592_v40  ;;  %2422 = vmatprep.mubr.msk.bf16.mxu0 %vm969_vm0, %v2594_v41 }
  0xae   : > { %1316 = vmatmul.mubr.bf16.gmra.mrb[68].mxu1 %v2595_v42  ;;  %2423 = vmatmul.mubr.msk.bf16.gmra.mrb[68].mxu0 %vm969_vm0, %v2596_v43 }
  0xaf   : > { %1323 = vmatprep.mubr.bf16.mxu1 %v2597_v44  ;;  %2426 = vmatprep.mubr.msk.bf16.mxu0 %vm969_vm0, %v2599_v45 }
  0xb6   : > { %1324 = vmatmul.mubr.bf16.gmra.mrb[72].mxu1 %v2600_v46  ;;  %2427 = vmatmul.mubr.msk.bf16.gmra.mrb[72].mxu0 %vm969_vm0, %v2601_v47 }
  0xb7   : > { %1331 = vmatprep.mubr.bf16.mxu1 %v2602_v48  ;;  %2430 = vmatprep.mubr.msk.bf16.mxu0 %vm969_vm0, %v2604_v49 }
  0xbe   : > { %1332 = vmatmul.mubr.bf16.gmra.mrb[76].mxu1 %v2605_v50  ;;  %2431 = vmatmul.mubr.msk.bf16.gmra.mrb[76].mxu0 %vm969_vm0, %v2606_v51 }
  0xf9   : > { %v2238_v52 = vpop.f32.mrb[0].mxu1  ;;  %v2166_v53 = vpop.f32.mrb[0].mxu0 }
  0xfa   : > { %v2239_v54 = vpop.f32.mrb[1].mxu1  ;;  %v2167_v55 = vpop.f32.mrb[1].mxu0 }
  0xfb   : > { %v2983_v56 = vadd.f32 %v2239_v54, %v2238_v52  ;;  %v2241_v57 = vpop.f32.mrb[2].mxu1  ;;  %v2168_v58 = vadd.f32 %v2167_v55, %v2166_v53  ;;  %v2169_v59 = vpop.f32.mrb[2].mxu0 }
  0xfc   : > { %v2242_v60 = vpop.f32.mrb[3].mxu1  ;;  %v2170_v61 = vpop.f32.mrb[3].mxu0 }
  0xfd   : > { %v2985_v62 = vadd.f32 %v2242_v60, %v2241_v57  ;;  %v2171_v63 = vadd.f32 %v2170_v61, %v2169_v59  ;;  %v1053_v41 = vadd.f32 %v2168_v58, %v3002_v38 }
  0xff   : > { %v1056_v48 = vadd.f32 %v2171_v63, %v3002_v38 }
 0x101   : > { %v2244_v0 = vpop.f32.mrb[4].mxu1  ;;  %v2172_v1 = vpop.f32.mrb[4].mxu0 }
 0x102   : > { %v2245_v2 = vpop.f32.mrb[5].mxu1  ;;  %v2173_v3 = vpop.f32.mrb[5].mxu0 }
 0x103   : > { %v2987_v4 = vadd.f32 %v2245_v2, %v2244_v0  ;;  %v2247_v5 = vpop.f32.mrb[6].mxu1  ;;  %v2174_v6 = vadd.f32 %v2173_v3, %v2172_v1  ;;  %v2175_v7 = vpop.f32.mrb[6].mxu0 }
 0x104   : > { %v2248_v8 = vpop.f32.mrb[7].mxu1  ;;  %v2176_v9 = vpop.f32.mrb[7].mxu0 }
 0x105   : > { %v2989_v10 = vadd.f32 %v2248_v8, %v2247_v5  ;;  %v2177_v11 = vadd.f32 %v2176_v9, %v2175_v7  ;;  %v1061_v58 = vadd.f32 %v2174_v6, %v3002_v38 }
 0x107   : > { %v1064_v63 = vadd.f32 %v2177_v11, %v3002_v38 }
 0x109   : > { %v2250_v12 = vpop.f32.mrb[8].mxu1  ;;  %v2178_v13 = vpop.f32.mrb[8].mxu0 }
 0x10a   : > { %v2251_v14 = vpop.f32.mrb[9].mxu1  ;;  %v2179_v15 = vpop.f32.mrb[9].mxu0 }
 0x10b   : > { %v2991_v16 = vadd.f32 %v2251_v14, %v2250_v12  ;;  %v2253_v17 = vpop.f32.mrb[10].mxu1  ;;  %v2180_v18 = vadd.f32 %v2179_v15, %v2178_v13  ;;  %v2181_v19 = vpop.f32.mrb[10].mxu0 }
 0x10c   : > { %v2254_v20 = vpop.f32.mrb[11].mxu1  ;;  %v2182_v21 = vpop.f32.mrb[11].mxu0 }
 0x10d   : > { %v2993_v22 = vadd.f32 %v2254_v20, %v2253_v17  ;;  %v2183_v23 = vadd.f32 %v2182_v21, %v2181_v19  ;;  %v1069_v6 = vadd.f32 %v2180_v18, %v3002_v38 }
 0x10f   : > { %v1072_v11 = vadd.f32 %v2183_v23, %v3002_v38 }
 0x111   : > { %v2256_v24 = vpop.f32.mrb[12].mxu1  ;;  %v2184_v25 = vpop.f32.mrb[12].mxu0 }
 0x112   : > { %v2257_v26 = vpop.f32.mrb[13].mxu1  ;;  %v2185_v27 = vpop.f32.mrb[13].mxu0 }
 0x113   : > { %v2995_v28 = vadd.f32 %v2257_v26, %v2256_v24  ;;  %v2259_v29 = vpop.f32.mrb[14].mxu1  ;;  %v2186_v30 = vadd.f32 %v2185_v27, %v2184_v25  ;;  %v2187_v31 = vpop.f32.mrb[14].mxu0 }
 0x114   : > { %v2260_v32 = vpop.f32.mrb[15].mxu1  ;;  %v2188_v33 = vpop.f32.mrb[15].mxu0 }
 0x115   : > { %v2997_v34 = vadd.f32 %v2260_v32, %v2259_v29  ;;  %v2189_v35 = vadd.f32 %v2188_v33, %v2187_v31  ;;  %v1077_v18 = vadd.f32 %v2186_v30, %v3002_v38 }
 0x117   : > { %v1080_v23 = vadd.f32 %v2189_v35, %v3002_v38 }
 0x119   : > { %v2278_v36 = vpop.f32.mrb[16].mxu1  ;;  %v2190_v37 = vpop.f32.mrb[16].mxu0 }
 0x11a   : > { %v2279_v39 = vpop.f32.mrb[17].mxu1  ;;  %v2191_v40 = vpop.f32.mrb[17].mxu0 }
 0x11b   : > { %v2280_v42 = vadd.f32 %v2279_v39, %v2278_v36  ;;  %v2281_v43 = vpop.f32.mrb[18].mxu1  ;;  %v2192_v44 = vadd.f32 %v2191_v40, %v2190_v37  ;;  %v2193_v45 = vpop.f32.mrb[18].mxu0 }
 0x11c   : > { %v2282_v46 = vpop.f32.mrb[19].mxu1  ;;  %v2194_v47 = vpop.f32.mrb[19].mxu0 }
 0x11d   : > { %v2283_v49 = vadd.f32 %v2282_v46, %v2281_v43  ;;  %v2195_v50 = vadd.f32 %v2194_v47, %v2193_v45  ;;  %v3006_v51 = vadd.f32 %v2280_v42, %v1053_v41  ;;  %v1085_v30 = vadd.f32 %v2192_v44, %v3002_v38 }
 0x11f   : > { %v3008_v52 = vadd.f32 %v2283_v49, %v1056_v48  ;;  %v1088_v35 = vadd.f32 %v2195_v50, %v3002_v38 }
 0x121   : > { %v2284_v53 = vpop.f32.mrb[20].mxu1  ;;  %v2196_v54 = vpop.f32.mrb[20].mxu0 }
 0x122   : > { %v2285_v55 = vpop.f32.mrb[21].mxu1  ;;  %v2197_v57 = vpop.f32.mrb[21].mxu0 }
 0x123   : > { %v2286_v59 = vadd.f32 %v2285_v55, %v2284_v53  ;;  %v2287_v60 = vpop.f32.mrb[22].mxu1  ;;  %v2198_v61 = vadd.f32 %v2197_v57, %v2196_v54  ;;  %v2199_v0 = vpop.f32.mrb[22].mxu0 }
 0x124   : > { %v2288_v1 = vpop.f32.mrb[23].mxu1  ;;  %v2200_v2 = vpop.f32.mrb[23].mxu0 }
 0x125   : > { %v2289_v3 = vadd.f32 %v2288_v1, %v2287_v60  ;;  %v2201_v5 = vadd.f32 %v2200_v2, %v2199_v0  ;;  %v3012_v7 = vadd.f32 %v2286_v59, %v1061_v58  ;;  %v1093_v44 = vadd.f32 %v2198_v61, %v3002_v38 }
 0x127   : > { %v3014_v8 = vadd.f32 %v2289_v3, %v1064_v63  ;;  %v1096_v50 = vadd.f32 %v2201_v5, %v3002_v38 }
 0x129   : > { %v2290_v9 = vpop.f32.mrb[24].mxu1  ;;  %v2202_v12 = vpop.f32.mrb[24].mxu0 }
 0x12a   : > { %v2291_v13 = vpop.f32.mrb[25].mxu1  ;;  %v2203_v14 = vpop.f32.mrb[25].mxu0 }
 0x12b   : > { %v2292_v15 = vadd.f32 %v2291_v13, %v2290_v9  ;;  %v2293_v17 = vpop.f32.mrb[26].mxu1  ;;  %v2204_v19 = vadd.f32 %v2203_v14, %v2202_v12  ;;  %v2205_v20 = vpop.f32.mrb[26].mxu0 }
 0x12c   : > { %v2294_v21 = vpop.f32.mrb[27].mxu1  ;;  %v2206_v24 = vpop.f32.mrb[27].mxu0 }
 0x12d   : > { %v2295_v25 = vadd.f32 %v2294_v21, %v2293_v17  ;;  %v2207_v26 = vadd.f32 %v2206_v24, %v2205_v20  ;;  %v3018_v27 = vadd.f32 %v2292_v15, %v1069_v6 }
 0x12f   : > { %v3020_v29 = vadd.f32 %v2295_v25, %v1072_v11 }
 0x131   : > { %v2296_v31 = vpop.f32.mrb[28].mxu1  ;;  %v2208_v32 = vpop.f32.mrb[28].mxu0 }
 0x132   : > { %v2297_v33 = vpop.f32.mrb[29].mxu1  ;;  %v2209_v36 = vpop.f32.mrb[29].mxu0 }
 0x133   : > { %v2298_v37 = vadd.f32 %v2297_v33, %v2296_v31  ;;  %v2299_v39 = vpop.f32.mrb[30].mxu1  ;;  %v2210_v40 = vadd.f32 %v2209_v36, %v2208_v32  ;;  %v2211_v41 = vpop.f32.mrb[30].mxu0 }
 0x134   : > { %v2300_v42 = vpop.f32.mrb[31].mxu1  ;;  %v2212_v43 = vpop.f32.mrb[31].mxu0 }
 0x135   : > { %v2301_v45 = vadd.f32 %v2300_v42, %v2299_v39  ;;  %v2213_v46 = vadd.f32 %v2212_v43, %v2211_v41  ;;  %v3024_v47 = vadd.f32 %v2298_v37, %v1077_v18  ;;  %v1101_v39 = vadd.f32 %v2204_v19, %v3002_v38 }
 0x137   : > { %v3026_v48 = vadd.f32 %v2301_v45, %v1080_v23 }
 0x139   : > { %v2302_v49 = vpop.f32.mrb[32].mxu1  ;;  %v2214_v53 = vpop.f32.mrb[32].mxu0 }
 0x13a   : > { %v2303_v54 = vpop.f32.mrb[33].mxu1  ;;  %v2215_v55 = vpop.f32.mrb[33].mxu0 }
 0x13b   : > { %v2304_v57 = vadd.f32 %v2303_v54, %v2302_v49  ;;  %v2305_v58 = vpop.f32.mrb[34].mxu1  ;;  %v2216_v59 = vadd.f32 %v2215_v55, %v2214_v53  ;;  %v2217_v60 = vpop.f32.mrb[34].mxu0  ;;  %v1104_v49 = vadd.f32 %v2207_v26, %v3002_v38 }
 0x13c   : > { %v2306_v0 = vpop.f32.mrb[35].mxu1  ;;  %v2218_v1 = vpop.f32.mrb[35].mxu0 }
 0x13d   : > { %v2307_v2 = vadd.f32 %v2306_v0, %v2305_v58  ;;  %v2219_v63 = vadd.f32 %v2218_v1, %v2217_v60  ;;  %v3030_v3 = vadd.f32 %v2304_v57, %v1085_v30  ;;  %v1109_v0 = vadd.f32 %v2210_v40, %v3002_v38 }
 0x13f   : > { %v3032_v9 = vadd.f32 %v2307_v2, %v1088_v35 }
 0x141   : > { %v2308_v12 = vpop.f32.mrb[36].mxu1  ;;  %v2220_v13 = vpop.f32.mrb[36].mxu0 }
 0x142   : > { %v2309_v14 = vpop.f32.mrb[37].mxu1  ;;  %v2221_v6 = vpop.f32.mrb[37].mxu0 }
 0x143   : > { %v2310_v15 = vadd.f32 %v2309_v14, %v2308_v12  ;;  %v2311_v17 = vpop.f32.mrb[38].mxu1  ;;  %v3035_v20 = vadd.f32 %v2221_v6, %v2220_v13  ;;  %v2223_v21 = vpop.f32.mrb[38].mxu0  ;;  %v1112_v14 = vadd.f32 %v2213_v46, %v3002_v38 }
 0x144   : > { %v2312_v24 = vpop.f32.mrb[39].mxu1  ;;  %v2224_v11 = vpop.f32.mrb[39].mxu0 }
 0x145   : > { %v2313_v25 = vadd.f32 %v2312_v24, %v2311_v17  ;;  %v3038_v31 = vadd.f32 %v2224_v11, %v2223_v21  ;;  %v3040_v32 = vadd.f32 %v2310_v15, %v1093_v44 }
 0x147   : > { %v3042_v33 = vadd.f32 %v2313_v25, %v1096_v50  ;;  %v1117_v25 = vadd.f32 %v2216_v59, %v3002_v38 }
 0x149   : > { %v2314_v36 = vpop.f32.mrb[40].mxu1  ;;  %v2226_v18 = vpop.f32.mrb[40].mxu0 }
 0x14a   : > { %v2315_v37 = vpop.f32.mrb[41].mxu1  ;;  %v2227_v61 = vpop.f32.mrb[41].mxu0 }
 0x14b   : > { %v2316_v41 = vadd.f32 %v2315_v37, %v2314_v36  ;;  %v2317_v42 = vpop.f32.mrb[42].mxu1  ;;  %v3045_v43 = vadd.f32 %v2227_v61, %v2226_v18  ;;  %v2229_v23 = vpop.f32.mrb[42].mxu0  ;;  %v1120_v61 = vadd.f32 %v2219_v63, %v3002_v38 }
 0x14c   : > { %v2318_v45 = vpop.f32.mrb[43].mxu1  ;;  %v2230_v5 = vpop.f32.mrb[43].mxu0 }
 0x14d   : > { %v2319_v53 = vadd.f32 %v2318_v45, %v2317_v42  ;;  %v3048_v54 = vadd.f32 %v2230_v5, %v2229_v23  ;;  %v3050_v55 = vadd.f32 %v2316_v41, %v1101_v39 }
 0x14f   : > { %v3052_v30 = vadd.f32 %v2319_v53, %v1104_v49 }
 0x151   : > { %v2320_v57 = vpop.f32.mrb[44].mxu1  ;;  %v2232_v58 = vpop.f32.mrb[44].mxu0 }
 0x152   : > { %v2321_v60 = vpop.f32.mrb[45].mxu1  ;;  %v2233_v19 = vpop.f32.mrb[45].mxu0 }
 0x153   : > { %v2322_v1 = vadd.f32 %v2321_v60, %v2320_v57  ;;  %v2323_v35 = vpop.f32.mrb[46].mxu1  ;;  %v3055_v2 = vadd.f32 %v2233_v19, %v2232_v58  ;;  %v2235_v12 = vpop.f32.mrb[46].mxu0  ;;  %v1125_v19 = vadd.f32 %v3035_v20, %v3002_v38 }
 0x154   : > { %v2324_v13 = vpop.f32.mrb[47].mxu1  ;;  %v2236_v26 = vpop.f32.mrb[47].mxu0 }
 0x155   : > { %v2325_v6 = vadd.f32 %v2324_v13, %v2323_v35  ;;  %v3058_v44 = vadd.f32 %v2236_v26, %v2235_v12  ;;  %v3060_v15 = vadd.f32 %v2322_v1, %v1109_v0  ;;  %v1128_v12 = vadd.f32 %v3038_v31, %v3002_v38 }
 0x157   : > { %v3062_v17 = vadd.f32 %v2325_v6, %v1112_v14 }
 0x159   : > { %v2326_v21 = vpop.f32.mrb[48].mxu1  ;;  %v2404_v24 = vpop.f32.mrb[48].mxu0 }
 0x15a   : > { %v1383_v40 = vadd.f32 %v2404_v24, %v3012_v7  ;;  %v2327_v11 = vpop.f32.mrb[49].mxu1  ;;  %v1374_v50 = vpop.f32.mrb[49].mxu0 }
 0x15b   : > { %v2328_v36 = vadd.f32 %v2327_v11, %v2326_v21  ;;  %v1375_v18 = vadd.f32 %v1374_v50, %v3006_v51  ;;  %v2329_v37 = vpop.f32.mrb[50].mxu1  ;;  %v2405_v46 = vpop.f32.mrb[50].mxu0 }
 0x15c   : > { %v2054_v39 = vmul.f32 -1.442695, %v1383_v40  ;;  %v1386_v41 = vadd.f32 %v2405_v46, %v3014_v8  ;;  %v2330_v42 = vpop.f32.mrb[51].mxu1  ;;  %v1377_v23 = vpop.f32.mrb[51].mxu0 }
 0x15d   : > { %v2052_v45 = vmul.f32 -1.442695, %v1375_v18  ;;  %v2331_v5 = vadd.f32 %v2330_v42, %v2329_v37  ;;  %v1378_v7 = vadd.f32 %v1377_v23, %v3008_v52  ;;  %v3070_v49 = vadd.f32 %v2328_v36, %v1117_v25 }
 0x15e   : > { %2607 = vpow2.f32 %v2054_v39  ;;  %v2055_v59 = vmul.f32 -1.442695, %v1386_v41  ;;  %v1133_v37 = vadd.f32 %v3045_v43, %v3002_v38 }
 0x15f   : > { %2609 = vpow2.f32 %v2052_v45  ;;  %v2053_v53 = vmul.f32 -1.442695, %v1378_v7  ;;  %v3072_v51 = vadd.f32 %v2331_v5, %v1120_v61 }
 0x160   : > { %2611 = vpow2.f32 %v2055_v59 }
 0x161   : > { %2613 = vpow2.f32 %v2053_v53  ;;  %v2332_v63 = vpop.f32.mrb[52].mxu1  ;;  %v2408_v57 = vpop.f32.mrb[52].mxu0 }
 0x162   : > { %v1399_v8 = vadd.f32 %v2408_v57, %v3024_v47  ;;  %v2333_v58 = vpop.f32.mrb[53].mxu1  ;;  %v1390_v60 = vpop.f32.mrb[53].mxu0 }
 0x163   : > { %v2334_v52 = vadd.f32 %v2333_v58, %v2332_v63  ;;  %v1391_v0 = vadd.f32 %v1390_v60, %v3018_v27  ;;  %v2335_v1 = vpop.f32.mrb[54].mxu1  ;;  %v2409_v35 = vpop.f32.mrb[54].mxu0 }
 0x164   : > { %v2058_v13 = vmul.f32 -1.442695, %v1399_v8  ;;  %v1402_v26 = vadd.f32 %v2409_v35, %v3026_v48  ;;  %v2336_v14 = vpop.f32.mrb[55].mxu1  ;;  %v1393_v6 = vpop.f32.mrb[55].mxu0 }
 0x165   : > { %v2056_v21 = vmul.f32 -1.442695, %v1391_v0  ;;  %v2337_v47 = vadd.f32 %v2336_v14, %v2335_v1  ;;  %v1394_v24 = vadd.f32 %v1393_v6, %v3020_v29  ;;  %v3082_v40 = vadd.f32 %v2334_v52, %v1125_v19 }
 0x166   : > { %2615 = vpow2.f32 %v2058_v13  ;;  %v2059_v20 = vmul.f32 -1.442695, %v1402_v26  ;;  %v1136_v29 = vadd.f32 %v3048_v54, %v3002_v38  ;;  %v1144_v26 = vadd.f32 %v3058_v44, %v3002_v38 }
 0x167   : > { %2617 = vpow2.f32 %v2056_v21  ;;  %v2057_v27 = vmul.f32 -1.442695, %v1394_v24  ;;  %v3084_v11 = vadd.f32 %v2337_v47, %v1128_v12 }
 0x168   : > { %v2608_v50 = vpop.eup %2607  ;;  %2619 = vpow2.f32 %v2059_v20 }
 0x169   : > { %v2610_v31 = vpop.eup %2609  ;;  %v1599_v25 = vadd.f32 1.0, %v2608_v50  ;;  %2621 = vpow2.f32 %v2057_v27  ;;  %v2338_v48 = vpop.f32.mrb[56].mxu1 }
 0x16a   : > { %v2412_v36 = vpop.f32.mrb[56].mxu0  ;;  %v2612_v18 = vpop.eup %2611  ;;  %v1597_v46 = vadd.f32 1.0, %v2610_v31 }
 0x16b   : > { %v1415_v61 = vadd.f32 %v2412_v36, %v3040_v32  ;;  %v2339_v39 = vpop.f32.mrb[57].mxu1  ;;  %v1406_v41 = vpop.f32.mrb[57].mxu0  ;;  %2623 = vrcp.f32 %v1599_v25  ;;  %v1600_v23 = vadd.f32 1.0, %v2612_v18 }
 0x16c   : > { %v2614_v42 = vpop.eup %2613  ;;  %v2340_v45 = vadd.f32 %v2339_v39, %v2338_v48  ;;  %v1407_v5 = vadd.f32 %v1406_v41, %v3030_v3  ;;  %v2341_v7 = vpop.f32.mrb[58].mxu1  ;;  %2625 = vrcp.f32 %v1597_v46 }
 0x16d   : > { %v2413_v59 = vpop.f32.mrb[58].mxu0  ;;  %v1598_v53 = vadd.f32 1.0, %v2614_v42  ;;  %v2062_v63 = vmul.f32 -1.442695, %v1415_v61  ;;  %v2342_v57 = vpop.f32.mrb[59].mxu1  ;;  %2627 = vrcp.f32 %v1600_v23 }
 0x16e   : > { %v1418_v43 = vadd.f32 %v2413_v59, %v3042_v33  ;;  %v1409_v54 = vpop.f32.mrb[59].mxu0  ;;  %v2060_v8 = vmul.f32 -1.442695, %v1407_v5  ;;  %v2343_v32 = vadd.f32 %v2342_v57, %v2341_v7  ;;  %v3094_v19 = vadd.f32 %v2340_v45, %v1133_v37 }
 0x16f   : > { %v1410_v58 = vadd.f32 %v1409_v54, %v3032_v9  ;;  %2629 = vrcp.f32 %v1598_v53  ;;  %v1141_v33 = vadd.f32 %v3055_v2, %v3002_v38  ;;  %v1149_v57 = vadd.f32 %v2983_v56, %v3002_v38 }
 0x170   : > { %v2063_v60 = vmul.f32 -1.442695, %v1418_v43  ;;  %2631 = vpow2.f32 %v2062_v63  ;;  %v3096_v52 = vadd.f32 %v2343_v32, %v1136_v29  ;;  %v2616_v0 = vpop.eup %2615 }
 0x171   : > { %v2061_v3 = vmul.f32 -1.442695, %v1410_v58  ;;  %2633 = vpow2.f32 %v2060_v8  ;;  %v2618_v1 = vpop.eup %2617  ;;  %v1603_v35 = vadd.f32 1.0, %v2616_v0  ;;  %v2344_v12 = vpop.f32.mrb[60].mxu1 }
 0x172   : > { %2635 = vpow2.f32 %v2063_v60  ;;  %v2416_v9 = vpop.f32.mrb[60].mxu0  ;;  %v2620_v13 = vpop.eup %2619  ;;  %v1601_v14 = vadd.f32 1.0, %v2618_v1 }
 0x173   : > { %2637 = vpow2.f32 %v2061_v3  ;;  %v1431_v6 = vadd.f32 %v2416_v9, %v3060_v15  ;;  %v2345_v21 = vpop.f32.mrb[61].mxu1  ;;  %v1422_v47 = vpop.f32.mrb[61].mxu0  ;;  %v1604_v20 = vadd.f32 1.0, %v2620_v13  ;;  %v1152_v3 = vadd.f32 %v2985_v62, %v3002_v38 }
 0x174   : > { %v2622_v24 = vpop.eup %2621  ;;  %2639 = vrcp.f32 %v1603_v35  ;;  %v2346_v2 = vadd.f32 %v2345_v21, %v2344_v12  ;;  %v1423_v27 = vadd.f32 %v1422_v47, %v3050_v55  ;;  %v2347_v50 = vpop.f32.mrb[62].mxu1 }
 0x175   : > { %v2417_v31 = vpop.f32.mrb[62].mxu0  ;;  %2641 = vrcp.f32 %v1601_v14  ;;  %v1602_v25 = vadd.f32 1.0, %v2622_v24  ;;  %v2066_v48 = vmul.f32 -1.442695, %v1431_v6  ;;  %v2348_v36 = vpop.f32.mrb[63].mxu1 }
 0x176   : > { %v1434_v44 = vadd.f32 %v2417_v31, %v3062_v17  ;;  %v1425_v18 = vpop.f32.mrb[63].mxu0  ;;  %v2624_v37 = vpop.eup %2623  ;;  %2643 = vrcp.f32 %v1604_v20  ;;  %v2064_v15 = vmul.f32 -1.442695, %v1423_v27  ;;  %v2349_v29 = vadd.f32 %v2348_v36, %v2347_v50 }
 0x177   : > { %v1426_v55 = vadd.f32 %v1425_v18, %v3052_v30  ;;  %v2626_v46 = vpop.eup %2625  ;;  %v2120_v61 = vpack.c.bf16 %v2624_v37, %v2624_v37  ;;  %2645 = vrcp.f32 %v1602_v25  ;;  %v3112_v17 = vadd.f32 %v2346_v2, %v1141_v33 }
 0x178   : > { %v2067_v39 = vmul.f32 -1.442695, %v1434_v44  ;;  %v2628_v41 = vpop.eup %2627  ;;  %v2118_v42 = vpack.c.bf16 %v2626_v46, %v2626_v46  ;;  %2647 = vpow2.f32 %v2066_v48  ;;  %v3114_v45 = vadd.f32 %v2349_v29, %v1144_v26 }
 0x179   : > { %v2065_v23 = vmul.f32 -1.442695, %v1426_v55  ;;  %v2630_v5 = vpop.eup %2629  ;;  %1824 = vst.msk [vmem:[%s3109_s21 + $0x8] sm:$0xf] %vm1821_vm1, %v2120_v61  ;;  %v2121_v7 = vpack.c.bf16 %v2628_v41, %v2628_v41  ;;  %2649 = vpow2.f32 %v2064_v15  ;;  %v2350_v53 = vpop.f32.mrb[64].mxu1  ;;  %v1157_v18 = vadd.f32 %v2987_v4, %v3002_v38 }
 0x17a   : > { %v2632_v30 = vpop.eup %2631  ;;  %1822 = vst.msk [vmem:[%s3109_s21] sm:$0xf] %vm1821_vm1, %v2118_v42  ;;  %v2119_v59 = vpack.c.bf16 %v2630_v5, %v2630_v5  ;;  %2651 = vpow2.f32 %v2067_v39  ;;  %v2420_v63 = vpop.f32.mrb[64].mxu0  ;;  %v1160_v55 = vadd.f32 %v2989_v10, %v3002_v38 }
 0x17b   : > { %v2634_v43 = vpop.eup %2633  ;;  %1825 = vst.msk [vmem:[%s3109_s21 + $0xc] sm:$0xf] %vm1821_vm1, %v2121_v7  ;;  %v1607_v54 = vadd.f32 1.0, %v2632_v30  ;;  %2653 = vpow2.f32 %v2065_v23  ;;  %v1447_v8 = vadd.f32 %v2420_v63, %v3082_v40  ;;  %v2351_v32 = vpop.f32.mrb[65].mxu1 }
 0x17c   : > { %v1438_v58 = vpop.f32.mrb[65].mxu0  ;;  %v2636_v60 = vpop.eup %2635  ;;  %1823 = vst.msk [vmem:[%s3109_s21 + $0x4] sm:$0xf] %vm1821_vm1, %v2119_v59  ;;  %v1605_v0 = vadd.f32 1.0, %v2634_v43  ;;  %v2352_v1 = vadd.f32 %v2351_v32, %v2350_v53 }
 0x17d   : > { %v1439_v33 = vadd.f32 %v1438_v58, %v3070_v49  ;;  %v2353_v35 = vpop.f32.mrb[66].mxu1  ;;  %v2421_v56 = vpop.f32.mrb[66].mxu0  ;;  %2655 = vrcp.f32 %v1607_v54  ;;  %v1608_v9 = vadd.f32 1.0, %v2636_v60  ;;  %v2070_v13 = vmul.f32 -1.442695, %v1447_v8 }
 0x17e   : > { %v2638_v12 = vpop.eup %2637  ;;  %v1450_v40 = vadd.f32 %v2421_v56, %v3084_v11  ;;  %v2354_v26 = vpop.f32.mrb[67].mxu1  ;;  %2657 = vrcp.f32 %v1605_v0  ;;  %v3132_v31 = vadd.f32 %v2352_v1, %v1149_v57 }
 0x17f   : > { %v1441_v14 = vpop.f32.mrb[67].mxu0  ;;  %v2640_v6 = vpop.eup %2639  ;;  %v1606_v62 = vadd.f32 1.0, %v2638_v12  ;;  %v2068_v21 = vmul.f32 -1.442695, %v1439_v33  ;;  %v2355_v47 = vadd.f32 %v2354_v26, %v2353_v35  ;;  %2659 = vrcp.f32 %v1608_v9 }
 0x180   : > { %v2642_v24 = vpop.eup %2641  ;;  %v2124_v20 = vpack.c.bf16 %v2640_v6, %v2640_v6  ;;  %v2071_v49 = vmul.f32 -1.442695, %v1450_v40  ;;  %v1442_v2 = vadd.f32 %v1441_v14, %v3072_v51 }
 0x181   : > { %v2644_v27 = vpop.eup %2643  ;;  %v2122_v50 = vpack.c.bf16 %v2642_v24, %v2642_v24  ;;  %2661 = vrcp.f32 %v1606_v62  ;;  %v3134_v11 = vadd.f32 %v2355_v47, %v1152_v3  ;;  %v2356_v37 = vpop.f32.mrb[68].mxu1 }
 0x182   : > { %v2646_v25 = vpop.eup %2645  ;;  %1828 = vst.msk [vmem:[%s3109_s21 + $0x18] sm:$0xf] %vm1821_vm1, %v2124_v20  ;;  %v2125_v48 = vpack.c.bf16 %v2644_v27, %v2644_v27  ;;  %2663 = vpow2.f32 %v2070_v13  ;;  %v2069_v44 = vmul.f32 -1.442695, %v1442_v2  ;;  %v2424_v15 = vpop.f32.mrb[68].mxu0 }
 0x183   : > { %v2648_v36 = vpop.eup %2647  ;;  %1826 = vst.msk [vmem:[%s3109_s21 + $0x10] sm:$0xf] %vm1821_vm1, %v2122_v50  ;;  %v2123_v51 = vpack.c.bf16 %v2646_v25, %v2646_v25  ;;  %2665 = vpow2.f32 %v2068_v21  ;;  %v1463_v61 = vadd.f32 %v2424_v15, %v3112_v17  ;;  %v2357_v39 = vpop.f32.mrb[69].mxu1 }
 0x184   : > { %v2650_v29 = vpop.eup %2649  ;;  %1829 = vst.msk [vmem:[%s3109_s21 + $0x1c] sm:$0xf] %vm1821_vm1, %v2125_v48  ;;  %v1611_v46 = vadd.f32 1.0, %v2648_v36  ;;  %2667 = vpow2.f32 %v2071_v49  ;;  %v1454_v41 = vpop.f32.mrb[69].mxu0  ;;  %v2358_v23 = vadd.f32 %v2357_v39, %v2356_v37 }
 0x185   : > { %v2652_v42 = vpop.eup %2651  ;;  %1827 = vst.msk [vmem:[%s3109_s21 + $0x14] sm:$0xf] %vm1821_vm1, %v2123_v51  ;;  %v1609_v4 = vadd.f32 1.0, %v2650_v29  ;;  %2669 = vpow2.f32 %v2069_v44  ;;  %v1455_v5 = vadd.f32 %v1454_v41, %v3094_v19  ;;  %v2359_v7 = vpop.f32.mrb[70].mxu1  ;;  %v2074_v53 = vmul.f32 -1.442695, %v1463_v61 }
 0x186   : > { %v2425_v30 = vpop.f32.mrb[70].mxu0  ;;  %v2654_v59 = vpop.eup %2653  ;;  %2671 = vrcp.f32 %v1611_v46  ;;  %v1612_v10 = vadd.f32 1.0, %v2652_v42  ;;  %v1318_v60 = vadd.f32 %v2358_v23, %v1157_v18 }
 0x187   : > { %v1466_v63 = vadd.f32 %v2425_v30, %v3114_v45  ;;  %v2360_v43 = vpop.f32.mrb[71].mxu1  ;;  %v1457_v17 = vpop.f32.mrb[71].mxu0  ;;  %2673 = vrcp.f32 %v1609_v4  ;;  %v1610_v57 = vadd.f32 1.0, %v2654_v59  ;;  %v2072_v54 = vmul.f32 -1.442695, %v1455_v5 }
 0x188   : > { %v2361_v8 = vadd.f32 %v2360_v43, %v2359_v7  ;;  %v2656_v32 = vpop.eup %2655  ;;  %2675 = vrcp.f32 %v1612_v10  ;;  %v1458_v19 = vadd.f32 %v1457_v17, %v3096_v52  ;;  %v1165_v52 = vadd.f32 %v2991_v16, %v3002_v38 }
 0x189   : > { %v2075_v58 = vmul.f32 -1.442695, %v1466_v63  ;;  %v2658_v3 = vpop.eup %2657  ;;  %v2128_v0 = vpack.c.bf16 %v2656_v32, %v2656_v32  ;;  %2677 = vrcp.f32 %v1610_v57  ;;  %v2362_v9 = vpop.f32.mrb[72].mxu1  ;;  %v1168_v16 = vadd.f32 %v2993_v22, %v3002_v38 }
 0x18a   : > { %v1321_v1 = vadd.f32 %v2361_v8, %v1160_v55  ;;  %v2660_v33 = vpop.eup %2659  ;;  %v2126_v45 = vpack.c.bf16 %v2658_v3, %v2658_v3  ;;  %2679 = vpow2.f32 %v2074_v53  ;;  %v2073_v35 = vmul.f32 -1.442695, %v1458_v19  ;;  %v2428_v13 = vpop.f32.mrb[72].mxu0 }
 0x18b   : > { %v2662_v56 = vpop.eup %2661  ;;  %1832 = vst.msk [vmem:[%s3109_s21 + $0x28] sm:$0xf] %vm1821_vm1, %v2128_v0  ;;  %v2129_v12 = vpack.c.bf16 %v2660_v33, %v2660_v33  ;;  %2681 = vpow2.f32 %v2072_v54  ;;  %v1479_v14 = vadd.f32 %v2428_v13, %v1318_v60  ;;  %v2363_v6 = vpop.f32.mrb[73].mxu1 }
 0x18c   : > { %v2664_v40 = vpop.eup %2663  ;;  %1830 = vst.msk [vmem:[%s3109_s21 + $0x20] sm:$0xf] %vm1821_vm1, %v2126_v45  ;;  %v2127_v26 = vpack.c.bf16 %v2662_v56, %v2662_v56  ;;  %2683 = vpow2.f32 %v2075_v58  ;;  %v1470_v62 = vpop.f32.mrb[73].mxu0  ;;  %v2364_v24 = vadd.f32 %v2363_v6, %v2362_v9 }
 0x18d   : > { %v2666_v21 = vpop.eup %2665  ;;  %1833 = vst.msk [vmem:[%s3109_s21 + $0x2c] sm:$0xf] %vm1821_vm1, %v2129_v12  ;;  %v1615_v47 = vadd.f32 1.0, %v2664_v40  ;;  %2685 = vpow2.f32 %v2073_v35  ;;  %v1471_v20 = vadd.f32 %v1470_v62, %v3132_v31  ;;  %v2365_v49 = vpop.f32.mrb[74].mxu1  ;;  %v2078_v25 = vmul.f32 -1.442695, %v1479_v14 }
 0x18e   : > { %v2429_v2 = vpop.f32.mrb[74].mxu0  ;;  %v2668_v27 = vpop.eup %2667  ;;  %1831 = vst.msk [vmem:[%s3109_s21 + $0x24] sm:$0xf] %vm1821_vm1, %v2127_v26  ;;  %v1613_v50 = vadd.f32 1.0, %v2666_v21  ;;  %v1326_v39 = vadd.f32 %v2364_v24, %v1165_v52 }
 0x18f   : > { %v1482_v48 = vadd.f32 %v2429_v2, %v1321_v1  ;;  %v2366_v44 = vpop.f32.mrb[75].mxu1  ;;  %v1473_v36 = vpop.f32.mrb[75].mxu0  ;;  %2687 = vrcp.f32 %v1615_v47  ;;  %v1616_v51 = vadd.f32 1.0, %v2668_v27  ;;  %v2076_v37 = vmul.f32 -1.442695, %v1471_v20 }
 0x190   : > { %v2670_v18 = vpop.eup %2669  ;;  %v2367_v15 = vadd.f32 %v2366_v44, %v2365_v49  ;;  %2689 = vrcp.f32 %v1613_v50  ;;  %v1474_v46 = vadd.f32 %v1473_v36, %v3134_v11  ;;  %v1173_v11 = vadd.f32 %v2995_v28, %v3002_v38 }
 0x191   : > { %v2672_v31 = vpop.eup %2671  ;;  %v1614_v29 = vadd.f32 1.0, %v2670_v18  ;;  %v2079_v55 = vmul.f32 -1.442695, %v1482_v48  ;;  %2691 = vrcp.f32 %v1616_v51  ;;  %v2368_v30 = vpop.f32.mrb[76].mxu1  ;;  %v1176_v28 = vadd.f32 %v2997_v34, %v3002_v38 }
 0x192   : > { %v2674_v22 = vpop.eup %2673  ;;  %v2132_v61 = vpack.c.bf16 %v2672_v31, %v2672_v31  ;;  %v1329_v41 = vadd.f32 %v2367_v15, %v1168_v16  ;;  %v2077_v23 = vmul.f32 -1.442695, %v1474_v46  ;;  %v2432_v59 = vpop.f32.mrb[76].mxu0 }
 0x193   : > { %v2676_v42 = vpop.eup %2675  ;;  %v2130_v4 = vpack.c.bf16 %v2674_v22, %v2674_v22  ;;  %2693 = vrcp.f32 %v1614_v29  ;;  %v2369_v63 = vpop.f32.mrb[77].mxu1 }
 0x194   : > { %v2678_v5 = vpop.eup %2677  ;;  %1836 = vst.msk [vmem:[%s3109_s21 + $0x38] sm:$0xf] %vm1821_vm1, %v2132_v61  ;;  %v2133_v7 = vpack.c.bf16 %v2676_v42, %v2676_v42  ;;  %2695 = vpow2.f32 %v2078_v25  ;;  %v1486_v43 = vpop.f32.mrb[77].mxu0  ;;  %v2370_v54 = vadd.f32 %v2369_v63, %v2368_v30 }
 0x195   : > { %v2680_v10 = vpop.eup %2679  ;;  %1834 = vst.msk [vmem:[%s3109_s21 + $0x30] sm:$0xf] %vm1821_vm1, %v2130_v4  ;;  %v2131_v53 = vpack.c.bf16 %v2678_v5, %v2678_v5  ;;  %2697 = vpow2.f32 %v2076_v37  ;;  %v1487_v8 = vadd.f32 %v1486_v43, %v1326_v39  ;;  %v2371_v32 = vpop.f32.mrb[78].mxu1 }
 0x196   : > { %v2682_v17 = vpop.eup %2681  ;;  %1837 = vst.msk [vmem:[%s3109_s21 + $0x3c] sm:$0xf] %vm1821_vm1, %v2133_v7  ;;  %v1619_v57 = vadd.f32 1.0, %v2680_v10  ;;  %2699 = vpow2.f32 %v2079_v55  ;;  %v2433_v58 = vpop.f32.mrb[78].mxu0  ;;  %v1334_v45 = vadd.f32 %v2370_v54, %v1173_v11 }
 0x197   : > { %v2684_v19 = vpop.eup %2683  ;;  %1835 = vst.msk [vmem:[%s3109_s21 + $0x34] sm:$0xf] %vm1821_vm1, %v2131_v53  ;;  %v1617_v60 = vadd.f32 1.0, %v2682_v17  ;;  %2701 = vpow2.f32 %v2077_v23  ;;  %v2372_v3 = vpop.f32.mrb[79].mxu1  ;;  %v2080_v35 = vmul.f32 -1.442695, %v1487_v8 }
 0x198   : > { %v1489_v0 = vpop.f32.mrb[79].mxu0  ;;  %v2686_v1 = vpop.eup %2685  ;;  %2703 = vrcp.f32 %v1619_v57  ;;  %v1620_v33 = vadd.f32 1.0, %v2684_v19  ;;  %v2373_v12 = vadd.f32 %v2372_v3, %v2371_v32  ;;  %v1495_v40 = vadd.f32 %v2432_v59, %v1334_v45 }
 0x199   : > { %2705 = vrcp.f32 %v1617_v60  ;;  %v1618_v56 = vadd.f32 1.0, %v2686_v1  ;;  %v1490_v9 = vadd.f32 %v1489_v0, %v1329_v41  ;;  %v2688_v13 = vpop.eup %2687 }
 0x19a   : > { %2707 = vrcp.f32 %v1620_v33  ;;  %v2690_v34 = vpop.eup %2689  ;;  %v2136_v38 = vpack.c.bf16 %v2688_v13, %v2688_v13  ;;  %v1337_v52 = vadd.f32 %v2373_v12, %v1176_v28  ;;  %v2082_v62 = vmul.f32 -1.442695, %v1495_v40 }
 0x19b   : > { %2709 = vrcp.f32 %v1618_v56  ;;  %v2081_v26 = vmul.f32 -1.442695, %v1490_v9  ;;  %v2692_v14 = vpop.eup %2691  ;;  %v2134_v6 = vpack.c.bf16 %v2690_v34, %v2690_v34 }
 0x19c   : > { %2711 = vpow2.f32 %v2080_v35  ;;  %1840 = vst.msk [vmem:[%s3109_s21 + $0x48] sm:$0xf] %vm1821_vm1, %v2136_v38  ;;  %v2137_v47 = vpack.c.bf16 %v2692_v14, %v2692_v14  ;;  %v1498_v24 = vadd.f32 %v2433_v58, %v1337_v52 }
 0x19d   : > { %v2694_v21 = vpop.eup %2693  ;;  %2713 = vpow2.f32 %v2081_v26  ;;  %1838 = vst.msk [vmem:[%s3109_s21 + $0x40] sm:$0xf] %vm1821_vm1, %v2134_v6 }
 0x19e   : > { %v2696_v20 = vpop.eup %2695  ;;  %v2135_v49 = vpack.c.bf16 %v2694_v21, %v2694_v21  ;;  %2715 = vpow2.f32 %v2082_v62  ;;  %1841 = vst.msk [vmem:[%s3109_s21 + $0x4c] sm:$0xf] %vm1821_vm1, %v2137_v47  ;;  %v2083_v44 = vmul.f32 -1.442695, %v1498_v24 }
 0x19f   : > { %v2698_v2 = vpop.eup %2697  ;;  %v1623_v27 = vadd.f32 1.0, %v2696_v20 }
 0x1a0   : > { %v2700_v16 = vpop.eup %2699  ;;  %1839 = vst.msk [vmem:[%s3109_s21 + $0x44] sm:$0xf] %vm1821_vm1, %v2135_v49  ;;  %v1621_v50 = vadd.f32 1.0, %v2698_v2 }
 0x1a1   : > { %v2702_v25 = vpop.eup %2701  ;;  %2717 = vrcp.f32 %v1623_v27  ;;  %v1624_v48 = vadd.f32 1.0, %v2700_v16 }
 0x1a2   : > { %v2704_v36 = vpop.eup %2703  ;;  %2719 = vrcp.f32 %v1621_v50  ;;  %v1622_v18 = vadd.f32 1.0, %v2702_v25 }
 0x1a3   : > { %v2706_v51 = vpop.eup %2705  ;;  %v2140_v37 = vpack.c.bf16 %v2704_v36, %v2704_v36  ;;  %2721 = vrcp.f32 %v1624_v48 }
 0x1a4   : > { %v2708_v15 = vpop.eup %2707  ;;  %v2138_v31 = vpack.c.bf16 %v2706_v51, %v2706_v51  ;;  %2723 = vrcp.f32 %v1622_v18 }
 0x1a5   : > { %v2710_v29 = vpop.eup %2709  ;;  %1844 = vst.msk [vmem:[%s3109_s21 + $0x58] sm:$0xf] %vm1821_vm1, %v2140_v37  ;;  %v2141_v55 = vpack.c.bf16 %v2708_v15, %v2708_v15  ;;  %2725 = vpow2.f32 %v2083_v44 }
 0x1a6   : > { %v2712_v46 = vpop.eup %2711  ;;  %1842 = vst.msk [vmem:[%s3109_s21 + $0x50] sm:$0xf] %vm1821_vm1, %v2138_v31  ;;  %v2139_v22 = vpack.c.bf16 %v2710_v29, %v2710_v29 }
 0x1a7   : > { %v2714_v61 = vpop.eup %2713  ;;  %1845 = vst.msk [vmem:[%s3109_s21 + $0x5c] sm:$0xf] %vm1821_vm1, %v2141_v55  ;;  %v1625_v39 = vadd.f32 1.0, %v2712_v46 }
 0x1a8   : > { %v2716_v41 = vpop.eup %2715  ;;  %1843 = vst.msk [vmem:[%s3109_s21 + $0x54] sm:$0xf] %vm1821_vm1, %v2139_v22  ;;  %v1626_v42 = vadd.f32 1.0, %v2714_v61 }
 0x1a9   : > { %v1627_v4 = vadd.f32 1.0, %v2716_v41  ;;  %2727 = vrcp.f32 %v1625_v39 }
 0x1aa   : > { %2729 = vrcp.f32 %v1626_v42 }
 0x1ab   : > { %v2718_v23 = vpop.eup %2717  ;;  %2731 = vrcp.f32 %v1627_v4 }
 0x1ac   : > { %v2720_v5 = vpop.eup %2719  ;;  %v2144_v7 = vpack.c.bf16 %v2718_v23, %v2718_v23 }
 0x1ad   : > { %v2722_v30 = vpop.eup %2721  ;;  %v2142_v59 = vpack.c.bf16 %v2720_v5, %v2720_v5 }
 0x1ae   : > { %v2724_v10 = vpop.eup %2723  ;;  %1848 = vst.msk [vmem:[%s3109_s21 + $0x68] sm:$0xf] %vm1821_vm1, %v2144_v7  ;;  %v2145_v11 = vpack.c.bf16 %v2722_v30, %v2722_v30 }
 0x1af   : > { %v2726_v53 = vpop.eup %2725  ;;  %1846 = vst.msk [vmem:[%s3109_s21 + $0x60] sm:$0xf] %vm1821_vm1, %v2142_v59  ;;  %v2143_v63 = vpack.c.bf16 %v2724_v10, %v2724_v10 }
 0x1b0   : > { %1849 = vst.msk [vmem:[%s3109_s21 + $0x6c] sm:$0xf] %vm1821_vm1, %v2145_v11  ;;  %v1628_v43 = vadd.f32 1.0, %v2726_v53 }
 0x1b1   : > { %1847 = vst.msk [vmem:[%s3109_s21 + $0x64] sm:$0xf] %vm1821_vm1, %v2143_v63 }
 0x1b2   : > { %2733 = vrcp.f32 %v1628_v43 }
 0x1b3   : > { %v2728_v17 = vpop.eup %2727 }
 0x1b4   : > { %v2730_v57 = vpop.eup %2729  ;;  %v2146_v54 = vpack.c.bf16 %v2728_v17, %v2728_v17 }
 0x1b5   : > { %v2732_v8 = vpop.eup %2731  ;;  %v2147_v32 = vpack.c.bf16 %v2730_v57, %v2730_v57 }
 0x1b6   : > { %v2148_v58 = vpack.c.bf16 %v2732_v8, %v2732_v8  ;;  %1850 = vst.msk [vmem:[%s3109_s21 + $0x70] sm:$0xf] %vm1821_vm1, %v2146_v54 }
 0x1b7   : > { %1851 = vst.msk [vmem:[%s3109_s21 + $0x74] sm:$0xf] %vm1821_vm1, %v2147_v32 }
 0x1b8   : > { %1852 = vst.msk [vmem:[%s3109_s21 + $0x78] sm:$0xf] %vm1821_vm1, %v2148_v58 }
 0x1bc   : > { %v2734_v19 = vpop.eup %2733 }
 0x1bd   : > { %v2149_v28 = vpack.c.bf16 %v2734_v19, %v2734_v19 }
 0x1bf   : > { %1853 = vst.msk [vmem:[%s3109_s21 + $0x7c] sm:$0xf] %vm1821_vm1, %v2149_v28 }
 0x1c0 PF: > { %s13_s12 = sadd.s32 1, %s2741_s12  }
 0x1c1   : > { %p10_p4 = scmp.ge.s32.totalorder %s13_s12, 4  }
 0x1c3   :  { %12 = sbr.rel (!%p10_p4) target bundleno = 1 (0x1), region = 62 }

// kernel: colornet_forward.29
= control target key start
LH: loop header
LB: loop body
LE: loop exit
PB: predicated region body
PF: predicated region fallthrough
CT: control target
= control target key end

     0   :  { %s1487_s12 = smov 0   ;;  %s1729_s0 = inlined_call_operand.vmem [shape: bf16[512,288], index: 0, kind: input, shape index: {}]   ;;  %s1730_s1 = inlined_call_operand.vmem [shape: bf16[288,128], index: 1, kind: input, shape index: {}]   ;;  %s1731_s2 = inlined_call_operand.vmem [shape: f32[1,128], index: 2, kind: input, shape index: {}]   ;;  %s1732_s3 = inlined_call_operand.vmem [shape: f32[512,128], index: 3, kind: output, shape index: {}]  }
   0x1 LB: > { %s1092_s13 = sadd.s32 4294967295, %s1465_s12   ;;  %p1096_p0 = scmp.ge.s32.totalorder %s1465_s12, 1  ;;  %s1465_s12 = sphi %s1487_s12, %s13_s12  }
   0x2   : > { %p139_p1 = scmp.lt.s32.totalorder %s1465_s12, 3 }
   0x4   : > { %p140_p2 = pnand %p1096_p0, %p139_p1 }
   0x5   : > { %v1377_v0 = vld [vmem:[%s1730_s1 + $0x40] sm:$0xff] (!%p140_p2)   ;;  %s1097_s16 = sshll.u32 (!%p140_p2), %s1092_s13, 5  ;;  %v1379_v2 = vld [vmem:[%s1730_s1 + $0x48] sm:$0xff] (!%p140_p2)   ;;  %v1381_v4 = vld [vmem:[%s1730_s1 + $0x50] sm:$0xff] (!%p140_p2)   ;;  %vm633_vm0 = vcmask (!%p140_p2), 261120  }
   0x6   : > { %143 = sbr.rel (%p140_p2) target bundleno = 348 (0x15c), region = 32  ;;  %v1378_v1 = vld [vmem:[%s1730_s1] sm:$0xff] (!%p140_p2)   ;;  %1186 = vmatprep.subr.bf16.mxu0 (!%p140_p2), %v1377_v0  ;;  %1352 = vmatprep.subr.bf16.mxu1 (!%p140_p2), %v1377_v0  ;;  %p165_p3 = scmp.lt.s32.totalorder (!%p140_p2), %s1097_s16, 63  ;;  %v1380_v3 = vld [vmem:[%s1730_s1 + $0x8] sm:$0xff] (!%p140_p2)   ;;  %v1382_v5 = vld [vmem:[%s1730_s1 + $0x10] sm:$0xff] (!%p140_p2)  }
   0x7   : > { %1187 = vmatpush3.bf16.msra.mxu0 (!%p140_p2), %v1378_v1  ;;  %1360 = vmatpush3.bf16.msra.mxu1 (!%p140_p2), %v1378_v1  ;;  %v1383_v6 = vld [vmem:[%s1730_s1 + $0x58] sm:$0xff] (!%p140_p2)   ;;  %v1385_v8 = vld [vmem:[%s1730_s1 + $0x60] sm:$0xff] (!%p140_p2)   ;;  %v1387_v10 = vld [vmem:[%s1730_s1 + $0x68] sm:$0xff] (!%p140_p2)  }
   0x8   : > { %1188 = vmatprep.subr.bf16.mxu0 (!%p140_p2), %v1379_v2  ;;  %1353 = vmatprep.subr.bf16.mxu1 (!%p140_p2), %v1379_v2  ;;  %v1384_v7 = vld [vmem:[%s1730_s1 + $0x18] sm:$0xff] (!%p140_p2)   ;;  %v1386_v9 = vld [vmem:[%s1730_s1 + $0x20] sm:$0xff] (!%p140_p2)   ;;  %v1388_v13 = vld [vmem:[%s1730_s1 + $0x28] sm:$0xff] (!%p140_p2)  }
   0x9   : > { %v1389_v14 = vld [vmem:[%s1730_s1 + $0x70] sm:$0xff] (!%p140_p2)   ;;  %v1391_v16 = vld [vmem:[%s1730_s1 + $0x78] sm:$0xff] (!%p140_p2)   ;;  %v1399_v18 = vld [vmem:[%s1730_s1 + $0x80] sm:$0xff] (!%p140_p2)  }
   0xa   : > { %v1390_v15 = vld [vmem:[%s1730_s1 + $0x30] sm:$0xff] (!%p140_p2)   ;;  %v1392_v17 = vld [vmem:[%s1730_s1 + $0x38] sm:$0xff] (!%p140_p2)   ;;  %v1412_v23 = vld [vmem:[%s1730_s1 + $0x88] sm:$0xff] (!%p140_p2)  }
   0xb   : > { %1189 = vmatpush3.bf16.msra.mxu0 (!%p140_p2), %v1380_v3  ;;  %1361 = vmatpush3.bf16.msra.mxu1 (!%p140_p2), %v1380_v3 }
   0xc   : > { %1190 = vmatprep.subr.bf16.mxu0 (!%p140_p2), %v1381_v4  ;;  %1354 = vmatprep.subr.bf16.mxu1 (!%p140_p2), %v1381_v4 }
   0xd   : > { %s1734_s16 = smov (!%p165_p3, %s1097_s16), 63 }
   0xe   : > { %s1368_s29 = smul.u32 12, %s1734_s16  ;;  %s1100_s30 = sshll.u32 %s1734_s16, 3 }
   0xf   : > { %1191 = vmatpush3.bf16.msra.mxu0 %v1382_v5  ;;  %1362 = vmatpush3.bf16.msra.mxu1 %v1382_v5  ;;  %s1647_s8 = scalar_lea.vmem %s1732_s3, %s1100_s30 }
  0x10   : > { %1192 = vmatprep.subr.bf16.mxu0 %v1383_v6  ;;  %1355 = vmatprep.subr.bf16.mxu1 %v1383_v6  ;;  %s1528_s9 = scalar_lea.vmem %s1729_s0, %s1368_s29 }
  0x11   : > { %v1395_v11 = vld [vmem:[%s1528_s9 + $0x4] ss:$12 sps:$4 sm:$0xff]   ;;  %v1393_v19 = vld [vmem:[%s1528_s9] ss:$12 sps:$4 sm:$0xff]   ;;  %v1400_v21 = vld [vmem:[%s1528_s9 + $0x1c] ss:$12 sps:$4 sm:$0xff]  }
  0x12   : > { %v1398_v12 = vld [vmem:[%s1528_s9 + $0x124] ss:$12 sps:$4 sm:$0xff]   ;;  %714 = vmatprep.mubr.bf16.mxu0 %v1395_v11  ;;  %v1396_v20 = vld [vmem:[%s1528_s9 + $0x120] ss:$12 sps:$4 sm:$0xff]   ;;  %v1402_v22 = vld [vmem:[%s1528_s9 + $0x13c] ss:$12 sps:$4 sm:$0xff]  }
  0x13   : > { %1193 = vmatpush3.bf16.msra.mxu0 %v1384_v7  ;;  %1363 = vmatpush3.bf16.msra.mxu1 %v1384_v7  ;;  %v1404_v24 = vld [vmem:[%s1528_s9 + $0x18] ss:$12 sps:$4 sm:$0xff]   ;;  %v1406_v26 = vld [vmem:[%s1528_s9 + $0x34] ss:$12 sps:$4 sm:$0xff]   ;;  %v1410_v28 = vld [vmem:[%s1528_s9 + $0x30] ss:$12 sps:$4 sm:$0xff]  }
  0x14   : > { %1194 = vmatprep.subr.bf16.mxu0 %v1385_v8  ;;  %1356 = vmatprep.subr.bf16.mxu1 %v1385_v8  ;;  %v1405_v25 = vld [vmem:[%s1528_s9 + $0x138] ss:$12 sps:$4 sm:$0xff]   ;;  %v1408_v27 = vld [vmem:[%s1528_s9 + $0x154] ss:$12 sps:$4 sm:$0xff]   ;;  %v1411_v29 = vld [vmem:[%s1528_s9 + $0x150] ss:$12 sps:$4 sm:$0xff]  }
  0x15   : > { %810 = vmatprep.mubr.bf16.mxu1 %v1398_v12  ;;  %v1413_v30 = vld [vmem:[%s1528_s9 + $0x4c] ss:$12 sps:$4 sm:$0xff]   ;;  %v1417_v32 = vld [vmem:[%s1528_s9 + $0x48] ss:$12 sps:$4 sm:$0xff]   ;;  %v1419_v34 = vld [vmem:[%s1528_s9 + $0x64] ss:$12 sps:$4 sm:$0xff]  }
  0x16   : > { %v1415_v31 = vld [vmem:[%s1528_s9 + $0x16c] ss:$12 sps:$4 sm:$0xff]   ;;  %v1418_v33 = vld [vmem:[%s1528_s9 + $0x168] ss:$12 sps:$4 sm:$0xff]   ;;  %v1428_v41 = vld [vmem:[%s1528_s9 + $0x50] ss:$12 sps:$4 sm:$0xff]  }
  0x17   : > { %1195 = vmatpush3.bf16.msra.mxu0 %v1386_v9  ;;  %1364 = vmatpush3.bf16.msra.mxu1 %v1386_v9  ;;  %v1421_v35 = vld [vmem:[%s1528_s9 + $0x8] ss:$12 sps:$4 sm:$0xff]   ;;  %v1422_v36 = vld [vmem:[%s1528_s9 + $0x60] ss:$12 sps:$4 sm:$0xff]   ;;  %v1426_v39 = vld [vmem:[%s1528_s9 + $0x38] ss:$12 sps:$4 sm:$0xff]  }
  0x18   : > { %1196 = vmatprep.subr.bf16.mxu0 %v1387_v10  ;;  %1357 = vmatprep.subr.bf16.mxu1 %v1387_v10  ;;  %v1423_v37 = vld [vmem:[%s1528_s9 + $0x20] ss:$12 sps:$4 sm:$0xff]   ;;  %v1424_v38 = vld [vmem:[%s1528_s9 + $0x7c] ss:$12 sps:$4 sm:$0xff]   ;;  %v1427_v40 = vld [vmem:[%s1528_s9 + $0x78] ss:$12 sps:$4 sm:$0xff]  }
  0x19   : > { %v1429_v42 = vld [vmem:[%s1528_s9 + $0x94] ss:$12 sps:$4 sm:$0xff]   ;;  %v1432_v44 = vld [vmem:[%s1528_s9 + $0x90] ss:$12 sps:$4 sm:$0xff]   ;;  %v1434_v46 = vld [vmem:[%s1528_s9 + $0xac] ss:$12 sps:$4 sm:$0xff]  }
  0x1a   : > { %v1431_v43 = vld [vmem:[%s1528_s9 + $0x68] ss:$12 sps:$4 sm:$0xff]   ;;  %v1433_v45 = vld [vmem:[%s1528_s9 + $0x80] ss:$12 sps:$4 sm:$0xff]   ;;  %v1436_v47 = vld [vmem:[%s1528_s9 + $0x98] ss:$12 sps:$4 sm:$0xff]  }
  0x1b   : > { %1197 = vmatpush3.bf16.msra.mxu0 %v1388_v13  ;;  %1365 = vmatpush3.bf16.msra.mxu1 %v1388_v13  ;;  %v1437_v48 = vld [vmem:[%s1528_s9 + $0xa8] ss:$12 sps:$4 sm:$0xff]   ;;  %v1438_v49 = vld [vmem:[%s1528_s9 + $0xb0] ss:$12 sps:$4 sm:$0xff]   ;;  %v1442_v52 = vld [vmem:[%s1528_s9 + $0xc0] ss:$12 sps:$4 sm:$0xff]  }
  0x1c   : > { %1198 = vmatprep.subr.bf16.mxu0 %v1389_v14  ;;  %1358 = vmatprep.subr.bf16.mxu1 %v1389_v14  ;;  %v1439_v50 = vld [vmem:[%s1528_s9 + $0xc4] ss:$12 sps:$4 sm:$0xff]   ;;  %v1441_v51 = vld [vmem:[%s1528_s9 + $0xc8] ss:$12 sps:$4 sm:$0xff]   ;;  %v1443_v53 = vld [vmem:[%s1528_s9 + $0xe0] ss:$12 sps:$4 sm:$0xff]  }
  0x1d   : > { %v1444_v54 = vld [vmem:[%s1528_s9 + $0xdc] ss:$12 sps:$4 sm:$0xff]   ;;  %v1446_v55 = vld [vmem:[%s1528_s9 + $0xf8] ss:$12 sps:$4 sm:$0xff]   ;;  %v1449_v58 = vld [vmem:[%s1528_s9 + $0xf4] ss:$12 sps:$4 sm:$0xff]  }
  0x1e   : > { %v1447_v56 = vld [vmem:[%s1528_s9 + $0xd8] ss:$12 sps:$4 sm:$0xff]   ;;  %v1448_v57 = vld [vmem:[%s1528_s9 + $0x110] ss:$12 sps:$4 sm:$0xff]   ;;  %v1451_v59 = vld [vmem:[%s1528_s9 + $0x128] ss:$12 sps:$4 sm:$0xff]  }
  0x1f   : > { %1199 = vmatpush3.bf16.msra.mxu0 %v1390_v15  ;;  %1366 = vmatpush3.bf16.msra.mxu1 %v1390_v15  ;;  %v1452_v60 = vld [vmem:[%s1528_s9 + $0xf0] ss:$12 sps:$4 sm:$0xff]   ;;  %v1453_v61 = vld [vmem:[%s1528_s9 + $0x140] ss:$12 sps:$4 sm:$0xff]   ;;  %v1456_v63 = vld [vmem:[%s1528_s9 + $0x158] ss:$12 sps:$4 sm:$0xff]  }
  0x20   : > { %1200 = vmatprep.subr.bf16.mxu0 %v1391_v16  ;;  %1359 = vmatprep.subr.bf16.mxu1 %v1391_v16  ;;  %v1454_v62 = vld [vmem:[%s1528_s9 + $0x10c] ss:$12 sps:$4 sm:$0xff]   ;;  %v1457_v0 = vld [vmem:[%s1528_s9 + $0x108] ss:$12 sps:$4 sm:$0xff]   ;;  %v1458_v1 = vld [vmem:[%s1528_s9 + $0x170] ss:$12 sps:$4 sm:$0xff]  }
  0x23   : > { %1201 = vmatpush3.bf16.msra.mxu0 %v1392_v17  ;;  %1367 = vmatpush3.bf16.msra.mxu1 %v1392_v17 }
  0x24   : > { %1316 = vmatprep.subr.bf16.mxu1 %v1399_v18 }
  0x26   : > { %715 = vmatmul.mubr.bf16.vlgmr.msra.gmra.mrb[0].mxu0 %v1393_v19  ;;  %811 = vmatmul.mubr.bf16.vlgmr.msra.gmra.mrb[0].mxu1 %v1396_v20 }
  0x27   : > { %1317 = vmatpush3.bf16.msra.mxu1 %v1399_v18  ;;  %722 = vmatprep.mubr.bf16.mxu0 %v1400_v21 }
  0x28   : > { %818 = vmatprep.mubr.bf16.mxu1 %v1402_v22  ;;  %1318 = vmatprep.subr.bf16.mxu1 %v1412_v23 }
  0x2b   : > { %1319 = vmatpush3.bf16.msra.mxu1 %v1412_v23 }
  0x2e   : > { %723 = vmatmul.mubr.bf16.gmra.mrb[4].mxu0 %v1404_v24  ;;  %819 = vmatmul.mubr.bf16.gmra.mrb[4].mxu1 %v1405_v25 }
  0x2f   : > { %730 = vmatprep.mubr.bf16.mxu0 %v1406_v26  ;;  %826 = vmatprep.mubr.bf16.mxu1 %v1408_v27 }
  0x36   : > { %731 = vmatmul.mubr.bf16.gmra.mrb[8].mxu0 %v1410_v28  ;;  %827 = vmatmul.mubr.bf16.gmra.mrb[8].mxu1 %v1411_v29 }
  0x37   : > { %738 = vmatprep.mubr.bf16.mxu0 %v1413_v30  ;;  %834 = vmatprep.mubr.bf16.mxu1 %v1415_v31 }
  0x3e   : > { %739 = vmatmul.mubr.bf16.gmra.mrb[12].mxu0 %v1417_v32  ;;  %835 = vmatmul.mubr.bf16.gmra.mrb[12].mxu1 %v1418_v33 }
  0x3f   : > { %746 = vmatprep.mubr.bf16.mxu0 %v1419_v34  ;;  %1320 = vmatprep.mubr.msk.bf16.mxu1 %vm633_vm0, %v1421_v35 }
  0x46   : > { %747 = vmatmul.mubr.bf16.gmra.mrb[16].mxu0 %v1422_v36  ;;  %1321 = vmatmul.mubr.msk.bf16.vlgmr.msra.gmra.mrb[16].mxu1 %vm633_vm0, %v1423_v37 }
  0x47   : > { %754 = vmatprep.mubr.bf16.mxu0 %v1424_v38  ;;  %1324 = vmatprep.mubr.msk.bf16.mxu1 %vm633_vm0, %v1426_v39 }
  0x4e   : > { %755 = vmatmul.mubr.bf16.gmra.mrb[20].mxu0 %v1427_v40  ;;  %1325 = vmatmul.mubr.msk.bf16.gmra.mrb[20].mxu1 %vm633_vm0, %v1428_v41 }
  0x4f   : > { %762 = vmatprep.mubr.bf16.mxu0 %v1429_v42  ;;  %1328 = vmatprep.mubr.msk.bf16.mxu1 %vm633_vm0, %v1431_v43 }
  0x56   : > { %763 = vmatmul.mubr.bf16.gmra.mrb[24].mxu0 %v1432_v44  ;;  %1329 = vmatmul.mubr.msk.bf16.gmra.mrb[24].mxu1 %vm633_vm0, %v1433_v45 }
  0x57   : > { %770 = vmatprep.mubr.bf16.mxu0 %v1434_v46  ;;  %1332 = vmatprep.mubr.msk.bf16.mxu1 %vm633_vm0, %v1436_v47 }
  0x5e   : > { %771 = vmatmul.mubr.bf16.gmra.mrb[28].mxu0 %v1437_v48  ;;  %1333 = vmatmul.mubr.msk.bf16.gmra.mrb[28].mxu1 %vm633_vm0, %v1438_v49 }
  0x5f   : > { %778 = vmatprep.mubr.bf16.mxu0 %v1439_v50  ;;  %1336 = vmatprep.mubr.msk.bf16.mxu1 %vm633_vm0, %v1441_v51  ;;  %v1641_v50 = vld [vmem:[%s1731_s2] ss:$0 sm:$0xff] }
  0x66   : > { %779 = vmatmul.mubr.bf16.gmra.mrb[32].mxu0 %v1442_v52  ;;  %1337 = vmatmul.mubr.msk.bf16.gmra.mrb[32].mxu1 %vm633_vm0, %v1443_v53 }
  0x67   : > { %786 = vmatprep.mubr.bf16.mxu0 %v1444_v54  ;;  %1340 = vmatprep.mubr.msk.bf16.mxu1 %vm633_vm0, %v1446_v55 }
  0x6e   : > { %787 = vmatmul.mubr.bf16.gmra.mrb[36].mxu0 %v1447_v56  ;;  %1341 = vmatmul.mubr.msk.bf16.gmra.mrb[36].mxu1 %vm633_vm0, %v1448_v57 }
  0x6f   : > { %794 = vmatprep.mubr.bf16.mxu0 %v1449_v58  ;;  %1344 = vmatprep.mubr.msk.bf16.mxu1 %vm633_vm0, %v1451_v59 }
  0x76   : > { %795 = vmatmul.mubr.bf16.gmra.mrb[40].mxu0 %v1452_v60  ;;  %1345 = vmatmul.mubr.msk.bf16.gmra.mrb[40].mxu1 %vm633_vm0, %v1453_v61 }
  0x77   : > { %802 = vmatprep.mubr.bf16.mxu0 %v1454_v62  ;;  %1348 = vmatprep.mubr.msk.bf16.mxu1 %vm633_vm0, %v1456_v63 }
  0x7e   : > { %803 = vmatmul.mubr.bf16.gmra.mrb[44].mxu0 %v1457_v0  ;;  %1349 = vmatmul.mubr.msk.bf16.gmra.mrb[44].mxu1 %vm633_vm0, %v1458_v1 }
  0xf9   : > { %v1202_v2 = vpop.f32.mrb[0].mxu0  ;;  %v1274_v3 = vpop.f32.mrb[0].mxu1 }
  0xfa   : > { %v1203_v4 = vpop.f32.mrb[1].mxu0  ;;  %v1275_v5 = vpop.f32.mrb[1].mxu1 }
  0xfb   : > { %v1204_v6 = vadd.f32 %v1203_v4, %v1202_v2  ;;  %v1205_v7 = vpop.f32.mrb[2].mxu0  ;;  %v1621_v8 = vadd.f32 %v1275_v5, %v1274_v3  ;;  %v1277_v9 = vpop.f32.mrb[2].mxu1 }
  0xfc   : > { %v1206_v10 = vpop.f32.mrb[3].mxu0  ;;  %v1278_v11 = vpop.f32.mrb[3].mxu1 }
  0xfd   : > { %v1207_v12 = vadd.f32 %v1206_v10, %v1205_v7  ;;  %v1623_v13 = vadd.f32 %v1278_v11, %v1277_v9  ;;  %v717_v54 = vadd.f32 %v1204_v6, %v1641_v50 }
  0xff   : > { %v720_v63 = vadd.f32 %v1207_v12, %v1641_v50 }
 0x101   : > { %v1208_v14 = vpop.f32.mrb[4].mxu0  ;;  %v1280_v15 = vpop.f32.mrb[4].mxu1 }
 0x102   : > { %v1209_v16 = vpop.f32.mrb[5].mxu0  ;;  %v1281_v17 = vpop.f32.mrb[5].mxu1 }
 0x103   : > { %v1210_v18 = vadd.f32 %v1209_v16, %v1208_v14  ;;  %v1211_v19 = vpop.f32.mrb[6].mxu0  ;;  %v1625_v20 = vadd.f32 %v1281_v17, %v1280_v15  ;;  %v1283_v21 = vpop.f32.mrb[6].mxu1 }
 0x104   : > { %v1212_v22 = vpop.f32.mrb[7].mxu0  ;;  %v1284_v23 = vpop.f32.mrb[7].mxu1 }
 0x105   : > { %v1213_v24 = vadd.f32 %v1212_v22, %v1211_v19  ;;  %v1627_v25 = vadd.f32 %v1284_v23, %v1283_v21  ;;  %v725_v51 = vadd.f32 %v1210_v18, %v1641_v50 }
 0x107   : > { %v728_v58 = vadd.f32 %v1213_v24, %v1641_v50 }
 0x109   : > { %v1214_v26 = vpop.f32.mrb[8].mxu0  ;;  %v1286_v27 = vpop.f32.mrb[8].mxu1 }
 0x10a   : > { %v1215_v28 = vpop.f32.mrb[9].mxu0  ;;  %v1287_v29 = vpop.f32.mrb[9].mxu1 }
 0x10b   : > { %v1216_v30 = vadd.f32 %v1215_v28, %v1214_v26  ;;  %v1217_v31 = vpop.f32.mrb[10].mxu0  ;;  %v1629_v32 = vadd.f32 %v1287_v29, %v1286_v27  ;;  %v1289_v33 = vpop.f32.mrb[10].mxu1 }
 0x10c   : > { %v1218_v34 = vpop.f32.mrb[11].mxu0  ;;  %v1290_v35 = vpop.f32.mrb[11].mxu1 }
 0x10d   : > { %v1219_v36 = vadd.f32 %v1218_v34, %v1217_v31  ;;  %v1631_v37 = vadd.f32 %v1290_v35, %v1289_v33  ;;  %v733_v9 = vadd.f32 %v1216_v30, %v1641_v50 }
 0x10f   : > { %v736_v19 = vadd.f32 %v1219_v36, %v1641_v50 }
 0x111   : > { %v1220_v38 = vpop.f32.mrb[12].mxu0  ;;  %v1292_v39 = vpop.f32.mrb[12].mxu1 }
 0x112   : > { %v1221_v40 = vpop.f32.mrb[13].mxu0  ;;  %v1293_v41 = vpop.f32.mrb[13].mxu1 }
 0x113   : > { %v1222_v42 = vadd.f32 %v1221_v40, %v1220_v38  ;;  %v1223_v43 = vpop.f32.mrb[14].mxu0  ;;  %v1633_v44 = vadd.f32 %v1293_v41, %v1292_v39  ;;  %v1295_v45 = vpop.f32.mrb[14].mxu1 }
 0x114   : > { %v1224_v46 = vpop.f32.mrb[15].mxu0  ;;  %v1296_v47 = vpop.f32.mrb[15].mxu1 }
 0x115   : > { %v1225_v48 = vadd.f32 %v1224_v46, %v1223_v43  ;;  %v1635_v49 = vadd.f32 %v1296_v47, %v1295_v45  ;;  %v741_v5 = vadd.f32 %v1222_v42, %v1641_v50 }
 0x117   : > { %v744_v14 = vadd.f32 %v1225_v48, %v1641_v50 }
 0x119   : > { %v1226_v52 = vpop.f32.mrb[16].mxu0  ;;  %v1322_v53 = vpop.f32.mrb[16].mxu1 }
 0x11a   : > { %v886_v55 = vadd.f32 %v1322_v53, %v725_v51  ;;  %v1227_v56 = vpop.f32.mrb[17].mxu0  ;;  %v877_v57 = vpop.f32.mrb[17].mxu1 }
 0x11b   : > { %v1228_v59 = vadd.f32 %v1227_v56, %v1226_v52  ;;  %v878_v60 = vadd.f32 %v877_v57, %v717_v54  ;;  %v1229_v61 = vpop.f32.mrb[18].mxu0  ;;  %v1323_v62 = vpop.f32.mrb[18].mxu1 }
 0x11c   : > { %1006 = vst [vmem:[%s1647_s8 + $0x10] sm:$0xff] %v886_v55  ;;  %v889_v0 = vadd.f32 %v1323_v62, %v728_v58  ;;  %v1230_v1 = vpop.f32.mrb[19].mxu0  ;;  %v880_v2 = vpop.f32.mrb[19].mxu1 }
 0x11d   : > { %1004 = vst [vmem:[%s1647_s8] sm:$0xff] %v878_v60  ;;  %v1231_v3 = vadd.f32 %v1230_v1, %v1229_v61  ;;  %v881_v4 = vadd.f32 %v880_v2, %v720_v63  ;;  %v749_v30 = vadd.f32 %v1228_v59, %v1641_v50 }
 0x11e   : > { %1007 = vst [vmem:[%s1647_s8 + $0x18] sm:$0xff] %v889_v0 }
 0x11f   : > { %1005 = vst [vmem:[%s1647_s8 + $0x8] sm:$0xff] %v881_v4  ;;  %v752_v41 = vadd.f32 %v1231_v3, %v1641_v50 }
 0x121   : > { %v1232_v6 = vpop.f32.mrb[20].mxu0  ;;  %v1326_v7 = vpop.f32.mrb[20].mxu1 }
 0x122   : > { %v902_v10 = vadd.f32 %v1326_v7, %v741_v5  ;;  %v1233_v11 = vpop.f32.mrb[21].mxu0  ;;  %v893_v12 = vpop.f32.mrb[21].mxu1 }
 0x123   : > { %v1234_v15 = vadd.f32 %v1233_v11, %v1232_v6  ;;  %v894_v16 = vadd.f32 %v893_v12, %v733_v9  ;;  %v1235_v17 = vpop.f32.mrb[22].mxu0  ;;  %v1327_v18 = vpop.f32.mrb[22].mxu1 }
 0x124   : > { %1010 = vst [vmem:[%s1647_s8 + $0x30] sm:$0xff] %v902_v10  ;;  %v905_v21 = vadd.f32 %v1327_v18, %v744_v14  ;;  %v1236_v22 = vpop.f32.mrb[23].mxu0  ;;  %v896_v23 = vpop.f32.mrb[23].mxu1 }
 0x125   : > { %1008 = vst [vmem:[%s1647_s8 + $0x20] sm:$0xff] %v894_v16  ;;  %v1237_v24 = vadd.f32 %v1236_v22, %v1235_v17  ;;  %v897_v26 = vadd.f32 %v896_v23, %v736_v19  ;;  %v757_v27 = vadd.f32 %v1234_v15, %v1641_v50 }
 0x126   : > { %1011 = vst [vmem:[%s1647_s8 + $0x38] sm:$0xff] %v905_v21 }
 0x127   : > { %1009 = vst [vmem:[%s1647_s8 + $0x28] sm:$0xff] %v897_v26  ;;  %v760_v35 = vadd.f32 %v1237_v24, %v1641_v50 }
 0x129   : > { %v1238_v28 = vpop.f32.mrb[24].mxu0  ;;  %v1330_v29 = vpop.f32.mrb[24].mxu1 }
 0x12a   : > { %v918_v31 = vadd.f32 %v1330_v29, %v757_v27  ;;  %v1239_v33 = vpop.f32.mrb[25].mxu0  ;;  %v909_v34 = vpop.f32.mrb[25].mxu1 }
 0x12b   : > { %v1240_v36 = vadd.f32 %v1239_v33, %v1238_v28  ;;  %v910_v38 = vadd.f32 %v909_v34, %v749_v30  ;;  %v1241_v39 = vpop.f32.mrb[26].mxu0  ;;  %v1331_v40 = vpop.f32.mrb[26].mxu1 }
 0x12c   : > { %1014 = vst [vmem:[%s1647_s8 + $0x50] sm:$0xff] %v918_v31  ;;  %v921_v42 = vadd.f32 %v1331_v40, %v760_v35  ;;  %v1242_v43 = vpop.f32.mrb[27].mxu0  ;;  %v912_v45 = vpop.f32.mrb[27].mxu1 }
 0x12d   : > { %1012 = vst [vmem:[%s1647_s8 + $0x40] sm:$0xff] %v910_v38  ;;  %v1243_v46 = vadd.f32 %v1242_v43, %v1241_v39  ;;  %v913_v47 = vadd.f32 %v912_v45, %v752_v41  ;;  %v765_v52 = vadd.f32 %v1240_v36, %v1641_v50  ;;  %v821_v36 = vadd.f32 %v1625_v20, %v1641_v50 }
 0x12e   : > { %1015 = vst [vmem:[%s1647_s8 + $0x58] sm:$0xff] %v921_v42  ;;  %v813_v41 = vadd.f32 %v1621_v8, %v1641_v50 }
 0x12f   : > { %1013 = vst [vmem:[%s1647_s8 + $0x48] sm:$0xff] %v913_v47  ;;  %v768_v59 = vadd.f32 %v1243_v46, %v1641_v50  ;;  %v824_v46 = vadd.f32 %v1627_v25, %v1641_v50 }
 0x131   : > { %v1244_v48 = vpop.f32.mrb[28].mxu0  ;;  %v1334_v51 = vpop.f32.mrb[28].mxu1 }
 0x132   : > { %v1245_v53 = vpop.f32.mrb[29].mxu0  ;;  %v925_v54 = vpop.f32.mrb[29].mxu1 }
 0x133   : > { %v1246_v55 = vadd.f32 %v1245_v53, %v1244_v48  ;;  %v926_v56 = vadd.f32 %v925_v54, %v765_v52  ;;  %v1247_v57 = vpop.f32.mrb[30].mxu0  ;;  %v1335_v58 = vpop.f32.mrb[30].mxu1  ;;  %v816_v52 = vadd.f32 %v1623_v13, %v1641_v50 }
 0x134   : > { %v1248_v60 = vpop.f32.mrb[31].mxu0  ;;  %v928_v61 = vpop.f32.mrb[31].mxu1 }
 0x135   : > { %v773_v62 = vadd.f32 %v1246_v55, %v1641_v50  ;;  %1016 = vst [vmem:[%s1647_s8 + $0x60] sm:$0xff] %v926_v56  ;;  %v1249_v63 = vadd.f32 %v1248_v60, %v1247_v57  ;;  %v929_v0 = vadd.f32 %v928_v61, %v768_v59  ;;  %v837_v59 = vadd.f32 %v1633_v44, %v1641_v50 }
 0x137   : > { %v934_v1 = vadd.f32 %v1334_v51, %v773_v62  ;;  %v776_v2 = vadd.f32 %v1249_v63, %v1641_v50  ;;  %1017 = vst [vmem:[%s1647_s8 + $0x68] sm:$0xff] %v929_v0  ;;  %v829_v62 = vadd.f32 %v1629_v32, %v1641_v50 }
 0x139   : > { %1018 = vst [vmem:[%s1647_s8 + $0x70] sm:$0xff] %v934_v1  ;;  %v937_v3 = vadd.f32 %v1335_v58, %v776_v2  ;;  %v1250_v4 = vpop.f32.mrb[32].mxu0  ;;  %v1338_v5 = vpop.f32.mrb[32].mxu1  ;;  %v840_v2 = vadd.f32 %v1635_v49, %v1641_v50 }
 0x13a   : > { %v1251_v6 = vpop.f32.mrb[33].mxu0  ;;  %v941_v7 = vpop.f32.mrb[33].mxu1 }
 0x13b   : > { %1019 = vst [vmem:[%s1647_s8 + $0x78] sm:$0xff] %v937_v3  ;;  %v1252_v9 = vadd.f32 %v1251_v6, %v1250_v4  ;;  %v1253_v10 = vpop.f32.mrb[34].mxu0  ;;  %v1339_v11 = vpop.f32.mrb[34].mxu1  ;;  %v832_v6 = vadd.f32 %v1631_v37, %v1641_v50 }
 0x13c   : > { %v1254_v12 = vpop.f32.mrb[35].mxu0  ;;  %v944_v14 = vpop.f32.mrb[35].mxu1 }
 0x13d   : > { %v781_v15 = vadd.f32 %v1252_v9, %v1641_v50  ;;  %v1255_v16 = vadd.f32 %v1254_v12, %v1253_v10 }
 0x13f   : > { %v942_v17 = vadd.f32 %v941_v7, %v781_v15  ;;  %v784_v18 = vadd.f32 %v1255_v16, %v1641_v50 }
 0x141   : > { %1020 = vst [vmem:[%s1647_s8 + $0x80] sm:$0xff] %v942_v17  ;;  %v945_v19 = vadd.f32 %v944_v14, %v784_v18  ;;  %v1256_v21 = vpop.f32.mrb[36].mxu0  ;;  %v1683_v22 = vpop.f32.mrb[36].mxu1 }
 0x142   : > { %v1257_v23 = vpop.f32.mrb[37].mxu0  ;;  %v957_v24 = vpop.f32.mrb[37].mxu1 }
 0x143   : > { %1021 = vst [vmem:[%s1647_s8 + $0x88] sm:$0xff] %v945_v19  ;;  %v1258_v26 = vadd.f32 %v1257_v23, %v1256_v21  ;;  %v1259_v27 = vpop.f32.mrb[38].mxu0  ;;  %v1686_v28 = vpop.f32.mrb[38].mxu1 }
 0x144   : > { %v1260_v29 = vpop.f32.mrb[39].mxu0  ;;  %v960_v30 = vpop.f32.mrb[39].mxu1 }
 0x145   : > { %v789_v31 = vadd.f32 %v1258_v26, %v1641_v50  ;;  %v1261_v33 = vadd.f32 %v1260_v29, %v1259_v27 }
 0x147   : > { %v950_v34 = vadd.f32 %v1338_v5, %v789_v31  ;;  %v792_v35 = vadd.f32 %v1261_v33, %v1641_v50 }
 0x149   : > { %1022 = vst [vmem:[%s1647_s8 + $0x90] sm:$0xff] %v950_v34  ;;  %v953_v38 = vadd.f32 %v1339_v11, %v792_v35  ;;  %v1262_v39 = vpop.f32.mrb[40].mxu0  ;;  %v1346_v40 = vpop.f32.mrb[40].mxu1 }
 0x14a   : > { %v982_v42 = vadd.f32 %v1346_v40, %v821_v36  ;;  %v1263_v43 = vpop.f32.mrb[41].mxu0  ;;  %v973_v45 = vpop.f32.mrb[41].mxu1 }
 0x14b   : > { %1023 = vst [vmem:[%s1647_s8 + $0x98] sm:$0xff] %v953_v38  ;;  %v1264_v47 = vadd.f32 %v1263_v43, %v1262_v39  ;;  %v974_v20 = vadd.f32 %v973_v45, %v813_v41  ;;  %v1265_v48 = vpop.f32.mrb[42].mxu0  ;;  %v1347_v51 = vpop.f32.mrb[42].mxu1 }
 0x14c   : > { %1030 = vst [vmem:[%s1647_s8 + $0xd0] sm:$0xff] %v982_v42  ;;  %v985_v8 = vadd.f32 %v1347_v51, %v824_v46  ;;  %v1266_v53 = vpop.f32.mrb[43].mxu0  ;;  %v976_v54 = vpop.f32.mrb[43].mxu1 }
 0x14d   : > { %v797_v55 = vadd.f32 %v1264_v47, %v1641_v50  ;;  %1028 = vst [vmem:[%s1647_s8 + $0xc0] sm:$0xff] %v974_v20  ;;  %v1267_v56 = vadd.f32 %v1266_v53, %v1265_v48  ;;  %v977_v25 = vadd.f32 %v976_v54, %v816_v52 }
 0x14e   : > { %1031 = vst [vmem:[%s1647_s8 + $0xd8] sm:$0xff] %v985_v8 }
 0x14f   : > { %v958_v57 = vadd.f32 %v957_v24, %v797_v55  ;;  %v800_v58 = vadd.f32 %v1267_v56, %v1641_v50  ;;  %1029 = vst [vmem:[%s1647_s8 + $0xc8] sm:$0xff] %v977_v25 }
 0x151   : > { %1024 = vst [vmem:[%s1647_s8 + $0xa0] sm:$0xff] %v958_v57  ;;  %v961_v13 = vadd.f32 %v960_v30, %v800_v58  ;;  %v1268_v60 = vpop.f32.mrb[44].mxu0  ;;  %v1350_v61 = vpop.f32.mrb[44].mxu1 }
 0x152   : > { %v998_v63 = vadd.f32 %v1350_v61, %v837_v59  ;;  %v1269_v0 = vpop.f32.mrb[45].mxu0  ;;  %v989_v1 = vpop.f32.mrb[45].mxu1 }
 0x153   : > { %1025 = vst [vmem:[%s1647_s8 + $0xa8] sm:$0xff] %v961_v13  ;;  %v1270_v3 = vadd.f32 %v1269_v0, %v1268_v60  ;;  %v990_v44 = vadd.f32 %v989_v1, %v829_v62  ;;  %v1271_v4 = vpop.f32.mrb[46].mxu0  ;;  %v1351_v5 = vpop.f32.mrb[46].mxu1 }
 0x154   : > { %1034 = vst [vmem:[%s1647_s8 + $0xf0] sm:$0xff] %v998_v63  ;;  %v1001_v32 = vadd.f32 %v1351_v5, %v840_v2  ;;  %v1272_v7 = vpop.f32.mrb[47].mxu0  ;;  %v992_v9 = vpop.f32.mrb[47].mxu1 }
 0x155   : > { %v805_v10 = vadd.f32 %v1270_v3, %v1641_v50  ;;  %1032 = vst [vmem:[%s1647_s8 + $0xe0] sm:$0xff] %v990_v44  ;;  %v1273_v11 = vadd.f32 %v1272_v7, %v1271_v4  ;;  %v993_v49 = vadd.f32 %v992_v9, %v832_v6 }
 0x156   : > { %1035 = vst [vmem:[%s1647_s8 + $0xf8] sm:$0xff] %v1001_v32 }
 0x157   : > { %v966_v12 = vadd.f32 %v1683_v22, %v805_v10  ;;  %v808_v14 = vadd.f32 %v1273_v11, %v1641_v50  ;;  %1033 = vst [vmem:[%s1647_s8 + $0xe8] sm:$0xff] %v993_v49 }
 0x159   : > { %1026 = vst [vmem:[%s1647_s8 + $0xb0] sm:$0xff] %v966_v12  ;;  %v969_v15 = vadd.f32 %v1686_v28, %v808_v14 }
 0x15b   : > { %1027 = vst [vmem:[%s1647_s8 + $0xb8] sm:$0xff] %v969_v15 }
 0x15c PF: > { %s13_s12 = sadd.s32 1, %s1465_s12  }
 0x15d   : > { %p10_p4 = scmp.ge.s32.totalorder %s13_s12, 4  }
 0x15f   :  { %12 = sbr.rel (!%p10_p4) target bundleno = 1 (0x1), region = 62 }

</bundles_post_ra>
